<compile_context>
chip_gen: v6e
topology: v6e:2x2x1
jax: 0.10.0
libtpu: 0.0.40
codegen_flags: <defaults>
</compile_context>

<pallas_src>
import functools

import jax
import jax.numpy as jnp
from jax.experimental import pallas as pl
from jax.experimental.pallas import tpu as pltpu


# ------------------------- static conv geometry -----------------------------

def conv_taps(D, H, W, k):
    """Flat-index offsets + validity masks for a k^3 'same' conv, stride 1."""
    pad = k // 2
    S = D * H * W
    s = jnp.arange(S, dtype=jnp.int32)
    z = s // (H * W)
    y = (s // W) % H
    x = s % W
    offs, masks = [], []
    for dz in range(k):
        for dy in range(k):
            for dx in range(k):
                oz, oy, ox = dz - pad, dy - pad, dx - pad
                offs.append(oz * H * W + oy * W + ox)
                valid = ((z + oz >= 0) & (z + oz < D) &
                         (y + oy >= 0) & (y + oy < H) &
                         (x + ox >= 0) & (x + ox < W))
                masks.append(valid.astype(jnp.float32))
    P = pad * (H * W + W + 1)                  # max |flat offset|
    return offs, jnp.stack(masks, axis=0), P   # offs: python ints; masks (k^3,S)


# ------------------------------ Pallas kernels -------------------------------

def _make_conv_in_relu_kernel(offs, cin, S, P):
    """Conv3d (via in-VMEM im2col) + bias + InstanceNorm + ReLU, one grid step
    per (batch*time) item.  Used for the non-recurrent U(x) branch."""

    def kernel(x_ref, w_ref, b_ref, g_ref, beta_ref, m_ref, out_ref,
               xp_ref, col_ref):
        # Stage x into a zero-padded flat volume.  Pads are (re)zeroed every
        # step: with a "parallel" grid axis we cannot rely on program_id == 0
        # running on every core.  Cost is a few KB of VMEM stores.
        zpad = jnp.zeros((cin, P), jnp.float32)
        xp_ref[:, :P] = zpad
        xp_ref[:, P + S:] = zpad
        xp_ref[:, P:P + S] = x_ref[0]

        # In-VMEM im2col: k^3 shifted windows, boundary-masked, stacked on the
        # sublane axis of the col scratch.
        for idx, off in enumerate(offs):
            win = xp_ref[:, P + off:P + off + S]
            col_ref[idx * cin:(idx + 1) * cin, :] = win * m_ref[idx:idx + 1, :]

        # Conv as a single GEMM: bf16 operands on the MXU, f32 accumulator.
        acc = jnp.dot(w_ref[...], col_ref[...].astype(jnp.bfloat16),
                      preferred_element_type=jnp.float32)
        acc = acc + b_ref[...]

        # InstanceNorm epilogue (single-pass mean / E[x^2], biased var) +
        # affine + ReLU, all on the VMEM-resident accumulator.
        mean = jnp.mean(acc, axis=1, keepdims=True)
        ex2 = jnp.mean(acc * acc, axis=1, keepdims=True)
        var = ex2 - mean * mean
        y = (acc - mean) * jax.lax.rsqrt(var + 1e-5)
        out_ref[0] = jnp.maximum(y * g_ref[...] + beta_ref[...], 0.0)

    return kernel


def _make_lstm_recurrence_kernel(offs, hid, S, P):
    """Fused recurrent cell: V(h) conv + bias + InstanceNorm + ReLU + LSTM
    gates + state update.  Grid = (B, T); h (padded) and c live in VMEM
    scratch across the whole T axis."""

    def kernel(u_ref, h0_ref, c0_ref, w_ref, b_ref, g_ref, beta_ref, m_ref,
               hseq_ref, clast_ref, hp_ref, c_ref, col_ref):
        t = pl.program_id(1)

        @pl.when(t == 0)
        def _init():
            zpad = jnp.zeros((hid, P), jnp.float32)
            hp_ref[:, :P] = zpad
            hp_ref[:, P + S:] = zpad
            hp_ref[:, P:P + S] = h0_ref[0]
            c_ref[...] = c0_ref[0]

        # V(h_{t-1}): in-VMEM im2col of the VMEM-resident padded h volume.
        for idx, off in enumerate(offs):
            win = hp_ref[:, P + off:P + off + S]
            col_ref[idx * hid:(idx + 1) * hid, :] = win * m_ref[idx:idx + 1, :]

        acc = jnp.dot(w_ref[...], col_ref[...].astype(jnp.bfloat16),
                      preferred_element_type=jnp.float32)
        acc = acc + b_ref[...]
        mean = jnp.mean(acc, axis=1, keepdims=True)
        ex2 = jnp.mean(acc * acc, axis=1, keepdims=True)
        var = ex2 - mean * mean
        v = (acc - mean) * jax.lax.rsqrt(var + 1e-5)
        v = jnp.maximum(v * g_ref[...] + beta_ref[...], 0.0)

        # Gates: rows of (4*hid, S) are [f | i | o | g] blocks (sublane slices,
        # matching torch.split(cell_input, hidden_dim, dim=1) ordering).
        ci = u_ref[0, 0] + v
        f = jax.nn.sigmoid(ci[0 * hid:1 * hid])
        i_g = jax.nn.sigmoid(ci[1 * hid:2 * hid])
        o = jax.nn.sigmoid(ci[2 * hid:3 * hid])
        g = jnp.tanh(ci[3 * hid:4 * hid])

        c_new = f * c_ref[...] + i_g * g
        h_new = o * jnp.tanh(c_new)

        c_ref[...] = c_new
        hp_ref[:, P:P + S] = h_new
        hseq_ref[0, 0] = h_new
        clast_ref[0] = c_new

    return kernel


# ------------------------------ Pallas wrappers ------------------------------

_VMEM_LIMIT = 32 * 1024 * 1024  # fits every generation (v7x physical = 64 MiB)


def conv_in_relu(x, w, b, gamma, beta, masks, offs, S, P):
    """x: (G, Cin, S) -> (G, 4*hid, S).  Conv3d + InstanceNorm + ReLU."""
    G, cin, _ = x.shape
    N, K = w.shape
    kern = _make_conv_in_relu_kernel(offs, cin, S, P)
    return pl.pallas_call(
        kern,
        out_shape=jax.ShapeDtypeStruct((G, N, S), jnp.float32),
        grid_spec=pltpu.PrefetchScalarGridSpec(
            num_scalar_prefetch=0,
            grid=(G,),
            in_specs=[
                pl.BlockSpec((1, cin, S), lambda i: (i, 0, 0)),
                pl.BlockSpec((N, K), lambda i: (0, 0)),      # weights: resident
                pl.BlockSpec((N, 1), lambda i: (0, 0)),
                pl.BlockSpec((N, 1), lambda i: (0, 0)),
                pl.BlockSpec((N, 1), lambda i: (0, 0)),
                pl.BlockSpec((len(offs), S), lambda i: (0, 0)),
            ],
            out_specs=pl.BlockSpec((1, N, S), lambda i: (i, 0, 0)),
            scratch_shapes=[pltpu.VMEM((cin, S + 2 * P), jnp.float32),
                            pltpu.VMEM((K, S), jnp.float32)],
        ),
        compiler_params=pltpu.CompilerParams(
            dimension_semantics=("parallel",),
            vmem_limit_bytes=_VMEM_LIMIT),
    )(x, w, b, gamma, beta, masks)


def lstm_recurrence(u, h0, c0, w, b, gamma, beta, masks, offs, S, P):
    """u: (B, T, 4*hid, S) precomputed U(x); h0, c0: (B, hid, S).
    Returns h sequence (B, T, hid, S) and final c (B, hid, S)."""
    B, T, N, _ = u.shape
    hid = h0.shape[1]
    K = w.shape[1]
    kern = _make_lstm_recurrence_kernel(offs, hid, S, P)
    return pl.pallas_call(
        kern,
        out_shape=(jax.ShapeDtypeStruct((B, T, hid, S), jnp.float32),
                   jax.ShapeDtypeStruct((B, hid, S), jnp.float32)),
        grid_spec=pltpu.PrefetchScalarGridSpec(
            num_scalar_prefetch=0,
            grid=(B, T),
            in_specs=[
                pl.BlockSpec((1, 1, N, S), lambda bb, tt: (bb, tt, 0, 0)),
                pl.BlockSpec((1, hid, S), lambda bb, tt: (bb, 0, 0)),
                pl.BlockSpec((1, hid, S), lambda bb, tt: (bb, 0, 0)),
                pl.BlockSpec((N, K), lambda bb, tt: (0, 0)),   # V weights resident
                pl.BlockSpec((N, 1), lambda bb, tt: (0, 0)),
                pl.BlockSpec((N, 1), lambda bb, tt: (0, 0)),
                pl.BlockSpec((N, 1), lambda bb, tt: (0, 0)),
                pl.BlockSpec((len(offs), S), lambda bb, tt: (0, 0)),
            ],
            out_specs=(pl.BlockSpec((1, 1, hid, S), lambda bb, tt: (bb, tt, 0, 0)),
                       pl.BlockSpec((1, hid, S), lambda bb, tt: (bb, 0, 0))),
            scratch_shapes=[pltpu.VMEM((hid, S + 2 * P), jnp.float32),  # padded h
                            pltpu.VMEM((hid, S), jnp.float32),          # c state
                            pltpu.VMEM((K, S), jnp.float32)],           # im2col
        ),
        compiler_params=pltpu.CompilerParams(
            dimension_semantics=("parallel", "arbitrary"),
            vmem_limit_bytes=_VMEM_LIMIT),
    )(u, h0, c0, w, b, gamma, beta, masks)


# -------------------------------- parameters ---------------------------------

def init_cell_params(key, input_dim, hidden_dim, k):
    """Synthetic init mirroring the torch module (kaiming_normal fan_out)."""
    cout = hidden_dim * 4
    keys = jax.random.split(key, 4)

    def conv_params(kw, kb, cin):
        fan_out = cout * k ** 3
        fan_in = cin * k ** 3
        std = (2.0 / fan_out) ** 0.5
        w = std * jax.random.normal(kw, (cout, cin, k, k, k), jnp.float32)
        bound = 1.0 / (fan_in ** 0.5)
        b = jax.random.uniform(kb, (cout,), jnp.float32, -bound, bound)
        # GEMM layout: rows = cout, cols ordered (dz, dy, dx, cin) — matches the
        # in-kernel col stacking.  Stored bf16 (MXU-native operand dtype).
        w_mat = jnp.transpose(w, (0, 2, 3, 4, 1)).reshape(cout, k ** 3 * cin)
        return w_mat.astype(jnp.bfloat16), b.reshape(cout, 1)

    uw, ub = conv_params(keys[0], keys[1], input_dim)
    vw, vb = conv_params(keys[2], keys[3], hidden_dim)
    ones = jnp.ones((cout, 1), jnp.float32)
    zeros = jnp.zeros((cout, 1), jnp.float32)
    return {'U_w': uw, 'U_b': ub, 'U_gamma': ones, 'U_beta': zeros,
            'V_w': vw, 'V_b': vb, 'V_gamma': ones, 'V_beta': zeros}


# --------------------------------- forward -----------------------------------

def conv_lstm_forward(params_list, x, h0, c0, kernel_sizes,
                      return_sequence=True):
    """Matches ConvLSTM.forward (conv_type='cba').

    x: (B, T, C, D, H, W); h0, c0: (L, B, hidden, D, H, W).
    Returns (out, (h_last, c_last)) with out: (B, T, hidden, D, H, W).
    """
    B, T, C, D, H, W = x.shape
    S = D * H * W
    L = len(params_list)

    cur = x.reshape(B, T, C, S)               # channels on sublanes, S on lanes
    h_cs = h0.reshape(L, B, -1, S)
    c_cs = c0.reshape(L, B, -1, S)

    c_last = None
    for li in range(L):
        offs, masks, P = conv_taps(D, H, W, kernel_sizes[li])
        p = params_list[li]
        cin = cur.shape[2]
        # U(x_t) hoisted out of the recurrence: one batched pass over B*T.
        u = conv_in_relu(cur.reshape(B * T, cin, S),
                         p['U_w'], p['U_b'], p['U_gamma'], p['U_beta'],
                         masks, offs, S, P)
        u = u.reshape(B, T, -1, S)
        # Recurrent V(h) + gates: one pallas_call per layer.
        cur, c_last = lstm_recurrence(u, h_cs[li], c_cs[li],
                                      p['V_w'], p['V_b'],
                                      p['V_gamma'], p['V_beta'],
                                      masks, offs, S, P)

    hid = cur.shape[2]
    out = cur.reshape(B, T, hid, D, H, W)     # torch: stack over layers, [:, -1]
    h_out = out[:, -1]
    c_out = c_last.reshape(B, hid, D, H, W)
    if not return_sequence:
        return out[:, -1], c_out              # torch: last_state_list[-1] == c
    return out, (h_out, c_out)


# ----------------------------- pure-JAX reference ----------------------------

def reference_forward(params_list, x, h0, c0, k):
    """Straightforward lax.conv based reference of the 'cba' ConvLSTM."""
    B, T, C, D, H, W = x.shape
    L = len(params_list)

    def branch(inp, w_mat, b, gamma, beta, cin, cout):
        w = w_mat.astype(jnp.float32).reshape(cout, k, k, k, cin)
        w = jnp.transpose(w, (0, 4, 1, 2, 3))              # (Cout, Cin, k, k, k)
        xq = inp.astype(jnp.bfloat16).astype(jnp.float32)  # match kernel operand
        y = jax.lax.conv_general_dilated(
            xq, w, window_strides=(1, 1, 1),
            padding=[(k // 2, k // 2)] * 3,
            dimension_numbers=("NCDHW", "OIDHW", "NCDHW"),
            precision=jax.lax.Precision.HIGHEST)
        y = y + b.reshape(1, cout, 1, 1, 1)
        mean = y.mean(axis=(2, 3, 4), keepdims=True)
        var = ((y - mean) ** 2).mean(axis=(2, 3, 4), keepdims=True)
        y = (y - mean) * jax.lax.rsqrt(var + 1e-5)
        y = y * gamma.reshape(1, cout, 1, 1, 1) + beta.reshape(1, cout, 1, 1, 1)
        return jnp.maximum(y, 0.0)

    cur = x
    h = c = None
    for li in range(L):
        p = params_list[li]
        cin = cur.shape[2]
        cout = p['U_b'].shape[0]
        hid = cout // 4
        h, c = h0[li], c0[li]
        outs = []
        for t in range(T):
            u = branch(cur[:, t], p['U_w'], p['U_b'], p['U_gamma'], p['U_beta'],
                       cin, cout)
            v = branch(h, p['V_w'], p['V_b'], p['V_gamma'], p['V_beta'],
                       hid, cout)
            ci = u + v
            f = jax.nn.sigmoid(ci[:, 0 * hid:1 * hid])
            i = jax.nn.sigmoid(ci[:, 1 * hid:2 * hid])
            o = jax.nn.sigmoid(ci[:, 2 * hid:3 * hid])
            g = jnp.tanh(ci[:, 3 * hid:4 * hid])
            c = f * c + i * g
            h = o * jnp.tanh(c)
            outs.append(h)
        cur = jnp.stack(outs, axis=1)
    return cur, (h, c)


# ----------------------------------- main ------------------------------------

if __name__ == "__main__":
    key = jax.random.PRNGKey(0)
    B, T, Cin, D, H, W = 2, 3, 4, 4, 8, 8      # S = D*H*W = 256 (lane-dense)
    hidden, k, num_layers = 8, 3, 2

    kp, kx = jax.random.split(key)
    pkeys = jax.random.split(kp, num_layers)
    params_list = []
    for li in range(num_layers):
        cin = Cin if li == 0 else hidden
        params_list.append(init_cell_params(pkeys[li], cin, hidden, k))

    x = jax.random.normal(kx, (B, T, Cin, D, H, W), jnp.float32)
    h0 = jnp.zeros((num_layers, B, hidden, D, H, W), jnp.float32)
    c0 = jnp.zeros((num_layers, B, hidden, D, H, W), jnp.float32)

    fwd = jax.jit(functools.partial(conv_lstm_forward,
                                    kernel_sizes=(k,) * num_layers,
                                    return_sequence=True))
    out, (h_last, c_last) = fwd(params_list, x, h0, c0)
    jax.block_until_ready(out)
    jax.block_until_ready(h_last)
    jax.block_until_ready(c_last)

    assert out.shape == (B, T, hidden, D, H, W)
    assert h_last.shape == (B, hidden, D, H, W)
    assert c_last.shape == (B, hidden, D, H, W)
    assert bool(jnp.all(jnp.isfinite(out)))

    # Numerical check against a pure-JAX reference (same bf16-rounded operands).
    ref = jax.jit(functools.partial(reference_forward, k=k))
    out_ref, (h_ref, c_ref) = ref(params_list, x, h0, c0)
    jax.block_until_ready(out_ref)
    assert float(jnp.max(jnp.abs(out - out_ref))) < 3e-2
    assert float(jnp.max(jnp.abs(c_last - c_ref))) < 5e-2

    print("KERNEL_OK")
</pallas_src>

<mosaic_0001>
module attributes {stable_mosaic.version = 11 : i64} {
  func.func @kernel(%arg0: i32, %arg1: memref<1x4x256xf32, #tpu.memory_space<vmem>>, %arg2: memref<32x108xbf16, #tpu.memory_space<vmem>>, %arg3: memref<32x1xf32, #tpu.memory_space<vmem>>, %arg4: memref<32x1xf32, #tpu.memory_space<vmem>>, %arg5: memref<32x1xf32, #tpu.memory_space<vmem>>, %arg6: memref<27x256xf32, #tpu.memory_space<vmem>>, %arg7: memref<1x32x256xf32, #tpu.memory_space<vmem>>, %arg8: memref<4x402xf32, #tpu.memory_space<vmem>>, %arg9: memref<108x256xf32, #tpu.memory_space<vmem>>) attributes {dimension_semantics = [#tpu.dimension_semantics<parallel>], iteration_bounds = array<i64: 6>, scalar_prefetch = 0 : i64, scratch_operands = 2 : i64, tpu.core_type = #tpu.core_type<tc>, window_params = [{transform_indices = @transform_0, window_bounds = array<i64: 1, 4, 256>}, {pipeline_mode = #tpu.pipeline_mode<synchronous>, transform_indices = @transform_1, window_bounds = array<i64: 32, 108>}, {pipeline_mode = #tpu.pipeline_mode<synchronous>, transform_indices = @transform_2, window_bounds = array<i64: 32, 1>}, {pipeline_mode = #tpu.pipeline_mode<synchronous>, transform_indices = @transform_3, window_bounds = array<i64: 32, 1>}, {pipeline_mode = #tpu.pipeline_mode<synchronous>, transform_indices = @transform_4, window_bounds = array<i64: 32, 1>}, {pipeline_mode = #tpu.pipeline_mode<synchronous>, transform_indices = @transform_5, window_bounds = array<i64: 27, 256>}, {transform_indices = @transform_6, window_bounds = array<i64: 1, 32, 256>}]} {
    %cst = arith.constant 0.000000e+00 : f32
    %0 = vector.broadcast %cst : f32 to vector<4x73xf32>
    %c0 = arith.constant 0 : index
    %c0_0 = arith.constant 0 : index
    %1 = vector.load %arg8[%c0, %c0_0] : memref<4x402xf32, #tpu.memory_space<vmem>>, vector<4x73xf32>
    tpu.vector_store %arg8[%c0, %c0_0], %0 {strides = array<i32>} : memref<4x402xf32, #tpu.memory_space<vmem>>, vector<4x73xf32>,
    %c0_1 = arith.constant 0 : index
    %c329 = arith.constant 329 : index
    %2 = vector.load %arg8[%c0_1, %c329] : memref<4x402xf32, #tpu.memory_space<vmem>>, vector<4x73xf32>
    tpu.vector_store %arg8[%c0_1, %c329], %0 {strides = array<i32>} : memref<4x402xf32, #tpu.memory_space<vmem>>, vector<4x73xf32>,
    %c0_2 = arith.constant 0 : index
    %c0_3 = arith.constant 0 : index
    %c0_4 = arith.constant 0 : index
    %3 = vector.load %arg1[%c0_2, %c0_3, %c0_4] : memref<1x4x256xf32, #tpu.memory_space<vmem>>, vector<1x4x256xf32>
    %4 = vector.shape_cast %3 : vector<1x4x256xf32> to vector<4x256xf32>
    %c0_5 = arith.constant 0 : index
    %c73 = arith.constant 73 : index
    %5 = vector.load %arg8[%c0_5, %c73] : memref<4x402xf32, #tpu.memory_space<vmem>>, vector<4x256xf32>
    tpu.vector_store %arg8[%c0_5, %c73], %4 {strides = array<i32>} : memref<4x402xf32, #tpu.memory_space<vmem>>, vector<4x256xf32>,
    %c0_6 = arith.constant 0 : index
    %c0_7 = arith.constant 0 : index
    %6 = vector.load %arg8[%c0_6, %c0_7] : memref<4x402xf32, #tpu.memory_space<vmem>>, vector<4x256xf32>
    %c0_8 = arith.constant 0 : index
    %c0_9 = arith.constant 0 : index
    %7 = vector.load %arg6[%c0_8, %c0_9] : memref<27x256xf32, #tpu.memory_space<vmem>>, vector<1x256xf32>
    %8 = vector.broadcast %7 : vector<1x256xf32> to vector<4x256xf32>
    %9 = arith.mulf %6, %8 : vector<4x256xf32>
    %c0_10 = arith.constant 0 : index
    %c0_11 = arith.constant 0 : index
    %10 = vector.load %arg9[%c0_10, %c0_11] : memref<108x256xf32, #tpu.memory_space<vmem>>, vector<4x256xf32>
    tpu.vector_store %arg9[%c0_10, %c0_11], %9 {strides = array<i32>} : memref<108x256xf32, #tpu.memory_space<vmem>>, vector<4x256xf32>,
    %c0_12 = arith.constant 0 : index
    %c1 = arith.constant 1 : index
    %11 = vector.load %arg8[%c0_12, %c1] : memref<4x402xf32, #tpu.memory_space<vmem>>, vector<4x256xf32>
    %c1_13 = arith.constant 1 : index
    %c0_14 = arith.constant 0 : index
    %12 = vector.load %arg6[%c1_13, %c0_14] : memref<27x256xf32, #tpu.memory_space<vmem>>, vector<1x256xf32>
    %13 = vector.broadcast %12 : vector<1x256xf32> to vector<4x256xf32>
    %14 = arith.mulf %11, %13 : vector<4x256xf32>
    %c4 = arith.constant 4 : index
    %c0_15 = arith.constant 0 : index
    %15 = vector.load %arg9[%c4, %c0_15] : memref<108x256xf32, #tpu.memory_space<vmem>>, vector<4x256xf32>
    tpu.vector_store %arg9[%c4, %c0_15], %14 {strides = array<i32>} : memref<108x256xf32, #tpu.memory_space<vmem>>, vector<4x256xf32>,
    %c0_16 = arith.constant 0 : index
    %c2 = arith.constant 2 : index
    %16 = vector.load %arg8[%c0_16, %c2] : memref<4x402xf32, #tpu.memory_space<vmem>>, vector<4x256xf32>
    %c2_17 = arith.constant 2 : index
    %c0_18 = arith.constant 0 : index
    %17 = vector.load %arg6[%c2_17, %c0_18] : memref<27x256xf32, #tpu.memory_space<vmem>>, vector<1x256xf32>
    %18 = vector.broadcast %17 : vector<1x256xf32> to vector<4x256xf32>
    %19 = arith.mulf %16, %18 : vector<4x256xf32>
    %c8 = arith.constant 8 : index
    %c0_19 = arith.constant 0 : index
    %20 = vector.load %arg9[%c8, %c0_19] : memref<108x256xf32, #tpu.memory_space<vmem>>, vector<4x256xf32>
    tpu.vector_store %arg9[%c8, %c0_19], %19 {strides = array<i32>} : memref<108x256xf32, #tpu.memory_space<vmem>>, vector<4x256xf32>,
    %c0_20 = arith.constant 0 : index
    %c8_21 = arith.constant 8 : index
    %21 = vector.load %arg8[%c0_20, %c8_21] : memref<4x402xf32, #tpu.memory_space<vmem>>, vector<4x256xf32>
    %c3 = arith.constant 3 : index
    %c0_22 = arith.constant 0 : index
    %22 = vector.load %arg6[%c3, %c0_22] : memref<27x256xf32, #tpu.memory_space<vmem>>, vector<1x256xf32>
    %23 = vector.broadcast %22 : vector<1x256xf32> to vector<4x256xf32>
    %24 = arith.mulf %21, %23 : vector<4x256xf32>
    %c12 = arith.constant 12 : index
    %c0_23 = arith.constant 0 : index
    %25 = vector.load %arg9[%c12, %c0_23] : memref<108x256xf32, #tpu.memory_space<vmem>>, vector<4x256xf32>
    tpu.vector_store %arg9[%c12, %c0_23], %24 {strides = array<i32>} : memref<108x256xf32, #tpu.memory_space<vmem>>, vector<4x256xf32>,
    %c0_24 = arith.constant 0 : index
    %c9 = arith.constant 9 : index
    %26 = vector.load %arg8[%c0_24, %c9] : memref<4x402xf32, #tpu.memory_space<vmem>>, vector<4x256xf32>
    %c4_25 = arith.constant 4 : index
    %c0_26 = arith.constant 0 : index
    %27 = vector.load %arg6[%c4_25, %c0_26] : memref<27x256xf32, #tpu.memory_space<vmem>>, vector<1x256xf32>
    %28 = vector.broadcast %27 : vector<1x256xf32> to vector<4x256xf32>
    %29 = arith.mulf %26, %28 : vector<4x256xf32>
    %c16 = arith.constant 16 : index
    %c0_27 = arith.constant 0 : index
    %30 = vector.load %arg9[%c16, %c0_27] : memref<108x256xf32, #tpu.memory_space<vmem>>, vector<4x256xf32>
    tpu.vector_store %arg9[%c16, %c0_27], %29 {strides = array<i32>} : memref<108x256xf32, #tpu.memory_space<vmem>>, vector<4x256xf32>,
    %c0_28 = arith.constant 0 : index
    %c10 = arith.constant 10 : index
    %31 = vector.load %arg8[%c0_28, %c10] : memref<4x402xf32, #tpu.memory_space<vmem>>, vector<4x256xf32>
    %c5 = arith.constant 5 : index
    %c0_29 = arith.constant 0 : index
    %32 = vector.load %arg6[%c5, %c0_29] : memref<27x256xf32, #tpu.memory_space<vmem>>, vector<1x256xf32>
    %33 = vector.broadcast %32 : vector<1x256xf32> to vector<4x256xf32>
    %34 = arith.mulf %31, %33 : vector<4x256xf32>
    %c20 = arith.constant 20 : index
    %c0_30 = arith.constant 0 : index
    %35 = vector.load %arg9[%c20, %c0_30] : memref<108x256xf32, #tpu.memory_space<vmem>>, vector<4x256xf32>
    tpu.vector_store %arg9[%c20, %c0_30], %34 {strides = array<i32>} : memref<108x256xf32, #tpu.memory_space<vmem>>, vector<4x256xf32>,
    %c0_31 = arith.constant 0 : index
    %c16_32 = arith.constant 16 : index
    %36 = vector.load %arg8[%c0_31, %c16_32] : memref<4x402xf32, #tpu.memory_space<vmem>>, vector<4x256xf32>
    %c6 = arith.constant 6 : index
    %c0_33 = arith.constant 0 : index
    %37 = vector.load %arg6[%c6, %c0_33] : memref<27x256xf32, #tpu.memory_space<vmem>>, vector<1x256xf32>
    %38 = vector.broadcast %37 : vector<1x256xf32> to vector<4x256xf32>
    %39 = arith.mulf %36, %38 : vector<4x256xf32>
    %c24 = arith.constant 24 : index
    %c0_34 = arith.constant 0 : index
    %40 = vector.load %arg9[%c24, %c0_34] : memref<108x256xf32, #tpu.memory_space<vmem>>, vector<4x256xf32>
    tpu.vector_store %arg9[%c24, %c0_34], %39 {strides = array<i32>} : memref<108x256xf32, #tpu.memory_space<vmem>>, vector<4x256xf32>,
    %c0_35 = arith.constant 0 : index
    %c17 = arith.constant 17 : index
    %41 = vector.load %arg8[%c0_35, %c17] : memref<4x402xf32, #tpu.memory_space<vmem>>, vector<4x256xf32>
    %c7 = arith.constant 7 : index
    %c0_36 = arith.constant 0 : index
    %42 = vector.load %arg6[%c7, %c0_36] : memref<27x256xf32, #tpu.memory_space<vmem>>, vector<1x256xf32>
    %43 = vector.broadcast %42 : vector<1x256xf32> to vector<4x256xf32>
    %44 = arith.mulf %41, %43 : vector<4x256xf32>
    %c28 = arith.constant 28 : index
    %c0_37 = arith.constant 0 : index
    %45 = vector.load %arg9[%c28, %c0_37] : memref<108x256xf32, #tpu.memory_space<vmem>>, vector<4x256xf32>
    tpu.vector_store %arg9[%c28, %c0_37], %44 {strides = array<i32>} : memref<108x256xf32, #tpu.memory_space<vmem>>, vector<4x256xf32>,
    %c0_38 = arith.constant 0 : index
    %c18 = arith.constant 18 : index
    %46 = vector.load %arg8[%c0_38, %c18] : memref<4x402xf32, #tpu.memory_space<vmem>>, vector<4x256xf32>
    %c8_39 = arith.constant 8 : index
    %c0_40 = arith.constant 0 : index
    %47 = vector.load %arg6[%c8_39, %c0_40] : memref<27x256xf32, #tpu.memory_space<vmem>>, vector<1x256xf32>
    %48 = vector.broadcast %47 : vector<1x256xf32> to vector<4x256xf32>
    %49 = arith.mulf %46, %48 : vector<4x256xf32>
    %c32 = arith.constant 32 : index
    %c0_41 = arith.constant 0 : index
    %50 = vector.load %arg9[%c32, %c0_41] : memref<108x256xf32, #tpu.memory_space<vmem>>, vector<4x256xf32>
    tpu.vector_store %arg9[%c32, %c0_41], %49 {strides = array<i32>} : memref<108x256xf32, #tpu.memory_space<vmem>>, vector<4x256xf32>,
    %c0_42 = arith.constant 0 : index
    %c64 = arith.constant 64 : index
    %51 = vector.load %arg8[%c0_42, %c64] : memref<4x402xf32, #tpu.memory_space<vmem>>, vector<4x256xf32>
    %c9_43 = arith.constant 9 : index
    %c0_44 = arith.constant 0 : index
    %52 = vector.load %arg6[%c9_43, %c0_44] : memref<27x256xf32, #tpu.memory_space<vmem>>, vector<1x256xf32>
    %53 = vector.broadcast %52 : vector<1x256xf32> to vector<4x256xf32>
    %54 = arith.mulf %51, %53 : vector<4x256xf32>
    %c36 = arith.constant 36 : index
    %c0_45 = arith.constant 0 : index
    %55 = vector.load %arg9[%c36, %c0_45] : memref<108x256xf32, #tpu.memory_space<vmem>>, vector<4x256xf32>
    tpu.vector_store %arg9[%c36, %c0_45], %54 {strides = array<i32>} : memref<108x256xf32, #tpu.memory_space<vmem>>, vector<4x256xf32>,
    %c0_46 = arith.constant 0 : index
    %c65 = arith.constant 65 : index
    %56 = vector.load %arg8[%c0_46, %c65] : memref<4x402xf32, #tpu.memory_space<vmem>>, vector<4x256xf32>
    %c10_47 = arith.constant 10 : index
    %c0_48 = arith.constant 0 : index
    %57 = vector.load %arg6[%c10_47, %c0_48] : memref<27x256xf32, #tpu.memory_space<vmem>>, vector<1x256xf32>
    %58 = vector.broadcast %57 : vector<1x256xf32> to vector<4x256xf32>
    %59 = arith.mulf %56, %58 : vector<4x256xf32>
    %c40 = arith.constant 40 : index
    %c0_49 = arith.constant 0 : index
    %60 = vector.load %arg9[%c40, %c0_49] : memref<108x256xf32, #tpu.memory_space<vmem>>, vector<4x256xf32>
    tpu.vector_store %arg9[%c40, %c0_49], %59 {strides = array<i32>} : memref<108x256xf32, #tpu.memory_space<vmem>>, vector<4x256xf32>,
    %c0_50 = arith.constant 0 : index
    %c66 = arith.constant 66 : index
    %61 = vector.load %arg8[%c0_50, %c66] : memref<4x402xf32, #tpu.memory_space<vmem>>, vector<4x256xf32>
    %c11 = arith.constant 11 : index
    %c0_51 = arith.constant 0 : index
    %62 = vector.load %arg6[%c11, %c0_51] : memref<27x256xf32, #tpu.memory_space<vmem>>, vector<1x256xf32>
    %63 = vector.broadcast %62 : vector<1x256xf32> to vector<4x256xf32>
    %64 = arith.mulf %61, %63 : vector<4x256xf32>
    %c44 = arith.constant 44 : index
    %c0_52 = arith.constant 0 : index
    %65 = vector.load %arg9[%c44, %c0_52] : memref<108x256xf32, #tpu.memory_space<vmem>>, vector<4x256xf32>
    tpu.vector_store %arg9[%c44, %c0_52], %64 {strides = array<i32>} : memref<108x256xf32, #tpu.memory_space<vmem>>, vector<4x256xf32>,
    %c0_53 = arith.constant 0 : index
    %c72 = arith.constant 72 : index
    %66 = vector.load %arg8[%c0_53, %c72] : memref<4x402xf32, #tpu.memory_space<vmem>>, vector<4x256xf32>
    %c12_54 = arith.constant 12 : index
    %c0_55 = arith.constant 0 : index
    %67 = vector.load %arg6[%c12_54, %c0_55] : memref<27x256xf32, #tpu.memory_space<vmem>>, vector<1x256xf32>
    %68 = vector.broadcast %67 : vector<1x256xf32> to vector<4x256xf32>
    %69 = arith.mulf %66, %68 : vector<4x256xf32>
    %c48 = arith.constant 48 : index
    %c0_56 = arith.constant 0 : index
    %70 = vector.load %arg9[%c48, %c0_56] : memref<108x256xf32, #tpu.memory_space<vmem>>, vector<4x256xf32>
    tpu.vector_store %arg9[%c48, %c0_56], %69 {strides = array<i32>} : memref<108x256xf32, #tpu.memory_space<vmem>>, vector<4x256xf32>,
    %c0_57 = arith.constant 0 : index
    %c73_58 = arith.constant 73 : index
    %71 = vector.load %arg8[%c0_57, %c73_58] : memref<4x402xf32, #tpu.memory_space<vmem>>, vector<4x256xf32>
    %c13 = arith.constant 13 : index
    %c0_59 = arith.constant 0 : index
    %72 = vector.load %arg6[%c13, %c0_59] : memref<27x256xf32, #tpu.memory_space<vmem>>, vector<1x256xf32>
    %73 = vector.broadcast %72 : vector<1x256xf32> to vector<4x256xf32>
    %74 = arith.mulf %71, %73 : vector<4x256xf32>
    %c52 = arith.constant 52 : index
    %c0_60 = arith.constant 0 : index
    %75 = vector.load %arg9[%c52, %c0_60] : memref<108x256xf32, #tpu.memory_space<vmem>>, vector<4x256xf32>
    tpu.vector_store %arg9[%c52, %c0_60], %74 {strides = array<i32>} : memref<108x256xf32, #tpu.memory_space<vmem>>, vector<4x256xf32>,
    %c0_61 = arith.constant 0 : index
    %c74 = arith.constant 74 : index
    %76 = vector.load %arg8[%c0_61, %c74] : memref<4x402xf32, #tpu.memory_space<vmem>>, vector<4x256xf32>
    %c14 = arith.constant 14 : index
    %c0_62 = arith.constant 0 : index
    %77 = vector.load %arg6[%c14, %c0_62] : memref<27x256xf32, #tpu.memory_space<vmem>>, vector<1x256xf32>
    %78 = vector.broadcast %77 : vector<1x256xf32> to vector<4x256xf32>
    %79 = arith.mulf %76, %78 : vector<4x256xf32>
    %c56 = arith.constant 56 : index
    %c0_63 = arith.constant 0 : index
    %80 = vector.load %arg9[%c56, %c0_63] : memref<108x256xf32, #tpu.memory_space<vmem>>, vector<4x256xf32>
    tpu.vector_store %arg9[%c56, %c0_63], %79 {strides = array<i32>} : memref<108x256xf32, #tpu.memory_space<vmem>>, vector<4x256xf32>,
    %c0_64 = arith.constant 0 : index
    %c80 = arith.constant 80 : index
    %81 = vector.load %arg8[%c0_64, %c80] : memref<4x402xf32, #tpu.memory_space<vmem>>, vector<4x256xf32>
    %c15 = arith.constant 15 : index
    %c0_65 = arith.constant 0 : index
    %82 = vector.load %arg6[%c15, %c0_65] : memref<27x256xf32, #tpu.memory_space<vmem>>, vector<1x256xf32>
    %83 = vector.broadcast %82 : vector<1x256xf32> to vector<4x256xf32>
    %84 = arith.mulf %81, %83 : vector<4x256xf32>
    %c60 = arith.constant 60 : index
    %c0_66 = arith.constant 0 : index
    %85 = vector.load %arg9[%c60, %c0_66] : memref<108x256xf32, #tpu.memory_space<vmem>>, vector<4x256xf32>
    tpu.vector_store %arg9[%c60, %c0_66], %84 {strides = array<i32>} : memref<108x256xf32, #tpu.memory_space<vmem>>, vector<4x256xf32>,
    %c0_67 = arith.constant 0 : index
    %c81 = arith.constant 81 : index
    %86 = vector.load %arg8[%c0_67, %c81] : memref<4x402xf32, #tpu.memory_space<vmem>>, vector<4x256xf32>
    %c16_68 = arith.constant 16 : index
    %c0_69 = arith.constant 0 : index
    %87 = vector.load %arg6[%c16_68, %c0_69] : memref<27x256xf32, #tpu.memory_space<vmem>>, vector<1x256xf32>
    %88 = vector.broadcast %87 : vector<1x256xf32> to vector<4x256xf32>
    %89 = arith.mulf %86, %88 : vector<4x256xf32>
    %c64_70 = arith.constant 64 : index
    %c0_71 = arith.constant 0 : index
    %90 = vector.load %arg9[%c64_70, %c0_71] : memref<108x256xf32, #tpu.memory_space<vmem>>, vector<4x256xf32>
    tpu.vector_store %arg9[%c64_70, %c0_71], %89 {strides = array<i32>} : memref<108x256xf32, #tpu.memory_space<vmem>>, vector<4x256xf32>,
    %c0_72 = arith.constant 0 : index
    %c82 = arith.constant 82 : index
    %91 = vector.load %arg8[%c0_72, %c82] : memref<4x402xf32, #tpu.memory_space<vmem>>, vector<4x256xf32>
    %c17_73 = arith.constant 17 : index
    %c0_74 = arith.constant 0 : index
    %92 = vector.load %arg6[%c17_73, %c0_74] : memref<27x256xf32, #tpu.memory_space<vmem>>, vector<1x256xf32>
    %93 = vector.broadcast %92 : vector<1x256xf32> to vector<4x256xf32>
    %94 = arith.mulf %91, %93 : vector<4x256xf32>
    %c68 = arith.constant 68 : index
    %c0_75 = arith.constant 0 : index
    %95 = vector.load %arg9[%c68, %c0_75] : memref<108x256xf32, #tpu.memory_space<vmem>>, vector<4x256xf32>
    tpu.vector_store %arg9[%c68, %c0_75], %94 {strides = array<i32>} : memref<108x256xf32, #tpu.memory_space<vmem>>, vector<4x256xf32>,
    %c0_76 = arith.constant 0 : index
    %c128 = arith.constant 128 : index
    %96 = vector.load %arg8[%c0_76, %c128] : memref<4x402xf32, #tpu.memory_space<vmem>>, vector<4x256xf32>
    %c18_77 = arith.constant 18 : index
    %c0_78 = arith.constant 0 : index
    %97 = vector.load %arg6[%c18_77, %c0_78] : memref<27x256xf32, #tpu.memory_space<vmem>>, vector<1x256xf32>
    %98 = vector.broadcast %97 : vector<1x256xf32> to vector<4x256xf32>
    %99 = arith.mulf %96, %98 : vector<4x256xf32>
    %c72_79 = arith.constant 72 : index
    %c0_80 = arith.constant 0 : index
    %100 = vector.load %arg9[%c72_79, %c0_80] : memref<108x256xf32, #tpu.memory_space<vmem>>, vector<4x256xf32>
    tpu.vector_store %arg9[%c72_79, %c0_80], %99 {strides = array<i32>} : memref<108x256xf32, #tpu.memory_space<vmem>>, vector<4x256xf32>,
    %c0_81 = arith.constant 0 : index
    %c129 = arith.constant 129 : index
    %101 = vector.load %arg8[%c0_81, %c129] : memref<4x402xf32, #tpu.memory_space<vmem>>, vector<4x256xf32>
    %c19 = arith.constant 19 : index
    %c0_82 = arith.constant 0 : index
    %102 = vector.load %arg6[%c19, %c0_82] : memref<27x256xf32, #tpu.memory_space<vmem>>, vector<1x256xf32>
    %103 = vector.broadcast %102 : vector<1x256xf32> to vector<4x256xf32>
    %104 = arith.mulf %101, %103 : vector<4x256xf32>
    %c76 = arith.constant 76 : index
    %c0_83 = arith.constant 0 : index
    %105 = vector.load %arg9[%c76, %c0_83] : memref<108x256xf32, #tpu.memory_space<vmem>>, vector<4x256xf32>
    tpu.vector_store %arg9[%c76, %c0_83], %104 {strides = array<i32>} : memref<108x256xf32, #tpu.memory_space<vmem>>, vector<4x256xf32>,
    %c0_84 = arith.constant 0 : index
    %c130 = arith.constant 130 : index
    %106 = vector.load %arg8[%c0_84, %c130] : memref<4x402xf32, #tpu.memory_space<vmem>>, vector<4x256xf32>
    %c20_85 = arith.constant 20 : index
    %c0_86 = arith.constant 0 : index
    %107 = vector.load %arg6[%c20_85, %c0_86] : memref<27x256xf32, #tpu.memory_space<vmem>>, vector<1x256xf32>
    %108 = vector.broadcast %107 : vector<1x256xf32> to vector<4x256xf32>
    %109 = arith.mulf %106, %108 : vector<4x256xf32>
    %c80_87 = arith.constant 80 : index
    %c0_88 = arith.constant 0 : index
    %110 = vector.load %arg9[%c80_87, %c0_88] : memref<108x256xf32, #tpu.memory_space<vmem>>, vector<4x256xf32>
    tpu.vector_store %arg9[%c80_87, %c0_88], %109 {strides = array<i32>} : memref<108x256xf32, #tpu.memory_space<vmem>>, vector<4x256xf32>,
    %c0_89 = arith.constant 0 : index
    %c136 = arith.constant 136 : index
    %111 = vector.load %arg8[%c0_89, %c136] : memref<4x402xf32, #tpu.memory_space<vmem>>, vector<4x256xf32>
    %c21 = arith.constant 21 : index
    %c0_90 = arith.constant 0 : index
    %112 = vector.load %arg6[%c21, %c0_90] : memref<27x256xf32, #tpu.memory_space<vmem>>, vector<1x256xf32>
    %113 = vector.broadcast %112 : vector<1x256xf32> to vector<4x256xf32>
    %114 = arith.mulf %111, %113 : vector<4x256xf32>
    %c84 = arith.constant 84 : index
    %c0_91 = arith.constant 0 : index
    %115 = vector.load %arg9[%c84, %c0_91] : memref<108x256xf32, #tpu.memory_space<vmem>>, vector<4x256xf32>
    tpu.vector_store %arg9[%c84, %c0_91], %114 {strides = array<i32>} : memref<108x256xf32, #tpu.memory_space<vmem>>, vector<4x256xf32>,
    %c0_92 = arith.constant 0 : index
    %c137 = arith.constant 137 : index
    %116 = vector.load %arg8[%c0_92, %c137] : memref<4x402xf32, #tpu.memory_space<vmem>>, vector<4x256xf32>
    %c22 = arith.constant 22 : index
    %c0_93 = arith.constant 0 : index
    %117 = vector.load %arg6[%c22, %c0_93] : memref<27x256xf32, #tpu.memory_space<vmem>>, vector<1x256xf32>
    %118 = vector.broadcast %117 : vector<1x256xf32> to vector<4x256xf32>
    %119 = arith.mulf %116, %118 : vector<4x256xf32>
    %c88 = arith.constant 88 : index
    %c0_94 = arith.constant 0 : index
    %120 = vector.load %arg9[%c88, %c0_94] : memref<108x256xf32, #tpu.memory_space<vmem>>, vector<4x256xf32>
    tpu.vector_store %arg9[%c88, %c0_94], %119 {strides = array<i32>} : memref<108x256xf32, #tpu.memory_space<vmem>>, vector<4x256xf32>,
    %c0_95 = arith.constant 0 : index
    %c138 = arith.constant 138 : index
    %121 = vector.load %arg8[%c0_95, %c138] : memref<4x402xf32, #tpu.memory_space<vmem>>, vector<4x256xf32>
    %c23 = arith.constant 23 : index
    %c0_96 = arith.constant 0 : index
    %122 = vector.load %arg6[%c23, %c0_96] : memref<27x256xf32, #tpu.memory_space<vmem>>, vector<1x256xf32>
    %123 = vector.broadcast %122 : vector<1x256xf32> to vector<4x256xf32>
    %124 = arith.mulf %121, %123 : vector<4x256xf32>
    %c92 = arith.constant 92 : index
    %c0_97 = arith.constant 0 : index
    %125 = vector.load %arg9[%c92, %c0_97] : memref<108x256xf32, #tpu.memory_space<vmem>>, vector<4x256xf32>
    tpu.vector_store %arg9[%c92, %c0_97], %124 {strides = array<i32>} : memref<108x256xf32, #tpu.memory_space<vmem>>, vector<4x256xf32>,
    %c0_98 = arith.constant 0 : index
    %c144 = arith.constant 144 : index
    %126 = vector.load %arg8[%c0_98, %c144] : memref<4x402xf32, #tpu.memory_space<vmem>>, vector<4x256xf32>
    %c24_99 = arith.constant 24 : index
    %c0_100 = arith.constant 0 : index
    %127 = vector.load %arg6[%c24_99, %c0_100] : memref<27x256xf32, #tpu.memory_space<vmem>>, vector<1x256xf32>
    %128 = vector.broadcast %127 : vector<1x256xf32> to vector<4x256xf32>
    %129 = arith.mulf %126, %128 : vector<4x256xf32>
    %c96 = arith.constant 96 : index
    %c0_101 = arith.constant 0 : index
    %130 = vector.load %arg9[%c96, %c0_101] : memref<108x256xf32, #tpu.memory_space<vmem>>, vector<4x256xf32>
    tpu.vector_store %arg9[%c96, %c0_101], %129 {strides = array<i32>} : memref<108x256xf32, #tpu.memory_space<vmem>>, vector<4x256xf32>,
    %c0_102 = arith.constant 0 : index
    %c145 = arith.constant 145 : index
    %131 = vector.load %arg8[%c0_102, %c145] : memref<4x402xf32, #tpu.memory_space<vmem>>, vector<4x256xf32>
    %c25 = arith.constant 25 : index
    %c0_103 = arith.constant 0 : index
    %132 = vector.load %arg6[%c25, %c0_103] : memref<27x256xf32, #tpu.memory_space<vmem>>, vector<1x256xf32>
    %133 = vector.broadcast %132 : vector<1x256xf32> to vector<4x256xf32>
    %134 = arith.mulf %131, %133 : vector<4x256xf32>
    %c100 = arith.constant 100 : index
    %c0_104 = arith.constant 0 : index
    %135 = vector.load %arg9[%c100, %c0_104] : memref<108x256xf32, #tpu.memory_space<vmem>>, vector<4x256xf32>
    tpu.vector_store %arg9[%c100, %c0_104], %134 {strides = array<i32>} : memref<108x256xf32, #tpu.memory_space<vmem>>, vector<4x256xf32>,
    %c0_105 = arith.constant 0 : index
    %c146 = arith.constant 146 : index
    %136 = vector.load %arg8[%c0_105, %c146] : memref<4x402xf32, #tpu.memory_space<vmem>>, vector<4x256xf32>
    %c26 = arith.constant 26 : index
    %c0_106 = arith.constant 0 : index
    %137 = vector.load %arg6[%c26, %c0_106] : memref<27x256xf32, #tpu.memory_space<vmem>>, vector<1x256xf32>
    %138 = vector.broadcast %137 : vector<1x256xf32> to vector<4x256xf32>
    %139 = arith.mulf %136, %138 : vector<4x256xf32>
    %c104 = arith.constant 104 : index
    %c0_107 = arith.constant 0 : index
    %140 = vector.load %arg9[%c104, %c0_107] : memref<108x256xf32, #tpu.memory_space<vmem>>, vector<4x256xf32>
    tpu.vector_store %arg9[%c104, %c0_107], %139 {strides = array<i32>} : memref<108x256xf32, #tpu.memory_space<vmem>>, vector<4x256xf32>,
    %c0_108 = arith.constant 0 : index
    %c0_109 = arith.constant 0 : index
    %141 = vector.load %arg2[%c0_108, %c0_109] : memref<32x108xbf16, #tpu.memory_space<vmem>>, vector<32x108xbf16>
    %c0_110 = arith.constant 0 : index
    %c0_111 = arith.constant 0 : index
    %142 = vector.load %arg9[%c0_110, %c0_111] : memref<108x256xf32, #tpu.memory_space<vmem>>, vector<108x256xf32>
    %143 = arith.truncf %142 : vector<108x256xf32> to vector<108x256xbf16>
    %cst_112 = arith.constant dense<0.000000e+00> : vector<32x256xf32>
    %144 = tpu.matmul %141, %143, %cst_112 {dimension_numbers = #tpu.dot_dimension_numbers<[1], [0], [0], [1], [0, 0, 1, 1], [], []>} : vector<32x108xbf16>, vector<108x256xbf16>, vector<32x256xf32> -> vector<32x256xf32>
    %c0_113 = arith.constant 0 : index
    %c0_114 = arith.constant 0 : index
    %145 = vector.load %arg3[%c0_113, %c0_114] : memref<32x1xf32, #tpu.memory_space<vmem>>, vector<32x1xf32>
    %146 = vector.broadcast %145 : vector<32x1xf32> to vector<32x256xf32>
    %147 = arith.addf %144, %146 : vector<32x256xf32>
    %cst_115 = arith.constant dense<0.000000e+00> : vector<32xf32>
    %148 = vector.multi_reduction <add>, %147, %cst_115 [1] : vector<32x256xf32> to vector<32xf32>
    %149 = vector.shape_cast %148 : vector<32xf32> to vector<32x1xf32>
    %cst_116 = arith.constant 2.560000e+02 : f32
    %150 = vector.broadcast %cst_116 : f32 to vector<32x1xf32>
    %151 = arith.divf %149, %150 : vector<32x1xf32>
    %152 = arith.mulf %147, %147 : vector<32x256xf32>
    %cst_117 = arith.constant dense<0.000000e+00> : vector<32xf32>
    %153 = vector.multi_reduction <add>, %152, %cst_117 [1] : vector<32x256xf32> to vector<32xf32>
    %154 = vector.shape_cast %153 : vector<32xf32> to vector<32x1xf32>
    %cst_118 = arith.constant 2.560000e+02 : f32
    %155 = vector.broadcast %cst_118 : f32 to vector<32x1xf32>
    %156 = arith.divf %154, %155 : vector<32x1xf32>
    %157 = arith.mulf %151, %151 : vector<32x1xf32>
    %158 = arith.subf %156, %157 : vector<32x1xf32>
    %159 = vector.broadcast %151 : vector<32x1xf32> to vector<32x256xf32>
    %160 = arith.subf %147, %159 : vector<32x256xf32>
    %cst_119 = arith.constant 9.99999974E-6 : f32
    %161 = vector.broadcast %cst_119 : f32 to vector<32x1xf32>
    %162 = arith.addf %158, %161 : vector<32x1xf32>
    %163 = math.rsqrt %162 : vector<32x1xf32>
    %164 = vector.broadcast %163 : vector<32x1xf32> to vector<32x256xf32>
    %165 = arith.mulf %160, %164 : vector<32x256xf32>
    %c0_120 = arith.constant 0 : index
    %c0_121 = arith.constant 0 : index
    %166 = vector.load %arg4[%c0_120, %c0_121] : memref<32x1xf32, #tpu.memory_space<vmem>>, vector<32x1xf32>
    %167 = vector.broadcast %166 : vector<32x1xf32> to vector<32x256xf32>
    %168 = arith.mulf %165, %167 : vector<32x256xf32>
    %c0_122 = arith.constant 0 : index
    %c0_123 = arith.constant 0 : index
    %169 = vector.load %arg5[%c0_122, %c0_123] : memref<32x1xf32, #tpu.memory_space<vmem>>, vector<32x1xf32>
    %170 = vector.broadcast %169 : vector<32x1xf32> to vector<32x256xf32>
    %171 = arith.addf %168, %170 : vector<32x256xf32>
    %cst_124 = arith.constant 0.000000e+00 : f32
    %172 = vector.broadcast %cst_124 : f32 to vector<32x256xf32>
    %173 = arith.maximumf %171, %172 : vector<32x256xf32>
    %c0_125 = arith.constant 0 : index
    %c0_126 = arith.constant 0 : index
    %c0_127 = arith.constant 0 : index
    %174 = vector.load %arg7[%c0_125, %c0_126, %c0_127] : memref<1x32x256xf32, #tpu.memory_space<vmem>>, vector<1x32x256xf32>
    %175 = vector.shape_cast %174 : vector<1x32x256xf32> to vector<32x256xf32>
    %176 = vector.shape_cast %173 : vector<32x256xf32> to vector<1x32x256xf32>
    tpu.vector_store %arg7[%c0_125, %c0_126, %c0_127], %176 {strides = array<i32>} : memref<1x32x256xf32, #tpu.memory_space<vmem>>, vector<1x32x256xf32>,
    return
  }
  func.func @transform_0(%arg0: i32) -> (i32, i32, i32) {
    %c0_i32 = arith.constant 0 : i32
    %c0_i32_0 = arith.constant 0 : i32
    %c0_i32_1 = arith.constant 0 : i32
    return %arg0, %c0_i32, %c0_i32_0 : i32, i32, i32
  }
  func.func @transform_1(%arg0: i32) -> (i32, i32) {
    %c0_i32 = arith.constant 0 : i32
    %c0_i32_0 = arith.constant 0 : i32
    %c0_i32_1 = arith.constant 0 : i32
    return %c0_i32, %c0_i32_0 : i32, i32
  }
  func.func @transform_2(%arg0: i32) -> (i32, i32) {
    %c0_i32 = arith.constant 0 : i32
    %c0_i32_0 = arith.constant 0 : i32
    %c0_i32_1 = arith.constant 0 : i32
    return %c0_i32, %c0_i32_0 : i32, i32
  }
  func.func @transform_3(%arg0: i32) -> (i32, i32) {
    %c0_i32 = arith.constant 0 : i32
    %c0_i32_0 = arith.constant 0 : i32
    %c0_i32_1 = arith.constant 0 : i32
    return %c0_i32, %c0_i32_0 : i32, i32
  }
  func.func @transform_4(%arg0: i32) -> (i32, i32) {
    %c0_i32 = arith.constant 0 : i32
    %c0_i32_0 = arith.constant 0 : i32
    %c0_i32_1 = arith.constant 0 : i32
    return %c0_i32, %c0_i32_0 : i32, i32
  }
  func.func @transform_5(%arg0: i32) -> (i32, i32) {
    %c0_i32 = arith.constant 0 : i32
    %c0_i32_0 = arith.constant 0 : i32
    %c0_i32_1 = arith.constant 0 : i32
    return %c0_i32, %c0_i32_0 : i32, i32
  }
  func.func @transform_6(%arg0: i32) -> (i32, i32, i32) {
    %c0_i32 = arith.constant 0 : i32
    %c0_i32_0 = arith.constant 0 : i32
    %c0_i32_1 = arith.constant 0 : i32
    return %arg0, %c0_i32, %c0_i32_0 : i32, i32, i32
  }
}

module attributes {stable_mosaic.version = 11 : i64} {
  func.func @kernel(%arg0: i32, %arg1: i32, %arg2: memref<1x1x32x256xf32, #tpu.memory_space<vmem>>, %arg3: memref<1x8x256xf32, #tpu.memory_space<vmem>>, %arg4: memref<1x8x256xf32, #tpu.memory_space<vmem>>, %arg5: memref<32x216xbf16, #tpu.memory_space<vmem>>, %arg6: memref<32x1xf32, #tpu.memory_space<vmem>>, %arg7: memref<32x1xf32, #tpu.memory_space<vmem>>, %arg8: memref<32x1xf32, #tpu.memory_space<vmem>>, %arg9: memref<27x256xf32, #tpu.memory_space<vmem>>, %arg10: memref<1x1x8x256xf32, #tpu.memory_space<vmem>>, %arg11: memref<1x8x256xf32, #tpu.memory_space<vmem>>, %arg12: memref<8x402xf32, #tpu.memory_space<vmem>>, %arg13: memref<8x256xf32, #tpu.memory_space<vmem>>, %arg14: memref<216x256xf32, #tpu.memory_space<vmem>>) attributes {dimension_semantics = [#tpu.dimension_semantics<parallel>, #tpu.dimension_semantics<arbitrary>], iteration_bounds = array<i64: 2, 3>, scalar_prefetch = 0 : i64, scratch_operands = 3 : i64, tpu.core_type = #tpu.core_type<tc>, window_params = [{transform_indices = @transform_0, window_bounds = array<i64: 1, 1, 32, 256>}, {transform_indices = @transform_1, window_bounds = array<i64: 1, 8, 256>}, {transform_indices = @transform_2, window_bounds = array<i64: 1, 8, 256>}, {pipeline_mode = #tpu.pipeline_mode<synchronous>, transform_indices = @transform_3, window_bounds = array<i64: 32, 216>}, {pipeline_mode = #tpu.pipeline_mode<synchronous>, transform_indices = @transform_4, window_bounds = array<i64: 32, 1>}, {pipeline_mode = #tpu.pipeline_mode<synchronous>, transform_indices = @transform_5, window_bounds = array<i64: 32, 1>}, {pipeline_mode = #tpu.pipeline_mode<synchronous>, transform_indices = @transform_6, window_bounds = array<i64: 32, 1>}, {pipeline_mode = #tpu.pipeline_mode<synchronous>, transform_indices = @transform_7, window_bounds = array<i64: 27, 256>}, {transform_indices = @transform_8, window_bounds = array<i64: 1, 1, 8, 256>}, {transform_indices = @transform_9, window_bounds = array<i64: 1, 8, 256>}]} {
    %c0_i32 = arith.constant 0 : i32
    %0 = arith.cmpi eq, %arg1, %c0_i32 : i32
    %1 = arith.extui %0 : i1 to i32
    %c0_i32_0 = arith.constant 0 : i32
    %2 = arith.cmpi ne, %1, %c0_i32_0 : i32
    scf.if %2 {
      %cst_137 = arith.constant 0.000000e+00 : f32
      %208 = vector.broadcast %cst_137 : f32 to vector<8x73xf32>
      %c0_138 = arith.constant 0 : index
      %c0_139 = arith.constant 0 : index
      %209 = vector.load %arg12[%c0_138, %c0_139] : memref<8x402xf32, #tpu.memory_space<vmem>>, vector<8x73xf32>
      tpu.vector_store %arg12[%c0_138, %c0_139], %208 {strides = array<i32>} : memref<8x402xf32, #tpu.memory_space<vmem>>, vector<8x73xf32>,
      %c0_140 = arith.constant 0 : index
      %c329 = arith.constant 329 : index
      %210 = vector.load %arg12[%c0_140, %c329] : memref<8x402xf32, #tpu.memory_space<vmem>>, vector<8x73xf32>
      tpu.vector_store %arg12[%c0_140, %c329], %208 {strides = array<i32>} : memref<8x402xf32, #tpu.memory_space<vmem>>, vector<8x73xf32>,
      %c0_141 = arith.constant 0 : index
      %c0_142 = arith.constant 0 : index
      %c0_143 = arith.constant 0 : index
      %211 = vector.load %arg3[%c0_141, %c0_142, %c0_143] : memref<1x8x256xf32, #tpu.memory_space<vmem>>, vector<1x8x256xf32>
      %212 = vector.shape_cast %211 : vector<1x8x256xf32> to vector<8x256xf32>
      %c0_144 = arith.constant 0 : index
      %c73_145 = arith.constant 73 : index
      %213 = vector.load %arg12[%c0_144, %c73_145] : memref<8x402xf32, #tpu.memory_space<vmem>>, vector<8x256xf32>
      tpu.vector_store %arg12[%c0_144, %c73_145], %212 {strides = array<i32>} : memref<8x402xf32, #tpu.memory_space<vmem>>, vector<8x256xf32>,
      %c0_146 = arith.constant 0 : index
      %c0_147 = arith.constant 0 : index
      %c0_148 = arith.constant 0 : index
      %214 = vector.load %arg4[%c0_146, %c0_147, %c0_148] : memref<1x8x256xf32, #tpu.memory_space<vmem>>, vector<1x8x256xf32>
      %215 = vector.shape_cast %214 : vector<1x8x256xf32> to vector<8x256xf32>
      %c0_149 = arith.constant 0 : index
      %c0_150 = arith.constant 0 : index
      %216 = vector.load %arg13[%c0_149, %c0_150] : memref<8x256xf32, #tpu.memory_space<vmem>>, vector<8x256xf32>
      tpu.vector_store %arg13[%c0_149, %c0_150], %215 {strides = array<i32>} : memref<8x256xf32, #tpu.memory_space<vmem>>, vector<8x256xf32>,
    } else {
    }
    %c0 = arith.constant 0 : index
    %c0_1 = arith.constant 0 : index
    %3 = vector.load %arg12[%c0, %c0_1] : memref<8x402xf32, #tpu.memory_space<vmem>>, vector<8x256xf32>
    %c0_2 = arith.constant 0 : index
    %c0_3 = arith.constant 0 : index
    %4 = vector.load %arg9[%c0_2, %c0_3] : memref<27x256xf32, #tpu.memory_space<vmem>>, vector<1x256xf32>
    %5 = vector.broadcast %4 : vector<1x256xf32> to vector<8x256xf32>
    %6 = arith.mulf %3, %5 : vector<8x256xf32>
    %c0_4 = arith.constant 0 : index
    %c0_5 = arith.constant 0 : index
    %7 = vector.load %arg14[%c0_4, %c0_5] : memref<216x256xf32, #tpu.memory_space<vmem>>, vector<8x256xf32>
    tpu.vector_store %arg14[%c0_4, %c0_5], %6 {strides = array<i32>} : memref<216x256xf32, #tpu.memory_space<vmem>>, vector<8x256xf32>,
    %c0_6 = arith.constant 0 : index
    %c1 = arith.constant 1 : index
    %8 = vector.load %arg12[%c0_6, %c1] : memref<8x402xf32, #tpu.memory_space<vmem>>, vector<8x256xf32>
    %c1_7 = arith.constant 1 : index
    %c0_8 = arith.constant 0 : index
    %9 = vector.load %arg9[%c1_7, %c0_8] : memref<27x256xf32, #tpu.memory_space<vmem>>, vector<1x256xf32>
    %10 = vector.broadcast %9 : vector<1x256xf32> to vector<8x256xf32>
    %11 = arith.mulf %8, %10 : vector<8x256xf32>
    %c8 = arith.constant 8 : index
    %c0_9 = arith.constant 0 : index
    %12 = vector.load %arg14[%c8, %c0_9] : memref<216x256xf32, #tpu.memory_space<vmem>>, vector<8x256xf32>
    tpu.vector_store %arg14[%c8, %c0_9], %11 {strides = array<i32>} : memref<216x256xf32, #tpu.memory_space<vmem>>, vector<8x256xf32>,
    %c0_10 = arith.constant 0 : index
    %c2 = arith.constant 2 : index
    %13 = vector.load %arg12[%c0_10, %c2] : memref<8x402xf32, #tpu.memory_space<vmem>>, vector<8x256xf32>
    %c2_11 = arith.constant 2 : index
    %c0_12 = arith.constant 0 : index
    %14 = vector.load %arg9[%c2_11, %c0_12] : memref<27x256xf32, #tpu.memory_space<vmem>>, vector<1x256xf32>
    %15 = vector.broadcast %14 : vector<1x256xf32> to vector<8x256xf32>
    %16 = arith.mulf %13, %15 : vector<8x256xf32>
    %c16 = arith.constant 16 : index
    %c0_13 = arith.constant 0 : index
    %17 = vector.load %arg14[%c16, %c0_13] : memref<216x256xf32, #tpu.memory_space<vmem>>, vector<8x256xf32>
    tpu.vector_store %arg14[%c16, %c0_13], %16 {strides = array<i32>} : memref<216x256xf32, #tpu.memory_space<vmem>>, vector<8x256xf32>,
    %c0_14 = arith.constant 0 : index
    %c8_15 = arith.constant 8 : index
    %18 = vector.load %arg12[%c0_14, %c8_15] : memref<8x402xf32, #tpu.memory_space<vmem>>, vector<8x256xf32>
    %c3 = arith.constant 3 : index
    %c0_16 = arith.constant 0 : index
    %19 = vector.load %arg9[%c3, %c0_16] : memref<27x256xf32, #tpu.memory_space<vmem>>, vector<1x256xf32>
    %20 = vector.broadcast %19 : vector<1x256xf32> to vector<8x256xf32>
    %21 = arith.mulf %18, %20 : vector<8x256xf32>
    %c24 = arith.constant 24 : index
    %c0_17 = arith.constant 0 : index
    %22 = vector.load %arg14[%c24, %c0_17] : memref<216x256xf32, #tpu.memory_space<vmem>>, vector<8x256xf32>
    tpu.vector_store %arg14[%c24, %c0_17], %21 {strides = array<i32>} : memref<216x256xf32, #tpu.memory_space<vmem>>, vector<8x256xf32>,
    %c0_18 = arith.constant 0 : index
    %c9 = arith.constant 9 : index
    %23 = vector.load %arg12[%c0_18, %c9] : memref<8x402xf32, #tpu.memory_space<vmem>>, vector<8x256xf32>
    %c4 = arith.constant 4 : index
    %c0_19 = arith.constant 0 : index
    %24 = vector.load %arg9[%c4, %c0_19] : memref<27x256xf32, #tpu.memory_space<vmem>>, vector<1x256xf32>
    %25 = vector.broadcast %24 : vector<1x256xf32> to vector<8x256xf32>
    %26 = arith.mulf %23, %25 : vector<8x256xf32>
    %c32 = arith.constant 32 : index
    %c0_20 = arith.constant 0 : index
    %27 = vector.load %arg14[%c32, %c0_20] : memref<216x256xf32, #tpu.memory_space<vmem>>, vector<8x256xf32>
    tpu.vector_store %arg14[%c32, %c0_20], %26 {strides = array<i32>} : memref<216x256xf32, #tpu.memory_space<vmem>>, vector<8x256xf32>,
    %c0_21 = arith.constant 0 : index
    %c10 = arith.constant 10 : index
    %28 = vector.load %arg12[%c0_21, %c10] : memref<8x402xf32, #tpu.memory_space<vmem>>, vector<8x256xf32>
    %c5 = arith.constant 5 : index
    %c0_22 = arith.constant 0 : index
    %29 = vector.load %arg9[%c5, %c0_22] : memref<27x256xf32, #tpu.memory_space<vmem>>, vector<1x256xf32>
    %30 = vector.broadcast %29 : vector<1x256xf32> to vector<8x256xf32>
    %31 = arith.mulf %28, %30 : vector<8x256xf32>
    %c40 = arith.constant 40 : index
    %c0_23 = arith.constant 0 : index
    %32 = vector.load %arg14[%c40, %c0_23] : memref<216x256xf32, #tpu.memory_space<vmem>>, vector<8x256xf32>
    tpu.vector_store %arg14[%c40, %c0_23], %31 {strides = array<i32>} : memref<216x256xf32, #tpu.memory_space<vmem>>, vector<8x256xf32>,
    %c0_24 = arith.constant 0 : index
    %c16_25 = arith.constant 16 : index
    %33 = vector.load %arg12[%c0_24, %c16_25] : memref<8x402xf32, #tpu.memory_space<vmem>>, vector<8x256xf32>
    %c6 = arith.constant 6 : index
    %c0_26 = arith.constant 0 : index
    %34 = vector.load %arg9[%c6, %c0_26] : memref<27x256xf32, #tpu.memory_space<vmem>>, vector<1x256xf32>
    %35 = vector.broadcast %34 : vector<1x256xf32> to vector<8x256xf32>
    %36 = arith.mulf %33, %35 : vector<8x256xf32>
    %c48 = arith.constant 48 : index
    %c0_27 = arith.constant 0 : index
    %37 = vector.load %arg14[%c48, %c0_27] : memref<216x256xf32, #tpu.memory_space<vmem>>, vector<8x256xf32>
    tpu.vector_store %arg14[%c48, %c0_27], %36 {strides = array<i32>} : memref<216x256xf32, #tpu.memory_space<vmem>>, vector<8x256xf32>,
    %c0_28 = arith.constant 0 : index
    %c17 = arith.constant 17 : index
    %38 = vector.load %arg12[%c0_28, %c17] : memref<8x402xf32, #tpu.memory_space<vmem>>, vector<8x256xf32>
    %c7 = arith.constant 7 : index
    %c0_29 = arith.constant 0 : index
    %39 = vector.load %arg9[%c7, %c0_29] : memref<27x256xf32, #tpu.memory_space<vmem>>, vector<1x256xf32>
    %40 = vector.broadcast %39 : vector<1x256xf32> to vector<8x256xf32>
    %41 = arith.mulf %38, %40 : vector<8x256xf32>
    %c56 = arith.constant 56 : index
    %c0_30 = arith.constant 0 : index
    %42 = vector.load %arg14[%c56, %c0_30] : memref<216x256xf32, #tpu.memory_space<vmem>>, vector<8x256xf32>
    tpu.vector_store %arg14[%c56, %c0_30], %41 {strides = array<i32>} : memref<216x256xf32, #tpu.memory_space<vmem>>, vector<8x256xf32>,
    %c0_31 = arith.constant 0 : index
    %c18 = arith.constant 18 : index
    %43 = vector.load %arg12[%c0_31, %c18] : memref<8x402xf32, #tpu.memory_space<vmem>>, vector<8x256xf32>
    %c8_32 = arith.constant 8 : index
    %c0_33 = arith.constant 0 : index
    %44 = vector.load %arg9[%c8_32, %c0_33] : memref<27x256xf32, #tpu.memory_space<vmem>>, vector<1x256xf32>
    %45 = vector.broadcast %44 : vector<1x256xf32> to vector<8x256xf32>
    %46 = arith.mulf %43, %45 : vector<8x256xf32>
    %c64 = arith.constant 64 : index
    %c0_34 = arith.constant 0 : index
    %47 = vector.load %arg14[%c64, %c0_34] : memref<216x256xf32, #tpu.memory_space<vmem>>, vector<8x256xf32>
    tpu.vector_store %arg14[%c64, %c0_34], %46 {strides = array<i32>} : memref<216x256xf32, #tpu.memory_space<vmem>>, vector<8x256xf32>,
    %c0_35 = arith.constant 0 : index
    %c64_36 = arith.constant 64 : index
    %48 = vector.load %arg12[%c0_35, %c64_36] : memref<8x402xf32, #tpu.memory_space<vmem>>, vector<8x256xf32>
    %c9_37 = arith.constant 9 : index
    %c0_38 = arith.constant 0 : index
    %49 = vector.load %arg9[%c9_37, %c0_38] : memref<27x256xf32, #tpu.memory_space<vmem>>, vector<1x256xf32>
    %50 = vector.broadcast %49 : vector<1x256xf32> to vector<8x256xf32>
    %51 = arith.mulf %48, %50 : vector<8x256xf32>
    %c72 = arith.constant 72 : index
    %c0_39 = arith.constant 0 : index
    %52 = vector.load %arg14[%c72, %c0_39] : memref<216x256xf32, #tpu.memory_space<vmem>>, vector<8x256xf32>
    tpu.vector_store %arg14[%c72, %c0_39], %51 {strides = array<i32>} : memref<216x256xf32, #tpu.memory_space<vmem>>, vector<8x256xf32>,
    %c0_40 = arith.constant 0 : index
    %c65 = arith.constant 65 : index
    %53 = vector.load %arg12[%c0_40, %c65] : memref<8x402xf32, #tpu.memory_space<vmem>>, vector<8x256xf32>
    %c10_41 = arith.constant 10 : index
    %c0_42 = arith.constant 0 : index
    %54 = vector.load %arg9[%c10_41, %c0_42] : memref<27x256xf32, #tpu.memory_space<vmem>>, vector<1x256xf32>
    %55 = vector.broadcast %54 : vector<1x256xf32> to vector<8x256xf32>
    %56 = arith.mulf %53, %55 : vector<8x256xf32>
    %c80 = arith.constant 80 : index
    %c0_43 = arith.constant 0 : index
    %57 = vector.load %arg14[%c80, %c0_43] : memref<216x256xf32, #tpu.memory_space<vmem>>, vector<8x256xf32>
    tpu.vector_store %arg14[%c80, %c0_43], %56 {strides = array<i32>} : memref<216x256xf32, #tpu.memory_space<vmem>>, vector<8x256xf32>,
    %c0_44 = arith.constant 0 : index
    %c66 = arith.constant 66 : index
    %58 = vector.load %arg12[%c0_44, %c66] : memref<8x402xf32, #tpu.memory_space<vmem>>, vector<8x256xf32>
    %c11 = arith.constant 11 : index
    %c0_45 = arith.constant 0 : index
    %59 = vector.load %arg9[%c11, %c0_45] : memref<27x256xf32, #tpu.memory_space<vmem>>, vector<1x256xf32>
    %60 = vector.broadcast %59 : vector<1x256xf32> to vector<8x256xf32>
    %61 = arith.mulf %58, %60 : vector<8x256xf32>
    %c88 = arith.constant 88 : index
    %c0_46 = arith.constant 0 : index
    %62 = vector.load %arg14[%c88, %c0_46] : memref<216x256xf32, #tpu.memory_space<vmem>>, vector<8x256xf32>
    tpu.vector_store %arg14[%c88, %c0_46], %61 {strides = array<i32>} : memref<216x256xf32, #tpu.memory_space<vmem>>, vector<8x256xf32>,
    %c0_47 = arith.constant 0 : index
    %c72_48 = arith.constant 72 : index
    %63 = vector.load %arg12[%c0_47, %c72_48] : memref<8x402xf32, #tpu.memory_space<vmem>>, vector<8x256xf32>
    %c12 = arith.constant 12 : index
    %c0_49 = arith.constant 0 : index
    %64 = vector.load %arg9[%c12, %c0_49] : memref<27x256xf32, #tpu.memory_space<vmem>>, vector<1x256xf32>
    %65 = vector.broadcast %64 : vector<1x256xf32> to vector<8x256xf32>
    %66 = arith.mulf %63, %65 : vector<8x256xf32>
    %c96 = arith.constant 96 : index
    %c0_50 = arith.constant 0 : index
    %67 = vector.load %arg14[%c96, %c0_50] : memref<216x256xf32, #tpu.memory_space<vmem>>, vector<8x256xf32>
    tpu.vector_store %arg14[%c96, %c0_50], %66 {strides = array<i32>} : memref<216x256xf32, #tpu.memory_space<vmem>>, vector<8x256xf32>,
    %c0_51 = arith.constant 0 : index
    %c73 = arith.constant 73 : index
    %68 = vector.load %arg12[%c0_51, %c73] : memref<8x402xf32, #tpu.memory_space<vmem>>, vector<8x256xf32>
    %c13 = arith.constant 13 : index
    %c0_52 = arith.constant 0 : index
    %69 = vector.load %arg9[%c13, %c0_52] : memref<27x256xf32, #tpu.memory_space<vmem>>, vector<1x256xf32>
    %70 = vector.broadcast %69 : vector<1x256xf32> to vector<8x256xf32>
    %71 = arith.mulf %68, %70 : vector<8x256xf32>
    %c104 = arith.constant 104 : index
    %c0_53 = arith.constant 0 : index
    %72 = vector.load %arg14[%c104, %c0_53] : memref<216x256xf32, #tpu.memory_space<vmem>>, vector<8x256xf32>
    tpu.vector_store %arg14[%c104, %c0_53], %71 {strides = array<i32>} : memref<216x256xf32, #tpu.memory_space<vmem>>, vector<8x256xf32>,
    %c0_54 = arith.constant 0 : index
    %c74 = arith.constant 74 : index
    %73 = vector.load %arg12[%c0_54, %c74] : memref<8x402xf32, #tpu.memory_space<vmem>>, vector<8x256xf32>
    %c14 = arith.constant 14 : index
    %c0_55 = arith.constant 0 : index
    %74 = vector.load %arg9[%c14, %c0_55] : memref<27x256xf32, #tpu.memory_space<vmem>>, vector<1x256xf32>
    %75 = vector.broadcast %74 : vector<1x256xf32> to vector<8x256xf32>
    %76 = arith.mulf %73, %75 : vector<8x256xf32>
    %c112 = arith.constant 112 : index
    %c0_56 = arith.constant 0 : index
    %77 = vector.load %arg14[%c112, %c0_56] : memref<216x256xf32, #tpu.memory_space<vmem>>, vector<8x256xf32>
    tpu.vector_store %arg14[%c112, %c0_56], %76 {strides = array<i32>} : memref<216x256xf32, #tpu.memory_space<vmem>>, vector<8x256xf32>,
    %c0_57 = arith.constant 0 : index
    %c80_58 = arith.constant 80 : index
    %78 = vector.load %arg12[%c0_57, %c80_58] : memref<8x402xf32, #tpu.memory_space<vmem>>, vector<8x256xf32>
    %c15 = arith.constant 15 : index
    %c0_59 = arith.constant 0 : index
    %79 = vector.load %arg9[%c15, %c0_59] : memref<27x256xf32, #tpu.memory_space<vmem>>, vector<1x256xf32>
    %80 = vector.broadcast %79 : vector<1x256xf32> to vector<8x256xf32>
    %81 = arith.mulf %78, %80 : vector<8x256xf32>
    %c120 = arith.constant 120 : index
    %c0_60 = arith.constant 0 : index
    %82 = vector.load %arg14[%c120, %c0_60] : memref<216x256xf32, #tpu.memory_space<vmem>>, vector<8x256xf32>
    tpu.vector_store %arg14[%c120, %c0_60], %81 {strides = array<i32>} : memref<216x256xf32, #tpu.memory_space<vmem>>, vector<8x256xf32>,
    %c0_61 = arith.constant 0 : index
    %c81 = arith.constant 81 : index
    %83 = vector.load %arg12[%c0_61, %c81] : memref<8x402xf32, #tpu.memory_space<vmem>>, vector<8x256xf32>
    %c16_62 = arith.constant 16 : index
    %c0_63 = arith.constant 0 : index
    %84 = vector.load %arg9[%c16_62, %c0_63] : memref<27x256xf32, #tpu.memory_space<vmem>>, vector<1x256xf32>
    %85 = vector.broadcast %84 : vector<1x256xf32> to vector<8x256xf32>
    %86 = arith.mulf %83, %85 : vector<8x256xf32>
    %c128 = arith.constant 128 : index
    %c0_64 = arith.constant 0 : index
    %87 = vector.load %arg14[%c128, %c0_64] : memref<216x256xf32, #tpu.memory_space<vmem>>, vector<8x256xf32>
    tpu.vector_store %arg14[%c128, %c0_64], %86 {strides = array<i32>} : memref<216x256xf32, #tpu.memory_space<vmem>>, vector<8x256xf32>,
    %c0_65 = arith.constant 0 : index
    %c82 = arith.constant 82 : index
    %88 = vector.load %arg12[%c0_65, %c82] : memref<8x402xf32, #tpu.memory_space<vmem>>, vector<8x256xf32>
    %c17_66 = arith.constant 17 : index
    %c0_67 = arith.constant 0 : index
    %89 = vector.load %arg9[%c17_66, %c0_67] : memref<27x256xf32, #tpu.memory_space<vmem>>, vector<1x256xf32>
    %90 = vector.broadcast %89 : vector<1x256xf32> to vector<8x256xf32>
    %91 = arith.mulf %88, %90 : vector<8x256xf32>
    %c136 = arith.constant 136 : index
    %c0_68 = arith.constant 0 : index
    %92 = vector.load %arg14[%c136, %c0_68] : memref<216x256xf32, #tpu.memory_space<vmem>>, vector<8x256xf32>
    tpu.vector_store %arg14[%c136, %c0_68], %91 {strides = array<i32>} : memref<216x256xf32, #tpu.memory_space<vmem>>, vector<8x256xf32>,
    %c0_69 = arith.constant 0 : index
    %c128_70 = arith.constant 128 : index
    %93 = vector.load %arg12[%c0_69, %c128_70] : memref<8x402xf32, #tpu.memory_space<vmem>>, vector<8x256xf32>
    %c18_71 = arith.constant 18 : index
    %c0_72 = arith.constant 0 : index
    %94 = vector.load %arg9[%c18_71, %c0_72] : memref<27x256xf32, #tpu.memory_space<vmem>>, vector<1x256xf32>
    %95 = vector.broadcast %94 : vector<1x256xf32> to vector<8x256xf32>
    %96 = arith.mulf %93, %95 : vector<8x256xf32>
    %c144 = arith.constant 144 : index
    %c0_73 = arith.constant 0 : index
    %97 = vector.load %arg14[%c144, %c0_73] : memref<216x256xf32, #tpu.memory_space<vmem>>, vector<8x256xf32>
    tpu.vector_store %arg14[%c144, %c0_73], %96 {strides = array<i32>} : memref<216x256xf32, #tpu.memory_space<vmem>>, vector<8x256xf32>,
    %c0_74 = arith.constant 0 : index
    %c129 = arith.constant 129 : index
    %98 = vector.load %arg12[%c0_74, %c129] : memref<8x402xf32, #tpu.memory_space<vmem>>, vector<8x256xf32>
    %c19 = arith.constant 19 : index
    %c0_75 = arith.constant 0 : index
    %99 = vector.load %arg9[%c19, %c0_75] : memref<27x256xf32, #tpu.memory_space<vmem>>, vector<1x256xf32>
    %100 = vector.broadcast %99 : vector<1x256xf32> to vector<8x256xf32>
    %101 = arith.mulf %98, %100 : vector<8x256xf32>
    %c152 = arith.constant 152 : index
    %c0_76 = arith.constant 0 : index
    %102 = vector.load %arg14[%c152, %c0_76] : memref<216x256xf32, #tpu.memory_space<vmem>>, vector<8x256xf32>
    tpu.vector_store %arg14[%c152, %c0_76], %101 {strides = array<i32>} : memref<216x256xf32, #tpu.memory_space<vmem>>, vector<8x256xf32>,
    %c0_77 = arith.constant 0 : index
    %c130 = arith.constant 130 : index
    %103 = vector.load %arg12[%c0_77, %c130] : memref<8x402xf32, #tpu.memory_space<vmem>>, vector<8x256xf32>
    %c20 = arith.constant 20 : index
    %c0_78 = arith.constant 0 : index
    %104 = vector.load %arg9[%c20, %c0_78] : memref<27x256xf32, #tpu.memory_space<vmem>>, vector<1x256xf32>
    %105 = vector.broadcast %104 : vector<1x256xf32> to vector<8x256xf32>
    %106 = arith.mulf %103, %105 : vector<8x256xf32>
    %c160 = arith.constant 160 : index
    %c0_79 = arith.constant 0 : index
    %107 = vector.load %arg14[%c160, %c0_79] : memref<216x256xf32, #tpu.memory_space<vmem>>, vector<8x256xf32>
    tpu.vector_store %arg14[%c160, %c0_79], %106 {strides = array<i32>} : memref<216x256xf32, #tpu.memory_space<vmem>>, vector<8x256xf32>,
    %c0_80 = arith.constant 0 : index
    %c136_81 = arith.constant 136 : index
    %108 = vector.load %arg12[%c0_80, %c136_81] : memref<8x402xf32, #tpu.memory_space<vmem>>, vector<8x256xf32>
    %c21 = arith.constant 21 : index
    %c0_82 = arith.constant 0 : index
    %109 = vector.load %arg9[%c21, %c0_82] : memref<27x256xf32, #tpu.memory_space<vmem>>, vector<1x256xf32>
    %110 = vector.broadcast %109 : vector<1x256xf32> to vector<8x256xf32>
    %111 = arith.mulf %108, %110 : vector<8x256xf32>
    %c168 = arith.constant 168 : index
    %c0_83 = arith.constant 0 : index
    %112 = vector.load %arg14[%c168, %c0_83] : memref<216x256xf32, #tpu.memory_space<vmem>>, vector<8x256xf32>
    tpu.vector_store %arg14[%c168, %c0_83], %111 {strides = array<i32>} : memref<216x256xf32, #tpu.memory_space<vmem>>, vector<8x256xf32>,
    %c0_84 = arith.constant 0 : index
    %c137 = arith.constant 137 : index
    %113 = vector.load %arg12[%c0_84, %c137] : memref<8x402xf32, #tpu.memory_space<vmem>>, vector<8x256xf32>
    %c22 = arith.constant 22 : index
    %c0_85 = arith.constant 0 : index
    %114 = vector.load %arg9[%c22, %c0_85] : memref<27x256xf32, #tpu.memory_space<vmem>>, vector<1x256xf32>
    %115 = vector.broadcast %114 : vector<1x256xf32> to vector<8x256xf32>
    %116 = arith.mulf %113, %115 : vector<8x256xf32>
    %c176 = arith.constant 176 : index
    %c0_86 = arith.constant 0 : index
    %117 = vector.load %arg14[%c176, %c0_86] : memref<216x256xf32, #tpu.memory_space<vmem>>, vector<8x256xf32>
    tpu.vector_store %arg14[%c176, %c0_86], %116 {strides = array<i32>} : memref<216x256xf32, #tpu.memory_space<vmem>>, vector<8x256xf32>,
    %c0_87 = arith.constant 0 : index
    %c138 = arith.constant 138 : index
    %118 = vector.load %arg12[%c0_87, %c138] : memref<8x402xf32, #tpu.memory_space<vmem>>, vector<8x256xf32>
    %c23 = arith.constant 23 : index
    %c0_88 = arith.constant 0 : index
    %119 = vector.load %arg9[%c23, %c0_88] : memref<27x256xf32, #tpu.memory_space<vmem>>, vector<1x256xf32>
    %120 = vector.broadcast %119 : vector<1x256xf32> to vector<8x256xf32>
    %121 = arith.mulf %118, %120 : vector<8x256xf32>
    %c184 = arith.constant 184 : index
    %c0_89 = arith.constant 0 : index
    %122 = vector.load %arg14[%c184, %c0_89] : memref<216x256xf32, #tpu.memory_space<vmem>>, vector<8x256xf32>
    tpu.vector_store %arg14[%c184, %c0_89], %121 {strides = array<i32>} : memref<216x256xf32, #tpu.memory_space<vmem>>, vector<8x256xf32>,
    %c0_90 = arith.constant 0 : index
    %c144_91 = arith.constant 144 : index
    %123 = vector.load %arg12[%c0_90, %c144_91] : memref<8x402xf32, #tpu.memory_space<vmem>>, vector<8x256xf32>
    %c24_92 = arith.constant 24 : index
    %c0_93 = arith.constant 0 : index
    %124 = vector.load %arg9[%c24_92, %c0_93] : memref<27x256xf32, #tpu.memory_space<vmem>>, vector<1x256xf32>
    %125 = vector.broadcast %124 : vector<1x256xf32> to vector<8x256xf32>
    %126 = arith.mulf %123, %125 : vector<8x256xf32>
    %c192 = arith.constant 192 : index
    %c0_94 = arith.constant 0 : index
    %127 = vector.load %arg14[%c192, %c0_94] : memref<216x256xf32, #tpu.memory_space<vmem>>, vector<8x256xf32>
    tpu.vector_store %arg14[%c192, %c0_94], %126 {strides = array<i32>} : memref<216x256xf32, #tpu.memory_space<vmem>>, vector<8x256xf32>,
    %c0_95 = arith.constant 0 : index
    %c145 = arith.constant 145 : index
    %128 = vector.load %arg12[%c0_95, %c145] : memref<8x402xf32, #tpu.memory_space<vmem>>, vector<8x256xf32>
    %c25 = arith.constant 25 : index
    %c0_96 = arith.constant 0 : index
    %129 = vector.load %arg9[%c25, %c0_96] : memref<27x256xf32, #tpu.memory_space<vmem>>, vector<1x256xf32>
    %130 = vector.broadcast %129 : vector<1x256xf32> to vector<8x256xf32>
    %131 = arith.mulf %128, %130 : vector<8x256xf32>
    %c200 = arith.constant 200 : index
    %c0_97 = arith.constant 0 : index
    %132 = vector.load %arg14[%c200, %c0_97] : memref<216x256xf32, #tpu.memory_space<vmem>>, vector<8x256xf32>
    tpu.vector_store %arg14[%c200, %c0_97], %131 {strides = array<i32>} : memref<216x256xf32, #tpu.memory_space<vmem>>, vector<8x256xf32>,
    %c0_98 = arith.constant 0 : index
    %c146 = arith.constant 146 : index
    %133 = vector.load %arg12[%c0_98, %c146] : memref<8x402xf32, #tpu.memory_space<vmem>>, vector<8x256xf32>
    %c26 = arith.constant 26 : index
    %c0_99 = arith.constant 0 : index
    %134 = vector.load %arg9[%c26, %c0_99] : memref<27x256xf32, #tpu.memory_space<vmem>>, vector<1x256xf32>
    %135 = vector.broadcast %134 : vector<1x256xf32> to vector<8x256xf32>
    %136 = arith.mulf %133, %135 : vector<8x256xf32>
    %c208 = arith.constant 208 : index
    %c0_100 = arith.constant 0 : index
    %137 = vector.load %arg14[%c208, %c0_100] : memref<216x256xf32, #tpu.memory_space<vmem>>, vector<8x256xf32>
    tpu.vector_store %arg14[%c208, %c0_100], %136 {strides = array<i32>} : memref<216x256xf32, #tpu.memory_space<vmem>>, vector<8x256xf32>,
    %c0_101 = arith.constant 0 : index
    %c0_102 = arith.constant 0 : index
    %138 = vector.load %arg5[%c0_101, %c0_102] : memref<32x216xbf16, #tpu.memory_space<vmem>>, vector<32x216xbf16>
    %c0_103 = arith.constant 0 : index
    %c0_104 = arith.constant 0 : index
    %139 = vector.load %arg14[%c0_103, %c0_104] : memref<216x256xf32, #tpu.memory_space<vmem>>, vector<216x256xf32>
    %140 = arith.truncf %139 : vector<216x256xf32> to vector<216x256xbf16>
    %cst = arith.constant dense<0.000000e+00> : vector<32x256xf32>
    %141 = tpu.matmul %138, %140, %cst {dimension_numbers = #tpu.dot_dimension_numbers<[1], [0], [0], [1], [0, 0, 1, 1], [], []>} : vector<32x216xbf16>, vector<216x256xbf16>, vector<32x256xf32> -> vector<32x256xf32>
    %c0_105 = arith.constant 0 : index
    %c0_106 = arith.constant 0 : index
    %142 = vector.load %arg6[%c0_105, %c0_106] : memref<32x1xf32, #tpu.memory_space<vmem>>, vector<32x1xf32>
    %143 = vector.broadcast %142 : vector<32x1xf32> to vector<32x256xf32>
    %144 = arith.addf %141, %143 : vector<32x256xf32>
    %cst_107 = arith.constant dense<0.000000e+00> : vector<32xf32>
    %145 = vector.multi_reduction <add>, %144, %cst_107 [1] : vector<32x256xf32> to vector<32xf32>
    %146 = vector.shape_cast %145 : vector<32xf32> to vector<32x1xf32>
    %cst_108 = arith.constant 2.560000e+02 : f32
    %147 = vector.broadcast %cst_108 : f32 to vector<32x1xf32>
    %148 = arith.divf %146, %147 : vector<32x1xf32>
    %149 = arith.mulf %144, %144 : vector<32x256xf32>
    %cst_109 = arith.constant dense<0.000000e+00> : vector<32xf32>
    %150 = vector.multi_reduction <add>, %149, %cst_109 [1] : vector<32x256xf32> to vector<32xf32>
    %151 = vector.shape_cast %150 : vector<32xf32> to vector<32x1xf32>
    %cst_110 = arith.constant 2.560000e+02 : f32
    %152 = vector.broadcast %cst_110 : f32 to vector<32x1xf32>
    %153 = arith.divf %151, %152 : vector<32x1xf32>
    %154 = arith.mulf %148, %148 : vector<32x1xf32>
    %155 = arith.subf %153, %154 : vector<32x1xf32>
    %156 = vector.broadcast %148 : vector<32x1xf32> to vector<32x256xf32>
    %157 = arith.subf %144, %156 : vector<32x256xf32>
    %cst_111 = arith.constant 9.99999974E-6 : f32
    %158 = vector.broadcast %cst_111 : f32 to vector<32x1xf32>
    %159 = arith.addf %155, %158 : vector<32x1xf32>
    %160 = math.rsqrt %159 : vector<32x1xf32>
    %161 = vector.broadcast %160 : vector<32x1xf32> to vector<32x256xf32>
    %162 = arith.mulf %157, %161 : vector<32x256xf32>
    %c0_112 = arith.constant 0 : index
    %c0_113 = arith.constant 0 : index
    %163 = vector.load %arg7[%c0_112, %c0_113] : memref<32x1xf32, #tpu.memory_space<vmem>>, vector<32x1xf32>
    %164 = vector.broadcast %163 : vector<32x1xf32> to vector<32x256xf32>
    %165 = arith.mulf %162, %164 : vector<32x256xf32>
    %c0_114 = arith.constant 0 : index
    %c0_115 = arith.constant 0 : index
    %166 = vector.load %arg8[%c0_114, %c0_115] : memref<32x1xf32, #tpu.memory_space<vmem>>, vector<32x1xf32>
    %167 = vector.broadcast %166 : vector<32x1xf32> to vector<32x256xf32>
    %168 = arith.addf %165, %167 : vector<32x256xf32>
    %cst_116 = arith.constant 0.000000e+00 : f32
    %169 = vector.broadcast %cst_116 : f32 to vector<32x256xf32>
    %170 = arith.maximumf %168, %169 : vector<32x256xf32>
    %c0_117 = arith.constant 0 : index
    %c0_118 = arith.constant 0 : index
    %c0_119 = arith.constant 0 : index
    %c0_120 = arith.constant 0 : index
    %171 = vector.load %arg2[%c0_117, %c0_118, %c0_119, %c0_120] : memref<1x1x32x256xf32, #tpu.memory_space<vmem>>, vector<1x1x32x256xf32>
    %172 = vector.shape_cast %171 : vector<1x1x32x256xf32> to vector<32x256xf32>
    %173 = arith.addf %172, %170 : vector<32x256xf32>
    %174 = vector.extract_strided_slice %173 {offsets = [0, 0], sizes = [8, 256], strides = [1, 1]} : vector<32x256xf32> to vector<8x256xf32>
    %175 = arith.negf %174 : vector<8x256xf32>
    %176 = math.exp %175 : vector<8x256xf32>
    %cst_121 = arith.constant 1.000000e+00 : f32
    %177 = vector.broadcast %cst_121 : f32 to vector<8x256xf32>
    %178 = arith.addf %177, %176 : vector<8x256xf32>
    %179 = arith.divf %177, %178 : vector<8x256xf32>
    %180 = vector.extract_strided_slice %173 {offsets = [8, 0], sizes = [8, 256], strides = [1, 1]} : vector<32x256xf32> to vector<8x256xf32>
    %181 = arith.negf %180 : vector<8x256xf32>
    %182 = math.exp %181 : vector<8x256xf32>
    %cst_122 = arith.constant 1.000000e+00 : f32
    %183 = vector.broadcast %cst_122 : f32 to vector<8x256xf32>
    %184 = arith.addf %183, %182 : vector<8x256xf32>
    %185 = arith.divf %183, %184 : vector<8x256xf32>
    %186 = vector.extract_strided_slice %173 {offsets = [16, 0], sizes = [8, 256], strides = [1, 1]} : vector<32x256xf32> to vector<8x256xf32>
    %187 = arith.negf %186 : vector<8x256xf32>
    %188 = math.exp %187 : vector<8x256xf32>
    %cst_123 = arith.constant 1.000000e+00 : f32
    %189 = vector.broadcast %cst_123 : f32 to vector<8x256xf32>
    %190 = arith.addf %189, %188 : vector<8x256xf32>
    %191 = arith.divf %189, %190 : vector<8x256xf32>
    %192 = vector.extract_strided_slice %173 {offsets = [24, 0], sizes = [8, 256], strides = [1, 1]} : vector<32x256xf32> to vector<8x256xf32>
    %193 = math.tanh %192 : vector<8x256xf32>
    %c0_124 = arith.constant 0 : index
    %c0_125 = arith.constant 0 : index
    %194 = vector.load %arg13[%c0_124, %c0_125] : memref<8x256xf32, #tpu.memory_space<vmem>>, vector<8x256xf32>
    %195 = arith.mulf %179, %194 : vector<8x256xf32>
    %196 = arith.mulf %185, %193 : vector<8x256xf32>
    %197 = arith.addf %195, %196 : vector<8x256xf32>
    %198 = math.tanh %197 : vector<8x256xf32>
    %199 = arith.mulf %191, %198 : vector<8x256xf32>
    %c0_126 = arith.constant 0 : index
    %c0_127 = arith.constant 0 : index
    %200 = vector.load %arg13[%c0_126, %c0_127] : memref<8x256xf32, #tpu.memory_space<vmem>>, vector<8x256xf32>
    tpu.vector_store %arg13[%c0_126, %c0_127], %197 {strides = array<i32>} : memref<8x256xf32, #tpu.memory_space<vmem>>, vector<8x256xf32>,
    %c0_128 = arith.constant 0 : index
    %c73_129 = arith.constant 73 : index
    %201 = vector.load %arg12[%c0_128, %c73_129] : memref<8x402xf32, #tpu.memory_space<vmem>>, vector<8x256xf32>
    tpu.vector_store %arg12[%c0_128, %c73_129], %199 {strides = array<i32>} : memref<8x402xf32, #tpu.memory_space<vmem>>, vector<8x256xf32>,
    %c0_130 = arith.constant 0 : index
    %c0_131 = arith.constant 0 : index
    %c0_132 = arith.constant 0 : index
    %c0_133 = arith.constant 0 : index
    %202 = vector.load %arg10[%c0_130, %c0_131, %c0_132, %c0_133] : memref<1x1x8x256xf32, #tpu.memory_space<vmem>>, vector<1x1x8x256xf32>
    %203 = vector.shape_cast %202 : vector<1x1x8x256xf32> to vector<8x256xf32>
    %204 = vector.shape_cast %199 : vector<8x256xf32> to vector<1x1x8x256xf32>
    tpu.vector_store %arg10[%c0_130, %c0_131, %c0_132, %c0_133], %204 {strides = array<i32>} : memref<1x1x8x256xf32, #tpu.memory_space<vmem>>, vector<1x1x8x256xf32>,
    %c0_134 = arith.constant 0 : index
    %c0_135 = arith.constant 0 : index
    %c0_136 = arith.constant 0 : index
    %205 = vector.load %arg11[%c0_134, %c0_135, %c0_136] : memref<1x8x256xf32, #tpu.memory_space<vmem>>, vector<1x8x256xf32>
    %206 = vector.shape_cast %205 : vector<1x8x256xf32> to vector<8x256xf32>
    %207 = vector.shape_cast %197 : vector<8x256xf32> to vector<1x8x256xf32>
    tpu.vector_store %arg11[%c0_134, %c0_135, %c0_136], %207 {strides = array<i32>} : memref<1x8x256xf32, #tpu.memory_space<vmem>>, vector<1x8x256xf32>,
    return
  }
  func.func @transform_0(%arg0: i32, %arg1: i32) -> (i32, i32, i32, i32) {
    %c0_i32 = arith.constant 0 : i32
    %c0_i32_0 = arith.constant 0 : i32
    %c0_i32_1 = arith.constant 0 : i32
    return %arg0, %arg1, %c0_i32, %c0_i32_0 : i32, i32, i32, i32
  }
  func.func @transform_1(%arg0: i32, %arg1: i32) -> (i32, i32, i32) {
    %c0_i32 = arith.constant 0 : i32
    %c0_i32_0 = arith.constant 0 : i32
    %c0_i32_1 = arith.constant 0 : i32
    return %arg0, %c0_i32, %c0_i32_0 : i32, i32, i32
  }
  func.func @transform_2(%arg0: i32, %arg1: i32) -> (i32, i32, i32) {
    %c0_i32 = arith.constant 0 : i32
    %c0_i32_0 = arith.constant 0 : i32
    %c0_i32_1 = arith.constant 0 : i32
    return %arg0, %c0_i32, %c0_i32_0 : i32, i32, i32
  }
  func.func @transform_3(%arg0: i32, %arg1: i32) -> (i32, i32) {
    %c0_i32 = arith.constant 0 : i32
    %c0_i32_0 = arith.constant 0 : i32
    %c0_i32_1 = arith.constant 0 : i32
    return %c0_i32, %c0_i32_0 : i32, i32
  }
  func.func @transform_4(%arg0: i32, %arg1: i32) -> (i32, i32) {
    %c0_i32 = arith.constant 0 : i32
    %c0_i32_0 = arith.constant 0 : i32
    %c0_i32_1 = arith.constant 0 : i32
    return %c0_i32, %c0_i32_0 : i32, i32
  }
  func.func @transform_5(%arg0: i32, %arg1: i32) -> (i32, i32) {
    %c0_i32 = arith.constant 0 : i32
    %c0_i32_0 = arith.constant 0 : i32
    %c0_i32_1 = arith.constant 0 : i32
    return %c0_i32, %c0_i32_0 : i32, i32
  }
  func.func @transform_6(%arg0: i32, %arg1: i32) -> (i32, i32) {
    %c0_i32 = arith.constant 0 : i32
    %c0_i32_0 = arith.constant 0 : i32
    %c0_i32_1 = arith.constant 0 : i32
    return %c0_i32, %c0_i32_0 : i32, i32
  }
  func.func @transform_7(%arg0: i32, %arg1: i32) -> (i32, i32) {
    %c0_i32 = arith.constant 0 : i32
    %c0_i32_0 = arith.constant 0 : i32
    %c0_i32_1 = arith.constant 0 : i32
    return %c0_i32, %c0_i32_0 : i32, i32
  }
  func.func @transform_8(%arg0: i32, %arg1: i32) -> (i32, i32, i32, i32) {
    %c0_i32 = arith.constant 0 : i32
    %c0_i32_0 = arith.constant 0 : i32
    %c0_i32_1 = arith.constant 0 : i32
    return %arg0, %arg1, %c0_i32, %c0_i32_0 : i32, i32, i32, i32
  }
  func.func @transform_9(%arg0: i32, %arg1: i32) -> (i32, i32, i32) {
    %c0_i32 = arith.constant 0 : i32
    %c0_i32_0 = arith.constant 0 : i32
    %c0_i32_1 = arith.constant 0 : i32
    return %arg0, %c0_i32, %c0_i32_0 : i32, i32, i32
  }
}

module attributes {stable_mosaic.version = 11 : i64} {
  func.func @kernel(%arg0: i32, %arg1: memref<1x8x256xf32, #tpu.memory_space<vmem>>, %arg2: memref<32x216xbf16, #tpu.memory_space<vmem>>, %arg3: memref<32x1xf32, #tpu.memory_space<vmem>>, %arg4: memref<32x1xf32, #tpu.memory_space<vmem>>, %arg5: memref<32x1xf32, #tpu.memory_space<vmem>>, %arg6: memref<27x256xf32, #tpu.memory_space<vmem>>, %arg7: memref<1x32x256xf32, #tpu.memory_space<vmem>>, %arg8: memref<8x402xf32, #tpu.memory_space<vmem>>, %arg9: memref<216x256xf32, #tpu.memory_space<vmem>>) attributes {dimension_semantics = [#tpu.dimension_semantics<parallel>], iteration_bounds = array<i64: 6>, scalar_prefetch = 0 : i64, scratch_operands = 2 : i64, tpu.core_type = #tpu.core_type<tc>, window_params = [{transform_indices = @transform_0, window_bounds = array<i64: 1, 8, 256>}, {pipeline_mode = #tpu.pipeline_mode<synchronous>, transform_indices = @transform_1, window_bounds = array<i64: 32, 216>}, {pipeline_mode = #tpu.pipeline_mode<synchronous>, transform_indices = @transform_2, window_bounds = array<i64: 32, 1>}, {pipeline_mode = #tpu.pipeline_mode<synchronous>, transform_indices = @transform_3, window_bounds = array<i64: 32, 1>}, {pipeline_mode = #tpu.pipeline_mode<synchronous>, transform_indices = @transform_4, window_bounds = array<i64: 32, 1>}, {pipeline_mode = #tpu.pipeline_mode<synchronous>, transform_indices = @transform_5, window_bounds = array<i64: 27, 256>}, {transform_indices = @transform_6, window_bounds = array<i64: 1, 32, 256>}]} {
    %cst = arith.constant 0.000000e+00 : f32
    %0 = vector.broadcast %cst : f32 to vector<8x73xf32>
    %c0 = arith.constant 0 : index
    %c0_0 = arith.constant 0 : index
    %1 = vector.load %arg8[%c0, %c0_0] : memref<8x402xf32, #tpu.memory_space<vmem>>, vector<8x73xf32>
    tpu.vector_store %arg8[%c0, %c0_0], %0 {strides = array<i32>} : memref<8x402xf32, #tpu.memory_space<vmem>>, vector<8x73xf32>,
    %c0_1 = arith.constant 0 : index
    %c329 = arith.constant 329 : index
    %2 = vector.load %arg8[%c0_1, %c329] : memref<8x402xf32, #tpu.memory_space<vmem>>, vector<8x73xf32>
    tpu.vector_store %arg8[%c0_1, %c329], %0 {strides = array<i32>} : memref<8x402xf32, #tpu.memory_space<vmem>>, vector<8x73xf32>,
    %c0_2 = arith.constant 0 : index
    %c0_3 = arith.constant 0 : index
    %c0_4 = arith.constant 0 : index
    %3 = vector.load %arg1[%c0_2, %c0_3, %c0_4] : memref<1x8x256xf32, #tpu.memory_space<vmem>>, vector<1x8x256xf32>
    %4 = vector.shape_cast %3 : vector<1x8x256xf32> to vector<8x256xf32>
    %c0_5 = arith.constant 0 : index
    %c73 = arith.constant 73 : index
    %5 = vector.load %arg8[%c0_5, %c73] : memref<8x402xf32, #tpu.memory_space<vmem>>, vector<8x256xf32>
    tpu.vector_store %arg8[%c0_5, %c73], %4 {strides = array<i32>} : memref<8x402xf32, #tpu.memory_space<vmem>>, vector<8x256xf32>,
    %c0_6 = arith.constant 0 : index
    %c0_7 = arith.constant 0 : index
    %6 = vector.load %arg8[%c0_6, %c0_7] : memref<8x402xf32, #tpu.memory_space<vmem>>, vector<8x256xf32>
    %c0_8 = arith.constant 0 : index
    %c0_9 = arith.constant 0 : index
    %7 = vector.load %arg6[%c0_8, %c0_9] : memref<27x256xf32, #tpu.memory_space<vmem>>, vector<1x256xf32>
    %8 = vector.broadcast %7 : vector<1x256xf32> to vector<8x256xf32>
    %9 = arith.mulf %6, %8 : vector<8x256xf32>
    %c0_10 = arith.constant 0 : index
    %c0_11 = arith.constant 0 : index
    %10 = vector.load %arg9[%c0_10, %c0_11] : memref<216x256xf32, #tpu.memory_space<vmem>>, vector<8x256xf32>
    tpu.vector_store %arg9[%c0_10, %c0_11], %9 {strides = array<i32>} : memref<216x256xf32, #tpu.memory_space<vmem>>, vector<8x256xf32>,
    %c0_12 = arith.constant 0 : index
    %c1 = arith.constant 1 : index
    %11 = vector.load %arg8[%c0_12, %c1] : memref<8x402xf32, #tpu.memory_space<vmem>>, vector<8x256xf32>
    %c1_13 = arith.constant 1 : index
    %c0_14 = arith.constant 0 : index
    %12 = vector.load %arg6[%c1_13, %c0_14] : memref<27x256xf32, #tpu.memory_space<vmem>>, vector<1x256xf32>
    %13 = vector.broadcast %12 : vector<1x256xf32> to vector<8x256xf32>
    %14 = arith.mulf %11, %13 : vector<8x256xf32>
    %c8 = arith.constant 8 : index
    %c0_15 = arith.constant 0 : index
    %15 = vector.load %arg9[%c8, %c0_15] : memref<216x256xf32, #tpu.memory_space<vmem>>, vector<8x256xf32>
    tpu.vector_store %arg9[%c8, %c0_15], %14 {strides = array<i32>} : memref<216x256xf32, #tpu.memory_space<vmem>>, vector<8x256xf32>,
    %c0_16 = arith.constant 0 : index
    %c2 = arith.constant 2 : index
    %16 = vector.load %arg8[%c0_16, %c2] : memref<8x402xf32, #tpu.memory_space<vmem>>, vector<8x256xf32>
    %c2_17 = arith.constant 2 : index
    %c0_18 = arith.constant 0 : index
    %17 = vector.load %arg6[%c2_17, %c0_18] : memref<27x256xf32, #tpu.memory_space<vmem>>, vector<1x256xf32>
    %18 = vector.broadcast %17 : vector<1x256xf32> to vector<8x256xf32>
    %19 = arith.mulf %16, %18 : vector<8x256xf32>
    %c16 = arith.constant 16 : index
    %c0_19 = arith.constant 0 : index
    %20 = vector.load %arg9[%c16, %c0_19] : memref<216x256xf32, #tpu.memory_space<vmem>>, vector<8x256xf32>
    tpu.vector_store %arg9[%c16, %c0_19], %19 {strides = array<i32>} : memref<216x256xf32, #tpu.memory_space<vmem>>, vector<8x256xf32>,
    %c0_20 = arith.constant 0 : index
    %c8_21 = arith.constant 8 : index
    %21 = vector.load %arg8[%c0_20, %c8_21] : memref<8x402xf32, #tpu.memory_space<vmem>>, vector<8x256xf32>
    %c3 = arith.constant 3 : index
    %c0_22 = arith.constant 0 : index
    %22 = vector.load %arg6[%c3, %c0_22] : memref<27x256xf32, #tpu.memory_space<vmem>>, vector<1x256xf32>
    %23 = vector.broadcast %22 : vector<1x256xf32> to vector<8x256xf32>
    %24 = arith.mulf %21, %23 : vector<8x256xf32>
    %c24 = arith.constant 24 : index
    %c0_23 = arith.constant 0 : index
    %25 = vector.load %arg9[%c24, %c0_23] : memref<216x256xf32, #tpu.memory_space<vmem>>, vector<8x256xf32>
    tpu.vector_store %arg9[%c24, %c0_23], %24 {strides = array<i32>} : memref<216x256xf32, #tpu.memory_space<vmem>>, vector<8x256xf32>,
    %c0_24 = arith.constant 0 : index
    %c9 = arith.constant 9 : index
    %26 = vector.load %arg8[%c0_24, %c9] : memref<8x402xf32, #tpu.memory_space<vmem>>, vector<8x256xf32>
    %c4 = arith.constant 4 : index
    %c0_25 = arith.constant 0 : index
    %27 = vector.load %arg6[%c4, %c0_25] : memref<27x256xf32, #tpu.memory_space<vmem>>, vector<1x256xf32>
    %28 = vector.broadcast %27 : vector<1x256xf32> to vector<8x256xf32>
    %29 = arith.mulf %26, %28 : vector<8x256xf32>
    %c32 = arith.constant 32 : index
    %c0_26 = arith.constant 0 : index
    %30 = vector.load %arg9[%c32, %c0_26] : memref<216x256xf32, #tpu.memory_space<vmem>>, vector<8x256xf32>
    tpu.vector_store %arg9[%c32, %c0_26], %29 {strides = array<i32>} : memref<216x256xf32, #tpu.memory_space<vmem>>, vector<8x256xf32>,
    %c0_27 = arith.constant 0 : index
    %c10 = arith.constant 10 : index
    %31 = vector.load %arg8[%c0_27, %c10] : memref<8x402xf32, #tpu.memory_space<vmem>>, vector<8x256xf32>
    %c5 = arith.constant 5 : index
    %c0_28 = arith.constant 0 : index
    %32 = vector.load %arg6[%c5, %c0_28] : memref<27x256xf32, #tpu.memory_space<vmem>>, vector<1x256xf32>
    %33 = vector.broadcast %32 : vector<1x256xf32> to vector<8x256xf32>
    %34 = arith.mulf %31, %33 : vector<8x256xf32>
    %c40 = arith.constant 40 : index
    %c0_29 = arith.constant 0 : index
    %35 = vector.load %arg9[%c40, %c0_29] : memref<216x256xf32, #tpu.memory_space<vmem>>, vector<8x256xf32>
    tpu.vector_store %arg9[%c40, %c0_29], %34 {strides = array<i32>} : memref<216x256xf32, #tpu.memory_space<vmem>>, vector<8x256xf32>,
    %c0_30 = arith.constant 0 : index
    %c16_31 = arith.constant 16 : index
    %36 = vector.load %arg8[%c0_30, %c16_31] : memref<8x402xf32, #tpu.memory_space<vmem>>, vector<8x256xf32>
    %c6 = arith.constant 6 : index
    %c0_32 = arith.constant 0 : index
    %37 = vector.load %arg6[%c6, %c0_32] : memref<27x256xf32, #tpu.memory_space<vmem>>, vector<1x256xf32>
    %38 = vector.broadcast %37 : vector<1x256xf32> to vector<8x256xf32>
    %39 = arith.mulf %36, %38 : vector<8x256xf32>
    %c48 = arith.constant 48 : index
    %c0_33 = arith.constant 0 : index
    %40 = vector.load %arg9[%c48, %c0_33] : memref<216x256xf32, #tpu.memory_space<vmem>>, vector<8x256xf32>
    tpu.vector_store %arg9[%c48, %c0_33], %39 {strides = array<i32>} : memref<216x256xf32, #tpu.memory_space<vmem>>, vector<8x256xf32>,
    %c0_34 = arith.constant 0 : index
    %c17 = arith.constant 17 : index
    %41 = vector.load %arg8[%c0_34, %c17] : memref<8x402xf32, #tpu.memory_space<vmem>>, vector<8x256xf32>
    %c7 = arith.constant 7 : index
    %c0_35 = arith.constant 0 : index
    %42 = vector.load %arg6[%c7, %c0_35] : memref<27x256xf32, #tpu.memory_space<vmem>>, vector<1x256xf32>
    %43 = vector.broadcast %42 : vector<1x256xf32> to vector<8x256xf32>
    %44 = arith.mulf %41, %43 : vector<8x256xf32>
    %c56 = arith.constant 56 : index
    %c0_36 = arith.constant 0 : index
    %45 = vector.load %arg9[%c56, %c0_36] : memref<216x256xf32, #tpu.memory_space<vmem>>, vector<8x256xf32>
    tpu.vector_store %arg9[%c56, %c0_36], %44 {strides = array<i32>} : memref<216x256xf32, #tpu.memory_space<vmem>>, vector<8x256xf32>,
    %c0_37 = arith.constant 0 : index
    %c18 = arith.constant 18 : index
    %46 = vector.load %arg8[%c0_37, %c18] : memref<8x402xf32, #tpu.memory_space<vmem>>, vector<8x256xf32>
    %c8_38 = arith.constant 8 : index
    %c0_39 = arith.constant 0 : index
    %47 = vector.load %arg6[%c8_38, %c0_39] : memref<27x256xf32, #tpu.memory_space<vmem>>, vector<1x256xf32>
    %48 = vector.broadcast %47 : vector<1x256xf32> to vector<8x256xf32>
    %49 = arith.mulf %46, %48 : vector<8x256xf32>
    %c64 = arith.constant 64 : index
    %c0_40 = arith.constant 0 : index
    %50 = vector.load %arg9[%c64, %c0_40] : memref<216x256xf32, #tpu.memory_space<vmem>>, vector<8x256xf32>
    tpu.vector_store %arg9[%c64, %c0_40], %49 {strides = array<i32>} : memref<216x256xf32, #tpu.memory_space<vmem>>, vector<8x256xf32>,
    %c0_41 = arith.constant 0 : index
    %c64_42 = arith.constant 64 : index
    %51 = vector.load %arg8[%c0_41, %c64_42] : memref<8x402xf32, #tpu.memory_space<vmem>>, vector<8x256xf32>
    %c9_43 = arith.constant 9 : index
    %c0_44 = arith.constant 0 : index
    %52 = vector.load %arg6[%c9_43, %c0_44] : memref<27x256xf32, #tpu.memory_space<vmem>>, vector<1x256xf32>
    %53 = vector.broadcast %52 : vector<1x256xf32> to vector<8x256xf32>
    %54 = arith.mulf %51, %53 : vector<8x256xf32>
    %c72 = arith.constant 72 : index
    %c0_45 = arith.constant 0 : index
    %55 = vector.load %arg9[%c72, %c0_45] : memref<216x256xf32, #tpu.memory_space<vmem>>, vector<8x256xf32>
    tpu.vector_store %arg9[%c72, %c0_45], %54 {strides = array<i32>} : memref<216x256xf32, #tpu.memory_space<vmem>>, vector<8x256xf32>,
    %c0_46 = arith.constant 0 : index
    %c65 = arith.constant 65 : index
    %56 = vector.load %arg8[%c0_46, %c65] : memref<8x402xf32, #tpu.memory_space<vmem>>, vector<8x256xf32>
    %c10_47 = arith.constant 10 : index
    %c0_48 = arith.constant 0 : index
    %57 = vector.load %arg6[%c10_47, %c0_48] : memref<27x256xf32, #tpu.memory_space<vmem>>, vector<1x256xf32>
    %58 = vector.broadcast %57 : vector<1x256xf32> to vector<8x256xf32>
    %59 = arith.mulf %56, %58 : vector<8x256xf32>
    %c80 = arith.constant 80 : index
    %c0_49 = arith.constant 0 : index
    %60 = vector.load %arg9[%c80, %c0_49] : memref<216x256xf32, #tpu.memory_space<vmem>>, vector<8x256xf32>
    tpu.vector_store %arg9[%c80, %c0_49], %59 {strides = array<i32>} : memref<216x256xf32, #tpu.memory_space<vmem>>, vector<8x256xf32>,
    %c0_50 = arith.constant 0 : index
    %c66 = arith.constant 66 : index
    %61 = vector.load %arg8[%c0_50, %c66] : memref<8x402xf32, #tpu.memory_space<vmem>>, vector<8x256xf32>
    %c11 = arith.constant 11 : index
    %c0_51 = arith.constant 0 : index
    %62 = vector.load %arg6[%c11, %c0_51] : memref<27x256xf32, #tpu.memory_space<vmem>>, vector<1x256xf32>
    %63 = vector.broadcast %62 : vector<1x256xf32> to vector<8x256xf32>
    %64 = arith.mulf %61, %63 : vector<8x256xf32>
    %c88 = arith.constant 88 : index
    %c0_52 = arith.constant 0 : index
    %65 = vector.load %arg9[%c88, %c0_52] : memref<216x256xf32, #tpu.memory_space<vmem>>, vector<8x256xf32>
    tpu.vector_store %arg9[%c88, %c0_52], %64 {strides = array<i32>} : memref<216x256xf32, #tpu.memory_space<vmem>>, vector<8x256xf32>,
    %c0_53 = arith.constant 0 : index
    %c72_54 = arith.constant 72 : index
    %66 = vector.load %arg8[%c0_53, %c72_54] : memref<8x402xf32, #tpu.memory_space<vmem>>, vector<8x256xf32>
    %c12 = arith.constant 12 : index
    %c0_55 = arith.constant 0 : index
    %67 = vector.load %arg6[%c12, %c0_55] : memref<27x256xf32, #tpu.memory_space<vmem>>, vector<1x256xf32>
    %68 = vector.broadcast %67 : vector<1x256xf32> to vector<8x256xf32>
    %69 = arith.mulf %66, %68 : vector<8x256xf32>
    %c96 = arith.constant 96 : index
    %c0_56 = arith.constant 0 : index
    %70 = vector.load %arg9[%c96, %c0_56] : memref<216x256xf32, #tpu.memory_space<vmem>>, vector<8x256xf32>
    tpu.vector_store %arg9[%c96, %c0_56], %69 {strides = array<i32>} : memref<216x256xf32, #tpu.memory_space<vmem>>, vector<8x256xf32>,
    %c0_57 = arith.constant 0 : index
    %c73_58 = arith.constant 73 : index
    %71 = vector.load %arg8[%c0_57, %c73_58] : memref<8x402xf32, #tpu.memory_space<vmem>>, vector<8x256xf32>
    %c13 = arith.constant 13 : index
    %c0_59 = arith.constant 0 : index
    %72 = vector.load %arg6[%c13, %c0_59] : memref<27x256xf32, #tpu.memory_space<vmem>>, vector<1x256xf32>
    %73 = vector.broadcast %72 : vector<1x256xf32> to vector<8x256xf32>
    %74 = arith.mulf %71, %73 : vector<8x256xf32>
    %c104 = arith.constant 104 : index
    %c0_60 = arith.constant 0 : index
    %75 = vector.load %arg9[%c104, %c0_60] : memref<216x256xf32, #tpu.memory_space<vmem>>, vector<8x256xf32>
    tpu.vector_store %arg9[%c104, %c0_60], %74 {strides = array<i32>} : memref<216x256xf32, #tpu.memory_space<vmem>>, vector<8x256xf32>,
    %c0_61 = arith.constant 0 : index
    %c74 = arith.constant 74 : index
    %76 = vector.load %arg8[%c0_61, %c74] : memref<8x402xf32, #tpu.memory_space<vmem>>, vector<8x256xf32>
    %c14 = arith.constant 14 : index
    %c0_62 = arith.constant 0 : index
    %77 = vector.load %arg6[%c14, %c0_62] : memref<27x256xf32, #tpu.memory_space<vmem>>, vector<1x256xf32>
    %78 = vector.broadcast %77 : vector<1x256xf32> to vector<8x256xf32>
    %79 = arith.mulf %76, %78 : vector<8x256xf32>
    %c112 = arith.constant 112 : index
    %c0_63 = arith.constant 0 : index
    %80 = vector.load %arg9[%c112, %c0_63] : memref<216x256xf32, #tpu.memory_space<vmem>>, vector<8x256xf32>
    tpu.vector_store %arg9[%c112, %c0_63], %79 {strides = array<i32>} : memref<216x256xf32, #tpu.memory_space<vmem>>, vector<8x256xf32>,
    %c0_64 = arith.constant 0 : index
    %c80_65 = arith.constant 80 : index
    %81 = vector.load %arg8[%c0_64, %c80_65] : memref<8x402xf32, #tpu.memory_space<vmem>>, vector<8x256xf32>
    %c15 = arith.constant 15 : index
    %c0_66 = arith.constant 0 : index
    %82 = vector.load %arg6[%c15, %c0_66] : memref<27x256xf32, #tpu.memory_space<vmem>>, vector<1x256xf32>
    %83 = vector.broadcast %82 : vector<1x256xf32> to vector<8x256xf32>
    %84 = arith.mulf %81, %83 : vector<8x256xf32>
    %c120 = arith.constant 120 : index
    %c0_67 = arith.constant 0 : index
    %85 = vector.load %arg9[%c120, %c0_67] : memref<216x256xf32, #tpu.memory_space<vmem>>, vector<8x256xf32>
    tpu.vector_store %arg9[%c120, %c0_67], %84 {strides = array<i32>} : memref<216x256xf32, #tpu.memory_space<vmem>>, vector<8x256xf32>,
    %c0_68 = arith.constant 0 : index
    %c81 = arith.constant 81 : index
    %86 = vector.load %arg8[%c0_68, %c81] : memref<8x402xf32, #tpu.memory_space<vmem>>, vector<8x256xf32>
    %c16_69 = arith.constant 16 : index
    %c0_70 = arith.constant 0 : index
    %87 = vector.load %arg6[%c16_69, %c0_70] : memref<27x256xf32, #tpu.memory_space<vmem>>, vector<1x256xf32>
    %88 = vector.broadcast %87 : vector<1x256xf32> to vector<8x256xf32>
    %89 = arith.mulf %86, %88 : vector<8x256xf32>
    %c128 = arith.constant 128 : index
    %c0_71 = arith.constant 0 : index
    %90 = vector.load %arg9[%c128, %c0_71] : memref<216x256xf32, #tpu.memory_space<vmem>>, vector<8x256xf32>
    tpu.vector_store %arg9[%c128, %c0_71], %89 {strides = array<i32>} : memref<216x256xf32, #tpu.memory_space<vmem>>, vector<8x256xf32>,
    %c0_72 = arith.constant 0 : index
    %c82 = arith.constant 82 : index
    %91 = vector.load %arg8[%c0_72, %c82] : memref<8x402xf32, #tpu.memory_space<vmem>>, vector<8x256xf32>
    %c17_73 = arith.constant 17 : index
    %c0_74 = arith.constant 0 : index
    %92 = vector.load %arg6[%c17_73, %c0_74] : memref<27x256xf32, #tpu.memory_space<vmem>>, vector<1x256xf32>
    %93 = vector.broadcast %92 : vector<1x256xf32> to vector<8x256xf32>
    %94 = arith.mulf %91, %93 : vector<8x256xf32>
    %c136 = arith.constant 136 : index
    %c0_75 = arith.constant 0 : index
    %95 = vector.load %arg9[%c136, %c0_75] : memref<216x256xf32, #tpu.memory_space<vmem>>, vector<8x256xf32>
    tpu.vector_store %arg9[%c136, %c0_75], %94 {strides = array<i32>} : memref<216x256xf32, #tpu.memory_space<vmem>>, vector<8x256xf32>,
    %c0_76 = arith.constant 0 : index
    %c128_77 = arith.constant 128 : index
    %96 = vector.load %arg8[%c0_76, %c128_77] : memref<8x402xf32, #tpu.memory_space<vmem>>, vector<8x256xf32>
    %c18_78 = arith.constant 18 : index
    %c0_79 = arith.constant 0 : index
    %97 = vector.load %arg6[%c18_78, %c0_79] : memref<27x256xf32, #tpu.memory_space<vmem>>, vector<1x256xf32>
    %98 = vector.broadcast %97 : vector<1x256xf32> to vector<8x256xf32>
    %99 = arith.mulf %96, %98 : vector<8x256xf32>
    %c144 = arith.constant 144 : index
    %c0_80 = arith.constant 0 : index
    %100 = vector.load %arg9[%c144, %c0_80] : memref<216x256xf32, #tpu.memory_space<vmem>>, vector<8x256xf32>
    tpu.vector_store %arg9[%c144, %c0_80], %99 {strides = array<i32>} : memref<216x256xf32, #tpu.memory_space<vmem>>, vector<8x256xf32>,
    %c0_81 = arith.constant 0 : index
    %c129 = arith.constant 129 : index
    %101 = vector.load %arg8[%c0_81, %c129] : memref<8x402xf32, #tpu.memory_space<vmem>>, vector<8x256xf32>
    %c19 = arith.constant 19 : index
    %c0_82 = arith.constant 0 : index
    %102 = vector.load %arg6[%c19, %c0_82] : memref<27x256xf32, #tpu.memory_space<vmem>>, vector<1x256xf32>
    %103 = vector.broadcast %102 : vector<1x256xf32> to vector<8x256xf32>
    %104 = arith.mulf %101, %103 : vector<8x256xf32>
    %c152 = arith.constant 152 : index
    %c0_83 = arith.constant 0 : index
    %105 = vector.load %arg9[%c152, %c0_83] : memref<216x256xf32, #tpu.memory_space<vmem>>, vector<8x256xf32>
    tpu.vector_store %arg9[%c152, %c0_83], %104 {strides = array<i32>} : memref<216x256xf32, #tpu.memory_space<vmem>>, vector<8x256xf32>,
    %c0_84 = arith.constant 0 : index
    %c130 = arith.constant 130 : index
    %106 = vector.load %arg8[%c0_84, %c130] : memref<8x402xf32, #tpu.memory_space<vmem>>, vector<8x256xf32>
    %c20 = arith.constant 20 : index
    %c0_85 = arith.constant 0 : index
    %107 = vector.load %arg6[%c20, %c0_85] : memref<27x256xf32, #tpu.memory_space<vmem>>, vector<1x256xf32>
    %108 = vector.broadcast %107 : vector<1x256xf32> to vector<8x256xf32>
    %109 = arith.mulf %106, %108 : vector<8x256xf32>
    %c160 = arith.constant 160 : index
    %c0_86 = arith.constant 0 : index
    %110 = vector.load %arg9[%c160, %c0_86] : memref<216x256xf32, #tpu.memory_space<vmem>>, vector<8x256xf32>
    tpu.vector_store %arg9[%c160, %c0_86], %109 {strides = array<i32>} : memref<216x256xf32, #tpu.memory_space<vmem>>, vector<8x256xf32>,
    %c0_87 = arith.constant 0 : index
    %c136_88 = arith.constant 136 : index
    %111 = vector.load %arg8[%c0_87, %c136_88] : memref<8x402xf32, #tpu.memory_space<vmem>>, vector<8x256xf32>
    %c21 = arith.constant 21 : index
    %c0_89 = arith.constant 0 : index
    %112 = vector.load %arg6[%c21, %c0_89] : memref<27x256xf32, #tpu.memory_space<vmem>>, vector<1x256xf32>
    %113 = vector.broadcast %112 : vector<1x256xf32> to vector<8x256xf32>
    %114 = arith.mulf %111, %113 : vector<8x256xf32>
    %c168 = arith.constant 168 : index
    %c0_90 = arith.constant 0 : index
    %115 = vector.load %arg9[%c168, %c0_90] : memref<216x256xf32, #tpu.memory_space<vmem>>, vector<8x256xf32>
    tpu.vector_store %arg9[%c168, %c0_90], %114 {strides = array<i32>} : memref<216x256xf32, #tpu.memory_space<vmem>>, vector<8x256xf32>,
    %c0_91 = arith.constant 0 : index
    %c137 = arith.constant 137 : index
    %116 = vector.load %arg8[%c0_91, %c137] : memref<8x402xf32, #tpu.memory_space<vmem>>, vector<8x256xf32>
    %c22 = arith.constant 22 : index
    %c0_92 = arith.constant 0 : index
    %117 = vector.load %arg6[%c22, %c0_92] : memref<27x256xf32, #tpu.memory_space<vmem>>, vector<1x256xf32>
    %118 = vector.broadcast %117 : vector<1x256xf32> to vector<8x256xf32>
    %119 = arith.mulf %116, %118 : vector<8x256xf32>
    %c176 = arith.constant 176 : index
    %c0_93 = arith.constant 0 : index
    %120 = vector.load %arg9[%c176, %c0_93] : memref<216x256xf32, #tpu.memory_space<vmem>>, vector<8x256xf32>
    tpu.vector_store %arg9[%c176, %c0_93], %119 {strides = array<i32>} : memref<216x256xf32, #tpu.memory_space<vmem>>, vector<8x256xf32>,
    %c0_94 = arith.constant 0 : index
    %c138 = arith.constant 138 : index
    %121 = vector.load %arg8[%c0_94, %c138] : memref<8x402xf32, #tpu.memory_space<vmem>>, vector<8x256xf32>
    %c23 = arith.constant 23 : index
    %c0_95 = arith.constant 0 : index
    %122 = vector.load %arg6[%c23, %c0_95] : memref<27x256xf32, #tpu.memory_space<vmem>>, vector<1x256xf32>
    %123 = vector.broadcast %122 : vector<1x256xf32> to vector<8x256xf32>
    %124 = arith.mulf %121, %123 : vector<8x256xf32>
    %c184 = arith.constant 184 : index
    %c0_96 = arith.constant 0 : index
    %125 = vector.load %arg9[%c184, %c0_96] : memref<216x256xf32, #tpu.memory_space<vmem>>, vector<8x256xf32>
    tpu.vector_store %arg9[%c184, %c0_96], %124 {strides = array<i32>} : memref<216x256xf32, #tpu.memory_space<vmem>>, vector<8x256xf32>,
    %c0_97 = arith.constant 0 : index
    %c144_98 = arith.constant 144 : index
    %126 = vector.load %arg8[%c0_97, %c144_98] : memref<8x402xf32, #tpu.memory_space<vmem>>, vector<8x256xf32>
    %c24_99 = arith.constant 24 : index
    %c0_100 = arith.constant 0 : index
    %127 = vector.load %arg6[%c24_99, %c0_100] : memref<27x256xf32, #tpu.memory_space<vmem>>, vector<1x256xf32>
    %128 = vector.broadcast %127 : vector<1x256xf32> to vector<8x256xf32>
    %129 = arith.mulf %126, %128 : vector<8x256xf32>
    %c192 = arith.constant 192 : index
    %c0_101 = arith.constant 0 : index
    %130 = vector.load %arg9[%c192, %c0_101] : memref<216x256xf32, #tpu.memory_space<vmem>>, vector<8x256xf32>
    tpu.vector_store %arg9[%c192, %c0_101], %129 {strides = array<i32>} : memref<216x256xf32, #tpu.memory_space<vmem>>, vector<8x256xf32>,
    %c0_102 = arith.constant 0 : index
    %c145 = arith.constant 145 : index
    %131 = vector.load %arg8[%c0_102, %c145] : memref<8x402xf32, #tpu.memory_space<vmem>>, vector<8x256xf32>
    %c25 = arith.constant 25 : index
    %c0_103 = arith.constant 0 : index
    %132 = vector.load %arg6[%c25, %c0_103] : memref<27x256xf32, #tpu.memory_space<vmem>>, vector<1x256xf32>
    %133 = vector.broadcast %132 : vector<1x256xf32> to vector<8x256xf32>
    %134 = arith.mulf %131, %133 : vector<8x256xf32>
    %c200 = arith.constant 200 : index
    %c0_104 = arith.constant 0 : index
    %135 = vector.load %arg9[%c200, %c0_104] : memref<216x256xf32, #tpu.memory_space<vmem>>, vector<8x256xf32>
    tpu.vector_store %arg9[%c200, %c0_104], %134 {strides = array<i32>} : memref<216x256xf32, #tpu.memory_space<vmem>>, vector<8x256xf32>,
    %c0_105 = arith.constant 0 : index
    %c146 = arith.constant 146 : index
    %136 = vector.load %arg8[%c0_105, %c146] : memref<8x402xf32, #tpu.memory_space<vmem>>, vector<8x256xf32>
    %c26 = arith.constant 26 : index
    %c0_106 = arith.constant 0 : index
    %137 = vector.load %arg6[%c26, %c0_106] : memref<27x256xf32, #tpu.memory_space<vmem>>, vector<1x256xf32>
    %138 = vector.broadcast %137 : vector<1x256xf32> to vector<8x256xf32>
    %139 = arith.mulf %136, %138 : vector<8x256xf32>
    %c208 = arith.constant 208 : index
    %c0_107 = arith.constant 0 : index
    %140 = vector.load %arg9[%c208, %c0_107] : memref<216x256xf32, #tpu.memory_space<vmem>>, vector<8x256xf32>
    tpu.vector_store %arg9[%c208, %c0_107], %139 {strides = array<i32>} : memref<216x256xf32, #tpu.memory_space<vmem>>, vector<8x256xf32>,
    %c0_108 = arith.constant 0 : index
    %c0_109 = arith.constant 0 : index
    %141 = vector.load %arg2[%c0_108, %c0_109] : memref<32x216xbf16, #tpu.memory_space<vmem>>, vector<32x216xbf16>
    %c0_110 = arith.constant 0 : index
    %c0_111 = arith.constant 0 : index
    %142 = vector.load %arg9[%c0_110, %c0_111] : memref<216x256xf32, #tpu.memory_space<vmem>>, vector<216x256xf32>
    %143 = arith.truncf %142 : vector<216x256xf32> to vector<216x256xbf16>
    %cst_112 = arith.constant dense<0.000000e+00> : vector<32x256xf32>
    %144 = tpu.matmul %141, %143, %cst_112 {dimension_numbers = #tpu.dot_dimension_numbers<[1], [0], [0], [1], [0, 0, 1, 1], [], []>} : vector<32x216xbf16>, vector<216x256xbf16>, vector<32x256xf32> -> vector<32x256xf32>
    %c0_113 = arith.constant 0 : index
    %c0_114 = arith.constant 0 : index
    %145 = vector.load %arg3[%c0_113, %c0_114] : memref<32x1xf32, #tpu.memory_space<vmem>>, vector<32x1xf32>
    %146 = vector.broadcast %145 : vector<32x1xf32> to vector<32x256xf32>
    %147 = arith.addf %144, %146 : vector<32x256xf32>
    %cst_115 = arith.constant dense<0.000000e+00> : vector<32xf32>
    %148 = vector.multi_reduction <add>, %147, %cst_115 [1] : vector<32x256xf32> to vector<32xf32>
    %149 = vector.shape_cast %148 : vector<32xf32> to vector<32x1xf32>
    %cst_116 = arith.constant 2.560000e+02 : f32
    %150 = vector.broadcast %cst_116 : f32 to vector<32x1xf32>
    %151 = arith.divf %149, %150 : vector<32x1xf32>
    %152 = arith.mulf %147, %147 : vector<32x256xf32>
    %cst_117 = arith.constant dense<0.000000e+00> : vector<32xf32>
    %153 = vector.multi_reduction <add>, %152, %cst_117 [1] : vector<32x256xf32> to vector<32xf32>
    %154 = vector.shape_cast %153 : vector<32xf32> to vector<32x1xf32>
    %cst_118 = arith.constant 2.560000e+02 : f32
    %155 = vector.broadcast %cst_118 : f32 to vector<32x1xf32>
    %156 = arith.divf %154, %155 : vector<32x1xf32>
    %157 = arith.mulf %151, %151 : vector<32x1xf32>
    %158 = arith.subf %156, %157 : vector<32x1xf32>
    %159 = vector.broadcast %151 : vector<32x1xf32> to vector<32x256xf32>
    %160 = arith.subf %147, %159 : vector<32x256xf32>
    %cst_119 = arith.constant 9.99999974E-6 : f32
    %161 = vector.broadcast %cst_119 : f32 to vector<32x1xf32>
    %162 = arith.addf %158, %161 : vector<32x1xf32>
    %163 = math.rsqrt %162 : vector<32x1xf32>
    %164 = vector.broadcast %163 : vector<32x1xf32> to vector<32x256xf32>
    %165 = arith.mulf %160, %164 : vector<32x256xf32>
    %c0_120 = arith.constant 0 : index
    %c0_121 = arith.constant 0 : index
    %166 = vector.load %arg4[%c0_120, %c0_121] : memref<32x1xf32, #tpu.memory_space<vmem>>, vector<32x1xf32>
    %167 = vector.broadcast %166 : vector<32x1xf32> to vector<32x256xf32>
    %168 = arith.mulf %165, %167 : vector<32x256xf32>
    %c0_122 = arith.constant 0 : index
    %c0_123 = arith.constant 0 : index
    %169 = vector.load %arg5[%c0_122, %c0_123] : memref<32x1xf32, #tpu.memory_space<vmem>>, vector<32x1xf32>
    %170 = vector.broadcast %169 : vector<32x1xf32> to vector<32x256xf32>
    %171 = arith.addf %168, %170 : vector<32x256xf32>
    %cst_124 = arith.constant 0.000000e+00 : f32
    %172 = vector.broadcast %cst_124 : f32 to vector<32x256xf32>
    %173 = arith.maximumf %171, %172 : vector<32x256xf32>
    %c0_125 = arith.constant 0 : index
    %c0_126 = arith.constant 0 : index
    %c0_127 = arith.constant 0 : index
    %174 = vector.load %arg7[%c0_125, %c0_126, %c0_127] : memref<1x32x256xf32, #tpu.memory_space<vmem>>, vector<1x32x256xf32>
    %175 = vector.shape_cast %174 : vector<1x32x256xf32> to vector<32x256xf32>
    %176 = vector.shape_cast %173 : vector<32x256xf32> to vector<1x32x256xf32>
    tpu.vector_store %arg7[%c0_125, %c0_126, %c0_127], %176 {strides = array<i32>} : memref<1x32x256xf32, #tpu.memory_space<vmem>>, vector<1x32x256xf32>,
    return
  }
  func.func @transform_0(%arg0: i32) -> (i32, i32, i32) {
    %c0_i32 = arith.constant 0 : i32
    %c0_i32_0 = arith.constant 0 : i32
    %c0_i32_1 = arith.constant 0 : i32
    return %arg0, %c0_i32, %c0_i32_0 : i32, i32, i32
  }
  func.func @transform_1(%arg0: i32) -> (i32, i32) {
    %c0_i32 = arith.constant 0 : i32
    %c0_i32_0 = arith.constant 0 : i32
    %c0_i32_1 = arith.constant 0 : i32
    return %c0_i32, %c0_i32_0 : i32, i32
  }
  func.func @transform_2(%arg0: i32) -> (i32, i32) {
    %c0_i32 = arith.constant 0 : i32
    %c0_i32_0 = arith.constant 0 : i32
    %c0_i32_1 = arith.constant 0 : i32
    return %c0_i32, %c0_i32_0 : i32, i32
  }
  func.func @transform_3(%arg0: i32) -> (i32, i32) {
    %c0_i32 = arith.constant 0 : i32
    %c0_i32_0 = arith.constant 0 : i32
    %c0_i32_1 = arith.constant 0 : i32
    return %c0_i32, %c0_i32_0 : i32, i32
  }
  func.func @transform_4(%arg0: i32) -> (i32, i32) {
    %c0_i32 = arith.constant 0 : i32
    %c0_i32_0 = arith.constant 0 : i32
    %c0_i32_1 = arith.constant 0 : i32
    return %c0_i32, %c0_i32_0 : i32, i32
  }
  func.func @transform_5(%arg0: i32) -> (i32, i32) {
    %c0_i32 = arith.constant 0 : i32
    %c0_i32_0 = arith.constant 0 : i32
    %c0_i32_1 = arith.constant 0 : i32
    return %c0_i32, %c0_i32_0 : i32, i32
  }
  func.func @transform_6(%arg0: i32) -> (i32, i32, i32) {
    %c0_i32 = arith.constant 0 : i32
    %c0_i32_0 = arith.constant 0 : i32
    %c0_i32_1 = arith.constant 0 : i32
    return %arg0, %c0_i32, %c0_i32_0 : i32, i32, i32
  }
}

module attributes {stable_mosaic.version = 11 : i64} {
  func.func @kernel(%arg0: i32, %arg1: i32, %arg2: memref<1x1x32x256xf32, #tpu.memory_space<vmem>>, %arg3: memref<1x8x256xf32, #tpu.memory_space<vmem>>, %arg4: memref<1x8x256xf32, #tpu.memory_space<vmem>>, %arg5: memref<32x216xbf16, #tpu.memory_space<vmem>>, %arg6: memref<32x1xf32, #tpu.memory_space<vmem>>, %arg7: memref<32x1xf32, #tpu.memory_space<vmem>>, %arg8: memref<32x1xf32, #tpu.memory_space<vmem>>, %arg9: memref<27x256xf32, #tpu.memory_space<vmem>>, %arg10: memref<1x1x8x256xf32, #tpu.memory_space<vmem>>, %arg11: memref<1x8x256xf32, #tpu.memory_space<vmem>>, %arg12: memref<8x402xf32, #tpu.memory_space<vmem>>, %arg13: memref<8x256xf32, #tpu.memory_space<vmem>>, %arg14: memref<216x256xf32, #tpu.memory_space<vmem>>) attributes {dimension_semantics = [#tpu.dimension_semantics<parallel>, #tpu.dimension_semantics<arbitrary>], iteration_bounds = array<i64: 2, 3>, scalar_prefetch = 0 : i64, scratch_operands = 3 : i64, tpu.core_type = #tpu.core_type<tc>, window_params = [{transform_indices = @transform_0, window_bounds = array<i64: 1, 1, 32, 256>}, {transform_indices = @transform_1, window_bounds = array<i64: 1, 8, 256>}, {transform_indices = @transform_2, window_bounds = array<i64: 1, 8, 256>}, {pipeline_mode = #tpu.pipeline_mode<synchronous>, transform_indices = @transform_3, window_bounds = array<i64: 32, 216>}, {pipeline_mode = #tpu.pipeline_mode<synchronous>, transform_indices = @transform_4, window_bounds = array<i64: 32, 1>}, {pipeline_mode = #tpu.pipeline_mode<synchronous>, transform_indices = @transform_5, window_bounds = array<i64: 32, 1>}, {pipeline_mode = #tpu.pipeline_mode<synchronous>, transform_indices = @transform_6, window_bounds = array<i64: 32, 1>}, {pipeline_mode = #tpu.pipeline_mode<synchronous>, transform_indices = @transform_7, window_bounds = array<i64: 27, 256>}, {transform_indices = @transform_8, window_bounds = array<i64: 1, 1, 8, 256>}, {transform_indices = @transform_9, window_bounds = array<i64: 1, 8, 256>}]} {
    %c0_i32 = arith.constant 0 : i32
    %0 = arith.cmpi eq, %arg1, %c0_i32 : i32
    %1 = arith.extui %0 : i1 to i32
    %c0_i32_0 = arith.constant 0 : i32
    %2 = arith.cmpi ne, %1, %c0_i32_0 : i32
    scf.if %2 {
      %cst_137 = arith.constant 0.000000e+00 : f32
      %208 = vector.broadcast %cst_137 : f32 to vector<8x73xf32>
      %c0_138 = arith.constant 0 : index
      %c0_139 = arith.constant 0 : index
      %209 = vector.load %arg12[%c0_138, %c0_139] : memref<8x402xf32, #tpu.memory_space<vmem>>, vector<8x73xf32>
      tpu.vector_store %arg12[%c0_138, %c0_139], %208 {strides = array<i32>} : memref<8x402xf32, #tpu.memory_space<vmem>>, vector<8x73xf32>,
      %c0_140 = arith.constant 0 : index
      %c329 = arith.constant 329 : index
      %210 = vector.load %arg12[%c0_140, %c329] : memref<8x402xf32, #tpu.memory_space<vmem>>, vector<8x73xf32>
      tpu.vector_store %arg12[%c0_140, %c329], %208 {strides = array<i32>} : memref<8x402xf32, #tpu.memory_space<vmem>>, vector<8x73xf32>,
      %c0_141 = arith.constant 0 : index
      %c0_142 = arith.constant 0 : index
      %c0_143 = arith.constant 0 : index
      %211 = vector.load %arg3[%c0_141, %c0_142, %c0_143] : memref<1x8x256xf32, #tpu.memory_space<vmem>>, vector<1x8x256xf32>
      %212 = vector.shape_cast %211 : vector<1x8x256xf32> to vector<8x256xf32>
      %c0_144 = arith.constant 0 : index
      %c73_145 = arith.constant 73 : index
      %213 = vector.load %arg12[%c0_144, %c73_145] : memref<8x402xf32, #tpu.memory_space<vmem>>, vector<8x256xf32>
      tpu.vector_store %arg12[%c0_144, %c73_145], %212 {strides = array<i32>} : memref<8x402xf32, #tpu.memory_space<vmem>>, vector<8x256xf32>,
      %c0_146 = arith.constant 0 : index
      %c0_147 = arith.constant 0 : index
      %c0_148 = arith.constant 0 : index
      %214 = vector.load %arg4[%c0_146, %c0_147, %c0_148] : memref<1x8x256xf32, #tpu.memory_space<vmem>>, vector<1x8x256xf32>
      %215 = vector.shape_cast %214 : vector<1x8x256xf32> to vector<8x256xf32>
      %c0_149 = arith.constant 0 : index
      %c0_150 = arith.constant 0 : index
      %216 = vector.load %arg13[%c0_149, %c0_150] : memref<8x256xf32, #tpu.memory_space<vmem>>, vector<8x256xf32>
      tpu.vector_store %arg13[%c0_149, %c0_150], %215 {strides = array<i32>} : memref<8x256xf32, #tpu.memory_space<vmem>>, vector<8x256xf32>,
    } else {
    }
    %c0 = arith.constant 0 : index
    %c0_1 = arith.constant 0 : index
    %3 = vector.load %arg12[%c0, %c0_1] : memref<8x402xf32, #tpu.memory_space<vmem>>, vector<8x256xf32>
    %c0_2 = arith.constant 0 : index
    %c0_3 = arith.constant 0 : index
    %4 = vector.load %arg9[%c0_2, %c0_3] : memref<27x256xf32, #tpu.memory_space<vmem>>, vector<1x256xf32>
    %5 = vector.broadcast %4 : vector<1x256xf32> to vector<8x256xf32>
    %6 = arith.mulf %3, %5 : vector<8x256xf32>
    %c0_4 = arith.constant 0 : index
    %c0_5 = arith.constant 0 : index
    %7 = vector.load %arg14[%c0_4, %c0_5] : memref<216x256xf32, #tpu.memory_space<vmem>>, vector<8x256xf32>
    tpu.vector_store %arg14[%c0_4, %c0_5], %6 {strides = array<i32>} : memref<216x256xf32, #tpu.memory_space<vmem>>, vector<8x256xf32>,
    %c0_6 = arith.constant 0 : index
    %c1 = arith.constant 1 : index
    %8 = vector.load %arg12[%c0_6, %c1] : memref<8x402xf32, #tpu.memory_space<vmem>>, vector<8x256xf32>
    %c1_7 = arith.constant 1 : index
    %c0_8 = arith.constant 0 : index
    %9 = vector.load %arg9[%c1_7, %c0_8] : memref<27x256xf32, #tpu.memory_space<vmem>>, vector<1x256xf32>
    %10 = vector.broadcast %9 : vector<1x256xf32> to vector<8x256xf32>
    %11 = arith.mulf %8, %10 : vector<8x256xf32>
    %c8 = arith.constant 8 : index
    %c0_9 = arith.constant 0 : index
    %12 = vector.load %arg14[%c8, %c0_9] : memref<216x256xf32, #tpu.memory_space<vmem>>, vector<8x256xf32>
    tpu.vector_store %arg14[%c8, %c0_9], %11 {strides = array<i32>} : memref<216x256xf32, #tpu.memory_space<vmem>>, vector<8x256xf32>,
    %c0_10 = arith.constant 0 : index
    %c2 = arith.constant 2 : index
    %13 = vector.load %arg12[%c0_10, %c2] : memref<8x402xf32, #tpu.memory_space<vmem>>, vector<8x256xf32>
    %c2_11 = arith.constant 2 : index
    %c0_12 = arith.constant 0 : index
    %14 = vector.load %arg9[%c2_11, %c0_12] : memref<27x256xf32, #tpu.memory_space<vmem>>, vector<1x256xf32>
    %15 = vector.broadcast %14 : vector<1x256xf32> to vector<8x256xf32>
    %16 = arith.mulf %13, %15 : vector<8x256xf32>
    %c16 = arith.constant 16 : index
    %c0_13 = arith.constant 0 : index
    %17 = vector.load %arg14[%c16, %c0_13] : memref<216x256xf32, #tpu.memory_space<vmem>>, vector<8x256xf32>
    tpu.vector_store %arg14[%c16, %c0_13], %16 {strides = array<i32>} : memref<216x256xf32, #tpu.memory_space<vmem>>, vector<8x256xf32>,
    %c0_14 = arith.constant 0 : index
    %c8_15 = arith.constant 8 : index
    %18 = vector.load %arg12[%c0_14, %c8_15] : memref<8x402xf32, #tpu.memory_space<vmem>>, vector<8x256xf32>
    %c3 = arith.constant 3 : index
    %c0_16 = arith.constant 0 : index
    %19 = vector.load %arg9[%c3, %c0_16] : memref<27x256xf32, #tpu.memory_space<vmem>>, vector<1x256xf32>
    %20 = vector.broadcast %19 : vector<1x256xf32> to vector<8x256xf32>
    %21 = arith.mulf %18, %20 : vector<8x256xf32>
    %c24 = arith.constant 24 : index
    %c0_17 = arith.constant 0 : index
    %22 = vector.load %arg14[%c24, %c0_17] : memref<216x256xf32, #tpu.memory_space<vmem>>, vector<8x256xf32>
    tpu.vector_store %arg14[%c24, %c0_17], %21 {strides = array<i32>} : memref<216x256xf32, #tpu.memory_space<vmem>>, vector<8x256xf32>,
    %c0_18 = arith.constant 0 : index
    %c9 = arith.constant 9 : index
    %23 = vector.load %arg12[%c0_18, %c9] : memref<8x402xf32, #tpu.memory_space<vmem>>, vector<8x256xf32>
    %c4 = arith.constant 4 : index
    %c0_19 = arith.constant 0 : index
    %24 = vector.load %arg9[%c4, %c0_19] : memref<27x256xf32, #tpu.memory_space<vmem>>, vector<1x256xf32>
    %25 = vector.broadcast %24 : vector<1x256xf32> to vector<8x256xf32>
    %26 = arith.mulf %23, %25 : vector<8x256xf32>
    %c32 = arith.constant 32 : index
    %c0_20 = arith.constant 0 : index
    %27 = vector.load %arg14[%c32, %c0_20] : memref<216x256xf32, #tpu.memory_space<vmem>>, vector<8x256xf32>
    tpu.vector_store %arg14[%c32, %c0_20], %26 {strides = array<i32>} : memref<216x256xf32, #tpu.memory_space<vmem>>, vector<8x256xf32>,
    %c0_21 = arith.constant 0 : index
    %c10 = arith.constant 10 : index
    %28 = vector.load %arg12[%c0_21, %c10] : memref<8x402xf32, #tpu.memory_space<vmem>>, vector<8x256xf32>
    %c5 = arith.constant 5 : index
    %c0_22 = arith.constant 0 : index
    %29 = vector.load %arg9[%c5, %c0_22] : memref<27x256xf32, #tpu.memory_space<vmem>>, vector<1x256xf32>
    %30 = vector.broadcast %29 : vector<1x256xf32> to vector<8x256xf32>
    %31 = arith.mulf %28, %30 : vector<8x256xf32>
    %c40 = arith.constant 40 : index
    %c0_23 = arith.constant 0 : index
    %32 = vector.load %arg14[%c40, %c0_23] : memref<216x256xf32, #tpu.memory_space<vmem>>, vector<8x256xf32>
    tpu.vector_store %arg14[%c40, %c0_23], %31 {strides = array<i32>} : memref<216x256xf32, #tpu.memory_space<vmem>>, vector<8x256xf32>,
    %c0_24 = arith.constant 0 : index
    %c16_25 = arith.constant 16 : index
    %33 = vector.load %arg12[%c0_24, %c16_25] : memref<8x402xf32, #tpu.memory_space<vmem>>, vector<8x256xf32>
    %c6 = arith.constant 6 : index
    %c0_26 = arith.constant 0 : index
    %34 = vector.load %arg9[%c6, %c0_26] : memref<27x256xf32, #tpu.memory_space<vmem>>, vector<1x256xf32>
    %35 = vector.broadcast %34 : vector<1x256xf32> to vector<8x256xf32>
    %36 = arith.mulf %33, %35 : vector<8x256xf32>
    %c48 = arith.constant 48 : index
    %c0_27 = arith.constant 0 : index
    %37 = vector.load %arg14[%c48, %c0_27] : memref<216x256xf32, #tpu.memory_space<vmem>>, vector<8x256xf32>
    tpu.vector_store %arg14[%c48, %c0_27], %36 {strides = array<i32>} : memref<216x256xf32, #tpu.memory_space<vmem>>, vector<8x256xf32>,
    %c0_28 = arith.constant 0 : index
    %c17 = arith.constant 17 : index
    %38 = vector.load %arg12[%c0_28, %c17] : memref<8x402xf32, #tpu.memory_space<vmem>>, vector<8x256xf32>
    %c7 = arith.constant 7 : index
    %c0_29 = arith.constant 0 : index
    %39 = vector.load %arg9[%c7, %c0_29] : memref<27x256xf32, #tpu.memory_space<vmem>>, vector<1x256xf32>
    %40 = vector.broadcast %39 : vector<1x256xf32> to vector<8x256xf32>
    %41 = arith.mulf %38, %40 : vector<8x256xf32>
    %c56 = arith.constant 56 : index
    %c0_30 = arith.constant 0 : index
    %42 = vector.load %arg14[%c56, %c0_30] : memref<216x256xf32, #tpu.memory_space<vmem>>, vector<8x256xf32>
    tpu.vector_store %arg14[%c56, %c0_30], %41 {strides = array<i32>} : memref<216x256xf32, #tpu.memory_space<vmem>>, vector<8x256xf32>,
    %c0_31 = arith.constant 0 : index
    %c18 = arith.constant 18 : index
    %43 = vector.load %arg12[%c0_31, %c18] : memref<8x402xf32, #tpu.memory_space<vmem>>, vector<8x256xf32>
    %c8_32 = arith.constant 8 : index
    %c0_33 = arith.constant 0 : index
    %44 = vector.load %arg9[%c8_32, %c0_33] : memref<27x256xf32, #tpu.memory_space<vmem>>, vector<1x256xf32>
    %45 = vector.broadcast %44 : vector<1x256xf32> to vector<8x256xf32>
    %46 = arith.mulf %43, %45 : vector<8x256xf32>
    %c64 = arith.constant 64 : index
    %c0_34 = arith.constant 0 : index
    %47 = vector.load %arg14[%c64, %c0_34] : memref<216x256xf32, #tpu.memory_space<vmem>>, vector<8x256xf32>
    tpu.vector_store %arg14[%c64, %c0_34], %46 {strides = array<i32>} : memref<216x256xf32, #tpu.memory_space<vmem>>, vector<8x256xf32>,
    %c0_35 = arith.constant 0 : index
    %c64_36 = arith.constant 64 : index
    %48 = vector.load %arg12[%c0_35, %c64_36] : memref<8x402xf32, #tpu.memory_space<vmem>>, vector<8x256xf32>
    %c9_37 = arith.constant 9 : index
    %c0_38 = arith.constant 0 : index
    %49 = vector.load %arg9[%c9_37, %c0_38] : memref<27x256xf32, #tpu.memory_space<vmem>>, vector<1x256xf32>
    %50 = vector.broadcast %49 : vector<1x256xf32> to vector<8x256xf32>
    %51 = arith.mulf %48, %50 : vector<8x256xf32>
    %c72 = arith.constant 72 : index
    %c0_39 = arith.constant 0 : index
    %52 = vector.load %arg14[%c72, %c0_39] : memref<216x256xf32, #tpu.memory_space<vmem>>, vector<8x256xf32>
    tpu.vector_store %arg14[%c72, %c0_39], %51 {strides = array<i32>} : memref<216x256xf32, #tpu.memory_space<vmem>>, vector<8x256xf32>,
    %c0_40 = arith.constant 0 : index
    %c65 = arith.constant 65 : index
    %53 = vector.load %arg12[%c0_40, %c65] : memref<8x402xf32, #tpu.memory_space<vmem>>, vector<8x256xf32>
    %c10_41 = arith.constant 10 : index
    %c0_42 = arith.constant 0 : index
    %54 = vector.load %arg9[%c10_41, %c0_42] : memref<27x256xf32, #tpu.memory_space<vmem>>, vector<1x256xf32>
    %55 = vector.broadcast %54 : vector<1x256xf32> to vector<8x256xf32>
    %56 = arith.mulf %53, %55 : vector<8x256xf32>
    %c80 = arith.constant 80 : index
    %c0_43 = arith.constant 0 : index
    %57 = vector.load %arg14[%c80, %c0_43] : memref<216x256xf32, #tpu.memory_space<vmem>>, vector<8x256xf32>
    tpu.vector_store %arg14[%c80, %c0_43], %56 {strides = array<i32>} : memref<216x256xf32, #tpu.memory_space<vmem>>, vector<8x256xf32>,
    %c0_44 = arith.constant 0 : index
    %c66 = arith.constant 66 : index
    %58 = vector.load %arg12[%c0_44, %c66] : memref<8x402xf32, #tpu.memory_space<vmem>>, vector<8x256xf32>
    %c11 = arith.constant 11 : index
    %c0_45 = arith.constant 0 : index
    %59 = vector.load %arg9[%c11, %c0_45] : memref<27x256xf32, #tpu.memory_space<vmem>>, vector<1x256xf32>
    %60 = vector.broadcast %59 : vector<1x256xf32> to vector<8x256xf32>
    %61 = arith.mulf %58, %60 : vector<8x256xf32>
    %c88 = arith.constant 88 : index
    %c0_46 = arith.constant 0 : index
    %62 = vector.load %arg14[%c88, %c0_46] : memref<216x256xf32, #tpu.memory_space<vmem>>, vector<8x256xf32>
    tpu.vector_store %arg14[%c88, %c0_46], %61 {strides = array<i32>} : memref<216x256xf32, #tpu.memory_space<vmem>>, vector<8x256xf32>,
    %c0_47 = arith.constant 0 : index
    %c72_48 = arith.constant 72 : index
    %63 = vector.load %arg12[%c0_47, %c72_48] : memref<8x402xf32, #tpu.memory_space<vmem>>, vector<8x256xf32>
    %c12 = arith.constant 12 : index
    %c0_49 = arith.constant 0 : index
    %64 = vector.load %arg9[%c12, %c0_49] : memref<27x256xf32, #tpu.memory_space<vmem>>, vector<1x256xf32>
    %65 = vector.broadcast %64 : vector<1x256xf32> to vector<8x256xf32>
    %66 = arith.mulf %63, %65 : vector<8x256xf32>
    %c96 = arith.constant 96 : index
    %c0_50 = arith.constant 0 : index
    %67 = vector.load %arg14[%c96, %c0_50] : memref<216x256xf32, #tpu.memory_space<vmem>>, vector<8x256xf32>
    tpu.vector_store %arg14[%c96, %c0_50], %66 {strides = array<i32>} : memref<216x256xf32, #tpu.memory_space<vmem>>, vector<8x256xf32>,
    %c0_51 = arith.constant 0 : index
    %c73 = arith.constant 73 : index
    %68 = vector.load %arg12[%c0_51, %c73] : memref<8x402xf32, #tpu.memory_space<vmem>>, vector<8x256xf32>
    %c13 = arith.constant 13 : index
    %c0_52 = arith.constant 0 : index
    %69 = vector.load %arg9[%c13, %c0_52] : memref<27x256xf32, #tpu.memory_space<vmem>>, vector<1x256xf32>
    %70 = vector.broadcast %69 : vector<1x256xf32> to vector<8x256xf32>
    %71 = arith.mulf %68, %70 : vector<8x256xf32>
    %c104 = arith.constant 104 : index
    %c0_53 = arith.constant 0 : index
    %72 = vector.load %arg14[%c104, %c0_53] : memref<216x256xf32, #tpu.memory_space<vmem>>, vector<8x256xf32>
    tpu.vector_store %arg14[%c104, %c0_53], %71 {strides = array<i32>} : memref<216x256xf32, #tpu.memory_space<vmem>>, vector<8x256xf32>,
    %c0_54 = arith.constant 0 : index
    %c74 = arith.constant 74 : index
    %73 = vector.load %arg12[%c0_54, %c74] : memref<8x402xf32, #tpu.memory_space<vmem>>, vector<8x256xf32>
    %c14 = arith.constant 14 : index
    %c0_55 = arith.constant 0 : index
    %74 = vector.load %arg9[%c14, %c0_55] : memref<27x256xf32, #tpu.memory_space<vmem>>, vector<1x256xf32>
    %75 = vector.broadcast %74 : vector<1x256xf32> to vector<8x256xf32>
    %76 = arith.mulf %73, %75 : vector<8x256xf32>
    %c112 = arith.constant 112 : index
    %c0_56 = arith.constant 0 : index
    %77 = vector.load %arg14[%c112, %c0_56] : memref<216x256xf32, #tpu.memory_space<vmem>>, vector<8x256xf32>
    tpu.vector_store %arg14[%c112, %c0_56], %76 {strides = array<i32>} : memref<216x256xf32, #tpu.memory_space<vmem>>, vector<8x256xf32>,
    %c0_57 = arith.constant 0 : index
    %c80_58 = arith.constant 80 : index
    %78 = vector.load %arg12[%c0_57, %c80_58] : memref<8x402xf32, #tpu.memory_space<vmem>>, vector<8x256xf32>
    %c15 = arith.constant 15 : index
    %c0_59 = arith.constant 0 : index
    %79 = vector.load %arg9[%c15, %c0_59] : memref<27x256xf32, #tpu.memory_space<vmem>>, vector<1x256xf32>
    %80 = vector.broadcast %79 : vector<1x256xf32> to vector<8x256xf32>
    %81 = arith.mulf %78, %80 : vector<8x256xf32>
    %c120 = arith.constant 120 : index
    %c0_60 = arith.constant 0 : index
    %82 = vector.load %arg14[%c120, %c0_60] : memref<216x256xf32, #tpu.memory_space<vmem>>, vector<8x256xf32>
    tpu.vector_store %arg14[%c120, %c0_60], %81 {strides = array<i32>} : memref<216x256xf32, #tpu.memory_space<vmem>>, vector<8x256xf32>,
    %c0_61 = arith.constant 0 : index
    %c81 = arith.constant 81 : index
    %83 = vector.load %arg12[%c0_61, %c81] : memref<8x402xf32, #tpu.memory_space<vmem>>, vector<8x256xf32>
    %c16_62 = arith.constant 16 : index
    %c0_63 = arith.constant 0 : index
    %84 = vector.load %arg9[%c16_62, %c0_63] : memref<27x256xf32, #tpu.memory_space<vmem>>, vector<1x256xf32>
    %85 = vector.broadcast %84 : vector<1x256xf32> to vector<8x256xf32>
    %86 = arith.mulf %83, %85 : vector<8x256xf32>
    %c128 = arith.constant 128 : index
    %c0_64 = arith.constant 0 : index
    %87 = vector.load %arg14[%c128, %c0_64] : memref<216x256xf32, #tpu.memory_space<vmem>>, vector<8x256xf32>
    tpu.vector_store %arg14[%c128, %c0_64], %86 {strides = array<i32>} : memref<216x256xf32, #tpu.memory_space<vmem>>, vector<8x256xf32>,
    %c0_65 = arith.constant 0 : index
    %c82 = arith.constant 82 : index
    %88 = vector.load %arg12[%c0_65, %c82] : memref<8x402xf32, #tpu.memory_space<vmem>>, vector<8x256xf32>
    %c17_66 = arith.constant 17 : index
    %c0_67 = arith.constant 0 : index
    %89 = vector.load %arg9[%c17_66, %c0_67] : memref<27x256xf32, #tpu.memory_space<vmem>>, vector<1x256xf32>
    %90 = vector.broadcast %89 : vector<1x256xf32> to vector<8x256xf32>
    %91 = arith.mulf %88, %90 : vector<8x256xf32>
    %c136 = arith.constant 136 : index
    %c0_68 = arith.constant 0 : index
    %92 = vector.load %arg14[%c136, %c0_68] : memref<216x256xf32, #tpu.memory_space<vmem>>, vector<8x256xf32>
    tpu.vector_store %arg14[%c136, %c0_68], %91 {strides = array<i32>} : memref<216x256xf32, #tpu.memory_space<vmem>>, vector<8x256xf32>,
    %c0_69 = arith.constant 0 : index
    %c128_70 = arith.constant 128 : index
    %93 = vector.load %arg12[%c0_69, %c128_70] : memref<8x402xf32, #tpu.memory_space<vmem>>, vector<8x256xf32>
    %c18_71 = arith.constant 18 : index
    %c0_72 = arith.constant 0 : index
    %94 = vector.load %arg9[%c18_71, %c0_72] : memref<27x256xf32, #tpu.memory_space<vmem>>, vector<1x256xf32>
    %95 = vector.broadcast %94 : vector<1x256xf32> to vector<8x256xf32>
    %96 = arith.mulf %93, %95 : vector<8x256xf32>
    %c144 = arith.constant 144 : index
    %c0_73 = arith.constant 0 : index
    %97 = vector.load %arg14[%c144, %c0_73] : memref<216x256xf32, #tpu.memory_space<vmem>>, vector<8x256xf32>
    tpu.vector_store %arg14[%c144, %c0_73], %96 {strides = array<i32>} : memref<216x256xf32, #tpu.memory_space<vmem>>, vector<8x256xf32>,
    %c0_74 = arith.constant 0 : index
    %c129 = arith.constant 129 : index
    %98 = vector.load %arg12[%c0_74, %c129] : memref<8x402xf32, #tpu.memory_space<vmem>>, vector<8x256xf32>
    %c19 = arith.constant 19 : index
    %c0_75 = arith.constant 0 : index
    %99 = vector.load %arg9[%c19, %c0_75] : memref<27x256xf32, #tpu.memory_space<vmem>>, vector<1x256xf32>
    %100 = vector.broadcast %99 : vector<1x256xf32> to vector<8x256xf32>
    %101 = arith.mulf %98, %100 : vector<8x256xf32>
    %c152 = arith.constant 152 : index
    %c0_76 = arith.constant 0 : index
    %102 = vector.load %arg14[%c152, %c0_76] : memref<216x256xf32, #tpu.memory_space<vmem>>, vector<8x256xf32>
    tpu.vector_store %arg14[%c152, %c0_76], %101 {strides = array<i32>} : memref<216x256xf32, #tpu.memory_space<vmem>>, vector<8x256xf32>,
    %c0_77 = arith.constant 0 : index
    %c130 = arith.constant 130 : index
    %103 = vector.load %arg12[%c0_77, %c130] : memref<8x402xf32, #tpu.memory_space<vmem>>, vector<8x256xf32>
    %c20 = arith.constant 20 : index
    %c0_78 = arith.constant 0 : index
    %104 = vector.load %arg9[%c20, %c0_78] : memref<27x256xf32, #tpu.memory_space<vmem>>, vector<1x256xf32>
    %105 = vector.broadcast %104 : vector<1x256xf32> to vector<8x256xf32>
    %106 = arith.mulf %103, %105 : vector<8x256xf32>
    %c160 = arith.constant 160 : index
    %c0_79 = arith.constant 0 : index
    %107 = vector.load %arg14[%c160, %c0_79] : memref<216x256xf32, #tpu.memory_space<vmem>>, vector<8x256xf32>
    tpu.vector_store %arg14[%c160, %c0_79], %106 {strides = array<i32>} : memref<216x256xf32, #tpu.memory_space<vmem>>, vector<8x256xf32>,
    %c0_80 = arith.constant 0 : index
    %c136_81 = arith.constant 136 : index
    %108 = vector.load %arg12[%c0_80, %c136_81] : memref<8x402xf32, #tpu.memory_space<vmem>>, vector<8x256xf32>
    %c21 = arith.constant 21 : index
    %c0_82 = arith.constant 0 : index
    %109 = vector.load %arg9[%c21, %c0_82] : memref<27x256xf32, #tpu.memory_space<vmem>>, vector<1x256xf32>
    %110 = vector.broadcast %109 : vector<1x256xf32> to vector<8x256xf32>
    %111 = arith.mulf %108, %110 : vector<8x256xf32>
    %c168 = arith.constant 168 : index
    %c0_83 = arith.constant 0 : index
    %112 = vector.load %arg14[%c168, %c0_83] : memref<216x256xf32, #tpu.memory_space<vmem>>, vector<8x256xf32>
    tpu.vector_store %arg14[%c168, %c0_83], %111 {strides = array<i32>} : memref<216x256xf32, #tpu.memory_space<vmem>>, vector<8x256xf32>,
    %c0_84 = arith.constant 0 : index
    %c137 = arith.constant 137 : index
    %113 = vector.load %arg12[%c0_84, %c137] : memref<8x402xf32, #tpu.memory_space<vmem>>, vector<8x256xf32>
    %c22 = arith.constant 22 : index
    %c0_85 = arith.constant 0 : index
    %114 = vector.load %arg9[%c22, %c0_85] : memref<27x256xf32, #tpu.memory_space<vmem>>, vector<1x256xf32>
    %115 = vector.broadcast %114 : vector<1x256xf32> to vector<8x256xf32>
    %116 = arith.mulf %113, %115 : vector<8x256xf32>
    %c176 = arith.constant 176 : index
    %c0_86 = arith.constant 0 : index
    %117 = vector.load %arg14[%c176, %c0_86] : memref<216x256xf32, #tpu.memory_space<vmem>>, vector<8x256xf32>
    tpu.vector_store %arg14[%c176, %c0_86], %116 {strides = array<i32>} : memref<216x256xf32, #tpu.memory_space<vmem>>, vector<8x256xf32>,
    %c0_87 = arith.constant 0 : index
    %c138 = arith.constant 138 : index
    %118 = vector.load %arg12[%c0_87, %c138] : memref<8x402xf32, #tpu.memory_space<vmem>>, vector<8x256xf32>
    %c23 = arith.constant 23 : index
    %c0_88 = arith.constant 0 : index
    %119 = vector.load %arg9[%c23, %c0_88] : memref<27x256xf32, #tpu.memory_space<vmem>>, vector<1x256xf32>
    %120 = vector.broadcast %119 : vector<1x256xf32> to vector<8x256xf32>
    %121 = arith.mulf %118, %120 : vector<8x256xf32>
    %c184 = arith.constant 184 : index
    %c0_89 = arith.constant 0 : index
    %122 = vector.load %arg14[%c184, %c0_89] : memref<216x256xf32, #tpu.memory_space<vmem>>, vector<8x256xf32>
    tpu.vector_store %arg14[%c184, %c0_89], %121 {strides = array<i32>} : memref<216x256xf32, #tpu.memory_space<vmem>>, vector<8x256xf32>,
    %c0_90 = arith.constant 0 : index
    %c144_91 = arith.constant 144 : index
    %123 = vector.load %arg12[%c0_90, %c144_91] : memref<8x402xf32, #tpu.memory_space<vmem>>, vector<8x256xf32>
    %c24_92 = arith.constant 24 : index
    %c0_93 = arith.constant 0 : index
    %124 = vector.load %arg9[%c24_92, %c0_93] : memref<27x256xf32, #tpu.memory_space<vmem>>, vector<1x256xf32>
    %125 = vector.broadcast %124 : vector<1x256xf32> to vector<8x256xf32>
    %126 = arith.mulf %123, %125 : vector<8x256xf32>
    %c192 = arith.constant 192 : index
    %c0_94 = arith.constant 0 : index
    %127 = vector.load %arg14[%c192, %c0_94] : memref<216x256xf32, #tpu.memory_space<vmem>>, vector<8x256xf32>
    tpu.vector_store %arg14[%c192, %c0_94], %126 {strides = array<i32>} : memref<216x256xf32, #tpu.memory_space<vmem>>, vector<8x256xf32>,
    %c0_95 = arith.constant 0 : index
    %c145 = arith.constant 145 : index
    %128 = vector.load %arg12[%c0_95, %c145] : memref<8x402xf32, #tpu.memory_space<vmem>>, vector<8x256xf32>
    %c25 = arith.constant 25 : index
    %c0_96 = arith.constant 0 : index
    %129 = vector.load %arg9[%c25, %c0_96] : memref<27x256xf32, #tpu.memory_space<vmem>>, vector<1x256xf32>
    %130 = vector.broadcast %129 : vector<1x256xf32> to vector<8x256xf32>
    %131 = arith.mulf %128, %130 : vector<8x256xf32>
    %c200 = arith.constant 200 : index
    %c0_97 = arith.constant 0 : index
    %132 = vector.load %arg14[%c200, %c0_97] : memref<216x256xf32, #tpu.memory_space<vmem>>, vector<8x256xf32>
    tpu.vector_store %arg14[%c200, %c0_97], %131 {strides = array<i32>} : memref<216x256xf32, #tpu.memory_space<vmem>>, vector<8x256xf32>,
    %c0_98 = arith.constant 0 : index
    %c146 = arith.constant 146 : index
    %133 = vector.load %arg12[%c0_98, %c146] : memref<8x402xf32, #tpu.memory_space<vmem>>, vector<8x256xf32>
    %c26 = arith.constant 26 : index
    %c0_99 = arith.constant 0 : index
    %134 = vector.load %arg9[%c26, %c0_99] : memref<27x256xf32, #tpu.memory_space<vmem>>, vector<1x256xf32>
    %135 = vector.broadcast %134 : vector<1x256xf32> to vector<8x256xf32>
    %136 = arith.mulf %133, %135 : vector<8x256xf32>
    %c208 = arith.constant 208 : index
    %c0_100 = arith.constant 0 : index
    %137 = vector.load %arg14[%c208, %c0_100] : memref<216x256xf32, #tpu.memory_space<vmem>>, vector<8x256xf32>
    tpu.vector_store %arg14[%c208, %c0_100], %136 {strides = array<i32>} : memref<216x256xf32, #tpu.memory_space<vmem>>, vector<8x256xf32>,
    %c0_101 = arith.constant 0 : index
    %c0_102 = arith.constant 0 : index
    %138 = vector.load %arg5[%c0_101, %c0_102] : memref<32x216xbf16, #tpu.memory_space<vmem>>, vector<32x216xbf16>
    %c0_103 = arith.constant 0 : index
    %c0_104 = arith.constant 0 : index
    %139 = vector.load %arg14[%c0_103, %c0_104] : memref<216x256xf32, #tpu.memory_space<vmem>>, vector<216x256xf32>
    %140 = arith.truncf %139 : vector<216x256xf32> to vector<216x256xbf16>
    %cst = arith.constant dense<0.000000e+00> : vector<32x256xf32>
    %141 = tpu.matmul %138, %140, %cst {dimension_numbers = #tpu.dot_dimension_numbers<[1], [0], [0], [1], [0, 0, 1, 1], [], []>} : vector<32x216xbf16>, vector<216x256xbf16>, vector<32x256xf32> -> vector<32x256xf32>
    %c0_105 = arith.constant 0 : index
    %c0_106 = arith.constant 0 : index
    %142 = vector.load %arg6[%c0_105, %c0_106] : memref<32x1xf32, #tpu.memory_space<vmem>>, vector<32x1xf32>
    %143 = vector.broadcast %142 : vector<32x1xf32> to vector<32x256xf32>
    %144 = arith.addf %141, %143 : vector<32x256xf32>
    %cst_107 = arith.constant dense<0.000000e+00> : vector<32xf32>
    %145 = vector.multi_reduction <add>, %144, %cst_107 [1] : vector<32x256xf32> to vector<32xf32>
    %146 = vector.shape_cast %145 : vector<32xf32> to vector<32x1xf32>
    %cst_108 = arith.constant 2.560000e+02 : f32
    %147 = vector.broadcast %cst_108 : f32 to vector<32x1xf32>
    %148 = arith.divf %146, %147 : vector<32x1xf32>
    %149 = arith.mulf %144, %144 : vector<32x256xf32>
    %cst_109 = arith.constant dense<0.000000e+00> : vector<32xf32>
    %150 = vector.multi_reduction <add>, %149, %cst_109 [1] : vector<32x256xf32> to vector<32xf32>
    %151 = vector.shape_cast %150 : vector<32xf32> to vector<32x1xf32>
    %cst_110 = arith.constant 2.560000e+02 : f32
    %152 = vector.broadcast %cst_110 : f32 to vector<32x1xf32>
    %153 = arith.divf %151, %152 : vector<32x1xf32>
    %154 = arith.mulf %148, %148 : vector<32x1xf32>
    %155 = arith.subf %153, %154 : vector<32x1xf32>
    %156 = vector.broadcast %148 : vector<32x1xf32> to vector<32x256xf32>
    %157 = arith.subf %144, %156 : vector<32x256xf32>
    %cst_111 = arith.constant 9.99999974E-6 : f32
    %158 = vector.broadcast %cst_111 : f32 to vector<32x1xf32>
    %159 = arith.addf %155, %158 : vector<32x1xf32>
    %160 = math.rsqrt %159 : vector<32x1xf32>
    %161 = vector.broadcast %160 : vector<32x1xf32> to vector<32x256xf32>
    %162 = arith.mulf %157, %161 : vector<32x256xf32>
    %c0_112 = arith.constant 0 : index
    %c0_113 = arith.constant 0 : index
    %163 = vector.load %arg7[%c0_112, %c0_113] : memref<32x1xf32, #tpu.memory_space<vmem>>, vector<32x1xf32>
    %164 = vector.broadcast %163 : vector<32x1xf32> to vector<32x256xf32>
    %165 = arith.mulf %162, %164 : vector<32x256xf32>
    %c0_114 = arith.constant 0 : index
    %c0_115 = arith.constant 0 : index
    %166 = vector.load %arg8[%c0_114, %c0_115] : memref<32x1xf32, #tpu.memory_space<vmem>>, vector<32x1xf32>
    %167 = vector.broadcast %166 : vector<32x1xf32> to vector<32x256xf32>
    %168 = arith.addf %165, %167 : vector<32x256xf32>
    %cst_116 = arith.constant 0.000000e+00 : f32
    %169 = vector.broadcast %cst_116 : f32 to vector<32x256xf32>
    %170 = arith.maximumf %168, %169 : vector<32x256xf32>
    %c0_117 = arith.constant 0 : index
    %c0_118 = arith.constant 0 : index
    %c0_119 = arith.constant 0 : index
    %c0_120 = arith.constant 0 : index
    %171 = vector.load %arg2[%c0_117, %c0_118, %c0_119, %c0_120] : memref<1x1x32x256xf32, #tpu.memory_space<vmem>>, vector<1x1x32x256xf32>
    %172 = vector.shape_cast %171 : vector<1x1x32x256xf32> to vector<32x256xf32>
    %173 = arith.addf %172, %170 : vector<32x256xf32>
    %174 = vector.extract_strided_slice %173 {offsets = [0, 0], sizes = [8, 256], strides = [1, 1]} : vector<32x256xf32> to vector<8x256xf32>
    %175 = arith.negf %174 : vector<8x256xf32>
    %176 = math.exp %175 : vector<8x256xf32>
    %cst_121 = arith.constant 1.000000e+00 : f32
    %177 = vector.broadcast %cst_121 : f32 to vector<8x256xf32>
    %178 = arith.addf %177, %176 : vector<8x256xf32>
    %179 = arith.divf %177, %178 : vector<8x256xf32>
    %180 = vector.extract_strided_slice %173 {offsets = [8, 0], sizes = [8, 256], strides = [1, 1]} : vector<32x256xf32> to vector<8x256xf32>
    %181 = arith.negf %180 : vector<8x256xf32>
    %182 = math.exp %181 : vector<8x256xf32>
    %cst_122 = arith.constant 1.000000e+00 : f32
    %183 = vector.broadcast %cst_122 : f32 to vector<8x256xf32>
    %184 = arith.addf %183, %182 : vector<8x256xf32>
    %185 = arith.divf %183, %184 : vector<8x256xf32>
    %186 = vector.extract_strided_slice %173 {offsets = [16, 0], sizes = [8, 256], strides = [1, 1]} : vector<32x256xf32> to vector<8x256xf32>
    %187 = arith.negf %186 : vector<8x256xf32>
    %188 = math.exp %187 : vector<8x256xf32>
    %cst_123 = arith.constant 1.000000e+00 : f32
    %189 = vector.broadcast %cst_123 : f32 to vector<8x256xf32>
    %190 = arith.addf %189, %188 : vector<8x256xf32>
    %191 = arith.divf %189, %190 : vector<8x256xf32>
    %192 = vector.extract_strided_slice %173 {offsets = [24, 0], sizes = [8, 256], strides = [1, 1]} : vector<32x256xf32> to vector<8x256xf32>
    %193 = math.tanh %192 : vector<8x256xf32>
    %c0_124 = arith.constant 0 : index
    %c0_125 = arith.constant 0 : index
    %194 = vector.load %arg13[%c0_124, %c0_125] : memref<8x256xf32, #tpu.memory_space<vmem>>, vector<8x256xf32>
    %195 = arith.mulf %179, %194 : vector<8x256xf32>
    %196 = arith.mulf %185, %193 : vector<8x256xf32>
    %197 = arith.addf %195, %196 : vector<8x256xf32>
    %198 = math.tanh %197 : vector<8x256xf32>
    %199 = arith.mulf %191, %198 : vector<8x256xf32>
    %c0_126 = arith.constant 0 : index
    %c0_127 = arith.constant 0 : index
    %200 = vector.load %arg13[%c0_126, %c0_127] : memref<8x256xf32, #tpu.memory_space<vmem>>, vector<8x256xf32>
    tpu.vector_store %arg13[%c0_126, %c0_127], %197 {strides = array<i32>} : memref<8x256xf32, #tpu.memory_space<vmem>>, vector<8x256xf32>,
    %c0_128 = arith.constant 0 : index
    %c73_129 = arith.constant 73 : index
    %201 = vector.load %arg12[%c0_128, %c73_129] : memref<8x402xf32, #tpu.memory_space<vmem>>, vector<8x256xf32>
    tpu.vector_store %arg12[%c0_128, %c73_129], %199 {strides = array<i32>} : memref<8x402xf32, #tpu.memory_space<vmem>>, vector<8x256xf32>,
    %c0_130 = arith.constant 0 : index
    %c0_131 = arith.constant 0 : index
    %c0_132 = arith.constant 0 : index
    %c0_133 = arith.constant 0 : index
    %202 = vector.load %arg10[%c0_130, %c0_131, %c0_132, %c0_133] : memref<1x1x8x256xf32, #tpu.memory_space<vmem>>, vector<1x1x8x256xf32>
    %203 = vector.shape_cast %202 : vector<1x1x8x256xf32> to vector<8x256xf32>
    %204 = vector.shape_cast %199 : vector<8x256xf32> to vector<1x1x8x256xf32>
    tpu.vector_store %arg10[%c0_130, %c0_131, %c0_132, %c0_133], %204 {strides = array<i32>} : memref<1x1x8x256xf32, #tpu.memory_space<vmem>>, vector<1x1x8x256xf32>,
    %c0_134 = arith.constant 0 : index
    %c0_135 = arith.constant 0 : index
    %c0_136 = arith.constant 0 : index
    %205 = vector.load %arg11[%c0_134, %c0_135, %c0_136] : memref<1x8x256xf32, #tpu.memory_space<vmem>>, vector<1x8x256xf32>
    %206 = vector.shape_cast %205 : vector<1x8x256xf32> to vector<8x256xf32>
    %207 = vector.shape_cast %197 : vector<8x256xf32> to vector<1x8x256xf32>
    tpu.vector_store %arg11[%c0_134, %c0_135, %c0_136], %207 {strides = array<i32>} : memref<1x8x256xf32, #tpu.memory_space<vmem>>, vector<1x8x256xf32>,
    return
  }
  func.func @transform_0(%arg0: i32, %arg1: i32) -> (i32, i32, i32, i32) {
    %c0_i32 = arith.constant 0 : i32
    %c0_i32_0 = arith.constant 0 : i32
    %c0_i32_1 = arith.constant 0 : i32
    return %arg0, %arg1, %c0_i32, %c0_i32_0 : i32, i32, i32, i32
  }
  func.func @transform_1(%arg0: i32, %arg1: i32) -> (i32, i32, i32) {
    %c0_i32 = arith.constant 0 : i32
    %c0_i32_0 = arith.constant 0 : i32
    %c0_i32_1 = arith.constant 0 : i32
    return %arg0, %c0_i32, %c0_i32_0 : i32, i32, i32
  }
  func.func @transform_2(%arg0: i32, %arg1: i32) -> (i32, i32, i32) {
    %c0_i32 = arith.constant 0 : i32
    %c0_i32_0 = arith.constant 0 : i32
    %c0_i32_1 = arith.constant 0 : i32
    return %arg0, %c0_i32, %c0_i32_0 : i32, i32, i32
  }
  func.func @transform_3(%arg0: i32, %arg1: i32) -> (i32, i32) {
    %c0_i32 = arith.constant 0 : i32
    %c0_i32_0 = arith.constant 0 : i32
    %c0_i32_1 = arith.constant 0 : i32
    return %c0_i32, %c0_i32_0 : i32, i32
  }
  func.func @transform_4(%arg0: i32, %arg1: i32) -> (i32, i32) {
    %c0_i32 = arith.constant 0 : i32
    %c0_i32_0 = arith.constant 0 : i32
    %c0_i32_1 = arith.constant 0 : i32
    return %c0_i32, %c0_i32_0 : i32, i32
  }
  func.func @transform_5(%arg0: i32, %arg1: i32) -> (i32, i32) {
    %c0_i32 = arith.constant 0 : i32
    %c0_i32_0 = arith.constant 0 : i32
    %c0_i32_1 = arith.constant 0 : i32
    return %c0_i32, %c0_i32_0 : i32, i32
  }
  func.func @transform_6(%arg0: i32, %arg1: i32) -> (i32, i32) {
    %c0_i32 = arith.constant 0 : i32
    %c0_i32_0 = arith.constant 0 : i32
    %c0_i32_1 = arith.constant 0 : i32
    return %c0_i32, %c0_i32_0 : i32, i32
  }
  func.func @transform_7(%arg0: i32, %arg1: i32) -> (i32, i32) {
    %c0_i32 = arith.constant 0 : i32
    %c0_i32_0 = arith.constant 0 : i32
    %c0_i32_1 = arith.constant 0 : i32
    return %c0_i32, %c0_i32_0 : i32, i32
  }
  func.func @transform_8(%arg0: i32, %arg1: i32) -> (i32, i32, i32, i32) {
    %c0_i32 = arith.constant 0 : i32
    %c0_i32_0 = arith.constant 0 : i32
    %c0_i32_1 = arith.constant 0 : i32
    return %arg0, %arg1, %c0_i32, %c0_i32_0 : i32, i32, i32, i32
  }
  func.func @transform_9(%arg0: i32, %arg1: i32) -> (i32, i32, i32) {
    %c0_i32 = arith.constant 0 : i32
    %c0_i32_0 = arith.constant 0 : i32
    %c0_i32_1 = arith.constant 0 : i32
    return %arg0, %c0_i32, %c0_i32_0 : i32, i32, i32
  }
}

</mosaic_0001>

<bundles_post_ra>
// kernel: squeeze.5
= control target key start
LH: loop header
LB: loop body
LE: loop exit
PB: predicated region body
PF: predicated region fallthrough
CT: control target
= control target key end

     0   :  { %vm109_vm0 = vcmask 1041409   ;;  %vm113_vm1 = vcmask 1042434   ;;  %vm117_vm2 = vcmask 1043459   ;;  %vm121_vm3 = vcmask 1044484   ;;  %s2757_s27 = smov 120   ;;  %s2758_s2 = smov 112   ;;  %s5081_s0 = inlined_call_operand.vmem [shape: f32[1,2,8,4,8,8], index: 0, kind: input, shape index: {}]   ;;  %s5082_s1 = inlined_call_operand.vmem [shape: f32[2,8,256], index: 1, kind: output, shape index: {}]  }
   0x1   :  { %vm125_vm4 = vcmask 1045509   ;;  %vm129_vm5 = vcmask 1046534   ;;  %vm133_vm6 = vcmask 1047559   ;;  %v2234_v0 = vld [vmem:[%s5081_s0 + $0x10f] sm:$0x1]   ;;  %s2759_s12 = smov 104  }
   0x2   :  { %v2235_v1 = vld [vmem:[%s5081_s0 + $0x12e] sm:$0x2]   ;;  %v2243_v24 = vld [vmem:[%s5081_s0 + $0x11f] sm:$0x1]   ;;  %v2260_v53 = vld [vmem:[%s5081_s0 + $0x1e] sm:$0x1]  }
   0x3   :  { %v2236_v2 = vld [vmem:[%s5081_s0 + $0x14d] sm:$0x4]   ;;  %v179_v4 = vsel %vm109_vm0, %v2235_v1, %v2234_v0  ;;  %v2244_v25 = vld [vmem:[%s5081_s0 + $0x13e] sm:$0x2]   ;;  %v2261_v54 = vld [vmem:[%s5081_s0 + $0x3d] sm:$0x2]  }
   0x4   :  { %v2237_v3 = vld [vmem:[%s5081_s0 + $0x16c] sm:$0x8]   ;;  %v183_v8 = vsel %vm113_vm1, %v2236_v2, %v179_v4  ;;  %v2245_v26 = vld [vmem:[%s5081_s0 + $0x15d] sm:$0x4]   ;;  %v214_v29 = vsel %vm109_vm0, %v2244_v25, %v2243_v24  ;;  %v283_v57 = vsel %vm109_vm0, %v2261_v54, %v2260_v53  ;;  %v2262_v58 = vld [vmem:[%s5081_s0 + $0x5c] sm:$0x4]  }
   0x5   :  { %v2238_v5 = vld [vmem:[%s5081_s0 + $0x18b] sm:$0x10]   ;;  %v187_v12 = vsel %vm117_vm2, %v2237_v3, %v183_v8  ;;  %v2246_v30 = vld [vmem:[%s5081_s0 + $0x17c] sm:$0x8]   ;;  %v218_v35 = vsel %vm113_vm1, %v2245_v26, %v214_v29  ;;  %v2263_v59 = vld [vmem:[%s5081_s0 + $0x7b] sm:$0x8]   ;;  %v287_v63 = vsel %vm113_vm1, %v2262_v58, %v283_v57 }
   0x6   :  { %v2239_v6 = vld [vmem:[%s5081_s0 + $0x1aa] sm:$0x20]   ;;  %v191_v17 = vsel %vm121_vm3, %v2238_v5, %v187_v12  ;;  %v2247_v31 = vld [vmem:[%s5081_s0 + $0x19b] sm:$0x10]   ;;  %v222_v40 = vsel %vm117_vm2, %v2246_v30, %v218_v35  ;;  %v2264_v60 = vld [vmem:[%s5081_s0 + $0x9a] sm:$0x10]   ;;  %v291_v4 = vsel %vm117_vm2, %v2263_v59, %v287_v63 }
   0x7   :  { %v2240_v7 = vld [vmem:[%s5081_s0 + $0x1c9] sm:$0x40]   ;;  %v195_v22 = vsel %vm125_vm4, %v2239_v6, %v191_v17  ;;  %v2248_v32 = vld [vmem:[%s5081_s0 + $0x1ba] sm:$0x20]   ;;  %v226_v45 = vsel %vm121_vm3, %v2247_v31, %v222_v40  ;;  %v2265_v0 = vld [vmem:[%s5081_s0 + $0xb9] sm:$0x20]  }
   0x8   :  { %v2241_v9 = vld [vmem:[%s5081_s0 + $0x1e8] sm:$0x80]   ;;  %v199_v27 = vsel %vm129_vm5, %v2240_v7, %v195_v22  ;;  %v2249_v36 = vld [vmem:[%s5081_s0 + $0x1d9] sm:$0x40]   ;;  %v230_v50 = vsel %vm125_vm4, %v2248_v32, %v226_v45  ;;  %v2266_v1 = vld [vmem:[%s5081_s0 + $0xd8] sm:$0x40]  }
   0x9   :  { %v2217_v10 = vld [vmem:[%s5081_s0 + $0xf] sm:$0x1]   ;;  %v203_v33 = vsel %vm133_vm6, %v2241_v9, %v199_v27  ;;  %v2250_v37 = vld [vmem:[%s5081_s0 + $0x1f8] sm:$0x80]   ;;  %v234_v55 = vsel %vm129_vm5, %v2249_v36, %v230_v50  ;;  %v2267_v2 = vld [vmem:[%s5081_s0 + $0xf7] sm:$0x80]   ;;  %v295_v9 = vsel %vm121_vm3, %v2264_v60, %v291_v4 }
   0xa   :  { %v2218_v11 = vld [vmem:[%s5081_s0 + $0x2e] sm:$0x2]   ;;  %v2225_v38 = vld [vmem:[%s5081_s0 + $0x1f] sm:$0x1]   ;;  %204 = vrot.lane.b32.xlu1 %v203_v33, %s2757_s27  ;;  %v238_v61 = vsel %vm133_vm6, %v2250_v37, %v234_v55  ;;  %v2252_v5 = vld [vmem:[%s5081_s0 + $0xe] sm:$0x1]  }
   0xb   :  { %v110_v13 = vsel %vm109_vm0, %v2218_v11, %v2217_v10  ;;  %v2219_v14 = vld [vmem:[%s5081_s0 + $0x4d] sm:$0x4]   ;;  %v2226_v41 = vld [vmem:[%s5081_s0 + $0x3e] sm:$0x2]   ;;  %v2253_v6 = vld [vmem:[%s5081_s0 + $0x2d] sm:$0x2]  }
   0xc   :  { %v2220_v15 = vld [vmem:[%s5081_s0 + $0x6c] sm:$0x8]   ;;  %v114_v18 = vsel %vm113_vm1, %v2219_v14, %v110_v13  ;;  %v2227_v42 = vld [vmem:[%s5081_s0 + $0x5d] sm:$0x4]   ;;  %v144_v46 = vsel %vm109_vm0, %v2226_v41, %v2225_v38  ;;  %v2254_v7 = vld [vmem:[%s5081_s0 + $0x4c] sm:$0x4]   ;;  %v249_v10 = vsel %vm109_vm0, %v2253_v6, %v2252_v5 }
   0xd   :  { %v2221_v16 = vld [vmem:[%s5081_s0 + $0x8b] sm:$0x10]   ;;  %v118_v23 = vsel %vm117_vm2, %v2220_v15, %v114_v18  ;;  %v2228_v43 = vld [vmem:[%s5081_s0 + $0x7c] sm:$0x8]   ;;  %v148_v51 = vsel %vm113_vm1, %v2227_v42, %v144_v46  ;;  %v2255_v11 = vld [vmem:[%s5081_s0 + $0x6b] sm:$0x8]   ;;  %v299_v15 = vsel %vm125_vm4, %v2265_v0, %v295_v9 }
   0xe   :  { %v2222_v19 = vld [vmem:[%s5081_s0 + $0xaa] sm:$0x20]   ;;  %v122_v28 = vsel %vm121_vm3, %v2221_v16, %v118_v23  ;;  %v2229_v47 = vld [vmem:[%s5081_s0 + $0x9b] sm:$0x10]   ;;  %v152_v56 = vsel %vm117_vm2, %v2228_v43, %v148_v51  ;;  %239 = vrot.lane.b32.xlu1 %v238_v61, %s2757_s27  ;;  %v2256_v12 = vld [vmem:[%s5081_s0 + $0x8a] sm:$0x10]   ;;  %v253_v16 = vsel %vm113_vm1, %v2254_v7, %v249_v10 }
   0xf   :  { %v2223_v20 = vld [vmem:[%s5081_s0 + $0xc9] sm:$0x40]   ;;  %v126_v34 = vsel %vm125_vm4, %v2222_v19, %v122_v28  ;;  %v2230_v48 = vld [vmem:[%s5081_s0 + $0xba] sm:$0x20]   ;;  %v156_v62 = vsel %vm121_vm3, %v2229_v47, %v152_v56  ;;  %v2257_v13 = vld [vmem:[%s5081_s0 + $0xa9] sm:$0x20]  }
  0x10   :  { %v2224_v21 = vld [vmem:[%s5081_s0 + $0xe8] sm:$0x80]   ;;  %v130_v39 = vsel %vm129_vm5, %v2223_v20, %v126_v34  ;;  %v2231_v49 = vld [vmem:[%s5081_s0 + $0xd9] sm:$0x40]   ;;  %v160_v3 = vsel %vm125_vm4, %v2230_v48, %v156_v62  ;;  %v2258_v17 = vld [vmem:[%s5081_s0 + $0xc8] sm:$0x40]   ;;  %v303_v20 = vsel %vm129_vm5, %v2266_v1, %v299_v15 }
  0x11   :  { %v134_v44 = vsel %vm133_vm6, %v2224_v21, %v130_v39  ;;  %v2232_v52 = vld [vmem:[%s5081_s0 + $0xf8] sm:$0x80]   ;;  %v164_v8 = vsel %vm129_vm5, %v2231_v49, %v160_v3  ;;  %v2259_v18 = vld [vmem:[%s5081_s0 + $0xe7] sm:$0x80]   ;;  %v2278_v19 = vld [vmem:[%s5081_s0 + $0x11e] sm:$0x1]   ;;  %v257_v21 = vsel %vm117_vm2, %v2255_v11, %v253_v16  ;;  %v307_v25 = vsel %vm133_vm6, %v2267_v2, %v303_v20 }
  0x12   :  { %135 = vrot.lane.b32.xlu0 %v134_v44, %s2757_s27  ;;  %v168_v14 = vsel %vm133_vm6, %v2232_v52, %v164_v8  ;;  %v2279_v22 = vld [vmem:[%s5081_s0 + $0x13d] sm:$0x2]   ;;  %v261_v26 = vsel %vm121_vm3, %v2256_v12, %v257_v21  ;;  %308 = vrot.lane.b32.xlu1 %v307_v25, %s2758_s2  ;;  %v2269_v34 = vld [vmem:[%s5081_s0 + $0x10e] sm:$0x1]   ;;  %s2760_s19 = smov 96   ;;  %s2761_s29 = smov 88  }
  0x13   :  { %v2280_v23 = vld [vmem:[%s5081_s0 + $0x15c] sm:$0x4]   ;;  %v353_v27 = vsel %vm109_vm0, %v2279_v22, %v2278_v19  ;;  %v265_v31 = vsel %vm125_vm4, %v2257_v13, %v261_v26  ;;  %v2270_v35 = vld [vmem:[%s5081_s0 + $0x12d] sm:$0x2]   ;;  %v2295_v50 = vld [vmem:[%s5081_s0 + $0x1d] sm:$0x1]  }
  0x14   :  { %v2281_v24 = vld [vmem:[%s5081_s0 + $0x17b] sm:$0x8]   ;;  %v357_v32 = vsel %vm113_vm1, %v2280_v23, %v353_v27  ;;  %v269_v36 = vsel %vm129_vm5, %v2258_v17, %v265_v31  ;;  %v318_v38 = vsel %vm109_vm0, %v2270_v35, %v2269_v34  ;;  %v2271_v39 = vld [vmem:[%s5081_s0 + $0x14c] sm:$0x4]   ;;  %v2296_v51 = vld [vmem:[%s5081_s0 + $0x3c] sm:$0x2]  }
  0x15   :  { %v2282_v28 = vld [vmem:[%s5081_s0 + $0x19a] sm:$0x10]   ;;  %v361_v37 = vsel %vm117_vm2, %v2281_v24, %v357_v32  ;;  %v2272_v40 = vld [vmem:[%s5081_s0 + $0x16b] sm:$0x8]   ;;  %v273_v42 = vsel %vm133_vm6, %v2259_v18, %v269_v36  ;;  %v322_v44 = vsel %vm113_vm1, %v2271_v39, %v318_v38  ;;  %v2297_v52 = vld [vmem:[%s5081_s0 + $0x5b] sm:$0x4]   ;;  %v422_v55 = vsel %vm109_vm0, %v2296_v51, %v2295_v50 }
  0x16   :  { %169 = vrot.lane.b32.xlu0 %v168_v14, %s2757_s27  ;;  %v2283_v29 = vld [vmem:[%s5081_s0 + $0x1b9] sm:$0x20]   ;;  %v2273_v41 = vld [vmem:[%s5081_s0 + $0x18a] sm:$0x10]   ;;  %v365_v43 = vsel %vm121_vm3, %v2282_v28, %v361_v37  ;;  %v326_v49 = vsel %vm117_vm2, %v2272_v40, %v322_v44  ;;  %v2298_v56 = vld [vmem:[%s5081_s0 + $0x7a] sm:$0x8]   ;;  %v426_v61 = vsel %vm113_vm1, %v2297_v52, %v422_v55 }
  0x17   :  { %v2284_v30 = vld [vmem:[%s5081_s0 + $0x1d8] sm:$0x40]   ;;  %v2274_v45 = vld [vmem:[%s5081_s0 + $0x1a9] sm:$0x20]   ;;  %v369_v48 = vsel %vm125_vm4, %v2283_v29, %v365_v43  ;;  %v330_v54 = vsel %vm121_vm3, %v2273_v41, %v326_v49  ;;  %v2299_v57 = vld [vmem:[%s5081_s0 + $0x99] sm:$0x10]   ;;  %v430_v2 = vsel %vm117_vm2, %v2298_v56, %v426_v61 }
  0x18   :  { %v2285_v33 = vld [vmem:[%s5081_s0 + $0x1f7] sm:$0x80]   ;;  %v2275_v46 = vld [vmem:[%s5081_s0 + $0x1c8] sm:$0x40]   ;;  %v373_v53 = vsel %vm129_vm5, %v2284_v30, %v369_v48  ;;  %v2300_v58 = vld [vmem:[%s5081_s0 + $0xb8] sm:$0x20]   ;;  %v334_v60 = vsel %vm125_vm4, %v2274_v45, %v330_v54  ;;  %v434_v7 = vsel %vm121_vm3, %v2299_v57, %v430_v2 }
  0x19   :  { %v2276_v47 = vld [vmem:[%s5081_s0 + $0x1e7] sm:$0x80]   ;;  %v377_v59 = vsel %vm133_vm6, %v2285_v33, %v373_v53  ;;  %v2301_v62 = vld [vmem:[%s5081_s0 + $0xd7] sm:$0x40]   ;;  %v2287_v0 = vld [vmem:[%s5081_s0 + $0xd] sm:$0x1]   ;;  %v338_v1 = vsel %vm129_vm5, %v2275_v46, %v334_v60  ;;  %v438_v12 = vsel %vm125_vm4, %v2300_v58, %v434_v7 }
  0x1a   :  { %274 = vrot.lane.b32.xlu0 %v273_v42, %s2758_s2  ;;  %v2302_v63 = vld [vmem:[%s5081_s0 + $0xf6] sm:$0x80]   ;;  %378 = vrot.lane.b32.xlu1 %v377_v59, %s2758_s2  ;;  %v2288_v3 = vld [vmem:[%s5081_s0 + $0x2c] sm:$0x2]   ;;  %v342_v6 = vsel %vm133_vm6, %v2276_v47, %v338_v1  ;;  %v442_v17 = vsel %vm129_vm5, %v2301_v62, %v438_v12  ;;  %s2762_s8 = smov 80   ;;  %s2763_s11 = smov 72  }
  0x1b   :  { %v2289_v4 = vld [vmem:[%s5081_s0 + $0x4b] sm:$0x4]   ;;  %v388_v8 = vsel %vm109_vm0, %v2288_v3, %v2287_v0  ;;  %v2313_v15 = vld [vmem:[%s5081_s0 + $0x11d] sm:$0x1]   ;;  %v446_v23 = vsel %vm133_vm6, %v2302_v63, %v442_v17  ;;  %v2330_v47 = vld [vmem:[%s5081_s0 + $0x1c] sm:$0x1]  }
  0x1c   :  { %v2290_v5 = vld [vmem:[%s5081_s0 + $0x6a] sm:$0x8]   ;;  %v392_v13 = vsel %vm113_vm1, %v2289_v4, %v388_v8  ;;  %v2314_v16 = vld [vmem:[%s5081_s0 + $0x13c] sm:$0x2]   ;;  %v2331_v48 = vld [vmem:[%s5081_s0 + $0x3b] sm:$0x2]  }
  0x1d   :  { %v2291_v9 = vld [vmem:[%s5081_s0 + $0x89] sm:$0x10]   ;;  %v396_v18 = vsel %vm117_vm2, %v2290_v5, %v392_v13  ;;  %v492_v19 = vsel %vm109_vm0, %v2314_v16, %v2313_v15  ;;  %v2315_v20 = vld [vmem:[%s5081_s0 + $0x15b] sm:$0x4]   ;;  %v2332_v49 = vld [vmem:[%s5081_s0 + $0x5a] sm:$0x4]   ;;  %v561_v52 = vsel %vm109_vm0, %v2331_v48, %v2330_v47 }
  0x1e   :  { %v2292_v10 = vld [vmem:[%s5081_s0 + $0xa8] sm:$0x20]   ;;  %343 = vrot.lane.b32.xlu0 %v342_v6, %s2758_s2  ;;  %v2316_v21 = vld [vmem:[%s5081_s0 + $0x17a] sm:$0x8]   ;;  %v400_v24 = vsel %vm121_vm3, %v2291_v9, %v396_v18  ;;  %v496_v25 = vsel %vm113_vm1, %v2315_v20, %v492_v19  ;;  %447 = vrot.lane.b32.xlu1 %v446_v23, %s2759_s12  ;;  %v565_v57 = vsel %vm113_vm1, %v2332_v49, %v561_v52  ;;  %s2764_s27 = smov 64   ;;  %s2765_s28 = smov 56  }
  0x1f   :  { %v2293_v11 = vld [vmem:[%s5081_s0 + $0xc7] sm:$0x40]   ;;  %v2317_v22 = vld [vmem:[%s5081_s0 + $0x199] sm:$0x10]   ;;  %v404_v29 = vsel %vm125_vm4, %v2292_v10, %v400_v24  ;;  %v500_v30 = vsel %vm117_vm2, %v2316_v21, %v496_v25  ;;  %v2333_v53 = vld [vmem:[%s5081_s0 + $0x79] sm:$0x8]  }
  0x20   :  { %v2294_v14 = vld [vmem:[%s5081_s0 + $0xe6] sm:$0x80]   ;;  %v2318_v26 = vld [vmem:[%s5081_s0 + $0x1b8] sm:$0x20]   ;;  %v408_v34 = vsel %vm129_vm5, %v2293_v11, %v404_v29  ;;  %v504_v35 = vsel %vm121_vm3, %v2317_v22, %v500_v30  ;;  %v2334_v54 = vld [vmem:[%s5081_s0 + $0x98] sm:$0x10]   ;;  %v569_v62 = vsel %vm117_vm2, %v2333_v53, %v565_v57 }
  0x21   :  { %v2319_v27 = vld [vmem:[%s5081_s0 + $0x1d7] sm:$0x40]   ;;  %v2304_v31 = vld [vmem:[%s5081_s0 + $0x10d] sm:$0x1]   ;;  %v412_v40 = vsel %vm133_vm6, %v2294_v14, %v408_v34  ;;  %v508_v41 = vsel %vm125_vm4, %v2318_v26, %v504_v35  ;;  %v2335_v55 = vld [vmem:[%s5081_s0 + $0xb7] sm:$0x20]   ;;  %v573_v3 = vsel %vm121_vm3, %v2334_v54, %v569_v62 }
  0x22   :  { %v2320_v28 = vld [vmem:[%s5081_s0 + $0x1f6] sm:$0x80]   ;;  %v2305_v32 = vld [vmem:[%s5081_s0 + $0x12c] sm:$0x2]   ;;  %413 = vrot.lane.b32.xlu0 %v412_v40, %s2759_s12  ;;  %v512_v45 = vsel %vm129_vm5, %v2319_v27, %v508_v41  ;;  %v2336_v58 = vld [vmem:[%s5081_s0 + $0xd6] sm:$0x40]   ;;  %v577_v8 = vsel %vm125_vm4, %v2335_v55, %v573_v3 }
  0x23   :  { %v2306_v33 = vld [vmem:[%s5081_s0 + $0x14b] sm:$0x4]   ;;  %v457_v36 = vsel %vm109_vm0, %v2305_v32, %v2304_v31  ;;  %v516_v50 = vsel %vm133_vm6, %v2320_v28, %v512_v45  ;;  %v2337_v59 = vld [vmem:[%s5081_s0 + $0xf5] sm:$0x80]   ;;  %v2322_v60 = vld [vmem:[%s5081_s0 + $0xc] sm:$0x1]   ;;  %v581_v13 = vsel %vm129_vm5, %v2336_v58, %v577_v8 }
  0x24   :  { %v2307_v37 = vld [vmem:[%s5081_s0 + $0x16a] sm:$0x8]   ;;  %v461_v42 = vsel %vm113_vm1, %v2306_v33, %v457_v36  ;;  %517 = vrot.lane.b32.xlu1 %v516_v50, %s2759_s12  ;;  %v2323_v63 = vld [vmem:[%s5081_s0 + $0x2b] sm:$0x2]   ;;  %v2348_v11 = vld [vmem:[%s5081_s0 + $0x11c] sm:$0x1]   ;;  %v585_v19 = vsel %vm133_vm6, %v2337_v59, %v581_v13 }
  0x25   :  { %v2308_v38 = vld [vmem:[%s5081_s0 + $0x189] sm:$0x10]   ;;  %v465_v46 = vsel %vm117_vm2, %v2307_v37, %v461_v42  ;;  %v2324_v0 = vld [vmem:[%s5081_s0 + $0x4a] sm:$0x4]   ;;  %v527_v4 = vsel %vm109_vm0, %v2323_v63, %v2322_v60  ;;  %v2349_v12 = vld [vmem:[%s5081_s0 + $0x13b] sm:$0x2]  }
  0x26   :  { %v2309_v39 = vld [vmem:[%s5081_s0 + $0x1a8] sm:$0x20]   ;;  %v469_v51 = vsel %vm121_vm3, %v2308_v38, %v465_v46  ;;  %v2325_v1 = vld [vmem:[%s5081_s0 + $0x69] sm:$0x8]   ;;  %v531_v9 = vsel %vm113_vm1, %v2324_v0, %v527_v4  ;;  %v631_v15 = vsel %vm109_vm0, %v2349_v12, %v2348_v11  ;;  %v2350_v16 = vld [vmem:[%s5081_s0 + $0x15a] sm:$0x4]  }
  0x27   :  { %v2310_v43 = vld [vmem:[%s5081_s0 + $0x1c7] sm:$0x40]   ;;  %v473_v56 = vsel %vm125_vm4, %v2309_v39, %v469_v51  ;;  %v2326_v5 = vld [vmem:[%s5081_s0 + $0x88] sm:$0x10]   ;;  %v535_v14 = vsel %vm117_vm2, %v2325_v1, %v531_v9  ;;  %v2351_v17 = vld [vmem:[%s5081_s0 + $0x179] sm:$0x8]   ;;  %v635_v21 = vsel %vm113_vm1, %v2350_v16, %v631_v15 }
  0x28   :  { %v2311_v44 = vld [vmem:[%s5081_s0 + $0x1e6] sm:$0x80]   ;;  %v477_v61 = vsel %vm129_vm5, %v2310_v43, %v473_v56  ;;  %v2327_v6 = vld [vmem:[%s5081_s0 + $0xa7] sm:$0x20]   ;;  %v2352_v18 = vld [vmem:[%s5081_s0 + $0x198] sm:$0x10]   ;;  %v539_v20 = vsel %vm121_vm3, %v2326_v5, %v535_v14  ;;  %586 = vrot.lane.b32.xlu1 %v585_v19, %s2760_s19  ;;  %v639_v26 = vsel %vm117_vm2, %v2351_v17, %v635_v21 }
  0x29   :  { %v481_v2 = vsel %vm133_vm6, %v2311_v44, %v477_v61  ;;  %v2328_v7 = vld [vmem:[%s5081_s0 + $0xc6] sm:$0x40]   ;;  %v2353_v22 = vld [vmem:[%s5081_s0 + $0x1b7] sm:$0x20]   ;;  %v543_v25 = vsel %vm125_vm4, %v2327_v6, %v539_v20  ;;  %v643_v31 = vsel %vm121_vm3, %v2352_v18, %v639_v26  ;;  %v2365_v41 = vld [vmem:[%s5081_s0 + $0x1b] sm:$0x1]  }
  0x2a   :  { %482 = vrot.lane.b32.xlu0 %v481_v2, %s2759_s12  ;;  %v2329_v10 = vld [vmem:[%s5081_s0 + $0xe5] sm:$0x80]   ;;  %v2354_v23 = vld [vmem:[%s5081_s0 + $0x1d6] sm:$0x40]   ;;  %v547_v30 = vsel %vm129_vm5, %v2328_v7, %v543_v25  ;;  %v647_v37 = vsel %vm125_vm4, %v2353_v22, %v643_v31  ;;  %v2366_v44 = vld [vmem:[%s5081_s0 + $0x3a] sm:$0x2]  }
  0x2b   :  { %v2355_v24 = vld [vmem:[%s5081_s0 + $0x1f5] sm:$0x80]   ;;  %v2339_v27 = vld [vmem:[%s5081_s0 + $0x10c] sm:$0x1]   ;;  %v551_v36 = vsel %vm133_vm6, %v2329_v10, %v547_v30  ;;  %v651_v42 = vsel %vm129_vm5, %v2354_v23, %v647_v37  ;;  %v2367_v45 = vld [vmem:[%s5081_s0 + $0x59] sm:$0x4]   ;;  %v700_v49 = vsel %vm109_vm0, %v2366_v44, %v2365_v41 }
  0x2c   :  { %v2340_v28 = vld [vmem:[%s5081_s0 + $0x12b] sm:$0x2]   ;;  %v2368_v46 = vld [vmem:[%s5081_s0 + $0x78] sm:$0x8]   ;;  %v655_v47 = vsel %vm133_vm6, %v2355_v24, %v651_v42  ;;  %v704_v54 = vsel %vm113_vm1, %v2367_v45, %v700_v49  ;;  %v2357_v56 = vld [vmem:[%s5081_s0 + $0xb] sm:$0x1]  }
  0x2d   :  { %v2341_v29 = vld [vmem:[%s5081_s0 + $0x14a] sm:$0x4]   ;;  %v596_v32 = vsel %vm109_vm0, %v2340_v28, %v2339_v27  ;;  %v2369_v50 = vld [vmem:[%s5081_s0 + $0x97] sm:$0x10]   ;;  %656 = vrot.lane.b32.xlu1 %v655_v47, %s2760_s19  ;;  %v2358_v57 = vld [vmem:[%s5081_s0 + $0x2a] sm:$0x2]   ;;  %v708_v59 = vsel %vm117_vm2, %v2368_v46, %v704_v54 }
  0x2e   :  { %v2342_v33 = vld [vmem:[%s5081_s0 + $0x169] sm:$0x8]   ;;  %v600_v38 = vsel %vm113_vm1, %v2341_v29, %v596_v32  ;;  %552 = vrot.lane.b32.xlu0 %v551_v36, %s2760_s19  ;;  %v2370_v51 = vld [vmem:[%s5081_s0 + $0xb6] sm:$0x20]   ;;  %v666_v60 = vsel %vm109_vm0, %v2358_v57, %v2357_v56  ;;  %v2359_v61 = vld [vmem:[%s5081_s0 + $0x49] sm:$0x4]   ;;  %v712_v1 = vsel %vm121_vm3, %v2369_v50, %v708_v59 }
  0x2f   :  { %v2343_v34 = vld [vmem:[%s5081_s0 + $0x188] sm:$0x10]   ;;  %v604_v43 = vsel %vm117_vm2, %v2342_v33, %v600_v38  ;;  %v2371_v52 = vld [vmem:[%s5081_s0 + $0xd5] sm:$0x40]   ;;  %v2360_v62 = vld [vmem:[%s5081_s0 + $0x68] sm:$0x8]   ;;  %v670_v2 = vsel %vm113_vm1, %v2359_v61, %v666_v60  ;;  %v716_v6 = vsel %vm125_vm4, %v2370_v51, %v712_v1 }
  0x30   :  { %v2344_v35 = vld [vmem:[%s5081_s0 + $0x1a7] sm:$0x20]   ;;  %v608_v48 = vsel %vm121_vm3, %v2343_v34, %v604_v43  ;;  %v2372_v55 = vld [vmem:[%s5081_s0 + $0xf4] sm:$0x80]   ;;  %v2361_v63 = vld [vmem:[%s5081_s0 + $0x87] sm:$0x10]   ;;  %v674_v7 = vsel %vm117_vm2, %v2360_v62, %v670_v2  ;;  %v720_v11 = vsel %vm129_vm5, %v2371_v52, %v716_v6 }
  0x31   :  { %v2345_v39 = vld [vmem:[%s5081_s0 + $0x1c6] sm:$0x40]   ;;  %v612_v53 = vsel %vm125_vm4, %v2344_v35, %v608_v48  ;;  %v2362_v3 = vld [vmem:[%s5081_s0 + $0xa6] sm:$0x20]   ;;  %v2383_v8 = vld [vmem:[%s5081_s0 + $0x11b] sm:$0x1]   ;;  %v678_v12 = vsel %vm121_vm3, %v2361_v63, %v674_v7  ;;  %v724_v17 = vsel %vm133_vm6, %v2372_v55, %v720_v11 }
  0x32   :  { %v2346_v40 = vld [vmem:[%s5081_s0 + $0x1e5] sm:$0x80]   ;;  %v616_v58 = vsel %vm129_vm5, %v2345_v39, %v612_v53  ;;  %v2363_v4 = vld [vmem:[%s5081_s0 + $0xc5] sm:$0x40]   ;;  %v2384_v9 = vld [vmem:[%s5081_s0 + $0x13a] sm:$0x2]   ;;  %v682_v18 = vsel %vm125_vm4, %v2362_v3, %v678_v12  ;;  %725 = vrot.lane.b32.xlu1 %v724_v17, %s2761_s29 }
  0x33   :  { %v620_v0 = vsel %vm133_vm6, %v2346_v40, %v616_v58  ;;  %v2364_v5 = vld [vmem:[%s5081_s0 + $0xe4] sm:$0x80]   ;;  %v2385_v10 = vld [vmem:[%s5081_s0 + $0x159] sm:$0x4]   ;;  %v770_v13 = vsel %vm109_vm0, %v2384_v9, %v2383_v8  ;;  %v686_v23 = vsel %vm129_vm5, %v2363_v4, %v682_v18  ;;  %v2400_v37 = vld [vmem:[%s5081_s0 + $0x1a] sm:$0x1]  }
  0x34   :  { %621 = vrot.lane.b32.xlu0 %v620_v0, %s2760_s19  ;;  %v2386_v14 = vld [vmem:[%s5081_s0 + $0x178] sm:$0x8]   ;;  %v774_v19 = vsel %vm113_vm1, %v2385_v10, %v770_v13  ;;  %v2374_v22 = vld [vmem:[%s5081_s0 + $0x10b] sm:$0x1]   ;;  %v690_v28 = vsel %vm133_vm6, %v2364_v5, %v686_v23  ;;  %v2401_v40 = vld [vmem:[%s5081_s0 + $0x39] sm:$0x2]  }
  0x35   :  { %v2387_v15 = vld [vmem:[%s5081_s0 + $0x197] sm:$0x10]   ;;  %v778_v24 = vsel %vm117_vm2, %v2386_v14, %v774_v19  ;;  %v2375_v25 = vld [vmem:[%s5081_s0 + $0x12a] sm:$0x2]   ;;  %v2402_v41 = vld [vmem:[%s5081_s0 + $0x58] sm:$0x4]   ;;  %v839_v45 = vsel %vm109_vm0, %v2401_v40, %v2400_v37 }
  0x36   :  { %v2388_v16 = vld [vmem:[%s5081_s0 + $0x1b6] sm:$0x20]   ;;  %v2376_v26 = vld [vmem:[%s5081_s0 + $0x149] sm:$0x4]   ;;  %v782_v29 = vsel %vm121_vm3, %v2387_v15, %v778_v24  ;;  %v735_v30 = vsel %vm109_vm0, %v2375_v25, %v2374_v22  ;;  %v2403_v42 = vld [vmem:[%s5081_s0 + $0x77] sm:$0x8]   ;;  %v843_v50 = vsel %vm113_vm1, %v2402_v41, %v839_v45 }
  0x37   :  { %v2389_v20 = vld [vmem:[%s5081_s0 + $0x1d5] sm:$0x40]   ;;  %v2377_v27 = vld [vmem:[%s5081_s0 + $0x168] sm:$0x8]   ;;  %v786_v34 = vsel %vm125_vm4, %v2388_v16, %v782_v29  ;;  %v739_v35 = vsel %vm113_vm1, %v2376_v26, %v735_v30  ;;  %v2404_v46 = vld [vmem:[%s5081_s0 + $0x96] sm:$0x10]   ;;  %v847_v55 = vsel %vm117_vm2, %v2403_v42, %v843_v50 }
  0x38   :  { %v2390_v21 = vld [vmem:[%s5081_s0 + $0x1f4] sm:$0x80]   ;;  %v2378_v31 = vld [vmem:[%s5081_s0 + $0x187] sm:$0x10]   ;;  %691 = vrot.lane.b32.xlu0 %v690_v28, %s2761_s29  ;;  %v790_v38 = vsel %vm129_vm5, %v2389_v20, %v786_v34  ;;  %v743_v39 = vsel %vm117_vm2, %v2377_v27, %v739_v35  ;;  %v2405_v47 = vld [vmem:[%s5081_s0 + $0xb5] sm:$0x20]   ;;  %v851_v61 = vsel %vm121_vm3, %v2404_v46, %v847_v55 }
  0x39   :  { %v2379_v32 = vld [vmem:[%s5081_s0 + $0x1a6] sm:$0x20]   ;;  %v794_v43 = vsel %vm133_vm6, %v2390_v21, %v790_v38  ;;  %v747_v44 = vsel %vm121_vm3, %v2378_v31, %v743_v39  ;;  %v2406_v48 = vld [vmem:[%s5081_s0 + $0xd4] sm:$0x40]   ;;  %v2392_v52 = vld [vmem:[%s5081_s0 + $0xa] sm:$0x1]   ;;  %v855_v2 = vsel %vm125_vm4, %v2405_v47, %v851_v61 }
  0x3a   :  { %v2380_v33 = vld [vmem:[%s5081_s0 + $0x1c5] sm:$0x40]   ;;  %795 = vrot.lane.b32.xlu1 %v794_v43, %s2761_s29  ;;  %v751_v49 = vsel %vm125_vm4, %v2379_v32, %v747_v44  ;;  %v2407_v51 = vld [vmem:[%s5081_s0 + $0xf3] sm:$0x80]   ;;  %v2393_v53 = vld [vmem:[%s5081_s0 + $0x29] sm:$0x2]   ;;  %v859_v7 = vsel %vm129_vm5, %v2406_v48, %v855_v2 }
  0x3b   :  { %v2381_v36 = vld [vmem:[%s5081_s0 + $0x1e4] sm:$0x80]   ;;  %v755_v54 = vsel %vm129_vm5, %v2380_v33, %v751_v49  ;;  %v805_v56 = vsel %vm109_vm0, %v2393_v53, %v2392_v52  ;;  %v2394_v57 = vld [vmem:[%s5081_s0 + $0x48] sm:$0x4]   ;;  %v2418_v4 = vld [vmem:[%s5081_s0 + $0x11a] sm:$0x1]   ;;  %v863_v13 = vsel %vm133_vm6, %v2407_v51, %v859_v7 }
  0x3c   :  { %v2395_v58 = vld [vmem:[%s5081_s0 + $0x67] sm:$0x8]   ;;  %v759_v60 = vsel %vm133_vm6, %v2381_v36, %v755_v54  ;;  %v809_v62 = vsel %vm113_vm1, %v2394_v57, %v805_v56  ;;  %v2419_v5 = vld [vmem:[%s5081_s0 + $0x139] sm:$0x2]   ;;  %v2435_v33 = vld [vmem:[%s5081_s0 + $0x19] sm:$0x1]  }
  0x3d   :  { %v2396_v59 = vld [vmem:[%s5081_s0 + $0x86] sm:$0x10]   ;;  %760 = vrot.lane.b32.xlu0 %v759_v60, %s2761_s29  ;;  %v813_v3 = vsel %vm117_vm2, %v2395_v58, %v809_v62  ;;  %v2420_v6 = vld [vmem:[%s5081_s0 + $0x158] sm:$0x4]   ;;  %v909_v9 = vsel %vm109_vm0, %v2419_v5, %v2418_v4  ;;  %v2436_v34 = vld [vmem:[%s5081_s0 + $0x38] sm:$0x2]  }
  0x3e   :  { %v2397_v63 = vld [vmem:[%s5081_s0 + $0xa5] sm:$0x20]   ;;  %v817_v8 = vsel %vm121_vm3, %v2396_v59, %v813_v3  ;;  %v2421_v10 = vld [vmem:[%s5081_s0 + $0x177] sm:$0x8]   ;;  %v913_v15 = vsel %vm113_vm1, %v2420_v6, %v909_v9  ;;  %864 = vrot.lane.b32.xlu1 %v863_v13, %s2762_s8  ;;  %v978_v37 = vsel %vm109_vm0, %v2436_v34, %v2435_v33  ;;  %v2437_v38 = vld [vmem:[%s5081_s0 + $0x57] sm:$0x4]  }
  0x3f   :  { %v2398_v0 = vld [vmem:[%s5081_s0 + $0xc4] sm:$0x40]   ;;  %v2422_v11 = vld [vmem:[%s5081_s0 + $0x196] sm:$0x10]   ;;  %v821_v14 = vsel %vm125_vm4, %v2397_v63, %v817_v8  ;;  %v917_v20 = vsel %vm117_vm2, %v2421_v10, %v913_v15  ;;  %v2438_v39 = vld [vmem:[%s5081_s0 + $0x76] sm:$0x8]   ;;  %v982_v43 = vsel %vm113_vm1, %v2437_v38, %v978_v37 }
  0x40   :  { %v2399_v1 = vld [vmem:[%s5081_s0 + $0xe3] sm:$0x80]   ;;  %v2423_v12 = vld [vmem:[%s5081_s0 + $0x1b5] sm:$0x20]   ;;  %v825_v19 = vsel %vm129_vm5, %v2398_v0, %v821_v14  ;;  %v921_v25 = vsel %vm121_vm3, %v2422_v11, %v917_v20  ;;  %v2439_v40 = vld [vmem:[%s5081_s0 + $0x95] sm:$0x10]   ;;  %v986_v48 = vsel %vm117_vm2, %v2438_v39, %v982_v43 }
  0x41   :  { %v2424_v16 = vld [vmem:[%s5081_s0 + $0x1d4] sm:$0x40]   ;;  %v2409_v18 = vld [vmem:[%s5081_s0 + $0x10a] sm:$0x1]   ;;  %v829_v24 = vsel %vm133_vm6, %v2399_v1, %v825_v19  ;;  %v925_v30 = vsel %vm125_vm4, %v2423_v12, %v921_v25  ;;  %v2440_v44 = vld [vmem:[%s5081_s0 + $0xb4] sm:$0x20]   ;;  %v990_v53 = vsel %vm121_vm3, %v2439_v40, %v986_v48 }
  0x42   :  { %v2425_v17 = vld [vmem:[%s5081_s0 + $0x1f3] sm:$0x80]   ;;  %v2410_v21 = vld [vmem:[%s5081_s0 + $0x129] sm:$0x2]   ;;  %830 = vrot.lane.b32.xlu0 %v829_v24, %s2762_s8  ;;  %v929_v35 = vsel %vm129_vm5, %v2424_v16, %v925_v30  ;;  %v2441_v45 = vld [vmem:[%s5081_s0 + $0xd3] sm:$0x40]   ;;  %v994_v59 = vsel %vm125_vm4, %v2440_v44, %v990_v53 }
  0x43   :  { %v2411_v22 = vld [vmem:[%s5081_s0 + $0x148] sm:$0x4]   ;;  %v874_v26 = vsel %vm109_vm0, %v2410_v21, %v2409_v18  ;;  %v933_v41 = vsel %vm133_vm6, %v2425_v17, %v929_v35  ;;  %v2442_v46 = vld [vmem:[%s5081_s0 + $0xf2] sm:$0x80]   ;;  %v2427_v49 = vld [vmem:[%s5081_s0 + $0x9] sm:$0x1]   ;;  %v998_v0 = vsel %vm129_vm5, %v2441_v45, %v994_v59 }
  0x44   :  { %v2412_v23 = vld [vmem:[%s5081_s0 + $0x167] sm:$0x8]   ;;  %v878_v31 = vsel %vm113_vm1, %v2411_v22, %v874_v26  ;;  %934 = vrot.lane.b32.xlu1 %v933_v41, %s2762_s8  ;;  %v2428_v50 = vld [vmem:[%s5081_s0 + $0x28] sm:$0x2]   ;;  %v2453_v63 = vld [vmem:[%s5081_s0 + $0x119] sm:$0x1]   ;;  %v1002_v5 = vsel %vm133_vm6, %v2442_v46, %v998_v0 }
  0x45   :  { %v2413_v27 = vld [vmem:[%s5081_s0 + $0x186] sm:$0x10]   ;;  %v882_v36 = vsel %vm117_vm2, %v2412_v23, %v878_v31  ;;  %v2429_v51 = vld [vmem:[%s5081_s0 + $0x47] sm:$0x4]   ;;  %v944_v54 = vsel %vm109_vm0, %v2428_v50, %v2427_v49  ;;  %v2454_v2 = vld [vmem:[%s5081_s0 + $0x138] sm:$0x2]  }
  0x46   :  { %v2414_v28 = vld [vmem:[%s5081_s0 + $0x1a5] sm:$0x20]   ;;  %v886_v42 = vsel %vm121_vm3, %v2413_v27, %v882_v36  ;;  %v2430_v55 = vld [vmem:[%s5081_s0 + $0x66] sm:$0x8]   ;;  %v948_v60 = vsel %vm113_vm1, %v2429_v51, %v944_v54  ;;  %v2455_v3 = vld [vmem:[%s5081_s0 + $0x157] sm:$0x4]   ;;  %v1048_v7 = vsel %vm109_vm0, %v2454_v2, %v2453_v63 }
  0x47   :  { %v2415_v29 = vld [vmem:[%s5081_s0 + $0x1c4] sm:$0x40]   ;;  %v890_v47 = vsel %vm125_vm4, %v2414_v28, %v886_v42  ;;  %v2431_v56 = vld [vmem:[%s5081_s0 + $0x85] sm:$0x10]   ;;  %v952_v1 = vsel %vm117_vm2, %v2430_v55, %v948_v60  ;;  %v2456_v4 = vld [vmem:[%s5081_s0 + $0x176] sm:$0x8]   ;;  %v1052_v12 = vsel %vm113_vm1, %v2455_v3, %v1048_v7 }
  0x48   :  { %v2416_v32 = vld [vmem:[%s5081_s0 + $0x1e3] sm:$0x80]   ;;  %v894_v52 = vsel %vm129_vm5, %v2415_v29, %v890_v47  ;;  %v2432_v57 = vld [vmem:[%s5081_s0 + $0xa4] sm:$0x20]   ;;  %v956_v6 = vsel %vm121_vm3, %v2431_v56, %v952_v1  ;;  %v2457_v8 = vld [vmem:[%s5081_s0 + $0x195] sm:$0x10]   ;;  %1003 = vrot.lane.b32.xlu1 %v1002_v5, %s2763_s11  ;;  %v1056_v17 = vsel %vm117_vm2, %v2456_v4, %v1052_v12 }
  0x49   :  { %v898_v58 = vsel %vm133_vm6, %v2416_v32, %v894_v52  ;;  %v2433_v61 = vld [vmem:[%s5081_s0 + $0xc3] sm:$0x40]   ;;  %v2458_v9 = vld [vmem:[%s5081_s0 + $0x1b4] sm:$0x20]   ;;  %v960_v11 = vsel %vm125_vm4, %v2432_v57, %v956_v6  ;;  %v1060_v23 = vsel %vm121_vm3, %v2457_v8, %v1056_v17  ;;  %v2470_v30 = vld [vmem:[%s5081_s0 + $0x18] sm:$0x1]  }
  0x4a   :  { %v2434_v62 = vld [vmem:[%s5081_s0 + $0xe2] sm:$0x80]   ;;  %899 = vrot.lane.b32.xlu0 %v898_v58, %s2762_s8  ;;  %v2459_v10 = vld [vmem:[%s5081_s0 + $0x1d3] sm:$0x40]   ;;  %v964_v16 = vsel %vm129_vm5, %v2433_v61, %v960_v11  ;;  %v1064_v28 = vsel %vm125_vm4, %v2458_v9, %v1060_v23  ;;  %v2471_v31 = vld [vmem:[%s5081_s0 + $0x37] sm:$0x2]  }
  0x4b   :  { %v2460_v13 = vld [vmem:[%s5081_s0 + $0x1f2] sm:$0x80]   ;;  %v2444_v14 = vld [vmem:[%s5081_s0 + $0x109] sm:$0x1]   ;;  %v968_v22 = vsel %vm133_vm6, %v2434_v62, %v964_v16  ;;  %v1068_v32 = vsel %vm129_vm5, %v2459_v10, %v1064_v28  ;;  %v1117_v34 = vsel %vm109_vm0, %v2471_v31, %v2470_v30  ;;  %v2472_v35 = vld [vmem:[%s5081_s0 + $0x56] sm:$0x4]  }
  0x4c   :  { %v2445_v15 = vld [vmem:[%s5081_s0 + $0x128] sm:$0x2]   ;;  %v2473_v36 = vld [vmem:[%s5081_s0 + $0x75] sm:$0x8]   ;;  %v1072_v38 = vsel %vm133_vm6, %v2460_v13, %v1068_v32  ;;  %v1121_v40 = vsel %vm113_vm1, %v2472_v35, %v1117_v34  ;;  %v2462_v46 = vld [vmem:[%s5081_s0 + $0x8] sm:$0x1]  }
  0x4d   :  { %v1013_v18 = vsel %vm109_vm0, %v2445_v15, %v2444_v14  ;;  %v2446_v19 = vld [vmem:[%s5081_s0 + $0x147] sm:$0x4]   ;;  %v2474_v37 = vld [vmem:[%s5081_s0 + $0x94] sm:$0x10]   ;;  %1073 = vrot.lane.b32.xlu1 %v1072_v38, %s2763_s11  ;;  %v1125_v45 = vsel %vm117_vm2, %v2473_v36, %v1121_v40  ;;  %v2463_v47 = vld [vmem:[%s5081_s0 + $0x27] sm:$0x2]  }
  0x4e   :  { %v2447_v20 = vld [vmem:[%s5081_s0 + $0x166] sm:$0x8]   ;;  %v1017_v24 = vsel %vm113_vm1, %v2446_v19, %v1013_v18  ;;  %969 = vrot.lane.b32.xlu0 %v968_v22, %s2763_s11  ;;  %v2475_v41 = vld [vmem:[%s5081_s0 + $0xb3] sm:$0x20]   ;;  %v2464_v48 = vld [vmem:[%s5081_s0 + $0x46] sm:$0x4]   ;;  %v1129_v50 = vsel %vm121_vm3, %v2474_v37, %v1125_v45  ;;  %v1083_v51 = vsel %vm109_vm0, %v2463_v47, %v2462_v46 }
  0x4f   :  { %v2448_v21 = vld [vmem:[%s5081_s0 + $0x185] sm:$0x10]   ;;  %v1021_v29 = vsel %vm117_vm2, %v2447_v20, %v1017_v24  ;;  %v2476_v42 = vld [vmem:[%s5081_s0 + $0xd2] sm:$0x40]   ;;  %v2465_v52 = vld [vmem:[%s5081_s0 + $0x65] sm:$0x8]   ;;  %v1133_v55 = vsel %vm125_vm4, %v2475_v41, %v1129_v50  ;;  %v1087_v56 = vsel %vm113_vm1, %v2464_v48, %v1083_v51 }
  0x50   :  { %v2449_v25 = vld [vmem:[%s5081_s0 + $0x1a4] sm:$0x20]   ;;  %v1025_v33 = vsel %vm121_vm3, %v2448_v21, %v1021_v29  ;;  %v2477_v43 = vld [vmem:[%s5081_s0 + $0xf1] sm:$0x80]   ;;  %v2466_v53 = vld [vmem:[%s5081_s0 + $0x84] sm:$0x10]   ;;  %v1137_v60 = vsel %vm129_vm5, %v2476_v42, %v1133_v55  ;;  %v1091_v61 = vsel %vm117_vm2, %v2465_v52, %v1087_v56 }
  0x51   :  { %v2450_v26 = vld [vmem:[%s5081_s0 + $0x1c3] sm:$0x40]   ;;  %v1029_v39 = vsel %vm125_vm4, %v2449_v25, %v1025_v33  ;;  %v2467_v54 = vld [vmem:[%s5081_s0 + $0xa3] sm:$0x20]   ;;  %v2488_v59 = vld [vmem:[%s5081_s0 + $0x118] sm:$0x1]   ;;  %v1141_v1 = vsel %vm133_vm6, %v2477_v43, %v1137_v60  ;;  %v1095_v2 = vsel %vm121_vm3, %v2466_v53, %v1091_v61 }
  0x52   :  { %v2451_v27 = vld [vmem:[%s5081_s0 + $0x1e2] sm:$0x80]   ;;  %v1033_v44 = vsel %vm129_vm5, %v2450_v26, %v1029_v39  ;;  %v2468_v57 = vld [vmem:[%s5081_s0 + $0xc2] sm:$0x40]   ;;  %v2489_v62 = vld [vmem:[%s5081_s0 + $0x137] sm:$0x2]   ;;  %1142 = vrot.lane.b32.xlu1 %v1141_v1, %s2764_s27  ;;  %v1099_v7 = vsel %vm125_vm4, %v2467_v54, %v1095_v2 }
  0x53   :  { %v1037_v49 = vsel %vm133_vm6, %v2451_v27, %v1033_v44  ;;  %v2469_v58 = vld [vmem:[%s5081_s0 + $0xe1] sm:$0x80]   ;;  %v2490_v63 = vld [vmem:[%s5081_s0 + $0x156] sm:$0x4]   ;;  %v1187_v3 = vsel %vm109_vm0, %v2489_v62, %v2488_v59  ;;  %v1103_v12 = vsel %vm129_vm5, %v2468_v57, %v1099_v7  ;;  %v2505_v26 = vld [vmem:[%s5081_s0 + $0x17] sm:$0x1]  }
  0x54   :  { %1038 = vrot.lane.b32.xlu0 %v1037_v49, %s2763_s11  ;;  %v2491_v0 = vld [vmem:[%s5081_s0 + $0x175] sm:$0x8]   ;;  %v1191_v8 = vsel %vm113_vm1, %v2490_v63, %v1187_v3  ;;  %v2479_v10 = vld [vmem:[%s5081_s0 + $0x108] sm:$0x1]   ;;  %v1107_v18 = vsel %vm133_vm6, %v2469_v58, %v1103_v12  ;;  %v2506_v27 = vld [vmem:[%s5081_s0 + $0x36] sm:$0x2]  }
  0x55   :  { %v2492_v4 = vld [vmem:[%s5081_s0 + $0x194] sm:$0x10]   ;;  %v2480_v11 = vld [vmem:[%s5081_s0 + $0x127] sm:$0x2]   ;;  %v1195_v13 = vsel %vm117_vm2, %v2491_v0, %v1191_v8  ;;  %v2507_v28 = vld [vmem:[%s5081_s0 + $0x55] sm:$0x4]   ;;  %v1256_v31 = vsel %vm109_vm0, %v2506_v27, %v2505_v26 }
  0x56   :  { %v2493_v5 = vld [vmem:[%s5081_s0 + $0x1b3] sm:$0x20]   ;;  %v1152_v14 = vsel %vm109_vm0, %v2480_v11, %v2479_v10  ;;  %v2481_v15 = vld [vmem:[%s5081_s0 + $0x146] sm:$0x4]   ;;  %v1199_v19 = vsel %vm121_vm3, %v2492_v4, %v1195_v13  ;;  %v2508_v32 = vld [vmem:[%s5081_s0 + $0x74] sm:$0x8]   ;;  %v1260_v37 = vsel %vm113_vm1, %v2507_v28, %v1256_v31 }
  0x57   :  { %v2494_v6 = vld [vmem:[%s5081_s0 + $0x1d2] sm:$0x40]   ;;  %v2482_v16 = vld [vmem:[%s5081_s0 + $0x165] sm:$0x8]   ;;  %v1156_v20 = vsel %vm113_vm1, %v2481_v15, %v1152_v14  ;;  %v1203_v24 = vsel %vm125_vm4, %v2493_v5, %v1199_v19  ;;  %v2509_v33 = vld [vmem:[%s5081_s0 + $0x93] sm:$0x10]   ;;  %v1264_v42 = vsel %vm117_vm2, %v2508_v32, %v1260_v37 }
  0x58   :  { %v2495_v9 = vld [vmem:[%s5081_s0 + $0x1f1] sm:$0x80]   ;;  %v2483_v17 = vld [vmem:[%s5081_s0 + $0x184] sm:$0x10]   ;;  %1108 = vrot.lane.b32.xlu0 %v1107_v18, %s2764_s27  ;;  %v1160_v25 = vsel %vm117_vm2, %v2482_v16, %v1156_v20  ;;  %v1207_v29 = vsel %vm129_vm5, %v2494_v6, %v1203_v24  ;;  %v2510_v34 = vld [vmem:[%s5081_s0 + $0xb2] sm:$0x20]   ;;  %v1268_v47 = vsel %vm121_vm3, %v2509_v33, %v1264_v42 }
  0x59   :  { %v2484_v21 = vld [vmem:[%s5081_s0 + $0x1a3] sm:$0x20]   ;;  %v1164_v30 = vsel %vm121_vm3, %v2483_v17, %v1160_v25  ;;  %v1211_v35 = vsel %vm133_vm6, %v2495_v9, %v1207_v29  ;;  %v2511_v38 = vld [vmem:[%s5081_s0 + $0xd1] sm:$0x40]   ;;  %v2497_v40 = vld [vmem:[%s5081_s0 + $0x7] sm:$0x1]   ;;  %v1272_v52 = vsel %vm125_vm4, %v2510_v34, %v1268_v47 }
  0x5a   :  { %v2485_v22 = vld [vmem:[%s5081_s0 + $0x1c2] sm:$0x40]   ;;  %v1168_v36 = vsel %vm125_vm4, %v2484_v21, %v1164_v30  ;;  %v2512_v39 = vld [vmem:[%s5081_s0 + $0xf0] sm:$0x80]   ;;  %1212 = vrot.lane.b32.xlu1 %v1211_v35, %s2764_s27  ;;  %v2498_v43 = vld [vmem:[%s5081_s0 + $0x26] sm:$0x2]   ;;  %v1276_v57 = vsel %vm129_vm5, %v2511_v38, %v1272_v52 }
  0x5b   :  { %v2486_v23 = vld [vmem:[%s5081_s0 + $0x1e1] sm:$0x80]   ;;  %v1172_v41 = vsel %vm129_vm5, %v2485_v22, %v1168_v36  ;;  %v2499_v44 = vld [vmem:[%s5081_s0 + $0x45] sm:$0x4]   ;;  %v1222_v48 = vsel %vm109_vm0, %v2498_v43, %v2497_v40  ;;  %v2523_v55 = vld [vmem:[%s5081_s0 + $0x117] sm:$0x1]   ;;  %v1280_v63 = vsel %vm133_vm6, %v2512_v39, %v1276_v57 }
  0x5c   :  { %v2500_v45 = vld [vmem:[%s5081_s0 + $0x64] sm:$0x8]   ;;  %v1176_v46 = vsel %vm133_vm6, %v2486_v23, %v1172_v41  ;;  %v1226_v53 = vsel %vm113_vm1, %v2499_v44, %v1222_v48  ;;  %v2524_v56 = vld [vmem:[%s5081_s0 + $0x136] sm:$0x2]   ;;  %v2540_v23 = vld [vmem:[%s5081_s0 + $0x16] sm:$0x1]  }
  0x5d   :  { %v2501_v49 = vld [vmem:[%s5081_s0 + $0x83] sm:$0x10]   ;;  %1177 = vrot.lane.b32.xlu0 %v1176_v46, %s2764_s27  ;;  %v1230_v58 = vsel %vm117_vm2, %v2500_v45, %v1226_v53  ;;  %v1326_v59 = vsel %vm109_vm0, %v2524_v56, %v2523_v55  ;;  %v2525_v60 = vld [vmem:[%s5081_s0 + $0x155] sm:$0x4]   ;;  %v2541_v24 = vld [vmem:[%s5081_s0 + $0x35] sm:$0x2]  }
  0x5e   :  { %v2502_v50 = vld [vmem:[%s5081_s0 + $0xa2] sm:$0x20]   ;;  %v2526_v61 = vld [vmem:[%s5081_s0 + $0x174] sm:$0x8]   ;;  %v1234_v0 = vsel %vm121_vm3, %v2501_v49, %v1230_v58  ;;  %v1330_v1 = vsel %vm113_vm1, %v2525_v60, %v1326_v59  ;;  %1281 = vrot.lane.b32.xlu1 %v1280_v63, %s2765_s28  ;;  %v2542_v25 = vld [vmem:[%s5081_s0 + $0x54] sm:$0x4]   ;;  %v1395_v28 = vsel %vm109_vm0, %v2541_v24, %v2540_v23 }
  0x5f   :  { %v2503_v51 = vld [vmem:[%s5081_s0 + $0xc1] sm:$0x40]   ;;  %v2527_v62 = vld [vmem:[%s5081_s0 + $0x193] sm:$0x10]   ;;  %v1238_v5 = vsel %vm125_vm4, %v2502_v50, %v1234_v0  ;;  %v1334_v6 = vsel %vm117_vm2, %v2526_v61, %v1330_v1  ;;  %v2543_v29 = vld [vmem:[%s5081_s0 + $0x73] sm:$0x8]   ;;  %v1399_v33 = vsel %vm113_vm1, %v2542_v25, %v1395_v28 }
  0x60   :  { %v2504_v54 = vld [vmem:[%s5081_s0 + $0xe0] sm:$0x80]   ;;  %v2528_v2 = vld [vmem:[%s5081_s0 + $0x1b2] sm:$0x20]   ;;  %v1242_v10 = vsel %vm129_vm5, %v2503_v51, %v1238_v5  ;;  %v1338_v11 = vsel %vm121_vm3, %v2527_v62, %v1334_v6  ;;  %v2544_v30 = vld [vmem:[%s5081_s0 + $0x92] sm:$0x10]   ;;  %v1403_v38 = vsel %vm117_vm2, %v2543_v29, %v1399_v33 }
  0x61   :  { %v2529_v3 = vld [vmem:[%s5081_s0 + $0x1d1] sm:$0x40]   ;;  %v2514_v7 = vld [vmem:[%s5081_s0 + $0x107] sm:$0x1]   ;;  %v1246_v16 = vsel %vm133_vm6, %v2504_v54, %v1242_v10  ;;  %v1342_v17 = vsel %vm125_vm4, %v2528_v2, %v1338_v11  ;;  %v2545_v31 = vld [vmem:[%s5081_s0 + $0xb1] sm:$0x20]   ;;  %v1407_v43 = vsel %vm121_vm3, %v2544_v30, %v1403_v38 }
  0x62   :  { %v2530_v4 = vld [vmem:[%s5081_s0 + $0x1f0] sm:$0x80]   ;;  %v2515_v8 = vld [vmem:[%s5081_s0 + $0x126] sm:$0x2]   ;;  %1247 = vrot.lane.b32.xlu0 %v1246_v16, %s2765_s28  ;;  %v1346_v21 = vsel %vm129_vm5, %v2529_v3, %v1342_v17  ;;  %v2546_v34 = vld [vmem:[%s5081_s0 + $0xd0] sm:$0x40]   ;;  %v1411_v48 = vsel %vm125_vm4, %v2545_v31, %v1407_v43 }
  0x63   :  { %v2516_v9 = vld [vmem:[%s5081_s0 + $0x145] sm:$0x4]   ;;  %v1291_v12 = vsel %vm109_vm0, %v2515_v8, %v2514_v7  ;;  %v1350_v26 = vsel %vm133_vm6, %v2530_v4, %v1346_v21  ;;  %v2547_v35 = vld [vmem:[%s5081_s0 + $0xef] sm:$0x80]   ;;  %v2532_v36 = vld [vmem:[%s5081_s0 + $0x6] sm:$0x1]   ;;  %v1415_v53 = vsel %vm129_vm5, %v2546_v34, %v1411_v48 }
  0x64   :  { %v2517_v13 = vld [vmem:[%s5081_s0 + $0x164] sm:$0x8]   ;;  %v1295_v18 = vsel %vm113_vm1, %v2516_v9, %v1291_v12  ;;  %1351 = vrot.lane.b32.xlu1 %v1350_v26, %s2765_s28  ;;  %v2533_v39 = vld [vmem:[%s5081_s0 + $0x25] sm:$0x2]   ;;  %v2558_v51 = vld [vmem:[%s5081_s0 + $0x116] sm:$0x1]   ;;  %v1419_v59 = vsel %vm133_vm6, %v2547_v35, %v1415_v53 }
  0x65   :  { %v2518_v14 = vld [vmem:[%s5081_s0 + $0x183] sm:$0x10]   ;;  %v1299_v22 = vsel %vm117_vm2, %v2517_v13, %v1295_v18  ;;  %v2534_v40 = vld [vmem:[%s5081_s0 + $0x44] sm:$0x4]   ;;  %v1361_v44 = vsel %vm109_vm0, %v2533_v39, %v2532_v36  ;;  %v2559_v52 = vld [vmem:[%s5081_s0 + $0x135] sm:$0x2]  }
  0x66   :  { %v2519_v15 = vld [vmem:[%s5081_s0 + $0x1a2] sm:$0x20]   ;;  %v1303_v27 = vsel %vm121_vm3, %v2518_v14, %v1299_v22  ;;  %v2535_v41 = vld [vmem:[%s5081_s0 + $0x63] sm:$0x8]   ;;  %v1365_v49 = vsel %vm113_vm1, %v2534_v40, %v1361_v44  ;;  %v1465_v55 = vsel %vm109_vm0, %v2559_v52, %v2558_v51  ;;  %v2560_v56 = vld [vmem:[%s5081_s0 + $0x154] sm:$0x4]  }
  0x67   :  { %v2520_v19 = vld [vmem:[%s5081_s0 + $0x1c1] sm:$0x40]   ;;  %v1307_v32 = vsel %vm125_vm4, %v2519_v15, %v1303_v27  ;;  %v2536_v45 = vld [vmem:[%s5081_s0 + $0x82] sm:$0x10]   ;;  %v1369_v54 = vsel %vm117_vm2, %v2535_v41, %v1365_v49  ;;  %v2561_v57 = vld [vmem:[%s5081_s0 + $0x173] sm:$0x8]   ;;  %v1469_v61 = vsel %vm113_vm1, %v2560_v56, %v1465_v55 }
  0x68   :  { %v2521_v20 = vld [vmem:[%s5081_s0 + $0x1e0] sm:$0x80]   ;;  %v1311_v37 = vsel %vm129_vm5, %v2520_v19, %v1307_v32  ;;  %v2537_v46 = vld [vmem:[%s5081_s0 + $0xa1] sm:$0x20]   ;;  %v2562_v58 = vld [vmem:[%s5081_s0 + $0x192] sm:$0x10]   ;;  %v1373_v60 = vsel %vm121_vm3, %v2536_v45, %v1369_v54  ;;  %v1473_v2 = vsel %vm117_vm2, %v2561_v57, %v1469_v61 }
  0x69   :  { %v1315_v42 = vsel %vm133_vm6, %v2521_v20, %v1311_v37  ;;  %v2538_v47 = vld [vmem:[%s5081_s0 + $0xc0] sm:$0x40]   ;;  %v2563_v62 = vld [vmem:[%s5081_s0 + $0x1b1] sm:$0x20]   ;;  %s2766_s7 = smov 48   ;;  %v1377_v1 = vsel %vm125_vm4, %v2537_v46, %v1373_v60  ;;  %v1477_v7 = vsel %vm121_vm3, %v2562_v58, %v1473_v2  ;;  %s2767_s18 = smov 40  }
  0x6a   :  { %1316 = vrot.lane.b32.xlu0 %v1315_v42, %s2765_s28  ;;  %v2539_v50 = vld [vmem:[%s5081_s0 + $0xdf] sm:$0x80]   ;;  %v2564_v63 = vld [vmem:[%s5081_s0 + $0x1d0] sm:$0x40]   ;;  %1420 = vrot.lane.b32.xlu1 %v1419_v59, %s2766_s7  ;;  %v1381_v6 = vsel %vm129_vm5, %v2538_v47, %v1377_v1  ;;  %v1481_v13 = vsel %vm125_vm4, %v2563_v62, %v1477_v7  ;;  %s2768_s24 = smov 32   ;;  %s2769_s8 = smov 24  }
  0x6b   :  { %v2565_v0 = vld [vmem:[%s5081_s0 + $0x1ef] sm:$0x80]   ;;  %v2549_v3 = vld [vmem:[%s5081_s0 + $0x106] sm:$0x1]   ;;  %v1385_v12 = vsel %vm133_vm6, %v2539_v50, %v1381_v6  ;;  %v2575_v17 = vld [vmem:[%s5081_s0 + $0x15] sm:$0x1]   ;;  %v1485_v18 = vsel %vm129_vm5, %v2564_v63, %v1481_v13 }
  0x6c   :  { %v2550_v4 = vld [vmem:[%s5081_s0 + $0x125] sm:$0x2]   ;;  %v2576_v20 = vld [vmem:[%s5081_s0 + $0x34] sm:$0x2]   ;;  %v1489_v23 = vsel %vm133_vm6, %v2565_v0, %v1485_v18  ;;  %v2567_v32 = vld [vmem:[%s5081_s0 + $0x5] sm:$0x1]  }
  0x6d   :  { %v2551_v5 = vld [vmem:[%s5081_s0 + $0x144] sm:$0x4]   ;;  %v1430_v8 = vsel %vm109_vm0, %v2550_v4, %v2549_v3  ;;  %v2577_v21 = vld [vmem:[%s5081_s0 + $0x53] sm:$0x4]   ;;  %v1534_v25 = vsel %vm109_vm0, %v2576_v20, %v2575_v17  ;;  %v2568_v33 = vld [vmem:[%s5081_s0 + $0x24] sm:$0x2]  }
  0x6e   :  { %v2552_v9 = vld [vmem:[%s5081_s0 + $0x163] sm:$0x8]   ;;  %v1434_v14 = vsel %vm113_vm1, %v2551_v5, %v1430_v8  ;;  %1386 = vrot.lane.b32.xlu0 %v1385_v12, %s2766_s7  ;;  %v2578_v22 = vld [vmem:[%s5081_s0 + $0x72] sm:$0x8]   ;;  %1490 = vrot.lane.b32.xlu1 %v1489_v23, %s2766_s7  ;;  %v1538_v30 = vsel %vm113_vm1, %v2577_v21, %v1534_v25  ;;  %v1500_v36 = vsel %vm109_vm0, %v2568_v33, %v2567_v32  ;;  %s2770_s6 = smov 16   ;;  %s2771_s17 = smov 8  }
  0x6f   :  { %v2553_v10 = vld [vmem:[%s5081_s0 + $0x182] sm:$0x10]   ;;  %v1438_v19 = vsel %vm117_vm2, %v2552_v9, %v1434_v14  ;;  %v2579_v26 = vld [vmem:[%s5081_s0 + $0x91] sm:$0x10]   ;;  %v1542_v35 = vsel %vm117_vm2, %v2578_v22, %v1538_v30  ;;  %v2569_v37 = vld [vmem:[%s5081_s0 + $0x43] sm:$0x4]  }
  0x70   :  { %v2554_v11 = vld [vmem:[%s5081_s0 + $0x1a1] sm:$0x20]   ;;  %v1442_v24 = vsel %vm121_vm3, %v2553_v10, %v1438_v19  ;;  %v2580_v27 = vld [vmem:[%s5081_s0 + $0xb0] sm:$0x20]   ;;  %v2570_v38 = vld [vmem:[%s5081_s0 + $0x62] sm:$0x8]   ;;  %v1546_v41 = vsel %vm121_vm3, %v2579_v26, %v1542_v35  ;;  %v1504_v42 = vsel %vm113_vm1, %v2569_v37, %v1500_v36 }
  0x71   :  { %v2555_v15 = vld [vmem:[%s5081_s0 + $0x1c0] sm:$0x40]   ;;  %v2581_v28 = vld [vmem:[%s5081_s0 + $0xcf] sm:$0x40]   ;;  %v1446_v29 = vsel %vm125_vm4, %v2554_v11, %v1442_v24  ;;  %v2571_v39 = vld [vmem:[%s5081_s0 + $0x81] sm:$0x10]   ;;  %v1550_v46 = vsel %vm125_vm4, %v2580_v27, %v1546_v41  ;;  %v1508_v47 = vsel %vm117_vm2, %v2570_v38, %v1504_v42 }
  0x72   :  { %v2556_v16 = vld [vmem:[%s5081_s0 + $0x1df] sm:$0x80]   ;;  %v2582_v31 = vld [vmem:[%s5081_s0 + $0xee] sm:$0x80]   ;;  %v1450_v34 = vsel %vm129_vm5, %v2555_v15, %v1446_v29  ;;  %v2572_v43 = vld [vmem:[%s5081_s0 + $0xa0] sm:$0x20]   ;;  %v1554_v51 = vsel %vm129_vm5, %v2581_v28, %v1550_v46  ;;  %v1512_v52 = vsel %vm121_vm3, %v2571_v39, %v1508_v47 }
  0x73   :  { %v1454_v40 = vsel %vm133_vm6, %v2556_v16, %v1450_v34  ;;  %v2573_v44 = vld [vmem:[%s5081_s0 + $0xbf] sm:$0x40]   ;;  %v2593_v48 = vld [vmem:[%s5081_s0 + $0x115] sm:$0x1]   ;;  %v1558_v57 = vsel %vm133_vm6, %v2582_v31, %v1554_v51  ;;  %v1516_v58 = vsel %vm125_vm4, %v2572_v43, %v1512_v52  ;;  %v2610_v13 = vld [vmem:[%s5081_s0 + $0x14] sm:$0x1]  }
  0x74   :  { %v2574_v45 = vld [vmem:[%s5081_s0 + $0xde] sm:$0x80]   ;;  %1455 = vrot.lane.b32.xlu0 %v1454_v40, %s2766_s7  ;;  %v2594_v49 = vld [vmem:[%s5081_s0 + $0x134] sm:$0x2]   ;;  %1559 = vrot.lane.b32.xlu1 %v1558_v57, %s2767_s18  ;;  %v1520_v63 = vsel %vm129_vm5, %v2573_v44, %v1516_v58  ;;  %s2_s4 = smov 3  ;;  %s4_s5 = smov 12 }
  0x75   :  { %v2595_v50 = vld [vmem:[%s5081_s0 + $0x153] sm:$0x4]   ;;  %v1604_v53 = vsel %vm109_vm0, %v2594_v49, %v2593_v48  ;;  %v2584_v62 = vld [vmem:[%s5081_s0 + $0x105] sm:$0x1]   ;;  %v1524_v4 = vsel %vm133_vm6, %v2574_v45, %v1520_v63  ;;  %v2611_v16 = vld [vmem:[%s5081_s0 + $0x33] sm:$0x2]  }
  0x76   :  { %v2596_v54 = vld [vmem:[%s5081_s0 + $0x172] sm:$0x8]   ;;  %v1608_v59 = vsel %vm113_vm1, %v2595_v50, %v1604_v53  ;;  %v2585_v1 = vld [vmem:[%s5081_s0 + $0x124] sm:$0x2]   ;;  %v2612_v17 = vld [vmem:[%s5081_s0 + $0x52] sm:$0x4]   ;;  %v1673_v21 = vsel %vm109_vm0, %v2611_v16, %v2610_v13 }
  0x77   :  { %v2597_v55 = vld [vmem:[%s5081_s0 + $0x191] sm:$0x10]   ;;  %v1612_v0 = vsel %vm117_vm2, %v2596_v54, %v1608_v59  ;;  %v2586_v2 = vld [vmem:[%s5081_s0 + $0x143] sm:$0x4]   ;;  %v1569_v6 = vsel %vm109_vm0, %v2585_v1, %v2584_v62  ;;  %v2613_v18 = vld [vmem:[%s5081_s0 + $0x71] sm:$0x8]   ;;  %v1677_v26 = vsel %vm113_vm1, %v2612_v17, %v1673_v21 }
  0x78   :  { %v2598_v56 = vld [vmem:[%s5081_s0 + $0x1b0] sm:$0x20]   ;;  %v2587_v3 = vld [vmem:[%s5081_s0 + $0x162] sm:$0x8]   ;;  %v1616_v5 = vsel %vm121_vm3, %v2597_v55, %v1612_v0  ;;  %1525 = vrot.lane.b32.xlu0 %v1524_v4, %s2767_s18  ;;  %v1573_v11 = vsel %vm113_vm1, %v2586_v2, %v1569_v6  ;;  %v2614_v22 = vld [vmem:[%s5081_s0 + $0x90] sm:$0x10]   ;;  %v1681_v31 = vsel %vm117_vm2, %v2613_v18, %v1677_v26 }
  0x79   :  { %v2599_v60 = vld [vmem:[%s5081_s0 + $0x1cf] sm:$0x40]   ;;  %v2588_v7 = vld [vmem:[%s5081_s0 + $0x181] sm:$0x10]   ;;  %v1620_v10 = vsel %vm125_vm4, %v2598_v56, %v1616_v5  ;;  %v1577_v15 = vsel %vm117_vm2, %v2587_v3, %v1573_v11  ;;  %v2615_v23 = vld [vmem:[%s5081_s0 + $0xaf] sm:$0x20]   ;;  %v1685_v38 = vsel %vm121_vm3, %v2614_v22, %v1681_v31 }
  0x7a   :  { %v2600_v61 = vld [vmem:[%s5081_s0 + $0x1ee] sm:$0x80]   ;;  %v2589_v8 = vld [vmem:[%s5081_s0 + $0x1a0] sm:$0x20]   ;;  %v1624_v14 = vsel %vm129_vm5, %v2599_v60, %v1620_v10  ;;  %v1581_v20 = vsel %vm121_vm3, %v2588_v7, %v1577_v15  ;;  %v2616_v24 = vld [vmem:[%s5081_s0 + $0xce] sm:$0x40]   ;;  %v1689_v43 = vsel %vm125_vm4, %v2615_v23, %v1685_v38 }
  0x7b   :  { %v2590_v9 = vld [vmem:[%s5081_s0 + $0x1bf] sm:$0x40]   ;;  %v1628_v19 = vsel %vm133_vm6, %v2600_v61, %v1624_v14  ;;  %v1585_v25 = vsel %vm125_vm4, %v2589_v8, %v1581_v20  ;;  %v2617_v27 = vld [vmem:[%s5081_s0 + $0xed] sm:$0x80]   ;;  %v2602_v28 = vld [vmem:[%s5081_s0 + $0x4] sm:$0x1]   ;;  %v1693_v49 = vsel %vm129_vm5, %v2616_v24, %v1689_v43 }
  0x7c   :  { %v2591_v12 = vld [vmem:[%s5081_s0 + $0x1de] sm:$0x80]   ;;  %1629 = vrot.lane.b32.xlu1 %v1628_v19, %s2767_s18  ;;  %v2603_v29 = vld [vmem:[%s5081_s0 + $0x23] sm:$0x2]   ;;  %v1589_v30 = vsel %vm129_vm5, %v2590_v9, %v1585_v25  ;;  %v4231_v36 = vpop.permute.xlu1 %204   ;;  %v2628_v45 = vld [vmem:[%s5081_s0 + $0x114] sm:$0x1]   ;;  %v1697_v55 = vsel %vm133_vm6, %v2617_v27, %v1693_v49 }
  0x7d   :  { %v1639_v32 = vsel %vm109_vm0, %v2603_v29, %v2602_v28  ;;  %v2604_v33 = vld [vmem:[%s5081_s0 + $0x42] sm:$0x4]   ;;  %v1593_v37 = vsel %vm133_vm6, %v2591_v12, %v1589_v30  ;;  %v2629_v46 = vld [vmem:[%s5081_s0 + $0x133] sm:$0x2]   ;;  %v2645_v12 = vld [vmem:[%s5081_s0 + $0x13] sm:$0x1]  }
  0x7e   :  { %v2605_v34 = vld [vmem:[%s5081_s0 + $0x61] sm:$0x8]   ;;  %v1643_v39 = vsel %vm113_vm1, %v2604_v33, %v1639_v32  ;;  %1594 = vrot.lane.b32.xlu0 %v1593_v37, %s2767_s18  ;;  %v2630_v47 = vld [vmem:[%s5081_s0 + $0x152] sm:$0x4]   ;;  %v1743_v51 = vsel %vm109_vm0, %v2629_v46, %v2628_v45  ;;  %v2646_v13 = vld [vmem:[%s5081_s0 + $0x32] sm:$0x2]  }
  0x7f   :  { %v2606_v35 = vld [vmem:[%s5081_s0 + $0x80] sm:$0x10]   ;;  %v1647_v44 = vsel %vm117_vm2, %v2605_v34, %v1643_v39  ;;  %v2631_v52 = vld [vmem:[%s5081_s0 + $0x171] sm:$0x8]   ;;  %v1747_v57 = vsel %vm113_vm1, %v2630_v47, %v1743_v51  ;;  %v1812_v16 = vsel %vm109_vm0, %v2646_v13, %v2645_v12  ;;  %v2647_v17 = vld [vmem:[%s5081_s0 + $0x51] sm:$0x4]  }
  0x80   :  { %v2607_v40 = vld [vmem:[%s5081_s0 + $0x9f] sm:$0x20]   ;;  %v1651_v50 = vsel %vm121_vm3, %v2606_v35, %v1647_v44  ;;  %v2632_v53 = vld [vmem:[%s5081_s0 + $0x190] sm:$0x10]   ;;  %1698 = vrot.lane.b32.xlu1 %v1697_v55, %s2768_s24  ;;  %v1751_v62 = vsel %vm117_vm2, %v2631_v52, %v1747_v57  ;;  %v4295_v2 = vpop.permute.xlu1 %239   ;;  %v2648_v18 = vld [vmem:[%s5081_s0 + $0x70] sm:$0x8]   ;;  %v1816_v23 = vsel %vm113_vm1, %v2647_v17, %v1812_v16 }
  0x81   :  { %v2608_v41 = vld [vmem:[%s5081_s0 + $0xbe] sm:$0x40]   ;;  %v2633_v54 = vld [vmem:[%s5081_s0 + $0x1af] sm:$0x20]   ;;  %v1655_v56 = vsel %vm125_vm4, %v2607_v40, %v1651_v50  ;;  %v1755_v4 = vsel %vm121_vm3, %v2632_v53, %v1751_v62  ;;  %v2649_v19 = vld [vmem:[%s5081_s0 + $0x8f] sm:$0x10]   ;;  %v1820_v28 = vsel %vm117_vm2, %v2648_v18, %v1816_v23 }
  0x82   :  { %v2609_v42 = vld [vmem:[%s5081_s0 + $0xdd] sm:$0x80]   ;;  %v2634_v58 = vld [vmem:[%s5081_s0 + $0x1ce] sm:$0x40]   ;;  %v1659_v61 = vsel %vm129_vm5, %v2608_v41, %v1655_v56  ;;  %v1759_v9 = vsel %vm125_vm4, %v2633_v54, %v1755_v4  ;;  %v2650_v24 = vld [vmem:[%s5081_s0 + $0xae] sm:$0x20]   ;;  %v1824_v34 = vsel %vm121_vm3, %v2649_v19, %v1820_v28 }
  0x83   :  { %v2635_v59 = vld [vmem:[%s5081_s0 + $0x1ed] sm:$0x80]   ;;  %v2619_v60 = vld [vmem:[%s5081_s0 + $0x104] sm:$0x1]   ;;  %v1663_v3 = vsel %vm133_vm6, %v2609_v42, %v1659_v61  ;;  %v1763_v14 = vsel %vm129_vm5, %v2634_v58, %v1759_v9  ;;  %v2651_v25 = vld [vmem:[%s5081_s0 + $0xcd] sm:$0x40]   ;;  %v1828_v41 = vsel %vm125_vm4, %v2650_v24, %v1824_v34 }
  0x84   :  { %v4257_v48 = vpop.permute.xlu0 %135   ;;  %v2620_v63 = vld [vmem:[%s5081_s0 + $0x123] sm:$0x2]   ;;  %1664 = vrot.lane.b32.xlu0 %v1663_v3, %s2768_s24  ;;  %v1767_v21 = vsel %vm133_vm6, %v2635_v59, %v1763_v14  ;;  %v2652_v26 = vld [vmem:[%s5081_s0 + $0xec] sm:$0x80]   ;;  %v2637_v29 = vld [vmem:[%s5081_s0 + $0x3] sm:$0x1]   ;;  %v4359_v32 = vpop.permute.xlu1 %308   ;;  %v1832_v46 = vsel %vm129_vm5, %v2651_v25, %v1828_v41 }
  0x85   :  { %v2621_v0 = vld [vmem:[%s5081_s0 + $0x142] sm:$0x4]   ;;  %v1708_v5 = vsel %vm109_vm0, %v2620_v63, %v2619_v60  ;;  %1768 = vrot.lane.b32.xlu1 %v1767_v21, %s2768_s24  ;;  %v2638_v30 = vld [vmem:[%s5081_s0 + $0x22] sm:$0x2]   ;;  %v2663_v45 = vld [vmem:[%s5081_s0 + $0x113] sm:$0x1]   ;;  %v1836_v53 = vsel %vm133_vm6, %v2652_v26, %v1832_v46 }
  0x86   :  { %v2622_v1 = vld [vmem:[%s5081_s0 + $0x161] sm:$0x8]   ;;  %v1712_v10 = vsel %vm113_vm1, %v2621_v0, %v1708_v5  ;;  %v2639_v31 = vld [vmem:[%s5081_s0 + $0x41] sm:$0x4]   ;;  %v1778_v35 = vsel %vm109_vm0, %v2638_v30, %v2637_v29  ;;  %v2664_v49 = vld [vmem:[%s5081_s0 + $0x132] sm:$0x2]  }
  0x87   :  { %v2623_v6 = vld [vmem:[%s5081_s0 + $0x180] sm:$0x10]   ;;  %v1716_v15 = vsel %vm117_vm2, %v2622_v1, %v1712_v10  ;;  %v2640_v37 = vld [vmem:[%s5081_s0 + $0x60] sm:$0x8]   ;;  %v1782_v42 = vsel %vm113_vm1, %v2639_v31, %v1778_v35  ;;  %v2665_v50 = vld [vmem:[%s5081_s0 + $0x151] sm:$0x4]   ;;  %v1882_v55 = vsel %vm109_vm0, %v2664_v49, %v2663_v45 }
  0x88   :  { %v2624_v7 = vld [vmem:[%s5081_s0 + $0x19f] sm:$0x20]   ;;  %v4333_v20 = vpop.permute.xlu0 %169   ;;  %v1720_v22 = vsel %vm121_vm3, %v2623_v6, %v1716_v15  ;;  %v2641_v38 = vld [vmem:[%s5081_s0 + $0x7f] sm:$0x10]   ;;  %v1786_v47 = vsel %vm117_vm2, %v2640_v37, %v1782_v42  ;;  %v2666_v51 = vld [vmem:[%s5081_s0 + $0x170] sm:$0x8]   ;;  %v1886_v60 = vsel %vm113_vm1, %v2665_v50, %v1882_v55 }
  0x89   :  { %v2625_v8 = vld [vmem:[%s5081_s0 + $0x1be] sm:$0x40]   ;;  %v1724_v27 = vsel %vm125_vm4, %v2624_v7, %v1720_v22  ;;  %v2642_v39 = vld [vmem:[%s5081_s0 + $0x9e] sm:$0x20]   ;;  %v1790_v54 = vsel %vm121_vm3, %v2641_v38, %v1786_v47  ;;  %v2667_v56 = vld [vmem:[%s5081_s0 + $0x18f] sm:$0x10]   ;;  %1837 = vrot.lane.b32.xlu1 %v1836_v53, %s2769_s8  ;;  %v1890_v1 = vsel %vm117_vm2, %v2666_v51, %v1886_v60 }
  0x8a   :  { %v2626_v11 = vld [vmem:[%s5081_s0 + $0x1dd] sm:$0x80]   ;;  %v1728_v33 = vsel %vm129_vm5, %v2625_v8, %v1724_v27  ;;  %v2643_v43 = vld [vmem:[%s5081_s0 + $0xbd] sm:$0x40]   ;;  %v2668_v57 = vld [vmem:[%s5081_s0 + $0x1ae] sm:$0x20]   ;;  %v1794_v59 = vsel %vm125_vm4, %v2642_v39, %v1790_v54  ;;  %v1894_v9 = vsel %vm121_vm3, %v2667_v56, %v1890_v1 }
  0x8b   :  { %v1732_v40 = vsel %vm133_vm6, %v2626_v11, %v1728_v33  ;;  %v2644_v44 = vld [vmem:[%s5081_s0 + $0xdc] sm:$0x80]   ;;  %v2669_v58 = vld [vmem:[%s5081_s0 + $0x1cd] sm:$0x40]   ;;  %v1798_v0 = vsel %vm129_vm5, %v2643_v43, %v1794_v59  ;;  %v1898_v14 = vsel %vm125_vm4, %v2668_v57, %v1894_v9  ;;  %v2680_v16 = vld [vmem:[%s5081_s0 + $0x12] sm:$0x1]  }
  0x8c   :  { %1733 = vrot.lane.b32.xlu0 %v1732_v40, %s2768_s24  ;;  %v4397_v52 = vpop.permute.xlu0 %274   ;;  %v2670_v61 = vld [vmem:[%s5081_s0 + $0x1ec] sm:$0x80]   ;;  %v2654_v62 = vld [vmem:[%s5081_s0 + $0x103] sm:$0x1]   ;;  %v4435_v7 = vpop.permute.xlu1 %378   ;;  %v1802_v8 = vsel %vm133_vm6, %v2644_v44, %v1798_v0  ;;  %v2681_v17 = vld [vmem:[%s5081_s0 + $0x31] sm:$0x2]   ;;  %v1902_v19 = vsel %vm129_vm5, %v2669_v58, %v1898_v14 }
  0x8d   :  { %v2655_v63 = vld [vmem:[%s5081_s0 + $0x122] sm:$0x2]   ;;  %v1951_v22 = vsel %vm109_vm0, %v2681_v17, %v2680_v16  ;;  %v2682_v23 = vld [vmem:[%s5081_s0 + $0x50] sm:$0x4]   ;;  %v1906_v26 = vsel %vm133_vm6, %v2670_v61, %v1902_v19  ;;  %v2672_v35 = vld [vmem:[%s5081_s0 + $0x2] sm:$0x1]  }
  0x8e   :  { %v1847_v3 = vsel %vm109_vm0, %v2655_v63, %v2654_v62  ;;  %v2656_v4 = vld [vmem:[%s5081_s0 + $0x141] sm:$0x4]   ;;  %v2683_v24 = vld [vmem:[%s5081_s0 + $0x6f] sm:$0x8]   ;;  %v1955_v28 = vsel %vm113_vm1, %v2682_v23, %v1951_v22  ;;  %1907 = vrot.lane.b32.xlu1 %v1906_v26, %s2769_s8  ;;  %v2673_v37 = vld [vmem:[%s5081_s0 + $0x21] sm:$0x2]  }
  0x8f   :  { %v2657_v5 = vld [vmem:[%s5081_s0 + $0x160] sm:$0x8]   ;;  %v1851_v10 = vsel %vm113_vm1, %v2656_v4, %v1847_v3  ;;  %v2684_v25 = vld [vmem:[%s5081_s0 + $0x8e] sm:$0x10]   ;;  %v1959_v34 = vsel %vm117_vm2, %v2683_v24, %v1955_v28  ;;  %v2674_v38 = vld [vmem:[%s5081_s0 + $0x40] sm:$0x4]   ;;  %v1917_v42 = vsel %vm109_vm0, %v2673_v37, %v2672_v35 }
  0x90   :  { %v2658_v6 = vld [vmem:[%s5081_s0 + $0x17f] sm:$0x10]   ;;  %1803 = vrot.lane.b32.xlu0 %v1802_v8, %s2769_s8  ;;  %v1855_v15 = vsel %vm117_vm2, %v2657_v5, %v1851_v10  ;;  %v4458_v18 = vpop.permute.xlu0 %343   ;;  %v2685_v29 = vld [vmem:[%s5081_s0 + $0xad] sm:$0x20]   ;;  %v4496_v39 = vpop.permute.xlu1 %447   ;;  %v1963_v41 = vsel %vm121_vm3, %v2684_v25, %v1959_v34  ;;  %v2675_v43 = vld [vmem:[%s5081_s0 + $0x5f] sm:$0x8]   ;;  %v1921_v47 = vsel %vm113_vm1, %v2674_v38, %v1917_v42 }
  0x91   :  { %v2659_v11 = vld [vmem:[%s5081_s0 + $0x19e] sm:$0x20]   ;;  %v1859_v21 = vsel %vm121_vm3, %v2658_v6, %v1855_v15  ;;  %v2686_v30 = vld [vmem:[%s5081_s0 + $0xcc] sm:$0x40]   ;;  %v2676_v44 = vld [vmem:[%s5081_s0 + $0x7e] sm:$0x10]   ;;  %v1967_v46 = vsel %vm125_vm4, %v2685_v29, %v1963_v41  ;;  %v1925_v54 = vsel %vm117_vm2, %v2675_v43, %v1921_v47 }
  0x92   :  { %v2660_v12 = vld [vmem:[%s5081_s0 + $0x1bd] sm:$0x40]   ;;  %v1863_v27 = vsel %vm125_vm4, %v2659_v11, %v1859_v21  ;;  %v2687_v31 = vld [vmem:[%s5081_s0 + $0xeb] sm:$0x80]   ;;  %v2677_v45 = vld [vmem:[%s5081_s0 + $0x9d] sm:$0x20]   ;;  %v1971_v53 = vsel %vm129_vm5, %v2686_v30, %v1967_v46  ;;  %v1929_v60 = vsel %vm121_vm3, %v2676_v44, %v1925_v54 }
  0x93   :  { %v2661_v13 = vld [vmem:[%s5081_s0 + $0x1dc] sm:$0x80]   ;;  %v1867_v33 = vsel %vm129_vm5, %v2660_v12, %v1863_v27  ;;  %v2678_v49 = vld [vmem:[%s5081_s0 + $0xbc] sm:$0x40]   ;;  %v2698_v51 = vld [vmem:[%s5081_s0 + $0x112] sm:$0x1]   ;;  %v1975_v59 = vsel %vm133_vm6, %v2687_v31, %v1971_v53  ;;  %v1933_v1 = vsel %vm125_vm4, %v2677_v45, %v1929_v60 }
  0x94   :  { %v1871_v40 = vsel %vm133_vm6, %v2661_v13, %v1867_v33  ;;  %v2679_v50 = vld [vmem:[%s5081_s0 + $0xdb] sm:$0x80]   ;;  %v2699_v55 = vld [vmem:[%s5081_s0 + $0x131] sm:$0x2]   ;;  %v4533_v58 = vpop.permute.xlu0 %413   ;;  %1976 = vrot.lane.b32.xlu1 %v1975_v59, %s2770_s6  ;;  %v1937_v9 = vsel %vm129_vm5, %v2678_v49, %v1933_v1  ;;  %v2715_v25 = vld [vmem:[%s5081_s0 + $0x11] sm:$0x1]  }
  0x95   :  { %1872 = vrot.lane.b32.xlu0 %v1871_v40, %s2769_s8  ;;  %v2700_v56 = vld [vmem:[%s5081_s0 + $0x150] sm:$0x4]   ;;  %v2021_v61 = vsel %vm109_vm0, %v2699_v55, %v2698_v51  ;;  %v2689_v5 = vld [vmem:[%s5081_s0 + $0x102] sm:$0x1]   ;;  %v1941_v15 = vsel %vm133_vm6, %v2679_v50, %v1937_v9  ;;  %v2716_v26 = vld [vmem:[%s5081_s0 + $0x30] sm:$0x2]  }
  0x96   :  { %v2701_v57 = vld [vmem:[%s5081_s0 + $0x16f] sm:$0x8]   ;;  %v2025_v3 = vsel %vm113_vm1, %v2700_v56, %v2021_v61  ;;  %v2690_v6 = vld [vmem:[%s5081_s0 + $0x121] sm:$0x2]   ;;  %v4559_v8 = vpop.permute.xlu1 %517   ;;  %v2717_v27 = vld [vmem:[%s5081_s0 + $0x4f] sm:$0x4]   ;;  %v2090_v31 = vsel %vm109_vm0, %v2716_v26, %v2715_v25 }
  0x97   :  { %v2702_v62 = vld [vmem:[%s5081_s0 + $0x18e] sm:$0x10]   ;;  %v2029_v10 = vsel %vm117_vm2, %v2701_v57, %v2025_v3  ;;  %v1986_v11 = vsel %vm109_vm0, %v2690_v6, %v2689_v5  ;;  %v2691_v12 = vld [vmem:[%s5081_s0 + $0x140] sm:$0x4]   ;;  %v2718_v33 = vld [vmem:[%s5081_s0 + $0x6e] sm:$0x8]   ;;  %v2094_v40 = vsel %vm113_vm1, %v2717_v27, %v2090_v31 }
  0x98   :  { %v2703_v63 = vld [vmem:[%s5081_s0 + $0x1ad] sm:$0x20]   ;;  %v2692_v13 = vld [vmem:[%s5081_s0 + $0x15f] sm:$0x8]   ;;  %v2033_v16 = vsel %vm121_vm3, %v2702_v62, %v2029_v10  ;;  %v1990_v17 = vsel %vm113_vm1, %v2691_v12, %v1986_v11  ;;  %v2719_v34 = vld [vmem:[%s5081_s0 + $0x8d] sm:$0x10]   ;;  %v2098_v45 = vsel %vm117_vm2, %v2718_v33, %v2094_v40 }
  0x99   :  { %v2704_v0 = vld [vmem:[%s5081_s0 + $0x1cc] sm:$0x40]   ;;  %v2693_v14 = vld [vmem:[%s5081_s0 + $0x17e] sm:$0x10]   ;;  %1942 = vrot.lane.b32.xlu0 %v1941_v15, %s2770_s6  ;;  %v2037_v23 = vsel %vm125_vm4, %v2703_v63, %v2033_v16  ;;  %v1994_v24 = vsel %vm117_vm2, %v2692_v13, %v1990_v17  ;;  %v2720_v35 = vld [vmem:[%s5081_s0 + $0xac] sm:$0x20]   ;;  %v2102_v53 = vsel %vm121_vm3, %v2719_v34, %v2098_v45 }
  0x9a   :  { %v2705_v4 = vld [vmem:[%s5081_s0 + $0x1eb] sm:$0x80]   ;;  %v2694_v19 = vld [vmem:[%s5081_s0 + $0x19d] sm:$0x20]   ;;  %v2041_v29 = vsel %vm129_vm5, %v2704_v0, %v2037_v23  ;;  %v1998_v30 = vsel %vm121_vm3, %v2693_v14, %v1994_v24  ;;  %v2721_v41 = vld [vmem:[%s5081_s0 + $0xcb] sm:$0x40]   ;;  %v4635_v50 = vpop.permute.xlu1 %586   ;;  %v2106_v59 = vsel %vm125_vm4, %v2720_v35, %v2102_v53 }
  0x9b   :  { %v2695_v21 = vld [vmem:[%s5081_s0 + $0x1bc] sm:$0x40]   ;;  %v2045_v37 = vsel %vm133_vm6, %v2705_v4, %v2041_v29  ;;  %v2002_v38 = vsel %vm125_vm4, %v2694_v19, %v1998_v30  ;;  %v2722_v42 = vld [vmem:[%s5081_s0 + $0xea] sm:$0x80]   ;;  %v2707_v43 = vld [vmem:[%s5081_s0 + $0x1] sm:$0x1]   ;;  %v2110_v0 = vsel %vm129_vm5, %v2721_v41, %v2106_v59 }
  0x9c   :  { %v2696_v22 = vld [vmem:[%s5081_s0 + $0x1db] sm:$0x80]   ;;  %v4597_v28 = vpop.permute.xlu0 %482   ;;  %2046 = vrot.lane.b32.xlu1 %v2045_v37, %s2770_s6  ;;  %v2006_v44 = vsel %vm129_vm5, %v2695_v21, %v2002_v38  ;;  %v2708_v46 = vld [vmem:[%s5081_s0 + $0x20] sm:$0x2]   ;;  %v2733_v62 = vld [vmem:[%s5081_s0 + $0x111] sm:$0x1]   ;;  %v2114_v10 = vsel %vm133_vm6, %v2722_v42, %v2110_v0 }
  0x9d   :  { %v2709_v47 = vld [vmem:[%s5081_s0 + $0x3f] sm:$0x4]   ;;  %v2010_v51 = vsel %vm133_vm6, %v2696_v22, %v2006_v44  ;;  %v2056_v54 = vsel %vm109_vm0, %v2708_v46, %v2707_v43  ;;  %v2734_v63 = vld [vmem:[%s5081_s0 + $0x130] sm:$0x2]   ;;  %vm6_vm7 = vcmask 1043458   ;;  %s8_s18 = smov 48 }
  0x9e   :  { %v2710_v49 = vld [vmem:[%s5081_s0 + $0x5e] sm:$0x8]   ;;  %2011 = vrot.lane.b32.xlu0 %v2010_v51, %s2770_s6  ;;  %v2060_v60 = vsel %vm113_vm1, %v2709_v47, %v2056_v54  ;;  %v2160_v3 = vsel %vm109_vm0, %v2734_v63, %v2733_v62  ;;  %v2735_v4 = vld [vmem:[%s5081_s0 + $0x14f] sm:$0x4]   ;;  %vm10_vm8 = vcmask 1045508   ;;  %s12_s9 = smov 192 }
  0x9f   :  { %v2711_v55 = vld [vmem:[%s5081_s0 + $0x7d] sm:$0x10]   ;;  %v2064_v1 = vsel %vm117_vm2, %v2710_v49, %v2060_v60  ;;  %v2736_v5 = vld [vmem:[%s5081_s0 + $0x16e] sm:$0x8]   ;;  %v2164_v12 = vsel %vm113_vm1, %v2735_v4, %v2160_v3  ;;  %v4699_v23 = vpop.permute.xlu1 %656   ;;  %v3_v41 = vld [vmem:[%s5081_s0] ss:$16 sm:%s2_s4]  }
  0xa0   :  { %v2712_v56 = vld [vmem:[%s5081_s0 + $0x9c] sm:$0x20]   ;;  %v2737_v6 = vld [vmem:[%s5081_s0 + $0x18d] sm:$0x10]   ;;  %v4673_v9 = vpop.permute.xlu0 %552   ;;  %v2068_v11 = vsel %vm121_vm3, %v2711_v55, %v2064_v1  ;;  %2115 = vrot.lane.b32.xlu1 %v2114_v10, %s2771_s17  ;;  %v2168_v17 = vsel %vm117_vm2, %v2736_v5, %v2164_v12  ;;  %vm14_vm9 = vcmask 1047558   ;;  %s25_s19 = smov 3 }
  0xa1   :  { %v2713_v57 = vld [vmem:[%s5081_s0 + $0xbb] sm:$0x40]   ;;  %v2738_v13 = vld [vmem:[%s5081_s0 + $0x1ac] sm:$0x20]   ;;  %v2072_v16 = vsel %vm125_vm4, %v2712_v56, %v2068_v11  ;;  %v2172_v25 = vsel %vm121_vm3, %v2737_v6, %v2168_v17  ;;  %s28_s13 = smov 12  ;;  %vm16_vm10 = vcmask 64512  }
  0xa2   :  { %v2714_v61 = vld [vmem:[%s5081_s0 + $0xda] sm:$0x80]   ;;  %v2739_v14 = vld [vmem:[%s5081_s0 + $0x1cb] sm:$0x40]   ;;  %v2076_v24 = vsel %vm129_vm5, %v2713_v57, %v2072_v16  ;;  %v2176_v33 = vsel %vm125_vm4, %v2738_v13, %v2172_v25  ;;  %v5_v45 = vld [vmem:[%s5081_s0] ss:$16 sm:%s4_s5]  }
  0xa3   :  { %v2740_v15 = vld [vmem:[%s5081_s0 + $0x1ea] sm:$0x80]   ;;  %v2724_v19 = vld [vmem:[%s5081_s0 + $0x101] sm:$0x1]   ;;  %v2080_v31 = vsel %vm133_vm6, %v2714_v61, %v2076_v24  ;;  %v2180_v38 = vsel %vm129_vm5, %v2739_v14, %v2176_v33  ;;  %s33_s16 = smov 48  ;;  %s38_s24 = smov 192  ;;  %v7_v47 = vsel %vm6_vm7, %v5_v45, %v3_v41 }
  0xa4   :  { %v2725_v21 = vld [vmem:[%s5081_s0 + $0x120] sm:$0x2]   ;;  %2081 = vrot.lane.b32.xlu0 %v2080_v31, %s2771_s17  ;;  %v2184_v43 = vsel %vm133_vm6, %v2740_v15, %v2180_v38  ;;  %v9_v49 = vld [vmem:[%s5081_s0] ss:$16 sm:%s8_s18]   ;;  %s52_s22 = smov 3  ;;  %s55_s23 = smov 12  ;;  %v4749_v56 = vpop.permute.xlu1 %725  }
  0xa5   :  { %v2726_v22 = vld [vmem:[%s5081_s0 + $0x13f] sm:$0x4]   ;;  %v2125_v26 = vsel %vm109_vm0, %v2725_v21, %v2724_v19  ;;  %2185 = vrot.lane.b32.xlu1 %v2184_v43, %s2771_s17  ;;  %v11_v53 = vsel %vm10_vm8, %v9_v49, %v7_v47  ;;  %v13_v54 = vld [vmem:[%s5081_s0] ss:$16 sm:%s12_s9]   ;;  %s60_s11 = smov 48  ;;  %s65_s12 = smov 192 }
  0xa6   :  { %v2727_v27 = vld [vmem:[%s5081_s0 + $0x15e] sm:$0x8]   ;;  %v2129_v34 = vsel %vm113_vm1, %v2726_v22, %v2125_v26  ;;  %v4728_v42 = vpop.permute.xlu0 %621   ;;  %v2193_v55 = vld [vmem:[%s5081_s0 + $0x80] ss:$16 sm:%s25_s19]   ;;  %v15_v59 = vsel %vm14_vm9, %v13_v54, %v11_v53  ;;  %vm137_vm11 = vcmask 1048512   ;;  %s82_s14 = smov 12 }
  0xa7   :  { %v2728_v29 = vld [vmem:[%s5081_s0 + $0x17d] sm:$0x10]   ;;  %v2133_v40 = vsel %vm117_vm2, %v2727_v27, %v2129_v34  ;;  %v2194_v60 = vld [vmem:[%s5081_s0 + $0x80] ss:$16 sm:%s28_s13]   ;;  %s79_s13 = smov 3  ;;  %s87_s15 = smov 48 }
  0xa8   :  { %v2729_v30 = vld [vmem:[%s5081_s0 + $0x19c] sm:$0x20]   ;;  %v2137_v44 = vsel %vm121_vm3, %v2728_v29, %v2133_v40  ;;  %v2195_v61 = vld [vmem:[%s5081_s0 + $0x80] ss:$16 sm:%s33_s16]   ;;  %v31_v62 = vsel %vm6_vm7, %v2194_v60, %v2193_v55  ;;  %s92_s16 = smov 192  ;;  %vm276_vm12 = vcmask 982912  }
  0xa9   :  { %v2730_v35 = vld [vmem:[%s5081_s0 + $0x1bb] sm:$0x40]   ;;  %v2141_v46 = vsel %vm125_vm4, %v2729_v30, %v2137_v44  ;;  %17 = vst.msk [vmem:[%s5082_s1] ss:$8 sm:$0x3] %vm16_vm10, %v15_v59   ;;  %v36_v1 = vsel %vm10_vm8, %v2195_v61, %v31_v62  ;;  %vm415_vm13 = vcmask 917312  }
  0xaa   :  { %v2731_v37 = vld [vmem:[%s5081_s0 + $0x1da] sm:$0x80]   ;;  %v2145_v51 = vsel %vm129_vm5, %v2730_v35, %v2141_v46  ;;  %2190 = vst.msk [vmem:[%s5082_s1 - $0xf] ss:$8 sm:$0xc] %vm16_vm10, %v15_v59   ;;  %v692_v0 = vpop.permute.xlu0 %691   ;;  %vm554_vm14 = vcmask 851712  }
  0xab   :  { %v2149_v57 = vsel %vm133_vm6, %v2731_v37, %v2145_v51  ;;  %2191 = vst.msk [vmem:[%s5082_s1 - $0x1e] ss:$8 sm:$0x30] %vm16_vm10, %v15_v59   ;;  %2192 = vst.msk [vmem:[%s5082_s1 - $0x2d] ss:$8 sm:$0xc0] %vm16_vm10, %v15_v59  }
  0xac   :  { %2150 = vrot.lane.b32.xlu0 %v2149_v57, %s2771_s17  ;;  %v2196_v63 = vld [vmem:[%s5081_s0 + $0x80] ss:$16 sm:%s38_s24]   ;;  %v796_v15 = vpop.permute.xlu1 %795   ;;  %vm693_vm15 = vcmask 786112   ;;  %vm832_vm0 = vcmask 720512   ;;  %vm971_vm1 = vcmask 654912   ;;  %vm1110_vm2 = vcmask 589312  }
  0xad   :  { %v2201_v3 = vld [vmem:[%s5081_s0 + $0x100] ss:$16 sm:%s52_s22]   ;;  %v41_v5 = vsel %vm14_vm9, %v2196_v63, %v36_v1  ;;  %vm1249_vm3 = vcmask 523712   ;;  %vm1388_vm4 = vcmask 458112   ;;  %vm1527_vm5 = vcmask 392512  }
  0xae   :  { %v2202_v4 = vld [vmem:[%s5081_s0 + $0x100] ss:$16 sm:%s55_s23]   ;;  %2197 = vst.msk [vmem:[%s5082_s1 + $0x4] ss:$8 sm:$0x3] %vm16_vm10, %v41_v5   ;;  %vm1666_vm6 = vcmask 326912  }
  0xaf   :  { %v58_v6 = vsel %vm6_vm7, %v2202_v4, %v2201_v3  ;;  %v2203_v10 = vld [vmem:[%s5081_s0 + $0x100] ss:$16 sm:%s60_s11]   ;;  %2198 = vst.msk [vmem:[%s5082_s1 - $0xb] ss:$8 sm:$0xc] %vm16_vm10, %v41_v5  }
  0xb0   :  { %v2204_v11 = vld [vmem:[%s5081_s0 + $0x100] ss:$16 sm:%s65_s12]   ;;  %2199 = vst.msk [vmem:[%s5082_s1 - $0x1a] ss:$8 sm:$0x30] %vm16_vm10, %v41_v5   ;;  %v63_v12 = vsel %vm10_vm8, %v2203_v10, %v58_v6 }
  0xb1   :  { %2200 = vst.msk [vmem:[%s5082_s1 - $0x29] ss:$8 sm:$0xc0] %vm16_vm10, %v41_v5   ;;  %v2209_v13 = vld [vmem:[%s5081_s0 + $0x180] ss:$16 sm:%s79_s13]  }
  0xb2   :  { %v2210_v14 = vld [vmem:[%s5081_s0 + $0x180] ss:$16 sm:%s82_s14]   ;;  %2233 = vst.msk [vmem:[%s5082_s1 + $0x8] sm:$0xff] %vm137_vm11, %v4333_v20   ;;  %138 = vst.msk [vmem:[%s5082_s1] sm:$0xff] %vm137_vm11, %v4257_v48   ;;  %v68_v48 = vsel %vm14_vm9, %v2204_v11, %v63_v12 }
  0xb3   :  { %v85_v20 = vsel %vm6_vm7, %v2210_v14, %v2209_v13  ;;  %v2211_v16 = vld [vmem:[%s5081_s0 + $0x180] ss:$16 sm:%s87_s15]   ;;  %2268 = vst.msk [vmem:[%s5082_s1 + $0x8] sm:$0xff] %vm276_vm12, %v4359_v32   ;;  %277 = vst.msk [vmem:[%s5082_s1] sm:$0xff] %vm276_vm12, %v4397_v52   ;;  %vm1805_vm7 = vcmask 261312  }
  0xb4   :  { %v2212_v17 = vld [vmem:[%s5081_s0 + $0x180] ss:$16 sm:%s92_s16]   ;;  %2205 = vst.msk [vmem:[%s5082_s1 + $0x10] ss:$8 sm:$0x3] %vm16_vm10, %v68_v48   ;;  %v90_v32 = vsel %vm10_vm8, %v2211_v16, %v85_v20  ;;  %vm1944_vm8 = vcmask 195712  }
  0xb5   :  { %2206 = vst.msk [vmem:[%s5082_s1 + $0x1] ss:$8 sm:$0xc] %vm16_vm10, %v68_v48   ;;  %2207 = vst.msk [vmem:[%s5082_s1 - $0xe] ss:$8 sm:$0x30] %vm16_vm10, %v68_v48   ;;  %v95_v52 = vsel %vm14_vm9, %v2212_v17, %v90_v32 }
  0xb6   :  { %2208 = vst.msk [vmem:[%s5082_s1 - $0x1d] ss:$8 sm:$0xc0] %vm16_vm10, %v68_v48   ;;  %2213 = vst.msk [vmem:[%s5082_s1 + $0x14] ss:$8 sm:$0x3] %vm16_vm10, %v95_v52  }
  0xb7   :  { %2303 = vst.msk [vmem:[%s5082_s1 + $0x8] sm:$0xff] %vm415_vm13, %v4496_v39   ;;  %416 = vst.msk [vmem:[%s5082_s1] sm:$0xff] %vm415_vm13, %v4533_v58   ;;  %v761_v39 = vpop.permute.xlu0 %760   ;;  %vm2083_vm9 = vcmask 130112  }
  0xb8   :  { %2214 = vst.msk [vmem:[%s5082_s1 + $0x5] ss:$8 sm:$0xc] %vm16_vm10, %v95_v52   ;;  %2215 = vst.msk [vmem:[%s5082_s1 - $0xa] ss:$8 sm:$0x30] %vm16_vm10, %v95_v52  }
  0xb9   :  { %2216 = vst.msk [vmem:[%s5082_s1 - $0x19] ss:$8 sm:$0xc0] %vm16_vm10, %v95_v52  }
  0xba   :  { %2338 = vst.msk [vmem:[%s5082_s1 + $0x8] sm:$0xff] %vm554_vm14, %v4635_v50   ;;  %555 = vst.msk [vmem:[%s5082_s1] sm:$0xff] %vm554_vm14, %v4673_v9  }
  0xbb   :  { %2251 = vst.msk [vmem:[%s5082_s1 + $0x18] sm:$0xff] %vm137_vm11, %v4295_v2   ;;  %2242 = vst.msk [vmem:[%s5082_s1 + $0x10] sm:$0xff] %vm137_vm11, %v4231_v36   ;;  %v865_v36 = vpop.permute.xlu1 %864   ;;  %v831_v2 = vpop.permute.xlu0 %830  }
  0xbc   :  { %2373 = vst.msk [vmem:[%s5082_s1 + $0x8] sm:$0xff] %vm693_vm15, %v4749_v56   ;;  %694 = vst.msk [vmem:[%s5082_s1] sm:$0xff] %vm693_vm15, %v692_v0  }
  0xbd   :  { %2286 = vst.msk [vmem:[%s5082_s1 + $0x18] sm:$0xff] %vm276_vm12, %v4435_v7   ;;  %2277 = vst.msk [vmem:[%s5082_s1 + $0x10] sm:$0xff] %vm276_vm12, %v4458_v18  }
  0xbe   :  { %2321 = vst.msk [vmem:[%s5082_s1 + $0x18] sm:$0xff] %vm415_vm13, %v4559_v8   ;;  %2312 = vst.msk [vmem:[%s5082_s1 + $0x10] sm:$0xff] %vm415_vm13, %v4597_v28  }
  0xbf   :  { %2408 = vst.msk [vmem:[%s5082_s1 + $0x8] sm:$0xff] %vm832_vm0, %v865_v36   ;;  %833 = vst.msk [vmem:[%s5082_s1] sm:$0xff] %vm832_vm0, %v831_v2   ;;  %v935_v7 = vpop.permute.xlu1 %934   ;;  %v900_v18 = vpop.permute.xlu0 %899  }
  0xc0   :  { %2356 = vst.msk [vmem:[%s5082_s1 + $0x18] sm:$0xff] %vm554_vm14, %v4699_v23   ;;  %2347 = vst.msk [vmem:[%s5082_s1 + $0x10] sm:$0xff] %vm554_vm14, %v4728_v42  }
  0xc1   :  { %2391 = vst.msk [vmem:[%s5082_s1 + $0x18] sm:$0xff] %vm693_vm15, %v796_v15   ;;  %2382 = vst.msk [vmem:[%s5082_s1 + $0x10] sm:$0xff] %vm693_vm15, %v761_v39  }
  0xc2   :  { %2426 = vst.msk [vmem:[%s5082_s1 + $0x18] sm:$0xff] %vm832_vm0, %v935_v7   ;;  %2417 = vst.msk [vmem:[%s5082_s1 + $0x10] sm:$0xff] %vm832_vm0, %v900_v18  }
  0xc3   :  { %v1004_v58 = vpop.permute.xlu1 %1003   ;;  %v970_v8 = vpop.permute.xlu0 %969  }
  0xc4   :  { %2443 = vst.msk [vmem:[%s5082_s1 + $0x8] sm:$0xff] %vm971_vm1, %v1004_v58   ;;  %972 = vst.msk [vmem:[%s5082_s1] sm:$0xff] %vm971_vm1, %v970_v8  }
  0xc7   :  { %v1074_v28 = vpop.permute.xlu1 %1073   ;;  %v1039_v50 = vpop.permute.xlu0 %1038  }
  0xc8   :  { %2461 = vst.msk [vmem:[%s5082_s1 + $0x18] sm:$0xff] %vm971_vm1, %v1074_v28   ;;  %2452 = vst.msk [vmem:[%s5082_s1 + $0x10] sm:$0xff] %vm971_vm1, %v1039_v50  }
  0xcb   :  { %v1143_v9 = vpop.permute.xlu1 %1142   ;;  %v1109_v19 = vpop.permute.xlu0 %1108  }
  0xcc   :  { %2478 = vst.msk [vmem:[%s5082_s1 + $0x8] sm:$0xff] %vm1110_vm2, %v1143_v9   ;;  %1111 = vst.msk [vmem:[%s5082_s1] sm:$0xff] %vm1110_vm2, %v1109_v19  }
  0xcf   :  { %v1213_v21 = vpop.permute.xlu1 %1212   ;;  %v1178_v22 = vpop.permute.xlu0 %1177  }
  0xd0   :  { %2496 = vst.msk [vmem:[%s5082_s1 + $0x18] sm:$0xff] %vm1110_vm2, %v1213_v21   ;;  %2487 = vst.msk [vmem:[%s5082_s1 + $0x10] sm:$0xff] %vm1110_vm2, %v1178_v22  }
  0xd3   :  { %v1282_v23 = vpop.permute.xlu1 %1281  }
  0xd4   :  { %2513 = vst.msk [vmem:[%s5082_s1 + $0x8] sm:$0xff] %vm1249_vm3, %v1282_v23   ;;  %v1248_v24 = vpop.permute.xlu0 %1247  }
  0xd5   :  { %1250 = vst.msk [vmem:[%s5082_s1] sm:$0xff] %vm1249_vm3, %v1248_v24  }
  0xd7   :  { %v1352_v25 = vpop.permute.xlu1 %1351  }
  0xd8   :  { %2531 = vst.msk [vmem:[%s5082_s1 + $0x18] sm:$0xff] %vm1249_vm3, %v1352_v25  }
  0xdc   :  { %v1317_v26 = vpop.permute.xlu0 %1316   ;;  %v1421_v27 = vpop.permute.xlu1 %1420  }
  0xdd   :  { %2522 = vst.msk [vmem:[%s5082_s1 + $0x10] sm:$0xff] %vm1249_vm3, %v1317_v26  }
  0xde   :  { %2548 = vst.msk [vmem:[%s5082_s1 + $0x8] sm:$0xff] %vm1388_vm4, %v1421_v27  }
  0xe0   :  { %v1387_v29 = vpop.permute.xlu0 %1386   ;;  %v1491_v30 = vpop.permute.xlu1 %1490  }
  0xe1   :  { %1389 = vst.msk [vmem:[%s5082_s1] sm:$0xff] %vm1388_vm4, %v1387_v29   ;;  %2566 = vst.msk [vmem:[%s5082_s1 + $0x18] sm:$0xff] %vm1388_vm4, %v1491_v30  }
  0xe6   :  { %v1456_v31 = vpop.permute.xlu0 %1455   ;;  %v1560_v33 = vpop.permute.xlu1 %1559  }
  0xe7   :  { %2557 = vst.msk [vmem:[%s5082_s1 + $0x10] sm:$0xff] %vm1388_vm4, %v1456_v31  }
  0xe8   :  { %2583 = vst.msk [vmem:[%s5082_s1 + $0x8] sm:$0xff] %vm1527_vm5, %v1560_v33  }
  0xea   :  { %v1526_v34 = vpop.permute.xlu0 %1525  }
  0xeb   :  { %1528 = vst.msk [vmem:[%s5082_s1] sm:$0xff] %vm1527_vm5, %v1526_v34  }
  0xee   :  { %v1630_v35 = vpop.permute.xlu1 %1629  }
  0xef   :  { %2601 = vst.msk [vmem:[%s5082_s1 + $0x18] sm:$0xff] %vm1527_vm5, %v1630_v35  }
  0xf0   :  { %v1595_v37 = vpop.permute.xlu0 %1594  }
  0xf1   :  { %2592 = vst.msk [vmem:[%s5082_s1 + $0x10] sm:$0xff] %vm1527_vm5, %v1595_v37  }
  0xf2   :  { %v1699_v38 = vpop.permute.xlu1 %1698  }
  0xf3   :  { %2618 = vst.msk [vmem:[%s5082_s1 + $0x8] sm:$0xff] %vm1666_vm6, %v1699_v38  }
  0xf6   :  { %v1665_v40 = vpop.permute.xlu0 %1664  }
  0xf7   :  { %1667 = vst.msk [vmem:[%s5082_s1] sm:$0xff] %vm1666_vm6, %v1665_v40   ;;  %v1769_v41 = vpop.permute.xlu1 %1768  }
  0xf8   :  { %2636 = vst.msk [vmem:[%s5082_s1 + $0x18] sm:$0xff] %vm1666_vm6, %v1769_v41  }
  0xfb   :  { %v1838_v43 = vpop.permute.xlu1 %1837  }
  0xfc   :  { %2653 = vst.msk [vmem:[%s5082_s1 + $0x8] sm:$0xff] %vm1805_vm7, %v1838_v43  }
  0xfe   :  { %v1734_v42 = vpop.permute.xlu0 %1733  }
  0xff   :  { %2627 = vst.msk [vmem:[%s5082_s1 + $0x10] sm:$0xff] %vm1666_vm6, %v1734_v42  }
 0x100   :  { %v1908_v45 = vpop.permute.xlu1 %1907  }
 0x101   :  { %2671 = vst.msk [vmem:[%s5082_s1 + $0x18] sm:$0xff] %vm1805_vm7, %v1908_v45  }
 0x102   :  { %v1804_v44 = vpop.permute.xlu0 %1803  }
 0x103   :  { %1806 = vst.msk [vmem:[%s5082_s1] sm:$0xff] %vm1805_vm7, %v1804_v44  }
 0x106   :  { %v1977_v47 = vpop.permute.xlu1 %1976  }
 0x107   :  { %v1873_v46 = vpop.permute.xlu0 %1872   ;;  %2688 = vst.msk [vmem:[%s5082_s1 + $0x8] sm:$0xff] %vm1944_vm8, %v1977_v47  }
 0x108   :  { %2662 = vst.msk [vmem:[%s5082_s1 + $0x10] sm:$0xff] %vm1805_vm7, %v1873_v46  }
 0x10b   :  { %v1943_v49 = vpop.permute.xlu0 %1942  }
 0x10c   :  { %1945 = vst.msk [vmem:[%s5082_s1] sm:$0xff] %vm1944_vm8, %v1943_v49  }
 0x10e   :  { %v2047_v51 = vpop.permute.xlu1 %2046  }
 0x10f   :  { %2706 = vst.msk [vmem:[%s5082_s1 + $0x18] sm:$0xff] %vm1944_vm8, %v2047_v51  }
 0x110   :  { %v2012_v53 = vpop.permute.xlu0 %2011  }
 0x111   :  { %2697 = vst.msk [vmem:[%s5082_s1 + $0x10] sm:$0xff] %vm1944_vm8, %v2012_v53  }
 0x112   :  { %v2116_v54 = vpop.permute.xlu1 %2115  }
 0x113   :  { %2723 = vst.msk [vmem:[%s5082_s1 + $0x8] sm:$0xff] %vm2083_vm9, %v2116_v54  }
 0x116   :  { %v2082_v55 = vpop.permute.xlu0 %2081  }
 0x117   :  { %2084 = vst.msk [vmem:[%s5082_s1] sm:$0xff] %vm2083_vm9, %v2082_v55   ;;  %v2186_v56 = vpop.permute.xlu1 %2185  }
 0x118   :  { %2741 = vst.msk [vmem:[%s5082_s1 + $0x18] sm:$0xff] %vm2083_vm9, %v2186_v56  }
 0x11e   :  { %v2151_v57 = vpop.permute.xlu0 %2150  }
 0x11f   :  { %2732 = vst.msk [vmem:[%s5082_s1 + $0x10] sm:$0xff] %vm2083_vm9, %v2151_v57  }

// kernel: conv_lstm_forward.4
= control target key start
LH: loop header
LB: loop body
LE: loop exit
PB: predicated region body
PF: predicated region fallthrough
CT: control target
= control target key end

     0   :  { %s1827_s21 = smov 0   ;;  %s2599_s0 = inlined_call_operand.vmem [shape: f32[6,4,256], index: 0, kind: input, shape index: {}]   ;;  %s2600_s1 = inlined_call_operand.vmem [shape: bf16[32,108], index: 1, kind: input, shape index: {}]   ;;  %s2601_s2 = inlined_call_operand.vmem [shape: f32[32,1], index: 2, kind: input, shape index: {}]   ;;  %s2602_s3 = inlined_call_operand.vmem [shape: f32[32,1], index: 3, kind: input, shape index: {}]   ;;  %s2603_s4 = inlined_call_operand.vmem [shape: f32[32,1], index: 4, kind: input, shape index: {}]   ;;  %s2604_s5 = inlined_call_operand.vmem [shape: f32[27,256], index: 5, kind: input, shape index: {}]   ;;  %s2605_s6 = inlined_call_operand.vmem [shape: f32[6,32,256], index: 6, kind: output, shape index: {}]  }
   0x1 LB: > { %s1636_s22 = sadd.s32 4294967295, %s1755_s21   ;;  %p1640_p0 = scmp.ge.s32.totalorder %s1755_s21, 1  ;;  %s1755_s21 = sphi %s1827_s21, %s16_s21  }
   0x2   : > { %p212_p1 = scmp.lt.s32.totalorder %s1755_s21, 7 }
   0x4   : > { %p213_p2 = pnand %p1640_p0, %p212_p1 }
   0x5   : > { %p242_p3 = scmp.lt.s32.totalorder (!%p213_p2), %s1636_s22, 5  ;;  %s1758_s11 = smov (!%p213_p2), 73  }
   0x6   : > { %216 = sbr.rel (%p213_p2) target bundleno = 811 (0x32b), region = 44  ;;  %s1759_s16 = smov (!%p213_p2), 17  }
   0x7   : > { %s1760_s17 = smov (!%p213_p2), 16   ;;  %s1761_s24 = smov (!%p213_p2), 18  }
   0x8   : > { %s1762_s25 = smov (!%p213_p2), 2   ;;  %s1763_s30 = smov (!%p213_p2), 9  }
   0x9   : > { %s1764_s7 = smov (!%p213_p2), 8   ;;  %s1765_s19 = smov (!%p213_p2), 10  }
   0xa   : > { %s1766_s26 = smov (!%p213_p2), 81   ;;  %s1768_s8 = smov (!%p213_p2), 1  }
   0xb   : > { %v275_v0 = vlaneseq  ;;  %vm253_vm0 = vcmask 592896   ;;  %v1669_v1 = vld [vmem:[%s2604_s5 + $0x31] ss:$8 sm:$0x3]  ;;  %s2607_s22 = smov (!%p242_p3, %s1636_s22), 5  ;;  %v1757_v4 = vmov 0.0  }
   0xc   : > { %v1668_v3 = vld [vmem:[%s2604_s5 + $0x30] ss:$8 sm:$0x3]  ;;  %254 = vst.msk [vmem:[#allocation2] sm:$0xf] %vm253_vm0, %v1757_v4  ;;  %vm255_vm1 = vcmask 1044040  }
   0xd   : > { %v276_v2 = vshrl.u32 %v275_v0, 7  ;;  %v1670_v5 = vld [vmem:[%s2604_s5 + $0x32] ss:$8 sm:$0x3]  ;;  %vm256_vm2 = vcmask 146436   ;;  %s1678_s29 = sshll.u32 %s2607_s22, 3 }
   0xe   : > { %v1664_v8 = vld [vmem:[%s2604_s5 + $0x24] ss:$8 sm:$0x3]  ;;  %vm257_vm3 = vmor %vm256_vm2, %vm255_vm1  ;;  %s246_s10 = scalar_lea.vmem %s2599_s0, %s1678_s29  ;;  %v1666_v18 = vld [vmem:[%s2604_s5 + $0x26] ss:$8 sm:$0x3] }
   0xf   : > { %v1848_v6 = vsub.s32 0, %v276_v2  ;;  %v1850_v7 = vsub.s32 1, %v276_v2  ;;  %258 = vst.msk [vmem:[#allocation2 + $0x8] sm:$0xff] %vm257_vm3, %v1757_v4  ;;  %v259_v9 = vld [vmem:[%s246_s10] sm:$0xff]  ;;  %s1767_s29 = smov 82   ;;  %s1769_s14 = smov 72  }
  0x10   : > { %261 = vrot.lane.b32.xlu0 %v259_v9, %s1758_s11  ;;  %v1665_v21 = vld [vmem:[%s2604_s5 + $0x25] ss:$8 sm:$0x3]  ;;  %v1667_v28 = vld [vmem:[%s2604_s5 + $0x27] ss:$8 sm:$0x3] }
  0x11   : > { %v1214_v10 = vrot.slane %v1669_v1, %v1848_v6  ;;  %v1218_v11 = vrot.slane %v1669_v1, %v1850_v7  ;;  %v1177_v12 = vrot.slane %v1668_v3, %v1848_v6  ;;  %v1181_v13 = vrot.slane %v1668_v3, %v1850_v7  ;;  %v1660_v29 = vld [vmem:[%s2604_s5 + $0x20] ss:$8 sm:$0x3]  ;;  %v1661_v36 = vld [vmem:[%s2604_s5 + $0x21] ss:$8 sm:$0x3] }
  0x12   : > { %v1252_v14 = vrot.slane %v1670_v5, %v1848_v6  ;;  %v1256_v15 = vrot.slane %v1670_v5, %v1850_v7  ;;  %v1027_v16 = vrot.slane %v1664_v8, %v1848_v6  ;;  %v1031_v17 = vrot.slane %v1664_v8, %v1850_v7  ;;  %v1663_v37 = vld [vmem:[%s2604_s5 + $0x23] ss:$8 sm:$0x3]  ;;  %v1656_v44 = vld [vmem:[%s2604_s5 + $0x14] ss:$8 sm:$0x3] }
  0x13   : > { %v1219_v19 = vcombine.low %v1214_v10, %v1218_v11  ;;  %v1182_v20 = vcombine.low %v1177_v12, %v1181_v13  ;;  %v1102_v23 = vrot.slane %v1666_v18, %v1848_v6  ;;  %v1106_v24 = vrot.slane %v1666_v18, %v1850_v7  ;;  %v1658_v45 = vld [vmem:[%s2604_s5 + $0x16] ss:$8 sm:$0x3]  ;;  %v273_v46 = vld [vmem:[%s2604_s5] ss:$8 sm:$0x3] }
  0x14   : > { %v1257_v22 = vcombine.low %v1252_v14, %v1256_v15  ;;  %v1032_v25 = vcombine.low %v1027_v16, %v1031_v17  ;;  %v1064_v26 = vrot.slane %v1665_v21, %v1848_v6  ;;  %v1068_v27 = vrot.slane %v1665_v21, %v1850_v7  ;;  %v1662_v47 = vld [vmem:[%s2604_s5 + $0x22] ss:$8 sm:$0x3]  ;;  %v1657_v51 = vld [vmem:[%s2604_s5 + $0x15] ss:$8 sm:$0x3] }
  0x15   : > { %1220 = vrot.lane.b32.xlu1 %v1219_v19, %s1759_s16  ;;  %1183 = vrot.lane.b32.xlu0 %v1182_v20, %s1760_s17  ;;  %v1107_v30 = vcombine.low %v1102_v23, %v1106_v24  ;;  %v1139_v31 = vrot.slane %v1667_v28, %v1848_v6  ;;  %v1143_v32 = vrot.slane %v1667_v28, %v1850_v7  ;;  %v1659_v55 = vld [vmem:[%s2604_s5 + $0x17] ss:$8 sm:$0x3]  ;;  %v1652_v3 = vld [vmem:[%s2604_s5 + $0x10] ss:$8 sm:$0x3] }
  0x16   : > { %v1069_v33 = vcombine.low %v1064_v26, %v1068_v27  ;;  %v890_v34 = vrot.slane %v1660_v29, %v1848_v6  ;;  %v894_v35 = vrot.slane %v1660_v29, %v1850_v7  ;;  %v929_v39 = vrot.slane %v1661_v36, %v1848_v6  ;;  %v1654_v5 = vld [vmem:[%s2604_s5 + $0x12] ss:$8 sm:$0x3]  ;;  %s1770_s15 = smov 74   ;;  %s1771_s27 = smov 80  }
  0x17   : > { %v1144_v38 = vcombine.low %v1139_v31, %v1143_v32  ;;  %v933_v40 = vrot.slane %v1661_v36, %v1850_v7  ;;  %v989_v42 = vrot.slane %v1663_v37, %v1848_v6  ;;  %v993_v43 = vrot.slane %v1663_v37, %v1850_v7  ;;  %v1653_v14 = vld [vmem:[%s2604_s5 + $0x11] ss:$8 sm:$0x3]  ;;  %v1655_v15 = vld [vmem:[%s2604_s5 + $0x13] ss:$8 sm:$0x3] }
  0x18   : > { %v895_v41 = vcombine.low %v890_v34, %v894_v35  ;;  %v733_v49 = vrot.slane %v1656_v44, %v1848_v6  ;;  %v737_v50 = vrot.slane %v1656_v44, %v1850_v7  ;;  %v811_v53 = vrot.slane %v1658_v45, %v1848_v6  ;;  %v1650_v23 = vld [vmem:[%s2604_s5 + $0x6] ss:$8 sm:$0x3]  ;;  %v1651_v31 = vld [vmem:[%s2604_s5 + $0x7] ss:$8 sm:$0x3] }
  0x19   : > { %1258 = vrot.lane.b32.xlu1 %v1257_v22, %s1761_s24  ;;  %1033 = vrot.lane.b32.xlu0 %v1032_v25, %s1762_s25  ;;  %v934_v48 = vcombine.low %v929_v39, %v933_v40  ;;  %v994_v52 = vcombine.low %v989_v42, %v993_v43  ;;  %v815_v54 = vrot.slane %v1658_v45, %v1850_v7  ;;  %v1648_v22 = vld [vmem:[%s2604_s5 + $0x4] ss:$8 sm:$0x3]  ;;  %s1774_s18 = smov 66   ;;  %vm268_vm4 = vcmask 1047556   ;;  %s1782_s9 = smov 118  }
  0x1a   : > { %v278_v56 = vrot.slane %v273_v46, %v1848_v6  ;;  %v282_v57 = vrot.slane %v273_v46, %v1850_v7  ;;  %v968_v58 = vrot.slane %v1662_v47, %v1848_v6  ;;  %v972_v59 = vrot.slane %v1662_v47, %v1850_v7  ;;  %v1645_v39 = vld [vmem:[%s2604_s5 + $0x1] ss:$8 sm:$0x3]  ;;  %v1647_v46 = vld [vmem:[%s2604_s5 + $0x3] ss:$8 sm:$0x3]  ;;  %vm269_vm6 = vmor %vm268_vm4, %vm255_vm1 }
  0x1b   : > { %v738_v60 = vcombine.low %v733_v49, %v737_v50  ;;  %v772_v61 = vrot.slane %v1657_v51, %v1848_v6  ;;  %v776_v62 = vrot.slane %v1657_v51, %v1850_v7  ;;  %v816_v0 = vcombine.low %v811_v53, %v815_v54  ;;  %v1207_v54 = vld [vmem:[#allocation2 + $0xc] sm:$0xf]  ;;  %s1783_s10 = smov 54   ;;  %s1785_s12 = smov 47  }
  0x1c   : > { %v1933_v63 = vcombine.low %v278_v56, %v282_v57  ;;  %v850_v1 = vrot.slane %v1659_v55, %v1848_v6  ;;  %v854_v2 = vrot.slane %v1659_v55, %v1850_v7  ;;  %v1941_v4 = vcombine.low %v968_v58, %v972_v59  ;;  %v1170_v57 = vld [vmem:[#allocation2 + $0xc] sm:$0xf]  ;;  %s1786_s13 = smov 55   ;;  %s1790_s20 = smov 62  }
  0x1d   : > { %1108 = vrot.lane.b32.xlu1 %v1107_v30, %s1763_s30  ;;  %1070 = vrot.lane.b32.xlu0 %v1069_v33, %s1764_s7  ;;  %v777_v8 = vcombine.low %v772_v61, %v776_v62  ;;  %v576_v9 = vrot.slane %v1652_v3, %v1848_v6  ;;  %v580_v10 = vrot.slane %v1652_v3, %v1850_v7  ;;  %v1649_v30 = vld [vmem:[%s2604_s5 + $0x5] ss:$8 sm:$0x3]  ;;  %vm264_vm5 = vcmask 596992  }
  0x1e   : > { %v855_v11 = vcombine.low %v850_v1, %v854_v2  ;;  %v654_v12 = vrot.slane %v1654_v5, %v1848_v6  ;;  %v658_v13 = vrot.slane %v1654_v5, %v1850_v7  ;;  %v615_v17 = vrot.slane %v1653_v14, %v1848_v6  ;;  %v1245_v62 = vld [vmem:[#allocation2 + $0xc] sm:$0xf] }
  0x1f   : > { %v581_v16 = vcombine.low %v576_v9, %v580_v10  ;;  %v619_v18 = vrot.slane %v1653_v14, %v1850_v7  ;;  %v693_v20 = vrot.slane %v1655_v15, %v1848_v6  ;;  %v697_v21 = vrot.slane %v1655_v15, %v1850_v7  ;;  %v1020_v5 = vld [vmem:[#allocation2 + $0xc] sm:$0xf] }
  0x20   : > { %v659_v19 = vcombine.low %v654_v12, %v658_v13  ;;  %v418_v25 = vrot.slane %v1648_v22, %v1848_v6  ;;  %v422_v26 = vrot.slane %v1648_v22, %v1850_v7  ;;  %v497_v28 = vrot.slane %v1650_v23, %v1848_v6 }
  0x21   : > { %1145 = vrot.lane.b32.xlu1 %v1144_v38, %s1765_s19  ;;  %896 = vrot.lane.b32.xlu0 %v895_v41, %s1766_s26  ;;  %v620_v24 = vcombine.low %v615_v17, %v619_v18  ;;  %v698_v27 = vcombine.low %v693_v20, %v697_v21  ;;  %v501_v29 = vrot.slane %v1650_v23, %v1850_v7  ;;  %v1646_v38 = vld [vmem:[%s2604_s5 + $0x2] ss:$8 sm:$0x3]  ;;  %v1057_v20 = vld [vmem:[#allocation2 + $0xc] sm:$0xf]  ;;  %vm387_vm7 = vcmask 64512  }
  0x22   : > { %v423_v32 = vcombine.low %v418_v25, %v422_v26  ;;  %v457_v33 = vrot.slane %v1649_v30, %v1848_v6  ;;  %v461_v34 = vrot.slane %v1649_v30, %v1850_v7  ;;  %v536_v36 = vrot.slane %v1651_v31, %v1848_v6 }
  0x23   : > { %v502_v35 = vcombine.low %v497_v28, %v501_v29  ;;  %v540_v37 = vrot.slane %v1651_v31, %v1850_v7  ;;  %v339_v41 = vrot.slane %v1646_v38, %v1848_v6  ;;  %v343_v42 = vrot.slane %v1646_v38, %v1850_v7 }
  0x24   : > { %v462_v40 = vcombine.low %v457_v33, %v461_v34  ;;  %v299_v44 = vrot.slane %v1645_v39, %v1848_v6  ;;  %v303_v45 = vrot.slane %v1645_v39, %v1850_v7  ;;  %v382_v49 = vrot.slane %v1647_v46, %v1850_v7  ;;  %v982_v33 = vld [vmem:[#allocation2 + $0xc] sm:$0xf] }
  0x25   : > { %935 = vrot.lane.b32.xlu1 %v934_v48, %s1767_s29  ;;  %995 = vrot.lane.b32.xlu0 %v994_v52, %s1768_s8  ;;  %v541_v43 = vcombine.low %v536_v36, %v540_v37  ;;  %v344_v47 = vcombine.low %v339_v41, %v343_v42  ;;  %v378_v48 = vrot.slane %v1647_v46, %v1848_v6  ;;  %vm506_vm8 = vcmask 130048  }
  0x26   : > { %v304_v50 = vcombine.low %v299_v44, %v303_v45  ;;  %vm466_vm9 = vcmask 80896   ;;  %vm545_vm10 = vcmask 138240   ;;  %vm585_vm11 = vcmask 146432  }
  0x27   : > { %v383_v51 = vcombine.low %v378_v48, %v382_v49  ;;  %vm348_vm12 = vcmask 15360   ;;  %vm427_vm13 = vcmask 72704   ;;  %vm938_vm14 = vcmask 670720  }
  0x28   : > { %vm859_vm15 = vcmask 654336   ;;  %vm742_vm1 = vcmask 588800   ;;  %vm899_vm2 = vcmask 662528   ;;  %vm820_vm3 = vcmask 605184  }
  0x29   : > { %739 = vrot.lane.b32.xlu1 %v738_v60, %s1769_s14  ;;  %817 = vrot.lane.b32.xlu0 %v816_v0, %s1770_s15  ;;  %s1787_s14 = smov 46   ;;  %s1788_s15 = smov 48   ;;  %vm663_vm4 = vcmask 531456  }
  0x2d   : > { %778 = vrot.lane.b32.xlu1 %v777_v8, %s1758_s11  ;;  %856 = vrot.lane.b32.xlu0 %v855_v11, %s1771_s27  ;;  %s1772_s11 = smov 65  }
  0x31   : > { %582 = vrot.lane.b32.xlu1 %v581_v16, %s1761_s24  ;;  %660 = vrot.lane.b32.xlu0 %v659_v19, %s1772_s11  ;;  %s1773_s24 = smov 64   ;;  %s1784_s11 = smov 127  }
  0x35   : > { %621 = vrot.lane.b32.xlu1 %v620_v24, %s1773_s24  ;;  %699 = vrot.lane.b32.xlu0 %v698_v27, %s1774_s18  ;;  %v1132_v27 = vld [vmem:[#allocation2 + $0xc] sm:$0xf]  ;;  %s1789_s18 = smov 63  }
  0x39   : > { %424 = vrot.lane.b32.xlu1 %v423_v32, %s1763_s30  ;;  %503 = vrot.lane.b32.xlu0 %v502_v35, %s1760_s17  ;;  %s1776_s17 = smov 111   ;;  %s1778_s30 = smov 126  }
  0x3d   : > { %463 = vrot.lane.b32.xlu1 %v462_v40, %s1765_s19  ;;  %542 = vrot.lane.b32.xlu0 %v541_v43, %s1759_s16  ;;  %s1775_s16 = smov 112   ;;  %s1780_s19 = smov 120  }
  0x41   : > { %345 = vrot.lane.b32.xlu1 %v344_v47, %s1762_s25  ;;  %305 = vrot.lane.b32.xlu0 %v304_v50, %s1768_s8  ;;  %s1777_s25 = smov 110   ;;  %s1781_s8 = smov 56  }
  0x45   : > { %384 = vrot.lane.b32.xlu1 %v383_v51, %s1764_s7  ;;  %s1779_s7 = smov 119  }
  0x82   : > { %v262_v52 = vpop.permute.xlu0 %261 }
  0x83   : > { %v263_v53 = vrot.slane %v262_v52, 4 }
  0x85   : > { %v265_v6 = vsel %vm264_vm5, %v263_v53, %v262_v52  ;;  %271 = vst.msk [vmem:[#allocation2 + $0x8] sm:$0xf] %vm253_vm0, %v263_v53  ;;  %vm308_vm0 = vcmask 7168  }
  0x86   : > { %270 = vst.msk [vmem:[#allocation2] sm:$0xff] %vm269_vm6, %v265_v6  ;;  %vm702_vm6 = vcmask 539648  }
  0x87   : > { %v2008_v7 = vpop.permute.xlu1 %1220  ;;  %v2011_v56 = vpop.permute.xlu0 %1183 }
  0x88   : > { %v1222_v55 = vrot.slane %v2008_v7, 4  ;;  %v1185_v58 = vrot.slane %v2011_v56, 4 }
  0x8a   : > { %v1227_v59 = vmul.f32 %v1222_v55, %v1207_v54  ;;  %v1190_v61 = vmul.f32 %v1185_v58, %v1170_v57  ;;  %v1186_v57 = vsel %vm506_vm8, %v1185_v58, %v2011_v56  ;;  %v1223_v58 = vsel %vm545_vm10, %v1222_v55, %v2008_v7 }
  0x8b   : > { %v2016_v60 = vpop.permute.xlu1 %1258  ;;  %v2021_v1 = vpop.permute.xlu0 %1033 }
  0x8c   : > { %v1260_v0 = vrot.slane %v2016_v60, 4  ;;  %v1231_v2 = vcombine.low %v1227_v59, %v1227_v59  ;;  %1198 = vrot.lane.b32.xlu0 %v1190_v61, %s1775_s16  ;;  %v1035_v10 = vrot.slane %v2021_v1, 4  ;;  %v726_v35 = vld [vmem:[#allocation2 + $0x8] sm:$0xf] }
  0x8d   : > { %v2027_v8 = vld [vmem:[#allocation2] sm:$0xff]  ;;  %v804_v42 = vld [vmem:[#allocation2 + $0x8] sm:$0xf] }
  0x8e   : > { %1236 = vrot.lane.b32.xlu1 %v1231_v2, %s1776_s17  ;;  %v1265_v3 = vmul.f32 %v1260_v0, %v1245_v62  ;;  %v2029_v9 = vld [vmem:[#allocation2 + $0x4] sm:$0xff]  ;;  %v285_v12 = vmul.f32 %v1933_v63, %v2027_v8  ;;  %v1040_v15 = vmul.f32 %v1035_v10, %v1020_v5  ;;  %v1095_v63 = vld [vmem:[#allocation2 + $0xc] sm:$0xf] }
  0x8f   : > { %v2032_v11 = vpop.permute.xlu1 %1108  ;;  %v975_v13 = vmul.f32 %v1941_v4, %v2029_v9  ;;  %v2038_v14 = vpop.permute.xlu0 %1070  ;;  %v569_v49 = vld [vmem:[#allocation2 + $0x8] sm:$0xf]  ;;  %v2110_v2 = vmul.f32 %v1186_v57, %v2029_v9  ;;  %v2141_v7 = vmul.f32 %v1223_v58, %v2029_v9 }
  0x90   : > { %1273 = vrot.lane.b32.xlu0 %v1265_v3, %s1777_s25  ;;  %289 = vst [vmem:[#allocation3 + $0xb0] sm:$0xf] %v285_v12  ;;  %v1110_v17 = vrot.slane %v2032_v11, 4  ;;  %v1072_v4 = vrot.slane %v2038_v14, 4  ;;  %v287_v21 = vcombine.high %v285_v12, %v285_v12  ;;  %v883_v51 = vld [vmem:[#allocation2 + $0x8] sm:$0xf]  ;;  %v1261_v12 = vsel %vm585_vm11, %v1260_v0, %v2016_v60 }
  0x91   : > { %979 = vst [vmem:[#allocation3 + $0xc0] sm:$0xf] %v975_v13  ;;  %v977_v16 = vcombine.high %v975_v13, %v975_v13  ;;  %v1036_v13 = vsel %vm348_vm12, %v1035_v10, %v2021_v1  ;;  %v922_v58 = vld [vmem:[#allocation2 + $0x8] sm:$0xf] }
  0x92   : > { %v1115_v24 = vmul.f32 %v1110_v17, %v1095_v63  ;;  %v1077_v25 = vmul.f32 %v1072_v4, %v1057_v20  ;;  %290 = vst [vmem:[#allocation3] sm:$0xf] %v287_v21  ;;  %v1073_v52 = vsel %vm387_vm7, %v1072_v4, %v2038_v14  ;;  %v2163_v63 = vmul.f32 %v1261_v12, %v2029_v9 }
  0x93   : > { %v2044_v18 = vpop.permute.xlu1 %1145  ;;  %v2046_v19 = vpop.permute.xlu0 %896  ;;  %980 = vst [vmem:[#allocation3 + $0x60] sm:$0xf] %v977_v16  ;;  %v2103_v59 = vmul.f32 %v1073_v52, %v2029_v9  ;;  %v1111_v20 = vsel %vm427_vm13, %v1110_v17, %v2032_v11 }
  0x94   : > { %1048 = vrot.lane.b32.xlu0 %v1040_v15, %s1778_s30  ;;  %v1147_v22 = vrot.slane %v2044_v18, 4  ;;  %v1081_v29 = vcombine.low %v1077_v25, %v1077_v25  ;;  %v898_v44 = vrot.slane %v2046_v19, 4 }
  0x96   : > { %v1152_v30 = vmul.f32 %v1147_v22, %v1132_v27  ;;  %v904_v6 = vmul.f32 %v898_v44, %v883_v51  ;;  %v1148_v61 = vsel %vm466_vm9, %v1147_v22, %v2044_v18  ;;  %v2160_v18 = vmul.f32 %v1036_v13, %v2029_v9 }
  0x97   : > { %v2051_v23 = vpop.permute.xlu1 %935  ;;  %v2055_v26 = vpop.permute.xlu0 %995  ;;  %v2124_v5 = vmul.f32 %v1148_v61, %v2029_v9 }
  0x98   : > { %1123 = vrot.lane.b32.xlu0 %v1115_v24, %s1779_s7  ;;  %v997_v34 = vrot.slane %v2055_v26, 4  ;;  %v1156_v39 = vcombine.low %v1152_v30, %v1152_v30  ;;  %v937_v4 = vrot.slane %v2051_v23, 4 }
  0x9a   : > { %v1002_v40 = vmul.f32 %v997_v34, %v982_v33  ;;  %v943_v13 = vmul.f32 %v937_v4, %v922_v58 }
  0x9b   : > { %v2058_v28 = vpop.permute.xlu1 %739  ;;  %v2061_v32 = vpop.permute.xlu0 %817 }
  0x9c   : > { %v741_v31 = vrot.slane %v2058_v28, 4  ;;  %1086 = vrot.lane.b32.xlu0 %v1081_v29, %s1780_s19  ;;  %v819_v36 = vrot.slane %v2061_v32, 4  ;;  %v1006_v46 = vcombine.low %v1002_v40, %v1002_v40 }
  0x9e   : > { %v747_v37 = vmul.f32 %v741_v31, %v726_v35  ;;  %v825_v43 = vmul.f32 %v819_v36, %v804_v42  ;;  %v2198_v35 = vmul.f32 %v1111_v20, %v2029_v9  ;;  %v1155_v20 = vcombine.low %v2124_v5, %v2124_v5 }
  0x9f   : > { %v2068_v38 = vpop.permute.xlu1 %778  ;;  %v2073_v41 = vpop.permute.xlu0 %856 }
  0xa0   : > { %755 = vrot.lane.b32.xlu1 %v747_v37, %s1781_s8  ;;  %1161 = vrot.lane.b32.xlu0 %v1156_v39, %s1782_s9  ;;  %v780_v55 = vrot.slane %v2068_v38, 4  ;;  %v858_v27 = vrot.slane %v2073_v41, 4  ;;  %v939_v37 = vsel %vm938_vm14, %v937_v4, %v2051_v23  ;;  %v1230_v4 = vcombine.low %v2141_v7, %v2141_v7 }
  0xa1   : > { %vm521_vm14 = vcmask 916480  }
  0xa2   : > { %v781_v25 = vsel %vm264_vm5, %v780_v55, %v2068_v38  ;;  %vm624_vm5 = vcmask 523264  }
  0xa3   : > { %v2079_v45 = vpop.permute.xlu1 %582  ;;  %v2083_v48 = vpop.permute.xlu0 %660  ;;  %v2212_v42 = vmul.f32 %v781_v25, %v2027_v8 }
  0xa4   : > { %v584_v47 = vrot.slane %v2079_v45, 4  ;;  %833 = vrot.lane.b32.xlu1 %v825_v43, %s1783_s10  ;;  %1011 = vrot.lane.b32.xlu0 %v1006_v46, %s1784_s11  ;;  %v860_v43 = vsel %vm859_vm15, %v858_v27, %v2073_v41  ;;  %v942_v41 = vmul.f32 %v939_v37, %v2027_v8  ;;  %vm600_vm15 = vcmask 900096  }
  0xa5   : > { %v2236_v52 = vmul.f32 %v860_v43, %v2027_v8 }
  0xa6   : > { %v590_v50 = vmul.f32 %v584_v47, %v569_v49 }
  0xa7   : > { %v2090_v53 = vpop.permute.xlu1 %621  ;;  %v2095_v54 = vpop.permute.xlu0 %699 }
  0xa8   : > { %598 = vrot.lane.b32.xlu1 %v590_v50, %s1777_s25  ;;  %912 = vrot.lane.b32.xlu0 %v904_v6, %s1785_s12  ;;  %v998_v50 = vsel %vm308_vm0, %v997_v34, %v2055_v26  ;;  %v743_v6 = vsel %vm742_vm1, %v741_v31, %v2058_v28  ;;  %v900_v34 = vsel %vm899_vm2, %v898_v44, %v2046_v19  ;;  %v765_v31 = vld [vmem:[#allocation2 + $0x8] sm:$0xf]  ;;  %vm363_vm1 = vcmask 1031168  }
  0xa9   : > { %v2245_v26 = vmul.f32 %v998_v50, %v2029_v9  ;;  %v746_v57 = vmul.f32 %v743_v6, %v2027_v8  ;;  %v821_v28 = vsel %vm820_vm3, %v819_v36, %v2061_v32  ;;  %v903_v61 = vmul.f32 %v900_v34, %v2027_v8  ;;  %v843_v19 = vld [vmem:[#allocation2 + $0x8] sm:$0xf] }
  0xaa   : > { %v785_v9 = vmul.f32 %v780_v55, %v765_v31  ;;  %v824_v12 = vmul.f32 %v821_v28, %v2027_v8  ;;  %v864_v32 = vmul.f32 %v858_v27, %v843_v19  ;;  %v947_v36 = vcombine.low %v943_v13, %v943_v13 }
  0xab   : > { %v2107_v62 = vpop.permute.xlu1 %424  ;;  %v2114_v3 = vpop.permute.xlu0 %503  ;;  %v1080_v55 = vcombine.low %v2103_v59, %v2103_v59  ;;  %v750_v25 = vcombine.high %v746_v57, %v746_v57  ;;  %v788_v50 = vcombine.low %v2212_v42, %v2212_v42  ;;  %vm835_vm2 = vcmask 441344  }
  0xac   : > { %1084 = vrot.lane.b32.xlu1 %v2103_v59, %s1780_s19  ;;  %v505_v56 = vrot.slane %v2114_v3, 4  ;;  %1194 = vrot.lane.b32.xlu0 %v2110_v2, %s1775_s16  ;;  %v789_v44 = vcombine.low %v785_v9, %v785_v9  ;;  %v1268_v59 = vcombine.high %v2163_v63, %v2163_v63  ;;  %v828_v27 = vcombine.high %v824_v12, %v824_v12  ;;  %v686_v9 = vld [vmem:[#allocation2 + $0x8] sm:$0xf] }
  0xad   : > { %v426_v34 = vrot.slane %v2107_v62, 4  ;;  %vm442_vm3 = vcmask 973824  }
  0xae   : > { %v507_v14 = vsel %vm506_vm8, %v505_v56, %v2114_v3  ;;  %vm482_vm8 = vcmask 965632  }
  0xaf   : > { %v2138_v15 = vpop.permute.xlu1 %463  ;;  %v2145_v60 = vmul.f32 %v507_v14, %v2027_v8  ;;  %v2150_v1 = vpop.permute.xlu0 %542  ;;  %v868_v14 = vcombine.low %v864_v32, %v864_v32  ;;  %v428_v28 = vsel %vm427_vm13, %v426_v34, %v2107_v62  ;;  %vm875_vm13 = vcmask 392192  }
  0xb0   : > { %v465_v0 = vrot.slane %v2138_v15, 4  ;;  %1159 = vrot.lane.b32.xlu1 %v2124_v5, %s1782_s9  ;;  %v544_v10 = vrot.slane %v2150_v1, 4  ;;  %1234 = vrot.lane.b32.xlu0 %v2141_v7, %s1776_s17  ;;  %v1043_v5 = vcombine.high %v2160_v18, %v2160_v18  ;;  %v431_v31 = vmul.f32 %v428_v28, %v2027_v8  ;;  %v1502_v28 = vld [vmem:[%s2602_s3 + $0x8] sm:$0xff] }
  0xb2   : > { %v467_v16 = vsel %vm466_vm9, %v465_v0, %v2138_v15  ;;  %v546_v21 = vsel %vm545_vm10, %v544_v10, %v2150_v1  ;;  %v435_v13 = vcombine.high %v431_v31, %v431_v31  ;;  %vm561_vm9 = vcmask 908288  }
  0xb3   : > { %v2174_v22 = vpop.permute.xlu1 %345  ;;  %v2177_v24 = vmul.f32 %v467_v16, %v2027_v8  ;;  %v2183_v29 = vmul.f32 %v546_v21, %v2027_v8  ;;  %v2188_v17 = vpop.permute.xlu0 %305  ;;  %v1193_v16 = vcombine.high %v2110_v2, %v2110_v2  ;;  %v946_v21 = vcombine.low %v942_v41, %v942_v41 }
  0xb4   : > { %v347_v11 = vrot.slane %v2174_v22, 4  ;;  %1044 = vrot.lane.b32.xlu1 %v2160_v18, %s1778_s30  ;;  %v307_v30 = vrot.slane %v2188_v17, 4  ;;  %1269 = vrot.lane.b32.xlu0 %v2163_v63, %s1777_s25  ;;  %v586_v2 = vsel %vm585_vm11, %v584_v47, %v2079_v45  ;;  %v623_v63 = vrot.slane %v2090_v53, 4 }
  0xb5   : > { %v589_v7 = vmul.f32 %v586_v2, %v2027_v8  ;;  %v1118_v45 = vcombine.high %v2198_v35, %v2198_v35  ;;  %v474_v3 = vcombine.low %v2177_v24, %v2177_v24  ;;  %vm324_vm10 = vcmask 1039360  }
  0xb6   : > { %v349_v33 = vsel %vm348_vm12, %v347_v11, %v2174_v22  ;;  %v309_v39 = vsel %vm308_vm0, %v307_v30, %v2188_v17  ;;  %v625_v18 = vsel %vm624_vm5, %v623_v63, %v2090_v53  ;;  %vm796_vm11 = vcmask 449536  }
  0xb7   : > { %v2203_v38 = vmul.f32 %v349_v33, %v2027_v8  ;;  %v2209_v40 = vpop.permute.xlu1 %384  ;;  %v2216_v46 = vmul.f32 %v309_v39, %v2027_v8  ;;  %v662_v33 = vrot.slane %v2083_v48, 4  ;;  %v593_v47 = vcombine.high %v589_v7, %v589_v7 }
  0xb8   : > { %v386_v23 = vrot.slane %v2209_v40, 4  ;;  %1119 = vrot.lane.b32.xlu1 %v2198_v35, %s1779_s7  ;;  %792 = vrot.lane.b32.xlu0 %v2212_v42, %s1786_s13  ;;  %v907_v39 = vcombine.high %v903_v61, %v903_v61  ;;  %vm954_vm12 = vcmask 375808   ;;  %vm757_vm0 = vcmask 457728  }
  0xb9   : > { %v664_v37 = vsel %vm663_vm4, %v662_v33, %v2083_v48  ;;  %v1005_v48 = vcombine.low %v2245_v26, %v2245_v26  ;;  %vm1368_vm4 = vcmask 1045504  }
  0xba   : > { %v388_v49 = vsel %vm387_vm7, %v386_v23, %v2209_v40  ;;  %v667_v43 = vmul.f32 %v664_v37, %v2027_v8  ;;  %v316_v37 = vcombine.low %v2216_v46, %v2216_v46  ;;  %vm403_vm7 = vcmask 982016  }
  0xbb   : > { %v2233_v51 = vmul.f32 %v388_v49, %v2027_v8  ;;  %v628_v49 = vmul.f32 %v625_v18, %v2027_v8 }
  0xbc   : > { %950 = vrot.lane.b32.xlu1 %v942_v41, %s1787_s14  ;;  %871 = vrot.lane.b32.xlu0 %v2236_v52, %s1788_s15  ;;  %v701_v41 = vrot.slane %v2095_v54, 4  ;;  %v671_v53 = vcombine.high %v667_v43, %v667_v43 }
  0xbd   : > { %v632_v62 = vcombine.low %v628_v49, %v628_v49  ;;  %v395_v17 = vcombine.low %v2233_v51, %v2233_v51 }
  0xbe   : > { %v703_v35 = vsel %vm702_vm6, %v701_v41, %v2095_v54  ;;  %vm914_vm6 = vcmask 384000  }
  0xbf   : > { %v706_v6 = vmul.f32 %v703_v35, %v2027_v8  ;;  %v514_v8 = vcombine.high %v2145_v60, %v2145_v60 }
  0xc0   : > { %1009 = vrot.lane.b32.xlu1 %v2245_v26, %s1784_s11  ;;  %751 = vrot.lane.b32.xlu0 %v746_v57, %s1781_s8  ;;  %v608_v57 = vld [vmem:[#allocation2 + $0x8] sm:$0xf]  ;;  %v867_v26 = vcombine.low %v2236_v52, %v2236_v52 }
  0xc1   : > { %v629_v54 = vmul.f32 %v623_v63, %v608_v57 }
  0xc3   : > { %v633_v42 = vcombine.low %v629_v54, %v629_v54  ;;  %v1328_v54 = vld [vmem:[%s2601_s2 + $0x8] sm:$0xff] }
  0xc4   : > { %908 = vrot.lane.b32.xlu1 %v903_v61, %s1785_s12  ;;  %829 = vrot.lane.b32.xlu0 %v824_v12, %s1783_s10  ;;  %v647_v61 = vld [vmem:[#allocation2 + $0x8] sm:$0xf]  ;;  %v707_v12 = vmul.f32 %v701_v41, %v686_v9  ;;  %v1330_v9 = vld [vmem:[%s2601_s2 + $0x18] sm:$0xff] }
  0xc5   : > { %v668_v58 = vmul.f32 %v662_v33, %v647_v61 }
  0xc6   : > { %v711_v52 = vcombine.low %v707_v12, %v707_v12 }
  0xc8   : > { %794 = vrot.lane.b32.xlu1 %v789_v44, %s1786_s13  ;;  %952 = vrot.lane.b32.xlu0 %v947_v36, %s1787_s14  ;;  %v710_v44 = vcombine.low %v706_v6, %v706_v6  ;;  %v411_v36 = vld [vmem:[#allocation2 + $0x8] sm:$0xf] }
  0xcc   : > { %873 = vrot.lane.b32.xlu1 %v868_v14, %s1788_s15  ;;  %1082 = vrot.lane.b32.xlu0 %v1080_v55, %s1780_s19  ;;  %v450_v14 = vld [vmem:[#allocation2 + $0x8] sm:$0xf]  ;;  %v432_v55 = vmul.f32 %v426_v34, %v411_v36  ;;  %v1327_v34 = vld [vmem:[%s2601_s2] sm:$0xff] }
  0xd0   : > { %1196 = vrot.lane.b32.xlu1 %v1193_v16, %s1775_s16  ;;  %1157 = vrot.lane.b32.xlu0 %v1155_v20, %s1782_s9  ;;  %v471_v16 = vmul.f32 %v465_v0, %v450_v14  ;;  %v1503_v14 = vld [vmem:[%s2602_s3 + $0x10] sm:$0xff] }
  0xd4   : > { %1232 = vrot.lane.b32.xlu1 %v1230_v4, %s1776_s17  ;;  %948 = vrot.lane.b32.xlu0 %v946_v21, %s1787_s14  ;;  %v475_v4 = vcombine.low %v471_v16, %v471_v16 }
  0xd8   : > { %1271 = vrot.lane.b32.xlu1 %v1268_v59, %s1777_s25  ;;  %753 = vrot.lane.b32.xlu0 %v750_v25, %s1781_s8  ;;  %v529_v59 = vld [vmem:[#allocation2 + $0x8] sm:$0xf] }
  0xd9   : > { %v490_v25 = vld [vmem:[#allocation2 + $0x8] sm:$0xf]  ;;  %v550_v15 = vmul.f32 %v544_v10, %v529_v59 }
  0xda   : > { %v511_v2 = vmul.f32 %v505_v56, %v490_v25  ;;  %v292_v10 = vld [vmem:[#allocation2 + $0x8] sm:$0xf]  ;;  %v1504_v25 = vld [vmem:[%s2602_s3 + $0x18] sm:$0xff] }
  0xdb   : > { %v313_v63 = vmul.f32 %v307_v30, %v292_v10 }
  0xdc   : > { %1046 = vrot.lane.b32.xlu1 %v1043_v5, %s1778_s30  ;;  %831 = vrot.lane.b32.xlu0 %v828_v27, %s1783_s10  ;;  %v554_v27 = vcombine.low %v550_v15, %v550_v15 }
  0xe0   : > { %1121 = vrot.lane.b32.xlu1 %v1118_v45, %s1779_s7  ;;  %596 = vrot.lane.b32.xlu0 %v593_v47, %s1777_s25  ;;  %v553_v47 = vcombine.low %v2183_v29, %v2183_v29 }
  0xe4   : > { %910 = vrot.lane.b32.xlu1 %v907_v39, %s1785_s12  ;;  %636 = vrot.lane.b32.xlu0 %v628_v49, %s1773_s24  ;;  %v317_v39 = vcombine.low %v313_v63, %v313_v63 }
  0xe8   : > { %1007 = vrot.lane.b32.xlu1 %v1005_v48, %s1784_s11  ;;  %674 = vrot.lane.b32.xlu0 %v671_v53, %s1789_s18 }
  0xec   : > { %790 = vrot.lane.b32.xlu1 %v788_v50, %s1786_s13  ;;  %714 = vrot.lane.b32.xlu0 %v706_v6, %s1790_s20  ;;  %v1791_v6 = vmov 0  }
  0xed   : > { %1407 = vmatprep.mubr.bf16.mxu0 %v1791_v6  ;;  %1417 = vmatprep.mubr.bf16.mxu1 %v1791_v6 }
  0xee   : > { %1738 = vset.pattern.permute.xlu0 %v1791_v6  ;;  %1737 = vset.pattern.permute.xlu1 %v1791_v6 }
  0xf0   : > { %869 = vrot.lane.b32.xlu1 %v867_v26, %s1788_s15  ;;  %594 = vrot.lane.b32.xlu0 %v589_v7, %s1777_s25 }
  0xf4   : > { %638 = vrot.lane.b32.xlu1 %v633_v42, %s1773_s24  ;;  %672 = vrot.lane.b32.xlu0 %v667_v43, %s1789_s18  ;;  %v332_v43 = vld [vmem:[#allocation2 + $0x8] sm:$0xf] }
  0xf8   : > { %676 = vrot.lane.b32.xlu1 %v668_v58, %s1789_s18  ;;  %438 = vrot.lane.b32.xlu0 %v435_v13, %s1779_s7  ;;  %v1533_v58 = vld [vmem:[%s2603_s4] sm:$0xff] }
  0xfc   : > { %716 = vrot.lane.b32.xlu1 %v711_v52, %s1790_s20  ;;  %478 = vrot.lane.b32.xlu0 %v2177_v24, %s1782_s9  ;;  %v1501_v52 = vld [vmem:[%s2602_s3] sm:$0xff] }
  0xfe   : > { %v2324_v19 = vpop.permute.xlu0 %1198 }
 0x100   : > { %634 = vrot.lane.b32.xlu1 %v632_v62, %s1773_s24  ;;  %517 = vrot.lane.b32.xlu0 %v514_v8, %s1775_s16  ;;  %v1237_v0 = vpop.permute.xlu1 %1236 }
 0x102   : > { %v2330_v32 = vpop.permute.xlu0 %1273 }
 0x104   : > { %712 = vrot.lane.b32.xlu1 %v710_v44, %s1790_s20  ;;  %557 = vrot.lane.b32.xlu0 %v2183_v29, %s1776_s17 }
 0x106   : > { %v2336_v20 = vpop.permute.xlu0 %1048 }
 0x108   : > { %440 = vrot.lane.b32.xlu1 %v432_v55, %s1779_s7  ;;  %436 = vrot.lane.b32.xlu0 %v431_v31, %s1779_s7 }
 0x10a   : > { %v2340_v21 = vpop.permute.xlu0 %1123 }
 0x10c   : > { %480 = vrot.lane.b32.xlu1 %v475_v4, %s1782_s9  ;;  %515 = vrot.lane.b32.xlu0 %v2145_v60, %s1775_s16  ;;  %v356_v60 = vcombine.high %v2203_v38, %v2203_v38 }
 0x10e   : > { %v1087_v5 = vpop.permute.xlu0 %1086 }
 0x110   : > { %519 = vrot.lane.b32.xlu1 %v511_v2, %s1775_s16  ;;  %320 = vrot.lane.b32.xlu0 %v2216_v46, %s1784_s11  ;;  %v371_v46 = vld [vmem:[#allocation2 + $0x8] sm:$0xf]  ;;  %s1679_s16 = sshll.u32 %s2607_s22, 6 }
 0x111   : > { %v392_v49 = vmul.f32 %v386_v23, %v371_v46 }
 0x112   : > { %v2352_v7 = vpop.permute.xlu1 %755  ;;  %v1162_v33 = vpop.permute.xlu0 %1161 }
 0x113   : > { %v396_v40 = vcombine.low %v392_v49, %v392_v49 }
 0x114   : > { %559 = vrot.lane.b32.xlu1 %v554_v27, %s1776_s17  ;;  %359 = vrot.lane.b32.xlu0 %v356_v60, %s1778_s30 }
 0x116   : > { %v2358_v1 = vpop.permute.xlu1 %833  ;;  %v1012_v56 = vpop.permute.xlu0 %1011 }
 0x118   : > { %476 = vrot.lane.b32.xlu1 %v474_v3, %s1782_s9  ;;  %399 = vrot.lane.b32.xlu0 %v2233_v51, %s1780_s19  ;;  %v353_v51 = vmul.f32 %v347_v11, %v332_v43 }
 0x11a   : > { %v2367_v45 = vpop.permute.xlu1 %598  ;;  %v2373_v18 = vpop.permute.xlu0 %912 }
 0x11c   : > { %555 = vrot.lane.b32.xlu1 %v553_v47, %s1776_s17  ;;  %318 = vrot.lane.b32.xlu0 %v316_v37, %s1784_s11 }
 0x11e   : > { %v2377_v24 = vpop.permute.xlu1 %1084  ;;  %v2383_v29 = vpop.permute.xlu0 %1194 }
 0x11f   : > { %v1089_v30 = vsel %vm403_vm7, %v2377_v24, %v1087_v5 }
 0x120   : > { %1093 = vst [vmem:[#allocation3 + $0xa8] sm:$0xf0] %v1089_v30  ;;  %322 = vrot.lane.b32.xlu1 %v317_v39, %s1784_s11  ;;  %397 = vrot.lane.b32.xlu0 %v395_v17, %s1780_s19 }
 0x122   : > { %v2389_v41 = vpop.permute.xlu1 %1159  ;;  %v2395_v53 = vpop.permute.xlu0 %1234 }
 0x123   : > { %v1164_v48 = vsel %vm482_vm8, %v2389_v41, %v1162_v33  ;;  %v1239_v35 = vsel %vm561_vm9, %v2395_v53, %v1237_v0  ;;  %v1534_v33 = vld [vmem:[%s2603_s4 + $0x8] sm:$0xff] }
 0x124   : > { %1168 = vst [vmem:[#allocation3 + $0xa0] sm:$0xf0] %v1164_v48  ;;  %361 = vrot.lane.b32.xlu1 %v353_v51, %s1778_s30  ;;  %1243 = vst [vmem:[#allocation3 + $0x10] sm:$0xf0] %v1239_v35  ;;  %1338 = vperm.xlu0 %1738, %v1328_v54  }
 0x126   : > { %v2400_v50 = vpop.permute.xlu1 %1044  ;;  %v2402_v23 = vpop.permute.xlu0 %1269 }
 0x128   : > { %401 = vrot.lane.b32.xlu1 %v396_v40, %s1780_s19  ;;  %1512 = vperm.xlu0 %1738, %v1502_v28  }
 0x12a   : > { %v2405_v22 = vpop.permute.xlu1 %1119  ;;  %v2407_v11 = vpop.permute.xlu0 %792 }
 0x12c   : > { %357 = vrot.lane.b32.xlu1 %v2203_v38, %s1778_s30  ;;  %v1329_v38 = vld [vmem:[%s2601_s2 + $0x10] sm:$0xff]  ;;  %1539 = vperm.xlu0 %1738, %v1533_v58   ;;  %s2576_s30 = scalar_lea.vmem %s2605_s6, %s1679_s16 }
 0x12e   : > { %v951_v57 = vpop.permute.xlu1 %950  ;;  %v2414_v26 = vpop.permute.xlu0 %871 }
 0x130   : > { %1333 = vperm.xlu1 %1737, %v1327_v34  }
 0x132   : > { %v2425_v42 = vpop.permute.xlu1 %1009  ;;  %v752_v61 = vpop.permute.xlu0 %751 }
 0x133   : > { %v1014_v31 = vsel %vm324_vm10, %v2425_v42, %v1012_v56 }
 0x134   : > { %1018 = vst [vmem:[#allocation3 + $0x60] sm:$0xf0] %v1014_v31  ;;  %1343 = vperm.xlu1 %1737, %v1329_v38  }
 0x136   : > { %v2435_v12 = vpop.permute.xlu1 %908  ;;  %v830_v13 = vpop.permute.xlu0 %829 }
 0x138   : > { %1348 = vperm.xlu1 %1737, %v1330_v9  }
 0x13a   : > { %v795_v62 = vpop.permute.xlu1 %794  ;;  %v953_v44 = vpop.permute.xlu0 %952 }
 0x13b   : > { %v798_v8 = vsel %vm796_vm11, %v2407_v11, %v795_v62  ;;  %v956_v36 = vsel %vm954_vm12, %v951_v57, %v953_v44  ;;  %v1304_v62 = vld [vmem:[#allocation3 + $0x60] sm:$0xff] }
 0x13c   : > { %802 = vst [vmem:[#allocation3 + $0x90] sm:$0xf0] %v798_v8  ;;  %1507 = vperm.xlu1 %1737, %v1501_v52   ;;  %960 = vst [vmem:[#allocation3 + $0x28] sm:$0xf0] %v956_v36 }
 0x13e   : > { %v874_v55 = vpop.permute.xlu1 %873  ;;  %v1083_v4 = vpop.permute.xlu0 %1082 }
 0x13f   : > { %v877_v16 = vsel %vm875_vm13, %v2414_v26, %v874_v55  ;;  %v1088_v59 = vsel %vm403_vm7, %v1083_v4, %v2377_v24 }
 0x140   : > { %881 = vst [vmem:[#allocation3 + $0xb8] sm:$0xf0] %v877_v16  ;;  %1517 = vperm.xlu1 %1737, %v1503_v14   ;;  %1092 = vst [vmem:[#allocation3 + $0xd0] sm:$0xf0] %v1088_v59 }
 0x142   : > { %v1197_v15 = vpop.permute.xlu1 %1196  ;;  %v1158_v5 = vpop.permute.xlu0 %1157 }
 0x143   : > { %v1200_v0 = vsel %vm521_vm14, %v2383_v29, %v1197_v15  ;;  %v1201_v2 = vsel %vm521_vm14, %v1197_v15, %v2324_v19  ;;  %v1163_v27 = vsel %vm482_vm8, %v1158_v5, %v2389_v41 }
 0x144   : > { %1204 = vst [vmem:[#allocation3 + $0x20] sm:$0xf] %v1200_v0  ;;  %1205 = vst [vmem:[#allocation3 + $0x10] sm:$0xf] %v1201_v2  ;;  %1522 = vperm.xlu1 %1737, %v1504_v25  }
 0x145   : > { %1167 = vst [vmem:[#allocation3 + $0x98] sm:$0xf0] %v1163_v27 }
 0x146   : > { %v1233_v60 = vpop.permute.xlu1 %1232  ;;  %v949_v56 = vpop.permute.xlu0 %948 }
 0x147   : > { %v1238_v3 = vsel %vm561_vm9, %v1233_v60, %v2395_v53  ;;  %v955_v19 = vsel %vm954_vm12, %v949_v56, %v951_v57  ;;  %vm718_vm12 = vcmask 506880  }
 0x148   : > { %1242 = vst [vmem:[#allocation3 + $0x20] sm:$0xf0] %v1238_v3  ;;  %1544 = vperm.xlu1 %1737, %v1534_v33   ;;  %959 = vst [vmem:[#allocation3 + $0x40] sm:$0xf0] %v955_v19 }
 0x14a   : > { %v1272_v10 = vpop.permute.xlu1 %1271  ;;  %v754_v37 = vpop.permute.xlu0 %753 }
 0x14b   : > { %v1275_v63 = vsel %vm600_vm15, %v2402_v23, %v1272_v10  ;;  %v1276_v47 = vsel %vm600_vm15, %v1272_v10, %v2330_v32  ;;  %v758_v24 = vsel %vm757_vm0, %v752_v61, %v754_v37  ;;  %v759_v39 = vsel %vm757_vm0, %v754_v37, %v2352_v7  ;;  %v1310_v49 = vld [vmem:[#allocation3 + $0x10] sm:$0xff] }
 0x14c   : > { %1279 = vst [vmem:[#allocation3 + $0xc8] sm:$0xf] %v1275_v63  ;;  %1280 = vst [vmem:[#allocation3 + $0x70] sm:$0xf] %v1276_v47 }
 0x14d   : > { %762 = vst [vmem:[#allocation3 + $0x38] sm:$0xf] %v758_v24  ;;  %763 = vst [vmem:[#allocation3 + $0x90] sm:$0xf] %v759_v39 }
 0x14e   : > { %v1047_v17 = vpop.permute.xlu1 %1046  ;;  %v832_v46 = vpop.permute.xlu0 %831 }
 0x14f   : > { %v1050_v30 = vsel %vm363_vm1, %v2400_v50, %v1047_v17  ;;  %v1051_v29 = vsel %vm363_vm1, %v1047_v17, %v2336_v20  ;;  %v836_v32 = vsel %vm835_vm2, %v830_v13, %v832_v46  ;;  %v837_v43 = vsel %vm835_vm2, %v832_v46, %v2358_v1  ;;  %v1309_v20 = vld [vmem:[#allocation3 + $0x20] sm:$0xff] }
 0x150   : > { %1054 = vst [vmem:[#allocation3 + $0xd0] sm:$0xf] %v1050_v30  ;;  %1055 = vst [vmem:[#allocation3 + $0xa8] sm:$0xf] %v1051_v29 }
 0x151   : > { %840 = vst [vmem:[#allocation3 + $0x78] sm:$0xf] %v836_v32  ;;  %841 = vst [vmem:[#allocation3 + $0xb8] sm:$0xf] %v837_v43 }
 0x152   : > { %v1122_v7 = vpop.permute.xlu1 %1121  ;;  %v597_v48 = vpop.permute.xlu0 %596 }
 0x153   : > { %v1125_v41 = vsel %vm442_vm3, %v2405_v22, %v1122_v7  ;;  %v1126_v51 = vsel %vm442_vm3, %v1122_v7, %v2340_v21  ;;  %v1312_v53 = vld [vmem:[#allocation3 + $0x70] sm:$0xf]  ;;  %v1311_v35 = vld [vmem:[#allocation3 + $0xc8] sm:$0xf]  ;;  %v602_v1 = vsel %vm600_vm15, %v597_v48, %v2367_v45 }
 0x154   : > { %1129 = vst [vmem:[#allocation3 + $0x98] sm:$0xf] %v1125_v41  ;;  %1130 = vst [vmem:[#allocation3 + $0xa0] sm:$0xf] %v1126_v51  ;;  %v1326_v50 = vpack.c.bf16 %v1312_v53, %v1310_v49  ;;  %v1325_v40 = vpack.c.bf16 %v1311_v35, %v1309_v20  ;;  %v1298_v59 = vld [vmem:[#allocation3 + $0x90] sm:$0xff] }
 0x155   : > { %606 = vst [vmem:[#allocation3 + $0x88] sm:$0xf] %v602_v1 }
 0x156   : > { %v911_v23 = vpop.permute.xlu1 %910  ;;  %1673 = vmatprep.subr.msk.bf16.mxu0 %vm1368_vm4, %v1326_v50  ;;  %1680 = vmatprep.subr.msk.bf16.mxu1 %vm1368_vm4, %v1326_v50  ;;  %v1370_v22 = vsel %vm1368_vm4, %v1325_v40, 0  ;;  %v2483_v34 = vpop.permute.xlu0 %636 }
 0x157   : > { %v915_v21 = vsel %vm914_vm6, %v2435_v12, %v911_v23  ;;  %v916_v6 = vsel %vm914_vm6, %v911_v23, %v2373_v18  ;;  %1378 = vmatpush1.bf16.msra.mxu0 %v1370_v22  ;;  %1687 = vmatpush1.bf16.msra.mxu1 %v1370_v22  ;;  %v1306_v45 = vld [vmem:[#allocation3 + $0xa8] sm:$0xff]  ;;  %v1305_v31 = vld [vmem:[#allocation3 + $0xd0] sm:$0xff] }
 0x158   : > { %919 = vst [vmem:[#allocation3 + $0x40] sm:$0xf] %v915_v21  ;;  %920 = vst [vmem:[#allocation3 + $0x28] sm:$0xf] %v916_v6  ;;  %v1300_v44 = vld [vmem:[#allocation3 + $0xb8] sm:$0xff] }
 0x159   : > { %v1320_v25 = vpack.c.bf16 %v1300_v44, %v1298_v59 }
 0x15a   : > { %v1008_v57 = vpop.permute.xlu1 %1007  ;;  %v675_v38 = vpop.permute.xlu0 %674 }
 0x15b   : > { %v1013_v54 = vsel %vm324_vm10, %v1008_v57, %v2425_v42  ;;  %v1308_v28 = vld [vmem:[#allocation3 + $0xa0] sm:$0xff]  ;;  %v1307_v61 = vld [vmem:[#allocation3 + $0x98] sm:$0xff] }
 0x15c   : > { %1017 = vst [vmem:[#allocation3 + $0xc0] sm:$0xf0] %v1013_v54  ;;  %v1324_v9 = vpack.c.bf16 %v1308_v28, %v1306_v45  ;;  %v1323_v58 = vpack.c.bf16 %v1307_v61, %v1305_v31 }
 0x15e   : > { %v791_v12 = vpop.permute.xlu1 %790  ;;  %1379 = vmatprep.subr.bf16.mxu0 %v1324_v9  ;;  %1681 = vmatprep.subr.bf16.mxu1 %v1324_v9  ;;  %v715_v13 = vpop.permute.xlu0 %714 }
 0x15f   : > { %v797_v18 = vsel %vm796_vm11, %v791_v12, %v2407_v11  ;;  %1380 = vmatpush1.bf16.msra.mxu0 %v1323_v58  ;;  %1688 = vmatpush1.bf16.msra.mxu1 %v1323_v58  ;;  %v1302_v52 = vld [vmem:[#allocation3 + $0x28] sm:$0xff]  ;;  %v1301_v55 = vld [vmem:[#allocation3 + $0x40] sm:$0xff]  ;;  %vm678_vm11 = vcmask 515072  }
 0x160   : > { %801 = vst [vmem:[#allocation3 + $0x38] sm:$0xf0] %v797_v18  ;;  %v1322_v42 = vpack.c.bf16 %v1304_v62, %v1302_v52 }
 0x162   : > { %v870_v8 = vpop.permute.xlu1 %869  ;;  %1381 = vmatprep.subr.bf16.mxu0 %v1322_v42  ;;  %1682 = vmatprep.subr.bf16.mxu1 %v1322_v42  ;;  %v595_v14 = vpop.permute.xlu0 %594 }
 0x163   : > { %v876_v36 = vsel %vm875_vm13, %v870_v8, %v2414_v26  ;;  %v1303_v16 = vld [vmem:[#allocation3 + $0xc0] sm:$0xff]  ;;  %v601_v11 = vsel %vm600_vm15, %v595_v14, %v597_v48 }
 0x164   : > { %880 = vst [vmem:[#allocation3 + $0x78] sm:$0xf0] %v876_v36  ;;  %v1321_v4 = vpack.c.bf16 %v1303_v16, %v1301_v55  ;;  %605 = vst [vmem:[#allocation3 + $0x80] sm:$0xf] %v601_v11 }
 0x166   : > { %v639_v15 = vpop.permute.xlu1 %638  ;;  %1382 = vmatpush1.bf16.msra.mxu0 %v1321_v4  ;;  %1689 = vmatpush1.bf16.msra.mxu1 %v1321_v4  ;;  %v673_v26 = vpop.permute.xlu0 %672 }
 0x167   : > { %v641_v0 = vsel %vm624_vm5, %v2483_v34, %v639_v15  ;;  %1383 = vmatprep.subr.bf16.mxu0 %v1320_v25  ;;  %1683 = vmatprep.subr.bf16.mxu1 %v1320_v25  ;;  %v679_v2 = vsel %vm678_vm11, %v673_v26, %v675_v38  ;;  %v1297_v60 = vld [vmem:[#allocation3 + $0x38] sm:$0xff] }
 0x168   : > { %645 = vst [vmem:[#allocation3 + $0x88] sm:$0xf0] %v641_v0  ;;  %683 = vst [vmem:[#allocation3 + $0x8] sm:$0xf] %v679_v2 }
 0x16a   : > { %v677_v5 = vpop.permute.xlu1 %676  ;;  %v439_v33 = vpop.permute.xlu0 %438 }
 0x16b   : > { %v680_v27 = vsel %vm678_vm11, %v675_v38, %v677_v5  ;;  %v1299_v3 = vld [vmem:[#allocation3 + $0x78] sm:$0xff]  ;;  %v1739_v5 = vld [vmem:[%s2600_s1] sm:$0xff]  }
 0x16c   : > { %684 = vst [vmem:[#allocation3 + $0x58] sm:$0xf] %v680_v27  ;;  %v1319_v56 = vpack.c.bf16 %v1299_v3, %v1297_v60  ;;  %v1740_v27 = vld [vmem:[%s2600_s1 + $0x8] sm:$0xff]  }
 0x16e   : > { %v717_v19 = vpop.permute.xlu1 %716  ;;  %1384 = vmatpush1.bf16.msra.mxu0 %v1319_v56  ;;  %1690 = vmatpush1.bf16.msra.mxu1 %v1319_v56  ;;  %v479_v63 = vpop.permute.xlu0 %478 }
 0x16f   : > { %v720_v10 = vsel %vm718_vm12, %v715_v13, %v717_v19  ;;  %v1294_v29 = vld [vmem:[#allocation3 + $0x88] sm:$0xff] }
 0x170   : > { %724 = vst [vmem:[#allocation3 + $0x58] sm:$0xf0] %v720_v10 }
 0x172   : > { %v635_v47 = vpop.permute.xlu1 %634  ;;  %v518_v24 = vpop.permute.xlu0 %517 }
 0x173   : > { %v640_v37 = vsel %vm624_vm5, %v635_v47, %v2483_v34  ;;  %vm1361_vm5 = vcmask 883712  }
 0x174   : > { %644 = vst [vmem:[#allocation3 + $0x80] sm:$0xf0] %v640_v37 }
 0x176   : > { %v713_v39 = vpop.permute.xlu1 %712  ;;  %v558_v30 = vpop.permute.xlu0 %557 }
 0x177   : > { %v719_v17 = vsel %vm718_vm12, %v713_v39, %v715_v13  ;;  %v1296_v46 = vld [vmem:[#allocation3 + $0x58] sm:$0xff] }
 0x178   : > { %723 = vst [vmem:[#allocation3 + $0x8] sm:$0xf0] %v719_v17  ;;  %v1318_v32 = vpack.c.bf16 %v1296_v46, %v1294_v29 }
 0x17a   : > { %v441_v43 = vpop.permute.xlu1 %440  ;;  %1385 = vmatprep.subr.bf16.mxu0 %v1318_v32  ;;  %1684 = vmatprep.subr.bf16.mxu1 %v1318_v32  ;;  %v437_v49 = vpop.permute.xlu0 %436 }
 0x17b   : > { %v444_v7 = vsel %vm442_vm3, %v439_v33, %v441_v43  ;;  %v443_v41 = vsel %vm442_vm3, %v437_v49, %v439_v33  ;;  %v1293_v20 = vld [vmem:[#allocation3 + $0x80] sm:$0xff] }
 0x17c   : > { %448 = vst [vmem:[#allocation3 + $0x68] sm:$0xf] %v444_v7  ;;  %447 = vst [vmem:[#allocation3 + $0x50] sm:$0xf] %v443_v41 }
 0x17e   : > { %v481_v51 = vpop.permute.xlu1 %480  ;;  %v516_v53 = vpop.permute.xlu0 %515 }
 0x17f   : > { %v484_v48 = vsel %vm482_vm8, %v479_v63, %v481_v51  ;;  %v1295_v35 = vld [vmem:[#allocation3 + $0x8] sm:$0xff]  ;;  %v522_v1 = vsel %vm521_vm14, %v516_v53, %v518_v24 }
 0x180   : > { %488 = vst [vmem:[#allocation3 + $0x68] sm:$0xf0] %v484_v48  ;;  %v1317_v50 = vpack.c.bf16 %v1295_v35, %v1293_v20  ;;  %526 = vst [vmem:[#allocation3 + $0x30] sm:$0xf] %v522_v1 }
 0x182   : > { %v520_v40 = vpop.permute.xlu1 %519  ;;  %1386 = vmatpush1.bf16.msra.mxu0 %v1317_v50  ;;  %1691 = vmatpush1.bf16.msra.mxu1 %v1317_v50  ;;  %v321_v22 = vpop.permute.xlu0 %320 }
 0x183   : > { %v523_v23 = vsel %vm521_vm14, %v518_v24, %v520_v40 }
 0x184   : > { %527 = vst [vmem:[#allocation3 + $0x48] sm:$0xf] %v523_v23 }
 0x186   : > { %v560_v21 = vpop.permute.xlu1 %559  ;;  %v360_v34 = vpop.permute.xlu0 %359 }
 0x187   : > { %v563_v6 = vsel %vm561_vm9, %v558_v30, %v560_v21  ;;  %v1290_v61 = vld [vmem:[#allocation3 + $0x68] sm:$0xff] }
 0x188   : > { %567 = vst [vmem:[#allocation3 + $0x48] sm:$0xf0] %v563_v6 }
 0x18a   : > { %v477_v57 = vpop.permute.xlu1 %476  ;;  %v400_v54 = vpop.permute.xlu0 %399 }
 0x18b   : > { %v483_v45 = vsel %vm482_vm8, %v477_v57, %v479_v63 }
 0x18c   : > { %487 = vst [vmem:[#allocation3 + $0x50] sm:$0xf0] %v483_v45 }
 0x18e   : > { %v556_v38 = vpop.permute.xlu1 %555  ;;  %v319_v31 = vpop.permute.xlu0 %318 }
 0x18f   : > { %v562_v28 = vsel %vm561_vm9, %v556_v38, %v558_v30  ;;  %v1292_v9 = vld [vmem:[#allocation3 + $0x48] sm:$0xff]  ;;  %v325_v58 = vsel %vm324_vm10, %v319_v31, %v321_v22 }
 0x190   : > { %566 = vst [vmem:[#allocation3 + $0x30] sm:$0xf0] %v562_v28  ;;  %v1316_v12 = vpack.c.bf16 %v1292_v9, %v1290_v61  ;;  %329 = vst [vmem:[#allocation3 + $0xb0] sm:$0xf0] %v325_v58  ;;  %v1536_v38 = vld [vmem:[%s2603_s4 + $0x18] sm:$0xff]  ;;  %v1535_v28 = vld [vmem:[%s2603_s4 + $0x10] sm:$0xff] }
 0x192   : > { %v323_v18 = vpop.permute.xlu1 %322  ;;  %1387 = vmatprep.subr.bf16.mxu0 %v1316_v12  ;;  %1685 = vmatprep.subr.bf16.mxu1 %v1316_v12  ;;  %v398_v52 = vpop.permute.xlu0 %397 }
 0x193   : > { %v326_v13 = vsel %vm324_vm10, %v321_v22, %v323_v18  ;;  %v404_v62 = vsel %vm403_vm7, %v398_v52, %v400_v54  ;;  %v1289_v44 = vld [vmem:[#allocation3 + $0x50] sm:$0xff] }
 0x194   : > { %330 = vst [vmem:[#allocation3] sm:$0xf0] %v326_v13  ;;  %408 = vst [vmem:[#allocation3 + $0xd8] sm:$0xf0] %v404_v62 }
 0x196   : > { %v362_v42 = vpop.permute.xlu1 %361 }
 0x197   : > { %v365_v8 = vsel %vm363_vm1, %v360_v34, %v362_v42  ;;  %v1291_v36 = vld [vmem:[#allocation3 + $0x30] sm:$0xff] }
 0x198   : > { %369 = vst [vmem:[#allocation3 + $0x18] sm:$0xf] %v365_v8  ;;  %v1315_v14 = vpack.c.bf16 %v1291_v36, %v1289_v44  ;;  %v1285_v0 = vld [vmem:[#allocation3 + $0xb0] sm:$0xff] }
 0x19a   : > { %v402_v55 = vpop.permute.xlu1 %401  ;;  %1388 = vmatpush1.bf16.msra.mxu0 %v1315_v14  ;;  %1692 = vmatpush1.bf16.msra.mxu1 %v1315_v14 }
 0x19b   : > { %v405_v16 = vsel %vm403_vm7, %v400_v54, %v402_v55  ;;  %v1286_v59 = vld [vmem:[#allocation3] sm:$0xff] }
 0x19c   : > { %409 = vst [vmem:[#allocation3 + $0x18] sm:$0xf0] %v405_v16 }
 0x19e   : > { %v358_v11 = vpop.permute.xlu1 %357 }
 0x19f   : > { %v364_v4 = vsel %vm363_vm1, %v358_v11, %v360_v34  ;;  %v1339_v48 = vpop.permute.xlu0 %1338 }
 0x1a0   : > { %368 = vst [vmem:[#allocation3 + $0xd8] sm:$0xf] %v364_v4 }
 0x1a3   : > { %v1288_v25 = vld [vmem:[#allocation3 + $0x18] sm:$0xff]  ;;  %v2562_v9 = vpop.permute.xlu0 %1512 }
 0x1a4   : > { %v1314_v15 = vpack.c.bf16 %v1288_v25, %v1286_v59 }
 0x1a6   : > { %1389 = vmatprep.subr.bf16.mxu0 %v1314_v15  ;;  %1686 = vmatprep.subr.bf16.mxu1 %v1314_v15 }
 0x1a7   : > { %v1287_v26 = vld [vmem:[#allocation3 + $0xd8] sm:$0xff]  ;;  %v1540_v12 = vpop.permute.xlu0 %1539 }
 0x1a8   : > { %v1313_v2 = vpack.c.bf16 %v1287_v26, %v1285_v0 }
 0x1aa   : > { %1390 = vmatpush1.bf16.msra.mxu0 %v1313_v2  ;;  %1693 = vmatpush1.bf16.msra.mxu1 %v1313_v2 }
 0x1ab   : > { %v1334_v33 = vpop.permute.xlu1 %1333 }
 0x1ad   : > { %1674 = vmatmul.mubr.msk.bf16.vlgmr.msra.gmra.mxu0 %vm1361_vm5, %v1739_v5  ;;  %1675 = vmatmul.mubr.msk.bf16.vlgmr.msra.gmra.mxu1 %vm1361_vm5, %v1740_v27 }
 0x1af   : > { %v1344_v56 = vpop.permute.xlu1 %1343 }
 0x1b3   : > { %v1349_v51 = vpop.permute.xlu1 %1348 }
 0x1b7   : > { %v1508_v31 = vpop.permute.xlu1 %1507 }
 0x1bb   : > { %v1518_v61 = vpop.permute.xlu1 %1517 }
 0x1bf   : > { %v2564_v58 = vpop.permute.xlu1 %1522 }
 0x1c3   : > { %v2566_v18 = vpop.permute.xlu1 %1544 }
 0x26d   : > { %v1409_v60 = vpop.f32.mrf.mxu0  ;;  %v1419_v3 = vpop.f32.mrf.mxu1 }
 0x26e   : > { %v2516_v19 = vadd.f32 %v1409_v60, %v1334_v33  ;;  %v2518_v47 = vadd.f32 %v1419_v3, %v1344_v56 }
 0x26f   : > { %v1411_v10 = vpop.f32.mrf.mxu0  ;;  %v1421_v63 = vpop.f32.mrf.mxu1 }
 0x270   : > { %v2520_v37 = vadd.f32 %v1411_v10, %v1334_v33  ;;  %v2522_v24 = vadd.f32 %v1421_v63, %v1344_v56  ;;  %v1445_v30 = vmul.f32 %v2516_v19, %v2516_v19  ;;  %v1449_v32 = vmul.f32 %v2518_v47, %v2518_v47 }
 0x271   : > { %v1413_v39 = vpop.f32.mrf.mxu0  ;;  %v1423_v17 = vpop.f32.mrf.mxu1 }
 0x272   : > { %v1446_v29 = vmul.f32 %v2520_v37, %v2520_v37  ;;  %v1428_v46 = vadd.f32 %v2520_v37, %v2516_v19  ;;  %v1450_v43 = vmul.f32 %v2522_v24, %v2522_v24  ;;  %v1434_v35 = vadd.f32 %v2522_v24, %v2518_v47 }
 0x273   : > { %v1415_v7 = vpop.f32.mrf.mxu0  ;;  %v1425_v49 = vpop.f32.mrf.mxu1  ;;  %v2540_v50 = vadd.f32 %v1423_v17, %v1349_v51  ;;  %v2542_v40 = vadd.f32 %v1413_v39, %v1339_v48 }
 0x274   : > { %v1453_v41 = vadd.f32 %v1446_v29, %v1445_v30  ;;  %1429 = vadd.xlane.f32.xlu0 %v1428_v46  ;;  %v2534_v53 = vadd.f32 %v1415_v7, %v1339_v48  ;;  %v2536_v20 = vadd.f32 %v1425_v49, %v1349_v51  ;;  %v1459_v1 = vadd.f32 %v1450_v43, %v1449_v32 }
 0x275   : > { %v1447_v6 = vmul.f32 %v2542_v40, %v2542_v40  ;;  %v1451_v45 = vmul.f32 %v2540_v50, %v2540_v50 }
 0x276   : > { %1454 = vadd.xlane.f32.xlu1 %v1453_v41  ;;  %v1448_v23 = vmul.f32 %v2534_v53, %v2534_v53  ;;  %v1437_v22 = vadd.f32 %v2536_v20, %v2540_v50  ;;  %v1431_v21 = vadd.f32 %v2534_v53, %v2542_v40  ;;  %v1452_v34 = vmul.f32 %v2536_v20, %v2536_v20 }
 0x278   : > { %1435 = vadd.xlane.f32.xlu0 %v1434_v35  ;;  %v1456_v57 = vadd.f32 %v1448_v23, %v1447_v6  ;;  %v1462_v54 = vadd.f32 %v1452_v34, %v1451_v45 }
 0x27a   : > { %1460 = vadd.xlane.f32.xlu1 %v1459_v1 }
 0x27c   : > { %1438 = vadd.xlane.f32.xlu0 %v1437_v22 }
 0x27e   : > { %1432 = vadd.xlane.f32.xlu1 %v1431_v21 }
 0x280   : > { %1457 = vadd.xlane.f32.xlu0 %v1456_v57 }
 0x284   : > { %1463 = vadd.xlane.f32.xlu0 %v1462_v54 }
 0x28f   : > { %1554 = vperm.xlu1 %1737, %v1536_v38  }
 0x29a   : > { %1549 = vperm.xlu0 %1738, %v1535_v28  }
 0x2fd   : > { %v1430_v13 = vpop.xlane.xlu0 %1429 }
 0x2fe   : > { %v1441_v52 = vmul.f32 0.00390625, %v1430_v13 }
 0x2ff   : > { %v1455_v62 = vpop.xlane.xlu1 %1454 }
 0x300   : > { %v1465_v42 = vmul.f32 0.00390625, %v1455_v62  ;;  %v1469_v8 = vmul.f32 %v1441_v52, %v1441_v52  ;;  %v1477_v17 = vsub.f32 %v2516_v19, %v1441_v52  ;;  %v1478_v30 = vsub.f32 %v2520_v37, %v1441_v52 }
 0x301   : > { %v1436_v44 = vpop.xlane.xlu0 %1435 }
 0x302   : > { %v1473_v36 = vsub.f32 %v1465_v42, %v1469_v8  ;;  %v1443_v14 = vmul.f32 0.00390625, %v1436_v44 }
 0x303   : > { %v1461_v55 = vpop.xlane.xlu1 %1460 }
 0x304   : > { %v1467_v16 = vmul.f32 0.00390625, %v1461_v55  ;;  %v1485_v11 = vadd.f32 1e-05, %v1473_v36  ;;  %v1471_v4 = vmul.f32 %v1443_v14, %v1443_v14  ;;  %v1481_v41 = vsub.f32 %v2518_v47, %v1443_v14 }
 0x305   : > { %v1439_v59 = vpop.xlane.xlu0 %1438  ;;  %v1482_v51 = vsub.f32 %v2522_v24, %v1443_v14 }
 0x306   : > { %1741 = vrsqrt.f32 %v1485_v11  ;;  %v1475_v25 = vsub.f32 %v1467_v16, %v1471_v4  ;;  %v1444_v27 = vmul.f32 0.00390625, %v1439_v59 }
 0x307   : > { %v1433_v15 = vpop.xlane.xlu1 %1432 }
 0x308   : > { %v1442_v0 = vmul.f32 0.00390625, %v1433_v15  ;;  %v1487_v26 = vadd.f32 1e-05, %v1475_v25  ;;  %v1472_v10 = vmul.f32 %v1444_v27, %v1444_v27  ;;  %v1483_v13 = vsub.f32 %v2540_v50, %v1444_v27 }
 0x309   : > { %v1458_v5 = vpop.xlane.xlu0 %1457 }
 0x30a   : > { %v1470_v2 = vmul.f32 %v1442_v0, %v1442_v0  ;;  %1743 = vrsqrt.f32 %v1487_v26  ;;  %v1466_v33 = vmul.f32 0.00390625, %v1458_v5  ;;  %v1479_v47 = vsub.f32 %v2542_v40, %v1442_v0 }
 0x30b   : > { %v1480_v24 = vsub.f32 %v2534_v53, %v1442_v0  ;;  %v1555_v55 = vpop.permute.xlu1 %1554 }
 0x30c   : > { %v1474_v60 = vsub.f32 %v1466_v33, %v1470_v2 }
 0x30d   : > { %v1464_v3 = vpop.xlane.xlu0 %1463 }
 0x30e   : > { %v1486_v56 = vadd.f32 1e-05, %v1474_v60  ;;  %v1468_v63 = vmul.f32 0.00390625, %v1464_v3 }
 0x310   : > { %1745 = vrsqrt.f32 %v1486_v56  ;;  %v1476_v39 = vsub.f32 %v1468_v63, %v1472_v10 }
 0x312   : > { %v1488_v29 = vadd.f32 1e-05, %v1476_v39 }
 0x313   : > { %v1742_v46 = vpop.eup %1741 }
 0x314   : > { %v1493_v32 = vmul.f32 %v1742_v46, %v1477_v17  ;;  %v1494_v43 = vmul.f32 %v1742_v46, %v1478_v30  ;;  %1747 = vrsqrt.f32 %v1488_v29 }
 0x315   : > { %v1550_v34 = vpop.permute.xlu0 %1549 }
 0x316   : > { %v1525_v7 = vmul.f32 %v1508_v31, %v1493_v32  ;;  %v1526_v49 = vmul.f32 %v1508_v31, %v1494_v43 }
 0x317   : > { %v1744_v48 = vpop.eup %1743 }
 0x318   : > { %v1557_v35 = vadd.f32 %v1540_v12, %v1525_v7  ;;  %v1558_v1 = vadd.f32 %v1540_v12, %v1526_v49  ;;  %v1497_v23 = vmul.f32 %v1744_v48, %v1481_v41  ;;  %v1498_v22 = vmul.f32 %v1744_v48, %v1482_v51 }
 0x31a   : > { %v1565_v19 = vmax.f32 %v1557_v35, 0.0  ;;  %v1566_v37 = vmax.f32 %v1558_v1, 0.0  ;;  %v1529_v21 = vmul.f32 %v1518_v61, %v1497_v23  ;;  %v1530_v6 = vmul.f32 %v1518_v61, %v1498_v22 }
 0x31b   : > { %v1484_v61 = vsub.f32 %v2536_v20, %v1444_v27 }
 0x31c   : > { %1573 = vst [vmem:[%s2576_s30] sm:$0xff] %v1565_v19  ;;  %1574 = vst [vmem:[%s2576_s30 + $0x8] sm:$0xff] %v1566_v37  ;;  %v1561_v57 = vadd.f32 %v1550_v34, %v1529_v21  ;;  %v1562_v45 = vadd.f32 %v1550_v34, %v1530_v6 }
 0x31d   : > { %v1746_v54 = vpop.eup %1745 }
 0x31e   : > { %v1495_v38 = vmul.f32 %v1746_v54, %v1479_v47  ;;  %v1496_v28 = vmul.f32 %v1746_v54, %v1480_v24  ;;  %v1569_v31 = vmax.f32 %v1561_v57, 0.0  ;;  %v1570_v12 = vmax.f32 %v1562_v45, 0.0 }
 0x320   : > { %v1527_v52 = vmul.f32 %v2562_v9, %v1495_v38  ;;  %v1528_v62 = vmul.f32 %v2562_v9, %v1496_v28  ;;  %1577 = vst [vmem:[%s2576_s30 + $0x20] sm:$0xff] %v1569_v31  ;;  %1578 = vst [vmem:[%s2576_s30 + $0x28] sm:$0xff] %v1570_v12 }
 0x321   : > { %v1748_v53 = vpop.eup %1747 }
 0x322   : > { %v1559_v40 = vadd.f32 %v2566_v18, %v1527_v52  ;;  %v1560_v42 = vadd.f32 %v2566_v18, %v1528_v62  ;;  %v1499_v8 = vmul.f32 %v1748_v53, %v1483_v13  ;;  %v1500_v44 = vmul.f32 %v1748_v53, %v1484_v61 }
 0x324   : > { %v1567_v50 = vmax.f32 %v1559_v40, 0.0  ;;  %v1568_v36 = vmax.f32 %v1560_v42, 0.0  ;;  %v1531_v20 = vmul.f32 %v2564_v58, %v1499_v8  ;;  %v1532_v14 = vmul.f32 %v2564_v58, %v1500_v44 }
 0x326   : > { %1575 = vst [vmem:[%s2576_s30 + $0x10] sm:$0xff] %v1567_v50  ;;  %1576 = vst [vmem:[%s2576_s30 + $0x18] sm:$0xff] %v1568_v36  ;;  %v1563_v9 = vadd.f32 %v1555_v55, %v1531_v20  ;;  %v1564_v16 = vadd.f32 %v1555_v55, %v1532_v14 }
 0x328   : > { %v1571_v11 = vmax.f32 %v1563_v9, 0.0  ;;  %v1572_v4 = vmax.f32 %v1564_v16, 0.0 }
 0x32a   : > { %1579 = vst [vmem:[%s2576_s30 + $0x30] sm:$0xff] %v1571_v11  ;;  %1580 = vst [vmem:[%s2576_s30 + $0x38] sm:$0xff] %v1572_v4 }
 0x32b PF: > { %s16_s21 = sadd.s32 1, %s1755_s21  }
 0x32c   : > { %p13_p4 = scmp.ge.s32.totalorder %s16_s21, 8  }
 0x32e   :  { %15 = sbr.rel (!%p13_p4) target bundleno = 1 (0x1), region = 100 }

// kernel: conv_lstm_forward.6
= control target key start
LH: loop header
LB: loop body
LE: loop exit
PB: predicated region body
PF: predicated region fallthrough
CT: control target
= control target key end

     0   :  { %s2111_s21 = smov 0   ;;  %s2687_s0 = inlined_call_operand.vmem [shape: f32[6,8,256], index: 0, kind: input, shape index: {}]   ;;  %s2688_s1 = inlined_call_operand.vmem [shape: bf16[32,216], index: 1, kind: input, shape index: {}]   ;;  %s2689_s2 = inlined_call_operand.vmem [shape: f32[32,1], index: 2, kind: input, shape index: {}]   ;;  %s2690_s3 = inlined_call_operand.vmem [shape: f32[32,1], index: 3, kind: input, shape index: {}]   ;;  %s2691_s4 = inlined_call_operand.vmem [shape: f32[32,1], index: 4, kind: input, shape index: {}]   ;;  %s2692_s5 = inlined_call_operand.vmem [shape: f32[27,256], index: 5, kind: input, shape index: {}]   ;;  %s2693_s6 = inlined_call_operand.vmem [shape: f32[6,32,256], index: 6, kind: output, shape index: {}]  }
   0x1 LB: > { %s1745_s22 = sadd.s32 4294967295, %s2039_s21   ;;  %p1749_p0 = scmp.ge.s32.totalorder %s2039_s21, 1  ;;  %s2039_s21 = sphi %s2111_s21, %s16_s21  }
   0x2   : > { %p212_p1 = scmp.lt.s32.totalorder %s2039_s21, 7 }
   0x4   : > { %p213_p2 = pnand %p1749_p0, %p212_p1 }
   0x5   : > { %p242_p3 = scmp.lt.s32.totalorder (!%p213_p2), %s1745_s22, 5  ;;  %s2042_s29 = smov (!%p213_p2), 73  }
   0x6   : > { %216 = sbr.rel (%p213_p2) target bundleno = 760 (0x2f8), region = 44  ;;  %s2043_s30 = smov (!%p213_p2), 74  }
   0x7   : > { %s2044_s11 = smov (!%p213_p2), 80   ;;  %s2045_s14 = smov (!%p213_p2), 72  }
   0x8   : > { %s2046_s19 = smov (!%p213_p2), 65   ;;  %s2047_s24 = smov (!%p213_p2), 66  }
   0x9   : > { %s2048_s27 = smov (!%p213_p2), 18   ;;  %s2050_s9 = smov (!%p213_p2), 16  }
   0xa   : > { %s2051_s12 = smov (!%p213_p2), 17   ;;  %s2052_s15 = smov (!%p213_p2), 9  }
   0xb   : > { %v278_v0 = vlaneseq  ;;  %vm253_vm0 = vcmask 596992   ;;  %s2695_s22 = smov (!%p242_p3, %s1745_s22), 5  ;;  %v2041_v2 = vmov 0.0   ;;  %vm255_vm1 = vcmask 1048136   ;;  %s2053_s18 = smov 10  }
   0xc   : > { %254 = vst.msk [vmem:[#allocation2] sm:$0xff] %vm253_vm0, %v2041_v2  ;;  %v1767_v3 = vld [vmem:[%s2692_s5 + $0x16] ss:$8 sm:$0x3]  ;;  %s1789_s25 = sshll.u32 %s2695_s22, 4  ;;  %vm257_vm2 = vcmask 146432  }
   0xd   : > { %v279_v1 = vshrl.u32 %v278_v0, 7  ;;  %256 = vst.msk [vmem:[#allocation2 + $0x10] sm:$0xff] %vm255_vm1, %v2041_v2  ;;  %s246_s28 = scalar_lea.vmem %s2687_s0, %s1789_s25  ;;  %v1768_v10 = vld [vmem:[%s2692_s5 + $0x17] ss:$8 sm:$0x3]  ;;  %s2054_s23 = smov 2  }
   0xe   : > { %v259_v6 = vld [vmem:[%s246_s28] sm:$0xff]  ;;  %v260_v9 = vld [vmem:[%s246_s28 + $0x8] sm:$0xff]  ;;  %v1765_v13 = vld [vmem:[%s2692_s5 + $0x14] ss:$8 sm:$0x3]  ;;  %258 = vst.msk [vmem:[#allocation2 + $0x18] sm:$0xff] %vm257_vm2, %v2041_v2 }
   0xf   : > { %v2127_v4 = vsub.s32 0, %v279_v1  ;;  %v2129_v5 = vsub.s32 1, %v279_v1  ;;  %263 = vrot.lane.b32.xlu0 %v259_v6, %s2042_s29  ;;  %v1766_v16 = vld [vmem:[%s2692_s5 + $0x15] ss:$8 sm:$0x3]  ;;  %s2055_s26 = smov 8  }
  0x10   : > { %v1763_v19 = vld [vmem:[%s2692_s5 + $0x12] ss:$8 sm:$0x3]  ;;  %v1764_v22 = vld [vmem:[%s2692_s5 + $0x13] ss:$8 sm:$0x3] }
  0x11   : > { %v844_v7 = vrot.slane %v1767_v3, %v2127_v4  ;;  %v848_v8 = vrot.slane %v1767_v3, %v2129_v5  ;;  %v886_v11 = vrot.slane %v1768_v10, %v2127_v4  ;;  %v890_v12 = vrot.slane %v1768_v10, %v2129_v5  ;;  %v1761_v25 = vld [vmem:[%s2692_s5 + $0x10] ss:$8 sm:$0x3]  ;;  %v1762_v28 = vld [vmem:[%s2692_s5 + $0x11] ss:$8 sm:$0x3] }
  0x12   : > { %v761_v14 = vrot.slane %v1765_v13, %v2127_v4  ;;  %v765_v15 = vrot.slane %v1765_v13, %v2129_v5  ;;  %v803_v17 = vrot.slane %v1766_v16, %v2127_v4  ;;  %v807_v18 = vrot.slane %v1766_v16, %v2129_v5  ;;  %v1759_v31 = vld [vmem:[%s2692_s5 + $0x6] ss:$8 sm:$0x3]  ;;  %v1760_v34 = vld [vmem:[%s2692_s5 + $0x7] ss:$8 sm:$0x3] }
  0x13   : > { %849 = vrot.lane.b32.xlu1 %v844_v7, %s2043_s30  ;;  %265 = vrot.lane.b32.xlu0 %v260_v9, %s2042_s29  ;;  %v677_v20 = vrot.slane %v1763_v19, %v2127_v4  ;;  %v681_v21 = vrot.slane %v1763_v19, %v2129_v5  ;;  %v719_v23 = vrot.slane %v1764_v22, %v2127_v4  ;;  %v1757_v37 = vld [vmem:[%s2692_s5 + $0x4] ss:$8 sm:$0x3]  ;;  %v1758_v40 = vld [vmem:[%s2692_s5 + $0x5] ss:$8 sm:$0x3] }
  0x14   : > { %v723_v24 = vrot.slane %v1764_v22, %v2129_v5  ;;  %v595_v26 = vrot.slane %v1761_v25, %v2127_v4  ;;  %v599_v27 = vrot.slane %v1761_v25, %v2129_v5  ;;  %v636_v29 = vrot.slane %v1762_v28, %v2127_v4  ;;  %v1755_v43 = vld [vmem:[%s2692_s5 + $0x2] ss:$8 sm:$0x3]  ;;  %v1756_v46 = vld [vmem:[%s2692_s5 + $0x3] ss:$8 sm:$0x3] }
  0x15   : > { %v640_v30 = vrot.slane %v1762_v28, %v2129_v5  ;;  %v511_v32 = vrot.slane %v1759_v31, %v2127_v4  ;;  %v515_v33 = vrot.slane %v1759_v31, %v2129_v5  ;;  %v553_v35 = vrot.slane %v1760_v34, %v2127_v4  ;;  %v1754_v49 = vld [vmem:[%s2692_s5 + $0x1] ss:$8 sm:$0x3]  ;;  %v1779_v52 = vld [vmem:[%s2692_s5 + $0x32] ss:$8 sm:$0x3] }
  0x16   : > { %v557_v36 = vrot.slane %v1760_v34, %v2129_v5  ;;  %v427_v38 = vrot.slane %v1757_v37, %v2127_v4  ;;  %v431_v39 = vrot.slane %v1757_v37, %v2129_v5  ;;  %v469_v41 = vrot.slane %v1758_v40, %v2127_v4  ;;  %s2056_s7 = smov 1   ;;  %v1777_v55 = vld [vmem:[%s2692_s5 + $0x30] ss:$8 sm:$0x3]  ;;  %s2060_s8 = smov 48  }
  0x17   : > { %851 = vrot.lane.b32.xlu1 %v848_v8, %s2043_s30  ;;  %891 = vrot.lane.b32.xlu0 %v886_v11, %s2044_s11  ;;  %s2049_s30 = smov 64   ;;  %v473_v42 = vrot.slane %v1758_v40, %v2129_v5  ;;  %v343_v44 = vrot.slane %v1755_v43, %v2127_v4  ;;  %v347_v45 = vrot.slane %v1755_v43, %v2129_v5  ;;  %v1778_v58 = vld [vmem:[%s2692_s5 + $0x31] ss:$8 sm:$0x3]  ;;  %s2061_s10 = smov 56   ;;  %vm853_vm3 = vcmask 605184  }
  0x18   : > { %v385_v47 = vrot.slane %v1756_v46, %v2127_v4  ;;  %v389_v48 = vrot.slane %v1756_v46, %v2129_v5  ;;  %v301_v50 = vrot.slane %v1754_v49, %v2127_v4  ;;  %v305_v51 = vrot.slane %v1754_v49, %v2129_v5  ;;  %v1775_v61 = vld [vmem:[%s2692_s5 + $0x26] ss:$8 sm:$0x3]  ;;  %v1776_v0 = vld [vmem:[%s2692_s5 + $0x27] ss:$8 sm:$0x3] }
  0x19   : > { %v1311_v53 = vrot.slane %v1779_v52, %v2127_v4  ;;  %v1315_v54 = vrot.slane %v1779_v52, %v2129_v5  ;;  %v1231_v56 = vrot.slane %v1777_v55, %v2127_v4  ;;  %v1235_v57 = vrot.slane %v1777_v55, %v2129_v5  ;;  %v1773_v3 = vld [vmem:[%s2692_s5 + $0x24] ss:$8 sm:$0x3]  ;;  %v1774_v8 = vld [vmem:[%s2692_s5 + $0x25] ss:$8 sm:$0x3] }
  0x1a   : > { %v1271_v59 = vrot.slane %v1778_v58, %v2127_v4  ;;  %v1275_v60 = vrot.slane %v1778_v58, %v2129_v5  ;;  %v1151_v62 = vrot.slane %v1775_v61, %v2127_v4  ;;  %v1155_v63 = vrot.slane %v1775_v61, %v2129_v5  ;;  %v1772_v11 = vld [vmem:[%s2692_s5 + $0x23] ss:$8 sm:$0x3]  ;;  %s2063_s13 = smov 63   ;;  %s2065_s16 = smov 110  }
  0x1b   : > { %893 = vrot.lane.b32.xlu1 %v890_v12, %s2044_s11  ;;  %766 = vrot.lane.b32.xlu0 %v761_v14, %s2045_s14  ;;  %v1191_v1 = vrot.slane %v1776_v0, %v2127_v4  ;;  %v1195_v2 = vrot.slane %v1776_v0, %v2129_v5  ;;  %v1071_v6 = vrot.slane %v1773_v3, %v2127_v4  ;;  %v1769_v14 = vld [vmem:[%s2692_s5 + $0x20] ss:$8 sm:$0x3]  ;;  %vm770_vm4 = vcmask 588800   ;;  %s2062_s11 = smov 55   ;;  %s2068_s17 = smov 119  }
  0x1c   : > { %v1075_v7 = vrot.slane %v1773_v3, %v2129_v5  ;;  %v1111_v9 = vrot.slane %v1774_v8, %v2127_v4  ;;  %v1115_v10 = vrot.slane %v1774_v8, %v2129_v5  ;;  %v1031_v12 = vrot.slane %v1772_v11, %v2127_v4  ;;  %s2072_s20 = smov 127   ;;  %s2075_s28 = smov 46  }
  0x1d   : > { %v1035_v13 = vrot.slane %v1772_v11, %v2129_v5  ;;  %v932_v16 = vrot.slane %v1769_v14, %v2129_v5  ;;  %vm686_vm5 = vcmask 531456   ;;  %vm895_vm6 = vcmask 654336  }
  0x1e   : > { %vm728_vm7 = vcmask 539648   ;;  %vm645_vm8 = vcmask 523264   ;;  %vm562_vm9 = vcmask 138240   ;;  %vm520_vm10 = vcmask 130048  }
  0x1f   : > { %768 = vrot.lane.b32.xlu1 %v765_v15, %s2045_s14  ;;  %808 = vrot.lane.b32.xlu0 %v803_v17, %s2042_s29  ;;  %v928_v15 = vrot.slane %v1769_v14, %v2127_v4  ;;  %v1770_v17 = vld [vmem:[%s2692_s5 + $0x21] ss:$8 sm:$0x3]  ;;  %s2064_s14 = smov 62   ;;  %vm436_vm11 = vcmask 72704   ;;  %vm478_vm12 = vcmask 80896  }
  0x20   : > { %v974_v19 = vrot.slane %v1770_v17, %v2129_v5  ;;  %vm352_vm13 = vcmask 15360   ;;  %vm394_vm14 = vcmask 64512   ;;  %vm310_vm15 = vcmask 7168  }
  0x23   : > { %810 = vrot.lane.b32.xlu1 %v807_v18, %s2042_s29  ;;  %682 = vrot.lane.b32.xlu0 %v677_v20, %s2046_s19  ;;  %s2057_s29 = smov 81   ;;  %v970_v18 = vrot.slane %v1770_v17, %v2127_v4 }
  0x27   : > { %684 = vrot.lane.b32.xlu1 %v681_v21, %s2046_s19  ;;  %724 = vrot.lane.b32.xlu0 %v719_v23, %s2047_s24  ;;  %s2070_s19 = smov 126  }
  0x2b   : > { %726 = vrot.lane.b32.xlu1 %v723_v24, %s2047_s24  ;;  %600 = vrot.lane.b32.xlu0 %v595_v26, %s2048_s27 }
  0x2f   : > { %602 = vrot.lane.b32.xlu1 %v599_v27, %s2048_s27  ;;  %641 = vrot.lane.b32.xlu0 %v636_v29, %s2049_s30 }
  0x33   : > { %643 = vrot.lane.b32.xlu1 %v640_v30, %s2049_s30  ;;  %516 = vrot.lane.b32.xlu0 %v511_v32, %s2050_s9 }
  0x37   : > { %518 = vrot.lane.b32.xlu1 %v515_v33, %s2050_s9  ;;  %558 = vrot.lane.b32.xlu0 %v553_v35, %s2051_s12 }
  0x3b   : > { %560 = vrot.lane.b32.xlu1 %v557_v36, %s2051_s12  ;;  %432 = vrot.lane.b32.xlu0 %v427_v38, %s2052_s15 }
  0x3f   : > { %434 = vrot.lane.b32.xlu1 %v431_v39, %s2052_s15  ;;  %474 = vrot.lane.b32.xlu0 %v469_v41, %s2053_s18 }
  0x43   : > { %476 = vrot.lane.b32.xlu1 %v473_v42, %s2053_s18  ;;  %348 = vrot.lane.b32.xlu0 %v343_v44, %s2054_s23 }
  0x47   : > { %350 = vrot.lane.b32.xlu1 %v347_v45, %s2054_s23  ;;  %390 = vrot.lane.b32.xlu0 %v385_v47, %s2055_s26 }
  0x4b   : > { %392 = vrot.lane.b32.xlu1 %v389_v48, %s2055_s26  ;;  %306 = vrot.lane.b32.xlu0 %v301_v50, %s2056_s7 }
  0x4f   : > { %308 = vrot.lane.b32.xlu1 %v305_v51, %s2056_s7  ;;  %1316 = vrot.lane.b32.xlu0 %v1311_v53, %s2048_s27 }
  0x53   : > { %1318 = vrot.lane.b32.xlu1 %v1315_v54, %s2048_s27  ;;  %1236 = vrot.lane.b32.xlu0 %v1231_v56, %s2050_s9  ;;  %s2066_s27 = smov 111  }
  0x57   : > { %1238 = vrot.lane.b32.xlu1 %v1235_v57, %s2050_s9  ;;  %1276 = vrot.lane.b32.xlu0 %v1271_v59, %s2051_s12  ;;  %s2069_s9 = smov 118  }
  0x5b   : > { %1278 = vrot.lane.b32.xlu1 %v1275_v60, %s2051_s12  ;;  %1156 = vrot.lane.b32.xlu0 %v1151_v62, %s2052_s15  ;;  %s2071_s12 = smov 120  }
  0x5f   : > { %1158 = vrot.lane.b32.xlu1 %v1155_v63, %s2052_s15  ;;  %1196 = vrot.lane.b32.xlu0 %v1191_v1, %s2053_s18 }
  0x63   : > { %1198 = vrot.lane.b32.xlu1 %v1195_v2, %s2053_s18  ;;  %1076 = vrot.lane.b32.xlu0 %v1071_v6, %s2054_s23 }
  0x67   : > { %1078 = vrot.lane.b32.xlu1 %v1075_v7, %s2054_s23  ;;  %1116 = vrot.lane.b32.xlu0 %v1111_v9, %s2055_s26  ;;  %s2073_s23 = smov 47  }
  0x6b   : > { %1118 = vrot.lane.b32.xlu1 %v1115_v10, %s2055_s26  ;;  %1036 = vrot.lane.b32.xlu0 %v1031_v12, %s2056_s7  ;;  %s2058_s26 = smov 82  }
  0x6f   : > { %1038 = vrot.lane.b32.xlu1 %v1035_v13, %s2056_s7  ;;  %933 = vrot.lane.b32.xlu0 %v928_v15, %s2057_s29  ;;  %s2059_s7 = smov 54  }
  0x73   : > { %935 = vrot.lane.b32.xlu1 %v932_v16, %s2057_s29  ;;  %975 = vrot.lane.b32.xlu0 %v970_v18, %s2058_s26 }
  0x77   : > { %977 = vrot.lane.b32.xlu1 %v974_v19, %s2058_s26 }
  0x81   : > { %v264_v20 = vpop.permute.xlu0 %263 }
  0x82   : > { %271 = vst.msk [vmem:[#allocation2] sm:$0xff] %vm255_vm1, %v264_v20  ;;  %vm979_vm1 = vcmask 670720  }
  0x85   : > { %v850_v21 = vpop.permute.xlu1 %849  ;;  %v266_v22 = vpop.permute.xlu0 %265 }
  0x86   : > { %v2293_v23 = vsel %vm253_vm0, %v264_v20, %v266_v22  ;;  %273 = vst.msk [vmem:[#allocation2 + $0x10] sm:$0xff] %vm253_vm0, %v266_v22 }
  0x87   : > { %272 = vst [vmem:[#allocation2 + $0x8] sm:$0xff] %v2293_v23 }
  0x89   : > { %v852_v24 = vpop.permute.xlu1 %851  ;;  %v2297_v25 = vld [vmem:[#allocation2] sm:$0xff]  ;;  %v892_v26 = vpop.permute.xlu0 %891 }
  0x8a   : > { %v858_v27 = vmul.f32 %v850_v21, %v2297_v25  ;;  %v900_v28 = vmul.f32 %v892_v26, %v2297_v25  ;;  %v854_v37 = vsel %vm853_vm3, %v850_v21, %v852_v24  ;;  %vm870_vm3 = vcmask 441344  }
  0x8b   : > { %v859_v43 = vmul.f32 %v854_v37, %v2293_v23 }
  0x8c   : > { %864 = vrot.lane.b32.xlu0 %v858_v27, %s2059_s7  ;;  %906 = vrot.lane.b32.xlu1 %v900_v28, %s2060_s8 }
  0x8d   : > { %v894_v29 = vpop.permute.xlu1 %893  ;;  %v767_v30 = vpop.permute.xlu0 %766  ;;  %v2306_v36 = vld [vmem:[#allocation2 + $0x10] sm:$0xff] }
  0x8e   : > { %v775_v31 = vmul.f32 %v2297_v25, %v767_v30  ;;  %v860_v39 = vmul.f32 %v852_v24, %v2306_v36  ;;  %v896_v57 = vsel %vm895_vm6, %v892_v26, %v894_v29  ;;  %v902_v58 = vmul.f32 %v894_v29, %v2306_v36 }
  0x8f   : > { %v901_v2 = vmul.f32 %v896_v57, %v2293_v23  ;;  %vm828_vm6 = vcmask 449536  }
  0x90   : > { %781 = vrot.lane.b32.xlu0 %v775_v31, %s2061_s10  ;;  %v1862_v49 = vpack.i.bf16 %v860_v39, %v859_v43 }
  0x91   : > { %v769_v32 = vpop.permute.xlu1 %768  ;;  %v809_v33 = vpop.permute.xlu0 %808  ;;  %v1867_v10 = vpack.i.bf16 %v902_v58, %v901_v2 }
  0x92   : > { %v816_v34 = vmul.f32 %v2297_v25, %v809_v33  ;;  %v771_v42 = vsel %vm770_vm4, %v767_v30, %v769_v32  ;;  %v777_v46 = vmul.f32 %v2306_v36, %v769_v32  ;;  %vm912_vm4 = vcmask 392192  }
  0x93   : > { %v776_v45 = vmul.f32 %v771_v42, %v2293_v23 }
  0x94   : > { %822 = vrot.lane.b32.xlu1 %v816_v34, %s2062_s11 }
  0x95   : > { %v811_v35 = vpop.permute.xlu1 %810  ;;  %v683_v38 = vpop.permute.xlu0 %682  ;;  %v1872_v55 = vpack.i.bf16 %v777_v46, %v776_v45 }
  0x96   : > { %v691_v40 = vmul.f32 %v2297_v25, %v683_v38  ;;  %v812_v1 = vsel %vm253_vm0, %v809_v33, %v811_v35  ;;  %v818_v7 = vmul.f32 %v2306_v36, %v811_v35  ;;  %vm937_vm0 = vcmask 662528  }
  0x97   : > { %v817_v6 = vmul.f32 %v812_v1, %v2293_v23 }
  0x98   : > { %697 = vrot.lane.b32.xlu0 %v691_v40, %s2063_s13 }
  0x99   : > { %v685_v41 = vpop.permute.xlu1 %684  ;;  %v725_v44 = vpop.permute.xlu0 %724  ;;  %v1877_v16 = vpack.i.bf16 %v818_v7, %v817_v6 }
  0x9a   : > { %v733_v47 = vmul.f32 %v2297_v25, %v725_v44  ;;  %v687_v50 = vsel %vm686_vm5, %v683_v38, %v685_v41  ;;  %v693_v53 = vmul.f32 %v2306_v36, %v685_v41  ;;  %vm787_vm5 = vcmask 457728  }
  0x9b   : > { %v692_v52 = vmul.f32 %v687_v50, %v2293_v23 }
  0x9c   : > { %1863 = vrot.lane.b32.xlu0 %v1862_v49, %s2059_s7  ;;  %739 = vrot.lane.b32.xlu1 %v733_v47, %s2064_s14 }
  0x9d   : > { %v727_v48 = vpop.permute.xlu1 %726  ;;  %v2318_v51 = vpop.permute.xlu0 %600  ;;  %v1882_v0 = vpack.i.bf16 %v693_v53, %v692_v52 }
  0x9e   : > { %v729_v11 = vsel %vm728_vm7, %v725_v44, %v727_v48  ;;  %v735_v14 = vmul.f32 %v2306_v36, %v727_v48  ;;  %v608_v41 = vmul.f32 %v2297_v25, %v2318_v51  ;;  %vm703_vm7 = vcmask 515072  }
  0x9f   : > { %v734_v13 = vmul.f32 %v729_v11, %v2293_v23 }
  0xa0   : > { %1873 = vrot.lane.b32.xlu0 %v1872_v55, %s2061_s10 }
  0xa1   : > { %v603_v54 = vpop.permute.xlu1 %602  ;;  %v642_v59 = vpop.permute.xlu0 %641  ;;  %v1887_v22 = vpack.i.bf16 %v735_v14, %v734_v13 }
  0xa2   : > { %v604_v56 = vsel %vm257_vm2, %v2318_v51, %v603_v54  ;;  %v610_v61 = vmul.f32 %v2306_v36, %v603_v54  ;;  %v650_v62 = vmul.f32 %v2297_v25, %v642_v59 }
  0xa3   : > { %v609_v60 = vmul.f32 %v604_v56, %v2293_v23 }
  0xa4   : > { %1883 = vrot.lane.b32.xlu0 %v1882_v0, %s2063_s13  ;;  %656 = vrot.lane.b32.xlu1 %v650_v62, %s2049_s30 }
  0xa5   : > { %v644_v63 = vpop.permute.xlu1 %643  ;;  %v517_v3 = vpop.permute.xlu0 %516  ;;  %v1892_v9 = vpack.i.bf16 %v610_v61, %v609_v60 }
  0xa6   : > { %v646_v17 = vsel %vm645_vm8, %v642_v59, %v644_v63  ;;  %v652_v20 = vmul.f32 %v2306_v36, %v644_v63  ;;  %v525_v54 = vmul.f32 %v2297_v25, %v517_v3 }
  0xa7   : > { %v651_v19 = vmul.f32 %v646_v17, %v2293_v23 }
  0xa8   : > { %1893 = vrot.lane.b32.xlu0 %v1892_v9, %s2065_s16  ;;  %1868 = vrot.lane.b32.xlu1 %v1867_v10, %s2060_s8 }
  0xa9   : > { %v519_v8 = vpop.permute.xlu1 %518  ;;  %v559_v12 = vpop.permute.xlu0 %558  ;;  %v1897_v30 = vpack.i.bf16 %v652_v20, %v651_v19 }
  0xaa   : > { %v521_v39 = vsel %vm520_vm10, %v517_v3, %v519_v8  ;;  %v527_v45 = vmul.f32 %v2306_v36, %v519_v8  ;;  %v567_v56 = vmul.f32 %v2297_v25, %v559_v12 }
  0xab   : > { %v526_v44 = vmul.f32 %v521_v39, %v2293_v23 }
  0xac   : > { %1878 = vrot.lane.b32.xlu1 %v1877_v16, %s2062_s11 }
  0xad   : > { %v561_v15 = vpop.permute.xlu1 %560  ;;  %v2341_v18 = vpop.permute.xlu0 %432  ;;  %v1907_v50 = vpack.i.bf16 %v527_v45, %v526_v44  ;;  %v1304_v44 = vld [vmem:[#allocation2 + $0x18] sm:$0xff] }
  0xae   : > { %v563_v24 = vsel %vm562_vm9, %v559_v12, %v561_v15  ;;  %v569_v28 = vmul.f32 %v2306_v36, %v561_v15  ;;  %v441_v11 = vmul.f32 %v2297_v25, %v2341_v18 }
  0xaf   : > { %v568_v27 = vmul.f32 %v563_v24, %v2293_v23 }
  0xb0   : > { %1888 = vrot.lane.b32.xlu1 %v1887_v22, %s2064_s14 }
  0xb1   : > { %v435_v21 = vpop.permute.xlu1 %434  ;;  %v2347_v26 = vpop.permute.xlu0 %474  ;;  %v1912_v32 = vpack.i.bf16 %v569_v28, %v568_v27 }
  0xb2   : > { %v437_v52 = vsel %vm436_vm11, %v2341_v18, %v435_v21  ;;  %v443_v60 = vmul.f32 %v2306_v36, %v435_v21  ;;  %v483_v14 = vmul.f32 %v2297_v25, %v2347_v26 }
  0xb3   : > { %v442_v59 = vmul.f32 %v437_v52, %v2293_v23 }
  0xb4   : > { %1898 = vrot.lane.b32.xlu1 %v1897_v30, %s2049_s30  ;;  %s2067_s30 = smov 112  }
  0xb5   : > { %v477_v29 = vpop.permute.xlu1 %476  ;;  %v2352_v31 = vpop.permute.xlu0 %348  ;;  %v1927_v7 = vpack.i.bf16 %v443_v60, %v442_v59 }
  0xb6   : > { %v479_v57 = vsel %vm478_vm12, %v2347_v26, %v477_v29  ;;  %v485_v1 = vmul.f32 %v2306_v36, %v477_v29 }
  0xb7   : > { %v484_v0 = vmul.f32 %v479_v57, %v2293_v23 }
  0xb8   : > { %1913 = vrot.lane.b32.xlu1 %v1912_v32, %s2066_s27 }
  0xb9   : > { %v351_v33 = vpop.permute.xlu1 %350  ;;  %v2355_v34 = vpop.permute.xlu0 %390  ;;  %v1932_v12 = vpack.i.bf16 %v485_v1, %v484_v0 }
  0xba   : > { %v353_v9 = vsel %vm352_vm13, %v2352_v31, %v351_v33  ;;  %v359_v19 = vmul.f32 %v2306_v36, %v351_v33  ;;  %v357_v33 = vmul.f32 %v2297_v25, %v2352_v31  ;;  %v399_v31 = vmul.f32 %v2297_v25, %v2355_v34 }
  0xbb   : > { %v358_v17 = vmul.f32 %v353_v9, %v2293_v23 }
  0xbd   : > { %v2357_v35 = vpop.permute.xlu1 %392  ;;  %v2359_v37 = vpop.permute.xlu0 %306  ;;  %v1947_v29 = vpack.i.bf16 %v359_v19, %v358_v17 }
  0xbe   : > { %v395_v15 = vsel %vm394_vm14, %v2355_v34, %v2357_v35  ;;  %v401_v24 = vmul.f32 %v2306_v36, %v2357_v35  ;;  %v315_v52 = vmul.f32 %v2297_v25, %v2359_v37 }
  0xbf   : > { %v400_v22 = vmul.f32 %v395_v15, %v2293_v23 }
  0xc1   : > { %v2361_v38 = vpop.permute.xlu1 %308  ;;  %v2363_v40 = vpop.permute.xlu0 %1316  ;;  %v1952_v35 = vpack.i.bf16 %v401_v24, %v400_v22  ;;  %v2021_v24 = vld [vmem:[%s2688_s1 + $0x4] ss:$8 sps:$4 sm:$0xff]  }
  0xc2   : > { %v1324_v42 = vmul.f32 %v2363_v40, %v2293_v23  ;;  %v311_v32 = vsel %vm310_vm15, %v2359_v37, %v2361_v38 }
  0xc3   : > { %v316_v39 = vmul.f32 %v311_v32, %v2293_v23  ;;  %v1428_v32 = vld [vmem:[%s2689_s2] sm:$0xff] }
  0xc4   : > { %v1902_v46 = vpack.i.bf16 %v1324_v42, %v608_v41  ;;  %v317_v41 = vmul.f32 %v2306_v36, %v2361_v38 }
  0xc5   : > { %v2369_v43 = vpop.permute.xlu1 %1318  ;;  %v2373_v47 = vpop.permute.xlu0 %1236 }
  0xc6   : > { %1903 = vrot.lane.b32.xlu0 %v1902_v46, %s2065_s16  ;;  %v1320_v45 = vsel %vm257_vm2, %v2363_v40, %v2369_v43  ;;  %v1326_v38 = vmul.f32 %v2369_v43, %v1304_v44  ;;  %v1244_v40 = vmul.f32 %v2373_v47, %v2293_v23  ;;  %vm1470_vm2 = vcmask 719872  }
  0xc7   : > { %1785 = vmatprep.mubr.msk.bf16.mxu0 %vm1470_vm2, %v2021_v24 }
  0xc9   : > { %v2375_v48 = vpop.permute.xlu1 %1238  ;;  %v2383_v53 = vpop.permute.xlu0 %1276 }
  0xca   : > { %v1240_v49 = vsel %vm520_vm10, %v2373_v47, %v2375_v48  ;;  %1908 = vrot.lane.b32.xlu0 %v1907_v50, %s2067_s30  ;;  %v1962_v50 = vpack.i.bf16 %v317_v41, %v316_v39  ;;  %v1431_v39 = vld [vmem:[%s2689_s2 + $0x18] sm:$0xff]  ;;  %v1430_v41 = vld [vmem:[%s2689_s2 + $0x10] sm:$0xff]  ;;  %vm620_vm10 = vcmask 900096  }
  0xcb   : > { %v1245_v51 = vmul.f32 %v1240_v49, %v2306_v36 }
  0xcd   : > { %v2386_v55 = vpop.permute.xlu1 %1278  ;;  %v1917_v62 = vpack.i.bf16 %v1245_v51, %v525_v54  ;;  %v2398_v63 = vpop.permute.xlu0 %1156  ;;  %v1325_v51 = vmul.f32 %v1320_v45, %v2306_v36  ;;  %v1246_v54 = vmul.f32 %v1304_v44, %v2375_v48  ;;  %v1611_v45 = vld [vmem:[%s2690_s3 + $0x8] sm:$0xff] }
  0xce   : > { %v1280_v58 = vsel %vm562_vm9, %v2383_v53, %v2386_v55  ;;  %v1286_v57 = vmul.f32 %v1304_v44, %v2386_v55  ;;  %v1164_v37 = vmul.f32 %v2398_v63, %v2293_v23  ;;  %vm745_vm9 = vcmask 506880  }
  0xcf   : > { %v1285_v61 = vmul.f32 %v1280_v58, %v2306_v36  ;;  %1918 = vrot.lane.b32.xlu0 %v1917_v62, %s2067_s30  ;;  %v1967_v34 = vpack.i.bf16 %v1326_v38, %v1325_v51  ;;  %v1972_v59 = vpack.i.bf16 %v1244_v40, %v1246_v54 }
  0xd1   : > { %v2402_v2 = vpop.permute.xlu1 %1158  ;;  %v1922_v3 = vpack.i.bf16 %v1285_v61, %v567_v56  ;;  %v1197_v10 = vpop.permute.xlu0 %1196  ;;  %v1284_v56 = vmul.f32 %v2383_v53, %v2293_v23 }
  0xd2   : > { %v1160_v6 = vsel %vm436_vm11, %v2398_v63, %v2402_v2  ;;  %v1166_v47 = vmul.f32 %v1304_v44, %v2402_v2  ;;  %v1204_v60 = vmul.f32 %v1197_v10, %v2293_v23  ;;  %vm537_vm11 = vcmask 916480  }
  0xd3   : > { %v1165_v8 = vmul.f32 %v1160_v6, %v2306_v36  ;;  %1923 = vrot.lane.b32.xlu1 %v1922_v3, %s2066_s27  ;;  %1928 = vrot.lane.b32.xlu0 %v1927_v7, %s2068_s17  ;;  %v1977_v48 = vpack.i.bf16 %v1284_v56, %v1286_v57 }
  0xd4   : > { %v1982_v55 = vpack.i.bf16 %v1164_v37, %v1166_v47 }
  0xd5   : > { %v1199_v13 = vpop.permute.xlu1 %1198  ;;  %v1937_v20 = vpack.i.bf16 %v1165_v8, %v441_v11  ;;  %v1077_v21 = vpop.permute.xlu0 %1076 }
  0xd6   : > { %v1200_v16 = vsel %vm478_vm12, %v1197_v10, %v1199_v13  ;;  %v1206_v61 = vmul.f32 %v1304_v44, %v1199_v13  ;;  %v1084_v62 = vmul.f32 %v1077_v21, %v2293_v23  ;;  %vm579_vm12 = vcmask 908288  }
  0xd7   : > { %v1205_v18 = vmul.f32 %v1200_v16, %v2306_v36  ;;  %1933 = vrot.lane.b32.xlu1 %v1932_v12, %s2069_s9  ;;  %1938 = vrot.lane.b32.xlu0 %v1937_v20, %s2068_s17 }
  0xd8   : > { %v1987_v63 = vpack.i.bf16 %v1204_v60, %v1206_v61 }
  0xd9   : > { %v1079_v26 = vpop.permute.xlu1 %1078  ;;  %v1942_v27 = vpack.i.bf16 %v1205_v18, %v483_v14  ;;  %v1117_v46 = vpop.permute.xlu0 %1116 }
  0xda   : > { %v1080_v28 = vsel %vm352_vm13, %v1077_v21, %v1079_v26  ;;  %v1086_v0 = vmul.f32 %v1304_v44, %v1079_v26  ;;  %v1124_v15 = vmul.f32 %v1117_v46, %v2293_v23  ;;  %v2024_v26 = vld [vmem:[%s2688_s1 + $0x14] ss:$8 sps:$4 sm:$0xff]   ;;  %vm495_vm13 = vcmask 965632  }
  0xdb   : > { %v1085_v30 = vmul.f32 %v1080_v28, %v2306_v36  ;;  %1943 = vrot.lane.b32.xlu1 %v1942_v27, %s2069_s9  ;;  %1948 = vrot.lane.b32.xlu0 %v1947_v29, %s2070_s19 }
  0xdc   : > { %v1992_v8 = vpack.i.bf16 %v1084_v62, %v1086_v0  ;;  %1786 = vmatprep.mubr.msk.bf16.mxu1 %vm1470_vm2, %v2024_v26  ;;  %vm954_vm2 = vcmask 384000  }
  0xdd   : > { %v1957_v42 = vpack.i.bf16 %v1085_v30, %v357_v33  ;;  %v1119_v49 = vpop.permute.xlu1 %1118  ;;  %v1037_v43 = vpop.permute.xlu0 %1036 }
  0xde   : > { %v1120_v53 = vsel %vm394_vm14, %v1117_v46, %v1119_v49  ;;  %v1126_v6 = vmul.f32 %v1304_v44, %v1119_v49  ;;  %v1044_v20 = vmul.f32 %v1037_v43, %v2293_v23  ;;  %v1613_v49 = vld [vmem:[%s2690_s3 + $0x18] sm:$0xff]  ;;  %vm369_vm14 = vcmask 1031168  }
  0xdf   : > { %1953 = vrot.lane.b32.xlu1 %v1952_v35, %s2071_s12  ;;  %1958 = vrot.lane.b32.xlu0 %v1957_v42, %s2070_s19  ;;  %v1125_v2 = vmul.f32 %v1120_v53, %v2306_v36  ;;  %v1429_v35 = vld [vmem:[%s2689_s2 + $0x8] sm:$0xff] }
  0xe1   : > { %v1039_v58 = vpop.permute.xlu1 %1038  ;;  %v934_v1 = vpop.permute.xlu0 %933  ;;  %v1997_v9 = vpack.i.bf16 %v1126_v6, %v1125_v2 }
  0xe2   : > { %v1040_v7 = vsel %vm310_vm15, %v1037_v43, %v1039_v58  ;;  %v1046_v11 = vmul.f32 %v1304_v44, %v1039_v58  ;;  %v942_v29 = vmul.f32 %v934_v1, %v2297_v25  ;;  %v1610_v44 = vld [vmem:[%s2690_s3] sm:$0xff]  ;;  %vm411_vm15 = vcmask 982016  }
  0xe3   : > { %405 = vrot.lane.b32.xlu1 %v399_v31, %s2071_s12  ;;  %1963 = vrot.lane.b32.xlu0 %v1962_v50, %s2072_s20  ;;  %v1045_v10 = vmul.f32 %v1040_v7, %v2306_v36  ;;  %v1612_v50 = vld [vmem:[%s2690_s3 + $0x10] sm:$0xff] }
  0xe5   : > { %v936_v3 = vpop.permute.xlu1 %935  ;;  %v976_v12 = vpop.permute.xlu0 %975  ;;  %v2002_v17 = vpack.i.bf16 %v1046_v11, %v1045_v10 }
  0xe6   : > { %v938_v14 = vsel %vm937_vm0, %v934_v1, %v936_v3  ;;  %v944_v18 = vmul.f32 %v936_v3, %v2306_v36  ;;  %v984_v30 = vmul.f32 %v976_v12, %v2297_v25  ;;  %vm327_vm0 = vcmask 1039360  }
  0xe7   : > { %321 = vrot.lane.b32.xlu1 %v315_v52, %s2072_s20  ;;  %1968 = vrot.lane.b32.xlu0 %v1967_v34, %s2065_s16  ;;  %v943_v19 = vmul.f32 %v938_v14, %v2293_v23  ;;  %v1642_v52 = vld [vmem:[%s2691_s4] sm:$0xff] }
  0xe9   : > { %v978_v13 = vpop.permute.xlu1 %977  ;;  %v2007_v27 = vpack.i.bf16 %v944_v18, %v943_v19 }
  0xea   : > { %v980_v16 = vsel %vm979_vm1, %v976_v12, %v978_v13  ;;  %v986_v22 = vmul.f32 %v978_v13, %v2306_v36  ;;  %v2074_v36 = vmov 0   ;;  %vm1477_vm1 = vcmask 1043456  }
  0xeb   : > { %1973 = vrot.lane.b32.xlu1 %v1972_v59, %s2067_s30  ;;  %1978 = vrot.lane.b32.xlu0 %v1977_v48, %s2066_s27  ;;  %v985_v21 = vmul.f32 %v980_v16, %v2293_v23  ;;  %s1790_s30 = sshll.u32 %s2695_s22, 6 }
  0xec   : > { %2018 = vset.pattern.permute.xlu1 %v2074_v36  ;;  %2017 = vset.pattern.permute.xlu0 %v2074_v36 }
  0xed   : > { %v2012_v28 = vpack.i.bf16 %v986_v22, %v985_v21 }
  0xef   : > { %1983 = vrot.lane.b32.xlu1 %v1982_v55, %s2068_s17  ;;  %1988 = vrot.lane.b32.xlu0 %v1987_v63, %s2069_s9 }
  0xf3   : > { %1993 = vrot.lane.b32.xlu1 %v1992_v8, %s2070_s19  ;;  %1998 = vrot.lane.b32.xlu0 %v1997_v9, %s2071_s12  ;;  %s2666_s19 = scalar_lea.vmem %s2693_s6, %s1790_s30 }
  0xf7   : > { %1130 = vrot.lane.b32.xlu1 %v1124_v15, %s2071_s12  ;;  %2003 = vrot.lane.b32.xlu0 %v2002_v17, %s2072_s20 }
  0xfb   : > { %1050 = vrot.lane.b32.xlu1 %v1044_v20, %s2072_s20  ;;  %2008 = vrot.lane.b32.xlu0 %v2007_v27, %s2073_s23 }
  0xfe   : > { %v865_v33 = vpop.permute.xlu0 %864  ;;  %v907_v31 = vpop.permute.xlu1 %906 }
  0xff   : > { %2013 = vrot.lane.b32.xlu1 %v2012_v28, %s2075_s28  ;;  %948 = vrot.lane.b32.xlu0 %v942_v29, %s2073_s23 }
 0x102   : > { %v782_v42 = vpop.permute.xlu0 %781 }
 0x103   : > { %990 = vrot.lane.b32.xlu1 %v984_v30, %s2075_s28  ;;  %1434 = vperm.xlu0 %2017, %v1428_v32  }
 0x106   : > { %v823_v51 = vpop.permute.xlu1 %822 }
 0x107   : > { %1439 = vperm.xlu1 %2018, %v1429_v35   ;;  %1449 = vperm.xlu0 %2017, %v1431_v39  }
 0x10a   : > { %v698_v46 = vpop.permute.xlu0 %697 }
 0x10b   : > { %1444 = vperm.xlu1 %2018, %v1430_v41   ;;  %1616 = vperm.xlu0 %2017, %v1610_v44  }
 0x10e   : > { %v1864_v38 = vpop.permute.xlu0 %1863  ;;  %v740_v40 = vpop.permute.xlu1 %739 }
 0x10f   : > { %1621 = vperm.xlu1 %2018, %v1611_v45   ;;  %1631 = vperm.xlu0 %2017, %v1613_v49   ;;  %v1866_v56 = vunpack.i.h.bf16 %v1864_v38  ;;  %v1865_v57 = vunpack.i.l.bf16 %v1864_v38 }
 0x111   : > { %v872_v60 = vsel %vm870_vm3, %v1865_v57, %v1866_v56  ;;  %v871_v53 = vsel %vm870_vm3, %v865_v33, %v1865_v57  ;;  %vm996_vm3 = vcmask 375808  }
 0x112   : > { %v1874_v54 = vpop.permute.xlu0 %1873 }
 0x113   : > { %1626 = vperm.xlu1 %2018, %v1612_v50   ;;  %v1876_v37 = vunpack.i.h.bf16 %v1874_v54  ;;  %v1875_v47 = vunpack.i.l.bf16 %v1874_v54 }
 0x115   : > { %v789_v7 = vsel %vm787_vm5, %v1875_v47, %v1876_v37  ;;  %v788_v9 = vsel %vm787_vm5, %v782_v42, %v1875_v47 }
 0x116   : > { %v2521_v34 = vpop.permute.xlu1 %656  ;;  %v1884_v48 = vpop.permute.xlu0 %1883 }
 0x117   : > { %1648 = vperm.xlu1 %2018, %v1642_v52   ;;  %v1886_v2 = vunpack.i.h.bf16 %v1884_v48  ;;  %v1885_v6 = vunpack.i.l.bf16 %v1884_v48 }
 0x119   : > { %v705_v17 = vsel %vm703_vm7, %v1885_v6, %v1886_v2  ;;  %v704_v19 = vsel %vm703_vm7, %v698_v46, %v1885_v6 }
 0x11a   : > { %v1869_v43 = vpop.permute.xlu1 %1868  ;;  %v1894_v11 = vpop.permute.xlu0 %1893 }
 0x11b   : > { %v1871_v58 = vunpack.i.h.bf16 %v1869_v43  ;;  %v1870_v59 = vunpack.i.l.bf16 %v1869_v43  ;;  %v1896_v18 = vunpack.i.h.bf16 %v1894_v11  ;;  %v1895_v20 = vunpack.i.l.bf16 %v1894_v11 }
 0x11d   : > { %v914_v61 = vsel %vm912_vm4, %v1870_v59, %v1871_v58  ;;  %v913_v55 = vsel %vm912_vm4, %v907_v31, %v1870_v59  ;;  %v622_v29 = vsel %vm620_vm10, %v1895_v20, %v1896_v18 }
 0x11e   : > { %v1879_v62 = vpop.permute.xlu1 %1878  ;;  %v1415_v0 = vpack.c.bf16 %v914_v61, %v872_v60  ;;  %v1414_v1 = vpack.c.bf16 %v913_v55, %v871_v53 }
 0x11f   : > { %v1881_v3 = vunpack.i.h.bf16 %v1879_v62  ;;  %v1880_v63 = vunpack.i.l.bf16 %v1879_v62 }
 0x120   : > { %1484 = vmatprep.subr.bf16.mxu0 %v1415_v0  ;;  %1791 = vmatprep.subr.bf16.mxu1 %v1415_v0 }
 0x121   : > { %1485 = vmatpush1.bf16.msra.mxu0 %v1414_v1  ;;  %1805 = vmatpush1.bf16.msra.mxu1 %v1414_v1  ;;  %v830_v8 = vsel %vm828_vm6, %v1880_v63, %v1881_v3  ;;  %v829_v10 = vsel %vm828_vm6, %v823_v51, %v1880_v63 }
 0x122   : > { %v1889_v12 = vpop.permute.xlu1 %1888  ;;  %v1413_v13 = vpack.c.bf16 %v830_v8, %v789_v7  ;;  %v1412_v14 = vpack.c.bf16 %v829_v10, %v788_v9 }
 0x123   : > { %v1891_v15 = vunpack.i.h.bf16 %v1889_v12  ;;  %v1890_v16 = vunpack.i.l.bf16 %v1889_v12 }
 0x124   : > { %1486 = vmatprep.subr.bf16.mxu0 %v1413_v13  ;;  %1792 = vmatprep.subr.bf16.mxu1 %v1413_v13 }
 0x125   : > { %1487 = vmatpush1.bf16.msra.mxu0 %v1412_v14  ;;  %1806 = vmatpush1.bf16.msra.mxu1 %v1412_v14  ;;  %v747_v21 = vsel %vm745_vm9, %v1890_v16, %v1891_v15  ;;  %v746_v22 = vsel %vm745_vm9, %v740_v40, %v1890_v16  ;;  %v276_v14 = vld [vmem:[%s2692_s5] ss:$8 sm:$0x3] }
 0x126   : > { %v1899_v24 = vpop.permute.xlu1 %1898  ;;  %v1411_v26 = vpack.c.bf16 %v747_v21, %v705_v17  ;;  %v1410_v27 = vpack.c.bf16 %v746_v22, %v704_v19  ;;  %v281_v21 = vrot.slane %v276_v14, %v2127_v4  ;;  %v285_v22 = vrot.slane %v276_v14, %v2129_v5 }
 0x127   : > { %v1901_v28 = vunpack.i.h.bf16 %v1899_v24  ;;  %v1900_v36 = vunpack.i.l.bf16 %v1899_v24 }
 0x128   : > { %1488 = vmatprep.subr.bf16.mxu0 %v1411_v26  ;;  %1793 = vmatprep.subr.bf16.mxu1 %v1411_v26 }
 0x129   : > { %1489 = vmatpush1.bf16.msra.mxu0 %v1410_v27  ;;  %1807 = vmatpush1.bf16.msra.mxu1 %v1410_v27  ;;  %v663_v30 = vsel %vm645_vm8, %v1900_v36, %v1901_v28  ;;  %v662_v45 = vsel %vm645_vm8, %v2521_v34, %v1900_v36  ;;  %vm453_vm8 = vcmask 973824  }
 0x12a   : > { %v1409_v32 = vpack.c.bf16 %v663_v30, %v622_v29  ;;  %v1914_v33 = vpop.permute.xlu1 %1913  ;;  %v288_v30 = vmul.f32 %v2297_v25, %v281_v21 }
 0x12b   : > { %v1916_v41 = vunpack.i.h.bf16 %v1914_v33  ;;  %v1915_v42 = vunpack.i.l.bf16 %v1914_v33  ;;  %v289_v33 = vmul.f32 %v285_v22, %v2293_v23 }
 0x12c   : > { %1490 = vmatprep.subr.bf16.mxu0 %v1409_v32  ;;  %1794 = vmatprep.subr.bf16.mxu1 %v1409_v32 }
 0x12d   : > { %v581_v38 = vsel %vm579_vm12, %v1915_v42, %v1916_v41 }
 0x138   : > { %v2527_v35 = vpop.permute.xlu0 %1903 }
 0x139   : > { %v1905_v39 = vunpack.i.l.bf16 %v2527_v35 }
 0x13b   : > { %v621_v44 = vsel %vm620_vm10, %v1905_v39, %v1895_v20 }
 0x13c   : > { %v1909_v31 = vpop.permute.xlu0 %1908  ;;  %v1408_v46 = vpack.c.bf16 %v662_v45, %v621_v44 }
 0x13d   : > { %v1911_v49 = vunpack.i.h.bf16 %v1909_v31  ;;  %v1910_v50 = vunpack.i.l.bf16 %v1909_v31  ;;  %v1906_v31 = vunpack.i.h.bf16 %v2527_v35 }
 0x13e   : > { %1491 = vmatpush1.bf16.msra.mxu0 %v1408_v46  ;;  %1808 = vmatpush1.bf16.msra.mxu1 %v1408_v46 }
 0x13f   : > { %v539_v51 = vsel %vm537_vm11, %v1910_v50, %v1911_v49 }
 0x140   : > { %v1407_v40 = vpack.c.bf16 %v581_v38, %v539_v51 }
 0x141   : > { %v2535_v52 = vpop.permute.xlu0 %1918 }
 0x142   : > { %v1920_v54 = vunpack.i.l.bf16 %v2535_v52  ;;  %1492 = vmatprep.subr.bf16.mxu0 %v1407_v40  ;;  %1795 = vmatprep.subr.bf16.mxu1 %v1407_v40  ;;  %v1921_v40 = vunpack.i.h.bf16 %v2535_v52 }
 0x144   : > { %v538_v59 = vsel %vm537_vm11, %v1920_v54, %v1910_v50 }
 0x145   : > { %v2538_v56 = vpop.permute.xlu1 %1923  ;;  %v1929_v57 = vpop.permute.xlu0 %1928 }
 0x146   : > { %v1925_v34 = vunpack.i.l.bf16 %v2538_v56  ;;  %v1931_v43 = vunpack.i.h.bf16 %v1929_v57  ;;  %v1930_v58 = vunpack.i.l.bf16 %v1929_v57  ;;  %v1926_v35 = vunpack.i.h.bf16 %v2538_v56 }
 0x148   : > { %v580_v37 = vsel %vm579_vm12, %v1925_v34, %v1915_v42  ;;  %v455_v62 = vsel %vm453_vm8, %v1930_v58, %v1931_v43 }
 0x149   : > { %v1934_v47 = vpop.permute.xlu1 %1933  ;;  %v1406_v48 = vpack.c.bf16 %v580_v37, %v538_v59  ;;  %v2543_v53 = vpop.permute.xlu0 %1938 }
 0x14a   : > { %v1936_v60 = vunpack.i.h.bf16 %v1934_v47  ;;  %v1935_v61 = vunpack.i.l.bf16 %v1934_v47  ;;  %v1940_v55 = vunpack.i.l.bf16 %v2543_v53 }
 0x14b   : > { %1493 = vmatpush1.bf16.msra.mxu0 %v1406_v48  ;;  %1809 = vmatpush1.bf16.msra.mxu1 %v1406_v48 }
 0x14c   : > { %v497_v0 = vsel %vm495_vm13, %v1935_v61, %v1936_v60  ;;  %v454_v8 = vsel %vm453_vm8, %v1940_v55, %v1930_v58  ;;  %v1941_v55 = vunpack.i.h.bf16 %v2543_v53 }
 0x14d   : > { %v2548_v1 = vpop.permute.xlu1 %1943  ;;  %v1405_v3 = vpack.c.bf16 %v497_v0, %v455_v62  ;;  %v1949_v2 = vpop.permute.xlu0 %1948 }
 0x14e   : > { %v1945_v63 = vunpack.i.l.bf16 %v2548_v1  ;;  %v1951_v6 = vunpack.i.h.bf16 %v1949_v2  ;;  %v1950_v7 = vunpack.i.l.bf16 %v1949_v2 }
 0x14f   : > { %1494 = vmatprep.subr.bf16.mxu0 %v1405_v3  ;;  %1796 = vmatprep.subr.bf16.mxu1 %v1405_v3 }
 0x150   : > { %v496_v9 = vsel %vm495_vm13, %v1945_v63, %v1935_v61  ;;  %v371_v17 = vsel %vm369_vm14, %v1950_v7, %v1951_v6  ;;  %v1946_v63 = vunpack.i.h.bf16 %v2548_v1  ;;  %v1771_v1 = vld [vmem:[%s2692_s5 + $0x22] ss:$8 sm:$0x3] }
 0x151   : > { %v1954_v10 = vpop.permute.xlu1 %1953  ;;  %v1404_v11 = vpack.c.bf16 %v496_v9, %v454_v8  ;;  %v2556_v15 = vpop.permute.xlu0 %1958  ;;  %v1011_v22 = vrot.slane %v1771_v1, %v2127_v4 }
 0x152   : > { %v1956_v12 = vunpack.i.h.bf16 %v1954_v10  ;;  %v1955_v13 = vunpack.i.l.bf16 %v1954_v10  ;;  %v1960_v16 = vunpack.i.l.bf16 %v2556_v15 }
 0x153   : > { %1495 = vmatpush1.bf16.msra.mxu0 %v1404_v11  ;;  %1810 = vmatpush1.bf16.msra.mxu1 %v1404_v11 }
 0x154   : > { %v413_v19 = vsel %vm411_vm15, %v1955_v13, %v1956_v12  ;;  %v370_v24 = vsel %vm369_vm14, %v1960_v16, %v1950_v7 }
 0x155   : > { %v406_v18 = vpop.permute.xlu1 %405  ;;  %v1403_v20 = vpack.c.bf16 %v413_v19, %v371_v17  ;;  %v1964_v28 = vpop.permute.xlu0 %1963 }
 0x156   : > { %v412_v26 = vsel %vm411_vm15, %v406_v18, %v1955_v13  ;;  %v1966_v36 = vunpack.i.h.bf16 %v1964_v28  ;;  %v1965_v29 = vunpack.i.l.bf16 %v1964_v28  ;;  %v1961_v13 = vunpack.i.h.bf16 %v2556_v15 }
 0x157   : > { %v1402_v27 = vpack.c.bf16 %v412_v26, %v370_v24  ;;  %1496 = vmatprep.subr.bf16.mxu0 %v1403_v20  ;;  %1797 = vmatprep.subr.bf16.mxu1 %v1403_v20  ;;  %v1015_v24 = vrot.slane %v1771_v1, %v2129_v5 }
 0x158   : > { %v329_v41 = vsel %vm327_vm0, %v1965_v29, %v1966_v36  ;;  %v1004_v36 = vld [vmem:[#allocation2 + $0x10] sm:$0xff] }
 0x159   : > { %v322_v32 = vpop.permute.xlu1 %321  ;;  %1497 = vmatpush1.bf16.msra.mxu0 %v1402_v27  ;;  %1811 = vmatpush1.bf16.msra.mxu1 %v1402_v27  ;;  %v1969_v44 = vpop.permute.xlu0 %1968  ;;  %v1401_v45 = vpack.c.bf16 %v329_v41, %v289_v33  ;;  %v1003_v27 = vld [vmem:[#allocation2 + $0x8] sm:$0xff]  ;;  %v1019_v4 = vmul.f32 %v1015_v24, %v1004_v36 }
 0x15a   : > { %v328_v39 = vsel %vm327_vm0, %v322_v32, %v1965_v29  ;;  %v1971_v46 = vunpack.i.h.bf16 %v1969_v44  ;;  %v1970_v49 = vunpack.i.l.bf16 %v1969_v44  ;;  %v1018_v41 = vmul.f32 %v1011_v22, %v1003_v27 }
 0x15b   : > { %v1400_v42 = vpack.c.bf16 %v328_v39, %v288_v30  ;;  %1498 = vmatprep.subr.bf16.mxu0 %v1401_v45  ;;  %1798 = vmatprep.subr.bf16.mxu1 %v1401_v45 }
 0x15c   : > { %v1337_v25 = vsel %vm620_vm10, %v1970_v49, %v1971_v46  ;;  %v1336_v23 = vsel %vm620_vm10, %v1906_v31, %v1970_v49 }
 0x15d   : > { %v1974_v50 = vpop.permute.xlu1 %1973  ;;  %1499 = vmatpush1.bf16.msra.mxu0 %v1400_v42  ;;  %1812 = vmatpush1.bf16.msra.mxu1 %v1400_v42  ;;  %v1427_v54 = vpack.c.bf16 %v1337_v25, %v1337_v25  ;;  %v1979_v34 = vpop.permute.xlu0 %1978  ;;  %v1426_v57 = vpack.c.bf16 %v1336_v23, %v1336_v23 }
 0x15e   : > { %v1976_v51 = vunpack.i.h.bf16 %v1974_v50  ;;  %v1975_v38 = vunpack.i.l.bf16 %v1974_v50  ;;  %v1981_v43 = vunpack.i.h.bf16 %v1979_v34  ;;  %v1980_v58 = vunpack.i.l.bf16 %v1979_v34 }
 0x15f   : > { %1784 = vmatprep.subr.msk.bf16.mxu0 %vm1477_vm1, %v1427_v54  ;;  %1799 = vmatprep.subr.msk.bf16.mxu1 %vm1477_vm1, %v1427_v54  ;;  %v1479_v37 = vsel %vm1477_vm1, %v1426_v57, 0 }
 0x160   : > { %v1257_v47 = vsel %vm537_vm11, %v1921_v40, %v1975_v38  ;;  %v1256_v48 = vsel %vm537_vm11, %v1976_v51, %v1921_v40  ;;  %v1297_v61 = vsel %vm579_vm12, %v1926_v35, %v1980_v58  ;;  %v1296_v56 = vsel %vm579_vm12, %v1981_v43, %v1926_v35 }
 0x161   : > { %v1984_v59 = vpop.permute.xlu1 %1983  ;;  %1505 = vmatpush2.bf16.msra.mxu0 %v1479_v37  ;;  %1813 = vmatpush2.bf16.msra.mxu1 %v1479_v37  ;;  %v1989_v62 = vpop.permute.xlu0 %1988  ;;  %v1425_v0 = vpack.c.bf16 %v1297_v61, %v1257_v47  ;;  %v1424_v3 = vpack.c.bf16 %v1296_v56, %v1256_v48  ;;  %v2022_v37 = vld [vmem:[%s2688_s1 + $0x10] ss:$8 sps:$4 sm:$0xff]  }
 0x162   : > { %v1986_v60 = vunpack.i.h.bf16 %v1984_v59  ;;  %v1985_v52 = vunpack.i.l.bf16 %v1984_v59  ;;  %v1991_v2 = vunpack.i.h.bf16 %v1989_v62  ;;  %v1990_v6 = vunpack.i.l.bf16 %v1989_v62  ;;  %v2019_v59 = vld [vmem:[%s2688_s1] ss:$8 sps:$4 sm:$0xff]  }
 0x163   : > { %1506 = vmatprep.subr.bf16.mxu0 %v1425_v0  ;;  %1800 = vmatprep.subr.bf16.mxu1 %v1425_v0 }
 0x164   : > { %v1177_v8 = vsel %vm453_vm8, %v1941_v55, %v1985_v52  ;;  %v1176_v9 = vsel %vm453_vm8, %v1986_v60, %v1941_v55  ;;  %v1217_v53 = vsel %vm495_vm13, %v1946_v63, %v1990_v6  ;;  %v1216_v12 = vsel %vm495_vm13, %v1991_v2, %v1946_v63 }
 0x165   : > { %v1994_v7 = vpop.permute.xlu1 %1993  ;;  %1507 = vmatpush2.bf16.msra.mxu0 %v1424_v3  ;;  %1814 = vmatpush2.bf16.msra.mxu1 %v1424_v3  ;;  %v1999_v14 = vpop.permute.xlu0 %1998  ;;  %v1423_v16 = vpack.c.bf16 %v1217_v53, %v1177_v8  ;;  %v1422_v17 = vpack.c.bf16 %v1216_v12, %v1176_v9 }
 0x166   : > { %v1996_v10 = vunpack.i.h.bf16 %v1994_v7  ;;  %v1995_v11 = vunpack.i.l.bf16 %v1994_v7  ;;  %v2001_v19 = vunpack.i.h.bf16 %v1999_v14  ;;  %v2000_v18 = vunpack.i.l.bf16 %v1999_v14 }
 0x167   : > { %1508 = vmatprep.subr.bf16.mxu0 %v1423_v16  ;;  %1801 = vmatprep.subr.bf16.mxu1 %v1423_v16 }
 0x168   : > { %v1096_v21 = vsel %vm369_vm14, %v1996_v10, %v1961_v13  ;;  %v1097_v15 = vsel %vm369_vm14, %v1961_v13, %v1995_v11  ;;  %v1137_v28 = vsel %vm411_vm15, %v2000_v18, %v2001_v19 }
 0x169   : > { %v1131_v20 = vpop.permute.xlu1 %1130  ;;  %1509 = vmatpush2.bf16.msra.mxu0 %v1422_v17  ;;  %1815 = vmatpush2.bf16.msra.mxu1 %v1422_v17  ;;  %v2004_v30 = vpop.permute.xlu0 %2003  ;;  %v1421_v32 = vpack.c.bf16 %v1137_v28, %v1097_v15 }
 0x16a   : > { %v1136_v26 = vsel %vm411_vm15, %v1131_v20, %v2000_v18  ;;  %v2006_v33 = vunpack.i.h.bf16 %v2004_v30  ;;  %v2005_v39 = vunpack.i.l.bf16 %v2004_v30  ;;  %v1643_v30 = vld [vmem:[%s2691_s4 + $0x8] sm:$0xff] }
 0x16b   : > { %v1420_v29 = vpack.c.bf16 %v1136_v26, %v1096_v21  ;;  %1510 = vmatprep.subr.bf16.mxu0 %v1421_v32  ;;  %1802 = vmatprep.subr.bf16.mxu1 %v1421_v32  ;;  %v1645_v32 = vld [vmem:[%s2691_s4 + $0x18] sm:$0xff] }
 0x16c   : > { %v1057_v44 = vsel %vm327_vm0, %v2005_v39, %v2006_v33 }
 0x16d   : > { %v1051_v42 = vpop.permute.xlu1 %1050  ;;  %1511 = vmatpush2.bf16.msra.mxu0 %v1420_v29  ;;  %1816 = vmatpush2.bf16.msra.mxu1 %v1420_v29  ;;  %v2009_v31 = vpop.permute.xlu0 %2008  ;;  %v1419_v46 = vpack.c.bf16 %v1057_v44, %v1019_v4  ;;  %v1644_v29 = vld [vmem:[%s2691_s4 + $0x10] sm:$0xff] }
 0x16e   : > { %v1056_v5 = vsel %vm327_vm0, %v1051_v42, %v2005_v39  ;;  %v2011_v49 = vunpack.i.h.bf16 %v2009_v31  ;;  %v2010_v50 = vunpack.i.l.bf16 %v2009_v31 }
 0x16f   : > { %v1418_v45 = vpack.c.bf16 %v1056_v5, %v1018_v41  ;;  %1512 = vmatprep.subr.bf16.mxu0 %v1419_v46  ;;  %1803 = vmatprep.subr.bf16.mxu1 %v1419_v46 }
 0x170   : > { %v956_v40 = vsel %vm954_vm2, %v2010_v50, %v2011_v49 }
 0x171   : > { %v2014_v25 = vpop.permute.xlu1 %2013  ;;  %1513 = vmatpush2.bf16.msra.mxu0 %v1418_v45  ;;  %1817 = vmatpush2.bf16.msra.mxu1 %v1418_v45  ;;  %v949_v23 = vpop.permute.xlu0 %948 }
 0x172   : > { %v2016_v51 = vunpack.i.h.bf16 %v2014_v25  ;;  %v2015_v38 = vunpack.i.l.bf16 %v2014_v25  ;;  %v955_v35 = vsel %vm954_vm2, %v949_v23, %v2010_v50 }
 0x174   : > { %v998_v54 = vsel %vm996_vm3, %v2015_v38, %v2016_v51 }
 0x175   : > { %v991_v34 = vpop.permute.xlu1 %990  ;;  %v1417_v57 = vpack.c.bf16 %v998_v54, %v956_v40 }
 0x176   : > { %v997_v43 = vsel %vm996_vm3, %v991_v34, %v2015_v38 }
 0x177   : > { %v1416_v58 = vpack.c.bf16 %v997_v43, %v955_v35  ;;  %1514 = vmatprep.subr.bf16.mxu0 %v1417_v57  ;;  %1804 = vmatprep.subr.bf16.mxu1 %v1417_v57 }
 0x179   : > { %1515 = vmatpush2.bf16.msra.mxu0 %v1416_v58  ;;  %1818 = vmatpush2.bf16.msra.mxu1 %v1416_v58 }
 0x17c   : > { %1517 = vmatmul.mubr.bf16.vlgmr.msra.gmra.mxu0 %v2019_v59  ;;  %1527 = vmatmul.mubr.bf16.vlgmr.msra.gmra.mxu1 %v2022_v37 }
 0x17e   : > { %v1435_v48 = vpop.permute.xlu0 %1434 }
 0x182   : > { %v1440_v47 = vpop.permute.xlu1 %1439  ;;  %v1450_v7 = vpop.permute.xlu0 %1449 }
 0x186   : > { %v1445_v61 = vpop.permute.xlu1 %1444  ;;  %v1617_v41 = vpop.permute.xlu0 %1616 }
 0x18a   : > { %v2654_v33 = vpop.permute.xlu1 %1621  ;;  %v2656_v4 = vpop.permute.xlu0 %1631 }
 0x18e   : > { %v1627_v39 = vpop.permute.xlu1 %1626 }
 0x192   : > { %v1649_v42 = vpop.permute.xlu1 %1648 }
 0x23c   : > { %v1518_v60 = vpop.f32.mrf.mxu0  ;;  %v1528_v52 = vpop.f32.mrf.mxu1 }
 0x23d   : > { %v2605_v56 = vadd.f32 %v1518_v60, %v1435_v48  ;;  %v2611_v63 = vadd.f32 %v1528_v52, %v1445_v61 }
 0x23e   : > { %v1520_v55 = vpop.f32.mrf.mxu0  ;;  %v1530_v62 = vpop.f32.mrf.mxu1 }
 0x23f   : > { %v2607_v0 = vadd.f32 %v1520_v55, %v1435_v48  ;;  %v2609_v3 = vadd.f32 %v1530_v62, %v1445_v61  ;;  %v1554_v8 = vmul.f32 %v2605_v56, %v2605_v56  ;;  %v1558_v21 = vmul.f32 %v2611_v63, %v2611_v63 }
 0x240   : > { %v1522_v2 = vpop.f32.mrf.mxu0  ;;  %v1532_v6 = vpop.f32.mrf.mxu1 }
 0x241   : > { %v1555_v9 = vmul.f32 %v2607_v0, %v2607_v0  ;;  %v1543_v53 = vadd.f32 %v2609_v3, %v2611_v63  ;;  %v1537_v12 = vadd.f32 %v2607_v0, %v2605_v56  ;;  %v2621_v1 = vadd.f32 %v1532_v6, %v1450_v7 }
 0x242   : > { %v1524_v10 = vpop.f32.mrf.mxu0  ;;  %v1534_v11 = vpop.f32.mrf.mxu1  ;;  %v2627_v16 = vadd.f32 %v1522_v2, %v1440_v47  ;;  %v1559_v19 = vmul.f32 %v2609_v3, %v2609_v3 }
 0x243   : > { %v2623_v13 = vadd.f32 %v1524_v10, %v1440_v47  ;;  %v2625_v14 = vadd.f32 %v1534_v11, %v1450_v7  ;;  %1544 = vadd.xlane.f32.xlu0 %v1543_v53  ;;  %1538 = vadd.xlane.f32.xlu1 %v1537_v12  ;;  %v1562_v20 = vadd.f32 %v1555_v9, %v1554_v8 }
 0x244   : > { %v1556_v22 = vmul.f32 %v2627_v16, %v2627_v16  ;;  %v1568_v26 = vadd.f32 %v1559_v19, %v1558_v21  ;;  %v1560_v15 = vmul.f32 %v2621_v1, %v2621_v1 }
 0x245   : > { %v1546_v17 = vadd.f32 %v2625_v14, %v2621_v1  ;;  %v1557_v18 = vmul.f32 %v2623_v13, %v2623_v13  ;;  %v1561_v24 = vmul.f32 %v2625_v14, %v2625_v14  ;;  %v1540_v28 = vadd.f32 %v2623_v13, %v2627_v16 }
 0x247   : > { %1563 = vadd.xlane.f32.xlu0 %v1562_v20  ;;  %1547 = vadd.xlane.f32.xlu1 %v1546_v17  ;;  %v1565_v27 = vadd.f32 %v1557_v18, %v1556_v22  ;;  %v1571_v36 = vadd.f32 %v1561_v24, %v1560_v15 }
 0x24b   : > { %1569 = vadd.xlane.f32.xlu0 %v1568_v26  ;;  %1566 = vadd.xlane.f32.xlu1 %v1565_v27 }
 0x24f   : > { %1541 = vadd.xlane.f32.xlu0 %v1540_v28  ;;  %1572 = vadd.xlane.f32.xlu1 %v1571_v36 }
 0x260   : > { %1658 = vperm.xlu1 %2018, %v1644_v29  }
 0x265   : > { %1653 = vperm.xlu0 %2017, %v1643_v30  }
 0x269   : > { %1663 = vperm.xlu0 %2017, %v1645_v32  }
 0x2cc   : > { %v1545_v5 = vpop.xlane.xlu0 %1544  ;;  %v1539_v44 = vpop.xlane.xlu1 %1538 }
 0x2cd   : > { %v1550_v45 = vmul.f32 0.00390625, %v1539_v44  ;;  %v1552_v49 = vmul.f32 0.00390625, %v1545_v5 }
 0x2cf   : > { %v1578_v25 = vmul.f32 %v1550_v45, %v1550_v45  ;;  %v1580_v54 = vmul.f32 %v1552_v49, %v1552_v49  ;;  %v1586_v6 = vsub.f32 %v2605_v56, %v1550_v45  ;;  %v1587_v7 = vsub.f32 %v2607_v0, %v1550_v45 }
 0x2d0   : > { %v1564_v31 = vpop.xlane.xlu0 %1563  ;;  %v1548_v46 = vpop.xlane.xlu1 %1547  ;;  %v1590_v11 = vsub.f32 %v2611_v63, %v1552_v49  ;;  %v1591_v53 = vsub.f32 %v2609_v3, %v1552_v49 }
 0x2d1   : > { %v1574_v50 = vmul.f32 0.00390625, %v1564_v31  ;;  %v1553_v57 = vmul.f32 0.00390625, %v1548_v46 }
 0x2d3   : > { %v1582_v51 = vsub.f32 %v1574_v50, %v1578_v25  ;;  %v1581_v48 = vmul.f32 %v1553_v57, %v1553_v57  ;;  %v1592_v3 = vsub.f32 %v2621_v1, %v1553_v57  ;;  %v1593_v27 = vsub.f32 %v2625_v14, %v1553_v57 }
 0x2d4   : > { %v1570_v38 = vpop.xlane.xlu0 %1569  ;;  %v1567_v23 = vpop.xlane.xlu1 %1566 }
 0x2d5   : > { %v1594_v40 = vadd.f32 1e-05, %v1582_v51  ;;  %v1576_v34 = vmul.f32 0.00390625, %v1570_v38  ;;  %v1575_v60 = vmul.f32 0.00390625, %v1567_v23 }
 0x2d7   : > { %2025 = vrsqrt.f32 %v1594_v40  ;;  %v1584_v35 = vsub.f32 %v1576_v34, %v1580_v54 }
 0x2d8   : > { %v1542_v43 = vpop.xlane.xlu0 %1541  ;;  %v1573_v58 = vpop.xlane.xlu1 %1572 }
 0x2d9   : > { %v1596_v59 = vadd.f32 1e-05, %v1584_v35  ;;  %v1551_v37 = vmul.f32 0.00390625, %v1542_v43  ;;  %v1577_v47 = vmul.f32 0.00390625, %v1573_v58 }
 0x2db   : > { %2027 = vrsqrt.f32 %v1596_v59  ;;  %v1579_v52 = vmul.f32 %v1551_v37, %v1551_v37  ;;  %v1585_v61 = vsub.f32 %v1577_v47, %v1581_v48  ;;  %v1588_v36 = vsub.f32 %v2627_v16, %v1551_v37 }
 0x2dc   : > { %v1659_v15 = vpop.permute.xlu1 %1658  ;;  %v1589_v29 = vsub.f32 %v2623_v13, %v1551_v37 }
 0x2dd   : > { %v1583_v55 = vsub.f32 %v1575_v60, %v1579_v52  ;;  %v1597_v62 = vadd.f32 1e-05, %v1585_v61 }
 0x2df   : > { %v1595_v2 = vadd.f32 1e-05, %v1583_v55  ;;  %2029 = vrsqrt.f32 %v1597_v62 }
 0x2e0   : > { %v1654_v26 = vpop.permute.xlu0 %1653 }
 0x2e1   : > { %2031 = vrsqrt.f32 %v1595_v2 }
 0x2e4   : > { %v2026_v8 = vpop.eup %2025  ;;  %v1664_v46 = vpop.permute.xlu0 %1663 }
 0x2e5   : > { %v1602_v9 = vmul.f32 %v2026_v8, %v1586_v6  ;;  %v1603_v10 = vmul.f32 %v2026_v8, %v1587_v7 }
 0x2e7   : > { %v1634_v12 = vmul.f32 %v1617_v41, %v1602_v9  ;;  %v1635_v17 = vmul.f32 %v1617_v41, %v1603_v10 }
 0x2e8   : > { %v2028_v19 = vpop.eup %2027 }
 0x2e9   : > { %v1666_v18 = vadd.f32 %v1649_v42, %v1634_v12  ;;  %v1667_v20 = vadd.f32 %v1649_v42, %v1635_v17  ;;  %v1606_v21 = vmul.f32 %v2028_v19, %v1590_v11  ;;  %v1607_v22 = vmul.f32 %v2028_v19, %v1591_v53 }
 0x2eb   : > { %v1674_v56 = vmax.f32 %v1666_v18, 0.0  ;;  %v1675_v0 = vmax.f32 %v1667_v20, 0.0  ;;  %v1638_v24 = vmul.f32 %v1627_v39, %v1606_v21  ;;  %v1639_v63 = vmul.f32 %v1627_v39, %v1607_v22 }
 0x2ec   : > { %v2030_v28 = vpop.eup %2029 }
 0x2ed   : > { %1682 = vst [vmem:[%s2666_s19] sm:$0xff] %v1674_v56  ;;  %1683 = vst [vmem:[%s2666_s19 + $0x8] sm:$0xff] %v1675_v0  ;;  %v1670_v30 = vadd.f32 %v1659_v15, %v1638_v24  ;;  %v1671_v32 = vadd.f32 %v1659_v15, %v1639_v63  ;;  %v1608_v42 = vmul.f32 %v2030_v28, %v1592_v3 }
 0x2ee   : > { %v2032_v41 = vpop.eup %2031  ;;  %v1609_v39 = vmul.f32 %v2030_v28, %v1593_v27 }
 0x2ef   : > { %v1678_v5 = vmax.f32 %v1670_v30, 0.0  ;;  %v1679_v44 = vmax.f32 %v1671_v32, 0.0  ;;  %v1604_v1 = vmul.f32 %v2032_v41, %v1588_v36  ;;  %v1605_v45 = vmul.f32 %v2032_v41, %v1589_v29 }
 0x2f0   : > { %v1640_v14 = vmul.f32 %v2656_v4, %v1608_v42  ;;  %v1641_v31 = vmul.f32 %v2656_v4, %v1609_v39 }
 0x2f1   : > { %1686 = vst [vmem:[%s2666_s19 + $0x20] sm:$0xff] %v1678_v5  ;;  %1687 = vst [vmem:[%s2666_s19 + $0x28] sm:$0xff] %v1679_v44  ;;  %v1636_v13 = vmul.f32 %v2654_v33, %v1604_v1  ;;  %v1637_v16 = vmul.f32 %v2654_v33, %v1605_v45 }
 0x2f2   : > { %v1672_v49 = vadd.f32 %v1664_v46, %v1640_v14  ;;  %v1673_v50 = vadd.f32 %v1664_v46, %v1641_v31 }
 0x2f3   : > { %v1668_v25 = vadd.f32 %v1654_v26, %v1636_v13  ;;  %v1669_v51 = vadd.f32 %v1654_v26, %v1637_v16 }
 0x2f4   : > { %v1680_v38 = vmax.f32 %v1672_v49, 0.0  ;;  %v1681_v23 = vmax.f32 %v1673_v50, 0.0 }
 0x2f5   : > { %v1676_v40 = vmax.f32 %v1668_v25, 0.0  ;;  %v1677_v54 = vmax.f32 %v1669_v51, 0.0 }
 0x2f6   : > { %1688 = vst [vmem:[%s2666_s19 + $0x30] sm:$0xff] %v1680_v38  ;;  %1689 = vst [vmem:[%s2666_s19 + $0x38] sm:$0xff] %v1681_v23 }
 0x2f7   : > { %1684 = vst [vmem:[%s2666_s19 + $0x10] sm:$0xff] %v1676_v40  ;;  %1685 = vst [vmem:[%s2666_s19 + $0x18] sm:$0xff] %v1677_v54 }
 0x2f8 PF: > { %s16_s21 = sadd.s32 1, %s2039_s21  }
 0x2f9   : > { %p13_p4 = scmp.ge.s32.totalorder %s16_s21, 8  }
 0x2fb   :  { %15 = sbr.rel (!%p13_p4) target bundleno = 1 (0x1), region = 100 }

// kernel: conv_lstm_forward.5
= control target key start
LH: loop header
LB: loop body
LE: loop exit
PB: predicated region body
PF: predicated region fallthrough
CT: control target
= control target key end

     0   :  { %s3379_s0 = inlined_call_operand.vmem [shape: f32[2,3,32,256], index: 0, kind: input, shape index: {}]   ;;  %s3380_s1 = inlined_call_operand.vmem [shape: f32[2,8,256], index: 1, kind: input, shape index: {}]   ;;  %s3381_s2 = inlined_call_operand.vmem [shape: f32[2,8,256], index: 2, kind: input, shape index: {}]   ;;  %s3382_s3 = inlined_call_operand.vmem [shape: bf16[32,216], index: 3, kind: input, shape index: {}]   ;;  %s3383_s4 = inlined_call_operand.vmem [shape: f32[32,1], index: 4, kind: input, shape index: {}]   ;;  %s3384_s5 = inlined_call_operand.vmem [shape: f32[32,1], index: 5, kind: input, shape index: {}]   ;;  %s3385_s6 = inlined_call_operand.vmem [shape: f32[32,1], index: 6, kind: input, shape index: {}]   ;;  %s3386_s7 = inlined_call_operand.vmem [shape: f32[27,256], index: 7, kind: input, shape index: {}]   ;;  %s3387_s8 = inlined_call_operand.vmem [shape: f32[2,3,8,256], index: 8, kind: output, shape index: {0}]   ;;  %s3388_s9 = inlined_call_operand.hbm [shape: f32[2,8,256], index: 9, kind: output, shape index: {1}]  }
   0x1   :  { %3405 = sst [smem:[#allocation20_spill]] %s3384_s5 }
   0x2   :  { %3406 = sst [smem:[#allocation21_spill]] %s3385_s6 }
   0x3   :  { %3407 = sst [smem:[#allocation22_spill]] %s3388_s9 }
   0x4   :  { %15 = vsyncpa [#allocation6], 0 }
   0x5   :  { %17 = vsyncpa [#allocation6 + $0x1], 0  ;;  %s2700_s30 = smov 0   ;;  %s2702_s10 = smov 0  }
   0x6   :  { %s2704_s11 = smov 0   ;;  %s2706_s12 = smov 0  }
   0x7   :  { %s2708_s13 = smov 0   ;;  %s2710_s14 = smov 0  }
   0x8   :  { %s2712_s15 = smov 0   ;;  %s2714_s16 = smov 0  }
   0x9 LB: > { %3408 = sst [smem:[#allocation8_spill]] %s2583_s30  ;;  %s2117_s17 = sadd.s32 4294967295, %s2611_s16   ;;  %s2611_s16 = sphi %s2714_s16, %s23_s16   ;;  %s2607_s15 = sphi %s2712_s15, %s3439_s15   ;;  %s2603_s14 = sphi %s2710_s14, %s3438_s14   ;;  %s2599_s13 = sphi %s2708_s13, %s3437_s13   ;;  %s2595_s12 = sphi %s2706_s12, %s3436_s12   ;;  %s2591_s11 = sphi %s2704_s11, %s3435_s11   ;;  %s2587_s10 = sphi %s2702_s10, %s3434_s10   ;;  %s2583_s30 = sphi %s2700_s30, %s3433_s30  }
   0xa   : > { %3409 = sst [smem:[#allocation9_spill]] %s2587_s10  ;;  %s2118_s18 = sadd.s32 4294967294, %s2611_s16  }
   0xb   : > { %3410 = sst [smem:[#allocation10_spill]] %s2591_s11  ;;  %s32_s19 = sadd.s32 1, %s2603_s14 }
   0xc   : > { %3411 = sst [smem:[#allocation11_spill]] %s2599_s13  ;;  %p33_p0 = scmp.ge.s32.totalorder %s32_s19, 3 }
   0xd   : > { %3412 = sst [smem:[#allocation12_spill]] %s2603_s14  ;;  %s35_s20 = sadd.s32 1, %s2607_s15 }
   0xe   : > { %3413 = sst [smem:[#allocation13_spill]] %s2607_s15  ;;  %p265_p1 = scmp.ne.s32.totalorder %s2591_s11, %s2587_s10 }
   0xf   : > { %3414 = sst [smem:[#allocation14_spill]] %s2611_s16  ;;  %p266_p2 = scmp.eq.s32.totalorder %s2117_s17, 5 }
  0x10   : > { %s3441_s19 = smov (%p33_p0, %s32_s19), 0  ;;  %s3443_s20 = smov (!%p33_p0, %s35_s20), %s2607_s15 }
  0x11   : > { %3415 = sst [smem:[#allocation15_spill]] %s3441_s19  ;;  %p2749_p3 = por %p266_p2, %p265_p1 }
  0x12   : > { %p271_p4 = scmp.ne.s32.totalorder %s2587_s10, %s2583_s30  ;;  %p37_p5 = scmp.ge.s32.totalorder %s3443_s20, 2 }
  0x13   : > { %s3416_s21 = scalar_select %p2749_p3, 1, 0 }
  0x14   : > { %p272_p6 = scmp.eq.s32.totalorder %s2118_s18, 5  ;;  %p2121_p7 = scmp.ge.s32.totalorder %s2611_s16, 1 }
  0x15   : > { %3417 = sst [smem:[#allocation16_spill]] %s3416_s21  ;;  %p333_p8 = scmp.lt.s32.totalorder %s2611_s16, 7 }
  0x16   : > { %s3445_s20 = smov (%p37_p5, %s3443_s20), 0  ;;  %p2759_p9 = por %p272_p6, %p271_p4 }
  0x17   : > { %3418 = sst [smem:[#allocation17_spill]] %s3445_s20  ;;  %p334_p10 = pnand %p2121_p7, %p333_p8 }
  0x18   : > { %s3419_s22 = scalar_select %p2759_p9, 1, 0 }
  0x19   : > { %s252_s23 = ssub.s32 %s2607_s15, %s3445_s20  ;;  %s255_s24 = sadd.s32 1, %s2591_s11 }
  0x1a   : > { %3420 = sst [smem:[#allocation18_spill]] %s3419_s22  ;;  %p253_p11 = scmp.eq.s32.totalorder %s252_s23, 0 }
  0x1b   : > { %337 = sbr.rel (%p334_p10) target bundleno = 1166 (0x48e), region = 52  ;;  %s3398_s26 = sand.u32 (!%p334_p10), 1, %s2587_s10  }
  0x1c   : > { %s2767_s25 = scalar_select %p253_p11, %s2591_s11, %s255_s24  }
  0x1d   : > { %p392_p12 = scmp.lt.s32.totalorder (!%p334_p10), %s2599_s13, 1  ;;  %s2122_s27 = sshll.u32 (!%p334_p10), %s3398_s26, 4 }
  0x1e   : > { %3421 = sst [smem:[#allocation19_spill]] %s2767_s25  ;;  %p394_p13 = scmp.lt.s32.totalorder (!%p334_p10), %s2595_s12, 2 }
  0x1f   : > { %p2131_p0 = scmp.ne.s32.totalorder (!%p334_p10), %s2595_s12, 0 }
  0x20   : > { %s393_s28 = scalar_select %p392_p12, %s2599_s13, 1 }
  0x21   : > { %s395_s29 = scalar_select %p394_p13, %s2595_s12, 2 }
  0x22   : > { %s2207_s17 = smul.u32 24, %s393_s28  ;;  %s2176_s18 = sshll.u32 %s393_s28, 4 }
  0x23   : > { %s2123_s20 = sshll.u32 %s395_s29, 3  ;;  %s405_s19 = scalar_lea.vmem %s3380_s1, %s2176_s18 }
  0x24   : > { %s398_s15 = sadd.s32 %s2207_s17, %s2123_s20  ;;  %s410_s11 = scalar_lea.vmem %s3381_s2, %s2176_s18 }
  0x25   : > { %s2124_s22 = sshll.u32 %s398_s15, 3  ;;  %s2129_s30 = sshll.u32 %s395_s29, 1 }
  0x26   : > { %s2785_s26 = scalar_lea.vmem %s3379_s0, %s2124_s22  ;;  %s2208_s21 = smul.u32 6, %s393_s28 }
  0x27   : > { %s2792_s20 = scalar_lea.vmem [#allocation5], %s2122_s27  ;;  %424 = sbr.rel (%p2131_p0) target bundleno = 166 (0xa6), region = 56 }
  0x28   : > { %s417_s10 = sadd.s32 %s2208_s21, %s2129_s30  ;;  %s2613_s14 = smov (!%p2131_p0), 73  }
  0x29   : > { %s2130_s13 = sshll.u32 %s417_s10, 3 }
  0x2a   : > { %s2790_s23 = scalar_lea.vmem %s3387_s8, %s2130_s13 }
  0x2c   : > { %v431_v0 = vld [vmem:[%s405_s19] sm:$0xff]  ;;  %vm425_vm0 = vcmask 596992   ;;  %vm427_vm1 = vcmask 1048136   ;;  %v2614_v1 = vmov 0.0   ;;  %vm429_vm2 = vcmask 146432   ;;  %v447_v3 = vld [vmem:[%s410_s11 + $0x8] sm:$0xff] }
  0x2d   : > { %435 = vrot.lane.b32.xlu0 %v431_v0, %s2613_s14  ;;  %426 = vst.msk [vmem:[#allocation2] sm:$0xff] %vm425_vm0, %v2614_v1  ;;  %v446_v2 = vld [vmem:[%s410_s11] sm:$0xff]  ;;  %v432_v4 = vld [vmem:[%s405_s19 + $0x8] sm:$0xff]  ;;  %449 = vst [vmem:[#allocation3 + $0x8] sm:$0xff] %v447_v3 }
  0x2e   : > { %428 = vst.msk [vmem:[#allocation2 + $0x10] sm:$0xff] %vm427_vm1, %v2614_v1  ;;  %448 = vst [vmem:[#allocation3] sm:$0xff] %v446_v2 }
  0x2f   : > { %430 = vst.msk [vmem:[#allocation2 + $0x18] sm:$0xff] %vm429_vm2, %v2614_v1 }
  0x31   : > { %437 = vrot.lane.b32.xlu0 %v432_v4, %s2613_s14 }
  0x9f   : > { %v436_v5 = vpop.permute.xlu0 %435 }
  0xa0   : > { %443 = vst.msk [vmem:[#allocation2] sm:$0xff] %vm427_vm1, %v436_v5 }
  0xa3   : > { %v438_v6 = vpop.permute.xlu0 %437 }
  0xa4   : > { %v439_v7 = vsel %vm425_vm0, %v436_v5, %v438_v6  ;;  %445 = vst.msk [vmem:[#allocation2 + $0x10] sm:$0xff] %vm425_vm0, %v438_v6 }
  0xa5   : > { %444 = vst [vmem:[#allocation2 + $0x8] sm:$0xff] %v439_v7 }
  0xa6 PF: > { %v454_v8 = vlaneseq  ;;  %v2146_v10 = vld [vmem:[%s3386_s7 + $0x17] ss:$8 sm:$0x3]  ;;  %v2145_v11 = vld [vmem:[%s3386_s7 + $0x16] ss:$8 sm:$0x3] }
  0xa7   : > { %s2615_s10 = smov 80   ;;  %s2616_s11 = smov 74   ;;  %v2143_v18 = vld [vmem:[%s3386_s7 + $0x14] ss:$8 sm:$0x3]  ;;  %vm1031_vm3 = vcmask 605184  }
  0xa8   : > { %v455_v9 = vshrl.u32 %v454_v8, 7  ;;  %v2144_v21 = vld [vmem:[%s3386_s7 + $0x15] ss:$8 sm:$0x3]  ;;  %s2617_s19 = smov 72   ;;  %s2618_s25 = smov 73  }
  0xa9   : > { %v2141_v24 = vld [vmem:[%s3386_s7 + $0x12] ss:$8 sm:$0x3]  ;;  %v2142_v27 = vld [vmem:[%s3386_s7 + $0x13] ss:$8 sm:$0x3] }
  0xaa   : > { %v2804_v12 = vsub.s32 0, %v455_v9  ;;  %v2806_v13 = vsub.s32 1, %v455_v9  ;;  %s2619_s29 = smov 65   ;;  %v2139_v30 = vld [vmem:[%s3386_s7 + $0x10] ss:$8 sm:$0x3] }
  0xab   : > { %s2620_s24 = smov 66   ;;  %v2140_v33 = vld [vmem:[%s3386_s7 + $0x11] ss:$8 sm:$0x3]  ;;  %s2621_s6 = smov 18   ;;  %vm1073_vm4 = vcmask 654336  }
  0xac   : > { %v1064_v14 = vrot.slane %v2146_v10, %v2804_v12  ;;  %v1022_v15 = vrot.slane %v2145_v11, %v2804_v12  ;;  %v1068_v16 = vrot.slane %v2146_v10, %v2806_v13  ;;  %v1026_v17 = vrot.slane %v2145_v11, %v2806_v13  ;;  %v2137_v36 = vld [vmem:[%s3386_s7 + $0x6] ss:$8 sm:$0x3]  ;;  %v2138_v39 = vld [vmem:[%s3386_s7 + $0x7] ss:$8 sm:$0x3] }
  0xad   : > { %v942_v19 = vrot.slane %v2143_v18, %v2806_v13  ;;  %v938_v20 = vrot.slane %v2143_v18, %v2804_v12  ;;  %v984_v22 = vrot.slane %v2144_v21, %v2806_v13  ;;  %v980_v23 = vrot.slane %v2144_v21, %v2804_v12  ;;  %s2623_s13 = smov 16   ;;  %v2135_v42 = vld [vmem:[%s3386_s7 + $0x4] ss:$8 sm:$0x3]  ;;  %s2625_s27 = smov 9  }
  0xae   : > { %1069 = vrot.lane.b32.xlu1 %v1064_v14, %s2615_s10  ;;  %1027 = vrot.lane.b32.xlu0 %v1022_v15, %s2616_s11  ;;  %v858_v25 = vrot.slane %v2141_v24, %v2806_v13  ;;  %v854_v26 = vrot.slane %v2141_v24, %v2804_v12  ;;  %v900_v28 = vrot.slane %v2142_v27, %v2806_v13  ;;  %v2136_v45 = vld [vmem:[%s3386_s7 + $0x5] ss:$8 sm:$0x3]  ;;  %v2133_v48 = vld [vmem:[%s3386_s7 + $0x2] ss:$8 sm:$0x3] }
  0xaf   : > { %v896_v29 = vrot.slane %v2142_v27, %v2804_v12  ;;  %v775_v31 = vrot.slane %v2139_v30, %v2806_v13  ;;  %v771_v32 = vrot.slane %v2139_v30, %v2804_v12  ;;  %v817_v34 = vrot.slane %v2140_v33, %v2806_v13  ;;  %s2626_s17 = smov 10   ;;  %v2134_v51 = vld [vmem:[%s3386_s7 + $0x3] ss:$8 sm:$0x3]  ;;  %s2627_s14 = smov 2  }
  0xb0   : > { %v813_v35 = vrot.slane %v2140_v33, %v2804_v12  ;;  %v691_v37 = vrot.slane %v2137_v36, %v2806_v13  ;;  %v687_v38 = vrot.slane %v2137_v36, %v2804_v12  ;;  %v733_v40 = vrot.slane %v2138_v39, %v2806_v13  ;;  %v2132_v54 = vld [vmem:[%s3386_s7 + $0x1] ss:$8 sm:$0x3]  ;;  %s2628_s30 = smov 8   ;;  %s2629_s15 = smov 1  }
  0xb1   : > { %v729_v41 = vrot.slane %v2138_v39, %v2804_v12  ;;  %v607_v43 = vrot.slane %v2135_v42, %v2806_v13  ;;  %v603_v44 = vrot.slane %v2135_v42, %v2804_v12  ;;  %v649_v46 = vrot.slane %v2136_v45, %v2806_v13  ;;  %v2157_v57 = vld [vmem:[%s3386_s7 + $0x32] ss:$8 sm:$0x3]  ;;  %v2155_v60 = vld [vmem:[%s3386_s7 + $0x30] ss:$8 sm:$0x3] }
  0xb2   : > { %1071 = vrot.lane.b32.xlu1 %v1068_v16, %s2615_s10  ;;  %1029 = vrot.lane.b32.xlu0 %v1026_v17, %s2616_s11  ;;  %s2622_s10 = smov 64   ;;  %v645_v47 = vrot.slane %v2136_v45, %v2804_v12  ;;  %v523_v49 = vrot.slane %v2133_v48, %v2806_v13  ;;  %v519_v50 = vrot.slane %v2133_v48, %v2804_v12  ;;  %v2156_v63 = vld [vmem:[%s3386_s7 + $0x31] ss:$8 sm:$0x3]  ;;  %s2631_s21 = smov 82   ;;  %vm947_vm5 = vcmask 588800  }
  0xb3   : > { %v565_v52 = vrot.slane %v2134_v51, %v2806_v13  ;;  %v561_v53 = vrot.slane %v2134_v51, %v2804_v12  ;;  %v481_v55 = vrot.slane %v2132_v54, %v2806_v13  ;;  %v477_v56 = vrot.slane %v2132_v54, %v2804_v12  ;;  %v2153_v2 = vld [vmem:[%s3386_s7 + $0x26] ss:$8 sm:$0x3]  ;;  %v2154_v5 = vld [vmem:[%s3386_s7 + $0x27] ss:$8 sm:$0x3] }
  0xb4   : > { %v1493_v58 = vrot.slane %v2157_v57, %v2806_v13  ;;  %v1489_v59 = vrot.slane %v2157_v57, %v2804_v12  ;;  %v1413_v61 = vrot.slane %v2155_v60, %v2806_v13  ;;  %v1409_v62 = vrot.slane %v2155_v60, %v2804_v12  ;;  %v2151_v8 = vld [vmem:[%s3386_s7 + $0x24] ss:$8 sm:$0x3]  ;;  %v2152_v11 = vld [vmem:[%s3386_s7 + $0x25] ss:$8 sm:$0x3] }
  0xb5   : > { %v1453_v0 = vrot.slane %v2156_v63, %v2806_v13  ;;  %v1449_v1 = vrot.slane %v2156_v63, %v2804_v12  ;;  %v1333_v3 = vrot.slane %v2153_v2, %v2806_v13  ;;  %v1329_v4 = vrot.slane %v2153_v2, %v2804_v12  ;;  %v2150_v16 = vld [vmem:[%s3386_s7 + $0x23] ss:$8 sm:$0x3]  ;;  %s2633_s22 = smov 54   ;;  %s2634_s28 = smov 56  }
  0xb6   : > { %945 = vrot.lane.b32.xlu1 %v942_v19, %s2617_s19  ;;  %943 = vrot.lane.b32.xlu0 %v938_v20, %s2617_s19  ;;  %s2624_s19 = smov 17   ;;  %v1373_v6 = vrot.slane %v2154_v5, %v2806_v13  ;;  %v1369_v7 = vrot.slane %v2154_v5, %v2804_v12  ;;  %v1253_v9 = vrot.slane %v2151_v8, %v2806_v13  ;;  %v2147_v19 = vld [vmem:[%s3386_s7 + $0x20] ss:$8 sm:$0x3]  ;;  %vm989_vm6 = vcmask 596992   ;;  %s2636_s18 = smov 63  }
  0xb7   : > { %v1249_v10 = vrot.slane %v2151_v8, %v2804_v12  ;;  %v1293_v14 = vrot.slane %v2152_v11, %v2806_v13  ;;  %v1289_v15 = vrot.slane %v2152_v11, %v2804_v12  ;;  %v1213_v17 = vrot.slane %v2150_v16, %v2806_v13  ;;  %s2641_s5 = smov 119   ;;  %s2643_s9 = smov 126  }
  0xb8   : > { %v1209_v18 = vrot.slane %v2150_v16, %v2804_v12  ;;  %v1110_v20 = vrot.slane %v2147_v19, %v2806_v13  ;;  %v1106_v21 = vrot.slane %v2147_v19, %v2804_v12  ;;  %vm863_vm7 = vcmask 531456   ;;  %s2645_s11 = smov 127   ;;  %s3426_s12 = sld [smem:[#allocation9_spill]] }
  0xb9   : > { %vm905_vm8 = vcmask 539648   ;;  %vm780_vm9 = vcmask 146432   ;;  %vm822_vm10 = vcmask 523264   ;;  %vm738_vm11 = vcmask 138240  }
  0xba   : > { %987 = vrot.lane.b32.xlu1 %v984_v22, %s2618_s25  ;;  %985 = vrot.lane.b32.xlu0 %v980_v23, %s2618_s25  ;;  %v2148_v22 = vld [vmem:[%s3386_s7 + $0x21] ss:$8 sm:$0x3]  ;;  %vm696_vm12 = vcmask 130048   ;;  %vm612_vm13 = vcmask 72704   ;;  %vm654_vm14 = vcmask 80896  }
  0xbb   : > { %v1152_v23 = vrot.slane %v2148_v22, %v2806_v13  ;;  %v1148_v24 = vrot.slane %v2148_v22, %v2804_v12  ;;  %vm528_vm15 = vcmask 15360   ;;  %vm570_vm0 = vcmask 64512  }
  0xbc   : > { %vm486_vm1 = vcmask 7168   ;;  %vm1157_vm2 = vcmask 670720  }
  0xbe   : > { %861 = vrot.lane.b32.xlu1 %v858_v25, %s2619_s29  ;;  %859 = vrot.lane.b32.xlu0 %v854_v26, %s2619_s29  ;;  %v2963_v25 = vld [vmem:[#allocation2] sm:$0xff]  ;;  %s2635_s29 = smov 55  }
  0xc2   : > { %903 = vrot.lane.b32.xlu1 %v900_v28, %s2620_s24  ;;  %901 = vrot.lane.b32.xlu0 %v896_v29, %s2620_s24  ;;  %s2638_s24 = smov 110  }
  0xc6   : > { %778 = vrot.lane.b32.xlu1 %v775_v31, %s2621_s6  ;;  %776 = vrot.lane.b32.xlu0 %v771_v32, %s2621_s6 }
  0xca   : > { %820 = vrot.lane.b32.xlu1 %v817_v34, %s2622_s10  ;;  %818 = vrot.lane.b32.xlu0 %v813_v35, %s2622_s10 }
  0xce   : > { %694 = vrot.lane.b32.xlu1 %v691_v37, %s2623_s13  ;;  %692 = vrot.lane.b32.xlu0 %v687_v38, %s2623_s13  ;;  %v2971_v37 = vld [vmem:[#allocation2 + $0x8] sm:$0xff]  ;;  %v2973_v38 = vld [vmem:[#allocation2 + $0x10] sm:$0xff] }
  0xd2   : > { %736 = vrot.lane.b32.xlu1 %v733_v40, %s2624_s19  ;;  %734 = vrot.lane.b32.xlu0 %v729_v41, %s2624_s19 }
  0xd6   : > { %610 = vrot.lane.b32.xlu1 %v607_v43, %s2625_s27  ;;  %608 = vrot.lane.b32.xlu0 %v603_v44, %s2625_s27 }
  0xda   : > { %652 = vrot.lane.b32.xlu1 %v649_v46, %s2626_s17  ;;  %650 = vrot.lane.b32.xlu0 %v645_v47, %s2626_s17 }
  0xde   : > { %526 = vrot.lane.b32.xlu1 %v523_v49, %s2627_s14  ;;  %524 = vrot.lane.b32.xlu0 %v519_v50, %s2627_s14 }
  0xe2   : > { %568 = vrot.lane.b32.xlu1 %v565_v52, %s2628_s30  ;;  %566 = vrot.lane.b32.xlu0 %v561_v53, %s2628_s30 }
  0xe6   : > { %484 = vrot.lane.b32.xlu1 %v481_v55, %s2629_s15  ;;  %482 = vrot.lane.b32.xlu0 %v477_v56, %s2629_s15 }
  0xea   : > { %1496 = vrot.lane.b32.xlu1 %v1493_v58, %s2621_s6  ;;  %1494 = vrot.lane.b32.xlu0 %v1489_v59, %s2621_s6  ;;  %s2637_s6 = smov 62  }
  0xee   : > { %1416 = vrot.lane.b32.xlu1 %v1413_v61, %s2623_s13  ;;  %1414 = vrot.lane.b32.xlu0 %v1409_v62, %s2623_s13  ;;  %s2639_s13 = smov 111  }
  0xf2   : > { %1456 = vrot.lane.b32.xlu1 %v1453_v0, %s2624_s19  ;;  %1454 = vrot.lane.b32.xlu0 %v1449_v1, %s2624_s19  ;;  %s2642_s19 = smov 118  }
  0xf6   : > { %1336 = vrot.lane.b32.xlu1 %v1333_v3, %s2625_s27  ;;  %1334 = vrot.lane.b32.xlu0 %v1329_v4, %s2625_s27  ;;  %s2644_s27 = smov 120  }
  0xfa   : > { %1376 = vrot.lane.b32.xlu1 %v1373_v6, %s2626_s17  ;;  %1374 = vrot.lane.b32.xlu0 %v1369_v7, %s2626_s17 }
  0xfe   : > { %1256 = vrot.lane.b32.xlu1 %v1253_v9, %s2627_s14  ;;  %1254 = vrot.lane.b32.xlu0 %v1249_v10, %s2627_s14 }
 0x102   : > { %1296 = vrot.lane.b32.xlu1 %v1293_v14, %s2628_s30  ;;  %1294 = vrot.lane.b32.xlu0 %v1289_v15, %s2628_s30  ;;  %s2630_s30 = smov 81  }
 0x106   : > { %1216 = vrot.lane.b32.xlu1 %v1213_v17, %s2629_s15  ;;  %1214 = vrot.lane.b32.xlu0 %v1209_v18, %s2629_s15  ;;  %s2632_s15 = smov 48  }
 0x10a   : > { %1113 = vrot.lane.b32.xlu1 %v1110_v20, %s2630_s30  ;;  %1111 = vrot.lane.b32.xlu0 %v1106_v21, %s2630_s30  ;;  %s2647_s30 = smov 47  }
 0x10e   : > { %1155 = vrot.lane.b32.xlu1 %v1152_v23, %s2631_s21  ;;  %1153 = vrot.lane.b32.xlu0 %v1148_v24, %s2631_s21  ;;  %s2648_s21 = smov 46  }
 0x120   : > { %v1070_v26 = vpop.permute.xlu1 %1069  ;;  %v1028_v27 = vpop.permute.xlu0 %1027 }
 0x121   : > { %v1078_v28 = vmul.f32 %v1070_v26, %v2963_v25  ;;  %v1036_v29 = vmul.f32 %v2963_v25, %v1028_v27 }
 0x123   : > { %1084 = vrot.lane.b32.xlu1 %v1078_v28, %s2632_s15  ;;  %1042 = vrot.lane.b32.xlu0 %v1036_v29, %s2633_s22 }
 0x124   : > { %v1072_v30 = vpop.permute.xlu1 %1071  ;;  %v1030_v31 = vpop.permute.xlu0 %1029 }
 0x125   : > { %v1032_v39 = vsel %vm1031_vm3, %v1028_v27, %v1030_v31  ;;  %v1038_v42 = vmul.f32 %v2973_v38, %v1030_v31  ;;  %v1074_v45 = vsel %vm1073_vm4, %v1070_v26, %v1072_v30  ;;  %v1080_v49 = vmul.f32 %v1072_v30, %v2973_v38 }
 0x126   : > { %v1037_v41 = vmul.f32 %v2971_v37, %v1032_v39  ;;  %v1079_v48 = vmul.f32 %v1074_v45, %v2971_v37  ;;  %vm1115_vm3 = vcmask 662528   ;;  %vm1648_vm4 = vcmask 719872  }
 0x128   : > { %v946_v32 = vpop.permute.xlu1 %945  ;;  %v944_v33 = vpop.permute.xlu0 %943  ;;  %v2316_v53 = vpack.i.bf16 %v1038_v42, %v1037_v41  ;;  %v2321_v0 = vpack.i.bf16 %v1080_v49, %v1079_v48 }
 0x129   : > { %v952_v34 = vmul.f32 %v2963_v25, %v944_v33  ;;  %v948_v47 = vsel %vm947_vm5, %v944_v33, %v946_v32  ;;  %v954_v50 = vmul.f32 %v2973_v38, %v946_v32  ;;  %vm1048_vm5 = vcmask 441344  }
 0x12a   : > { %v953_v54 = vmul.f32 %v2971_v37, %v948_v47 }
 0x12b   : > { %958 = vrot.lane.b32.xlu0 %v952_v34, %s2634_s28 }
 0x12c   : > { %v988_v35 = vpop.permute.xlu1 %987  ;;  %v986_v36 = vpop.permute.xlu0 %985  ;;  %v2326_v1 = vpack.i.bf16 %v954_v50, %v953_v54 }
 0x12d   : > { %v994_v40 = vmul.f32 %v2963_v25, %v986_v36  ;;  %v990_v55 = vsel %vm989_vm6, %v986_v36, %v988_v35  ;;  %v996_v58 = vmul.f32 %v2973_v38, %v988_v35 }
 0x12e   : > { %v995_v59 = vmul.f32 %v2971_v37, %v990_v55 }
 0x12f   : > { %1000 = vrot.lane.b32.xlu1 %v994_v40, %s2635_s29 }
 0x130   : > { %v862_v43 = vpop.permute.xlu1 %861  ;;  %v860_v44 = vpop.permute.xlu0 %859  ;;  %v2331_v6 = vpack.i.bf16 %v996_v58, %v995_v59 }
 0x131   : > { %v868_v46 = vmul.f32 %v2963_v25, %v860_v44  ;;  %v864_v56 = vsel %vm863_vm7, %v860_v44, %v862_v43  ;;  %v870_v60 = vmul.f32 %v2973_v38, %v862_v43  ;;  %vm1090_vm7 = vcmask 392192  }
 0x132   : > { %v869_v61 = vmul.f32 %v2971_v37, %v864_v56 }
 0x133   : > { %874 = vrot.lane.b32.xlu0 %v868_v46, %s2636_s18 }
 0x134   : > { %v904_v51 = vpop.permute.xlu1 %903  ;;  %v902_v52 = vpop.permute.xlu0 %901  ;;  %v2336_v7 = vpack.i.bf16 %v870_v60, %v869_v61 }
 0x135   : > { %v910_v57 = vmul.f32 %v2963_v25, %v902_v52  ;;  %v906_v2 = vsel %vm905_vm8, %v902_v52, %v904_v51  ;;  %v912_v8 = vmul.f32 %v2973_v38, %v904_v51  ;;  %vm964_vm8 = vcmask 457728  }
 0x136   : > { %v911_v9 = vmul.f32 %v2971_v37, %v906_v2 }
 0x137   : > { %916 = vrot.lane.b32.xlu1 %v910_v57, %s2637_s6  ;;  %2317 = vrot.lane.b32.xlu0 %v2316_v53, %s2633_s22 }
 0x138   : > { %v779_v62 = vpop.permute.xlu1 %778  ;;  %v777_v63 = vpop.permute.xlu0 %776  ;;  %v2341_v19 = vpack.i.bf16 %v912_v8, %v911_v9 }
 0x139   : > { %v781_v3 = vsel %vm780_vm9, %v777_v63, %v779_v62  ;;  %v787_v10 = vmul.f32 %v2973_v38, %v779_v62  ;;  %v785_v45 = vmul.f32 %v2963_v25, %v777_v63 }
 0x13a   : > { %v786_v11 = vmul.f32 %v2971_v37, %v781_v3 }
 0x13b   : > { %2322 = vrot.lane.b32.xlu1 %v2321_v0, %s2632_s15  ;;  %2327 = vrot.lane.b32.xlu0 %v2326_v1, %s2634_s28  ;;  %s3424_s28 = sld [smem:[#allocation21_spill]] }
 0x13c   : > { %v821_v4 = vpop.permute.xlu1 %820  ;;  %v819_v5 = vpop.permute.xlu0 %818  ;;  %v2346_v20 = vpack.i.bf16 %v787_v10, %v786_v11 }
 0x13d   : > { %v823_v14 = vsel %vm822_vm10, %v819_v5, %v821_v4  ;;  %v829_v17 = vmul.f32 %v2973_v38, %v821_v4  ;;  %v827_v28 = vmul.f32 %v2963_v25, %v819_v5 }
 0x13e   : > { %v828_v18 = vmul.f32 %v2971_v37, %v823_v14 }
 0x13f   : > { %2332 = vrot.lane.b32.xlu1 %v2331_v6, %s2635_s29  ;;  %2337 = vrot.lane.b32.xlu0 %v2336_v7, %s2636_s18  ;;  %s3428_s29 = sld [smem:[#allocation22_spill]] }
 0x140   : > { %v695_v15 = vpop.permute.xlu1 %694  ;;  %v693_v16 = vpop.permute.xlu0 %692  ;;  %v2356_v23 = vpack.i.bf16 %v829_v17, %v828_v18 }
 0x141   : > { %v697_v42 = vsel %vm696_vm12, %v693_v16, %v695_v15  ;;  %v703_v47 = vmul.f32 %v2973_v38, %v695_v15  ;;  %v701_v58 = vmul.f32 %v2963_v25, %v693_v16 }
 0x142   : > { %v702_v48 = vmul.f32 %v2971_v37, %v697_v42 }
 0x143   : > { %2342 = vrot.lane.b32.xlu1 %v2341_v19, %s2637_s6  ;;  %2347 = vrot.lane.b32.xlu0 %v2346_v20, %s2638_s24  ;;  %s3429_s6 = sand.u32 1, %s3426_s12  }
 0x144   : > { %v737_v21 = vpop.permute.xlu1 %736  ;;  %v735_v22 = vpop.permute.xlu0 %734  ;;  %v2361_v54 = vpack.i.bf16 %v703_v47, %v702_v48 }
 0x145   : > { %v739_v24 = vsel %vm738_vm11, %v735_v22, %v737_v21  ;;  %v745_v29 = vmul.f32 %v2973_v38, %v737_v21  ;;  %v743_v61 = vmul.f32 %v2963_v25, %v735_v22 }
 0x146   : > { %v744_v30 = vmul.f32 %v2971_v37, %v739_v24 }
 0x147   : > { %2357 = vrot.lane.b32.xlu1 %v2356_v23, %s2622_s10 }
 0x148   : > { %v611_v26 = vpop.permute.xlu1 %610  ;;  %v609_v27 = vpop.permute.xlu0 %608  ;;  %v2366_v33 = vpack.i.bf16 %v745_v29, %v744_v30 }
 0x149   : > { %v613_v55 = vsel %vm612_vm13, %v609_v27, %v611_v26  ;;  %v619_v63 = vmul.f32 %v2973_v38, %v611_v26  ;;  %v617_v16 = vmul.f32 %v2963_v25, %v609_v27 }
 0x14a   : > { %v618_v0 = vmul.f32 %v2971_v37, %v613_v55 }
 0x14b   : > { %833 = vrot.lane.b32.xlu1 %v827_v28, %s2622_s10  ;;  %s2640_s10 = smov 112  }
 0x14c   : > { %v653_v31 = vpop.permute.xlu1 %652  ;;  %v651_v32 = vpop.permute.xlu0 %650  ;;  %v2381_v9 = vpack.i.bf16 %v619_v63, %v618_v0 }
 0x14d   : > { %v655_v59 = vsel %vm654_vm14, %v651_v32, %v653_v31  ;;  %v661_v2 = vmul.f32 %v2973_v38, %v653_v31  ;;  %v659_v19 = vmul.f32 %v2963_v25, %v651_v32 }
 0x14e   : > { %v660_v3 = vmul.f32 %v2971_v37, %v655_v59 }
 0x14f   : > { %2367 = vrot.lane.b32.xlu1 %v2366_v33, %s2639_s13 }
 0x150   : > { %v527_v34 = vpop.permute.xlu1 %526  ;;  %v3014_v35 = vpop.permute.xlu0 %524  ;;  %v2386_v15 = vpack.i.bf16 %v661_v2, %v660_v3 }
 0x151   : > { %v529_v10 = vsel %vm528_vm15, %v3014_v35, %v527_v34  ;;  %v535_v21 = vmul.f32 %v2973_v38, %v527_v34 }
 0x152   : > { %v534_v22 = vmul.f32 %v2971_v37, %v529_v10 }
 0x154   : > { %v569_v36 = vpop.permute.xlu1 %568  ;;  %v3016_v39 = vpop.permute.xlu0 %566  ;;  %v2401_v32 = vpack.i.bf16 %v535_v21, %v534_v22 }
 0x155   : > { %v571_v17 = vsel %vm570_vm0, %v3016_v39, %v569_v36  ;;  %v577_v24 = vmul.f32 %v2973_v38, %v569_v36  ;;  %v533_v36 = vmul.f32 %v2963_v25, %v3014_v35 }
 0x156   : > { %v576_v26 = vmul.f32 %v2971_v37, %v571_v17 }
 0x158   : > { %v3018_v40 = vpop.permute.xlu1 %484  ;;  %v3020_v41 = vpop.permute.xlu0 %482  ;;  %v2406_v34 = vpack.i.bf16 %v577_v24, %v576_v26 }
 0x159   : > { %v487_v33 = vsel %vm486_vm1, %v3020_v41, %v3018_v40  ;;  %v491_v55 = vmul.f32 %v2963_v25, %v3020_v41 }
 0x15a   : > { %v492_v47 = vmul.f32 %v2971_v37, %v487_v33  ;;  %v1606_v33 = vld [vmem:[%s3383_s4] sm:$0xff] }
 0x15c   : > { %v3022_v43 = vpop.permute.xlu1 %1496  ;;  %v3024_v44 = vpop.permute.xlu0 %1494 }
 0x15d   : > { %v1502_v46 = vmul.f32 %v3024_v44, %v2971_v37  ;;  %v1498_v35 = vsel %vm780_vm9, %v3024_v44, %v3022_v43  ;;  %vm1006_vm9 = vcmask 449536  }
 0x15f   : > { %v2351_v49 = vpack.i.bf16 %v1502_v46, %v785_v45  ;;  %v493_v46 = vmul.f32 %v2973_v38, %v3018_v40 }
 0x160   : > { %v3031_v50 = vpop.permute.xlu1 %1416  ;;  %v3033_v51 = vpop.permute.xlu0 %1414 }
 0x161   : > { %v1418_v52 = vsel %vm696_vm12, %v3033_v51, %v3031_v50  ;;  %2352 = vrot.lane.b32.xlu0 %v2351_v49, %s2638_s24  ;;  %v575_v49 = vmul.f32 %v2963_v25, %v3016_v39  ;;  %v2416_v40 = vpack.i.bf16 %v493_v46, %v492_v47  ;;  %v1422_v39 = vmul.f32 %v3033_v51, %v2971_v37 }
 0x162   : > { %v1423_v53 = vmul.f32 %v1418_v52, %v2973_v38  ;;  %v1482_v52 = vld [vmem:[#allocation2 + $0x18] sm:$0xff]  ;;  %vm922_vm12 = vcmask 506880  }
 0x164   : > { %v3040_v56 = vpop.permute.xlu1 %1456  ;;  %v3042_v57 = vpop.permute.xlu0 %1454  ;;  %v2371_v1 = vpack.i.bf16 %v1423_v53, %v701_v58  ;;  %v1504_v53 = vmul.f32 %v3022_v43, %v1482_v52  ;;  %v1424_v58 = vmul.f32 %v1482_v52, %v3031_v50 }
 0x165   : > { %v1458_v60 = vsel %vm738_vm11, %v3042_v57, %v3040_v56  ;;  %2362 = vrot.lane.b32.xlu0 %v2361_v54, %s2640_s10  ;;  %v1503_v54 = vmul.f32 %v1498_v35, %v2973_v38  ;;  %v1464_v43 = vmul.f32 %v1482_v52, %v3040_v56  ;;  %v1462_v44 = vmul.f32 %v3042_v57, %v2971_v37 }
 0x166   : > { %v1463_v62 = vmul.f32 %v1458_v60, %v2973_v38  ;;  %vm880_vm11 = vcmask 515072  }
 0x167   : > { %v2431_v0 = vpack.i.bf16 %v1462_v44, %v1464_v43 }
 0x168   : > { %v3056_v4 = vpop.permute.xlu1 %1336  ;;  %v3058_v5 = vpop.permute.xlu0 %1334  ;;  %v2376_v6 = vpack.i.bf16 %v1463_v62, %v743_v61  ;;  %v2421_v61 = vpack.i.bf16 %v1504_v53, %v1503_v54  ;;  %v2426_v62 = vpack.i.bf16 %v1422_v39, %v1424_v58 }
 0x169   : > { %v1338_v7 = vsel %vm612_vm13, %v3058_v5, %v3056_v4  ;;  %2372 = vrot.lane.b32.xlu0 %v2371_v1, %s2640_s10  ;;  %v1344_v41 = vmul.f32 %v1482_v52, %v3056_v4  ;;  %v1342_v50 = vmul.f32 %v3058_v5, %v2971_v37  ;;  %vm797_vm13 = vcmask 900096  }
 0x16a   : > { %2377 = vrot.lane.b32.xlu1 %v2376_v6, %s2639_s13  ;;  %v1343_v8 = vmul.f32 %v1338_v7, %v2973_v38 }
 0x16b   : > { %v2436_v57 = vpack.i.bf16 %v1342_v50, %v1344_v41 }
 0x16c   : > { %v3068_v11 = vpop.permute.xlu1 %1376  ;;  %v3070_v14 = vpop.permute.xlu0 %1374  ;;  %v2391_v23 = vpack.i.bf16 %v1343_v8, %v617_v16 }
 0x16d   : > { %v1378_v18 = vsel %vm654_vm14, %v3070_v14, %v3068_v11  ;;  %2382 = vrot.lane.b32.xlu0 %v2381_v9, %s2641_s5  ;;  %v1384_v1 = vmul.f32 %v1482_v52, %v3068_v11  ;;  %v1382_v56 = vmul.f32 %v3070_v14, %v2971_v37  ;;  %vm713_vm14 = vcmask 916480  }
 0x16e   : > { %v1383_v20 = vmul.f32 %v1378_v18, %v2973_v38  ;;  %2387 = vrot.lane.b32.xlu1 %v2386_v15, %s2642_s19 }
 0x16f   : > { %v2441_v5 = vpack.i.bf16 %v1382_v56, %v1384_v1 }
 0x170   : > { %v1257_v27 = vpop.permute.xlu1 %1256  ;;  %v1255_v28 = vpop.permute.xlu0 %1254  ;;  %v2396_v29 = vpack.i.bf16 %v1383_v20, %v659_v19 }
 0x171   : > { %v1258_v30 = vsel %vm528_vm15, %v1255_v28, %v1257_v27  ;;  %2392 = vrot.lane.b32.xlu0 %v2391_v23, %s2641_s5  ;;  %v1264_v2 = vmul.f32 %v1482_v52, %v1257_v27  ;;  %v1262_v3 = vmul.f32 %v1255_v28, %v2971_v37  ;;  %v2475_v27 = vld [vmem:[%s3382_s3 + $0x4] ss:$8 sps:$4 sm:$0xff]   ;;  %v2478_v28 = vld [vmem:[%s3382_s3 + $0x14] ss:$8 sps:$4 sm:$0xff]   ;;  %vm755_vm15 = vcmask 908288  }
 0x172   : > { %2397 = vrot.lane.b32.xlu1 %v2396_v29, %s2642_s19  ;;  %v1263_v31 = vmul.f32 %v1258_v30, %v2973_v38  ;;  %2163 = vmatprep.mubr.msk.bf16.mxu0 %vm1648_vm4, %v2475_v27  ;;  %v2646_v30 = vmov 0  }
 0x173   : > { %v2446_v8 = vpack.i.bf16 %v1262_v3, %v1264_v2  ;;  %2164 = vmatprep.mubr.msk.bf16.mxu1 %vm1648_vm4, %v2478_v28  ;;  %2472 = vset.pattern.permute.xlu1 %v2646_v30  ;;  %vm1655_vm4 = vcmask 1043456  }
 0x174   : > { %v1297_v42 = vpop.permute.xlu1 %1296  ;;  %v1295_v45 = vpop.permute.xlu0 %1294  ;;  %v2411_v48 = vpack.i.bf16 %v1263_v31, %v533_v36  ;;  %2471 = vset.pattern.permute.xlu0 %v2646_v30 }
 0x175   : > { %2402 = vrot.lane.b32.xlu0 %v2401_v32, %s2643_s9  ;;  %v1298_v4 = vsel %vm570_vm0, %v1295_v45, %v1297_v42  ;;  %v1304_v6 = vmul.f32 %v1482_v52, %v1297_v42  ;;  %v1302_v18 = vmul.f32 %v1295_v45, %v2971_v37  ;;  %v1609_v42 = vld [vmem:[%s3383_s4 + $0x18] sm:$0xff]  ;;  %v1608_v45 = vld [vmem:[%s3383_s4 + $0x10] sm:$0xff]  ;;  %vm671_vm0 = vcmask 965632  }
 0x176   : > { %2407 = vrot.lane.b32.xlu1 %v2406_v34, %s2644_s27  ;;  %v1303_v7 = vmul.f32 %v1298_v4, %v2973_v38  ;;  %v1607_v34 = vld [vmem:[%s3383_s4 + $0x8] sm:$0xff] }
 0x178   : > { %v1217_v59 = vpop.permute.xlu1 %1216  ;;  %v1215_v60 = vpop.permute.xlu0 %1214  ;;  %v2451_v16 = vpack.i.bf16 %v1304_v6, %v1303_v7 }
 0x179   : > { %2412 = vrot.lane.b32.xlu0 %v2411_v48, %s2643_s9  ;;  %v1218_v9 = vsel %vm486_vm1, %v1215_v60, %v1217_v59  ;;  %v1224_v14 = vmul.f32 %v1482_v52, %v1217_v59  ;;  %v1222_v26 = vmul.f32 %v1215_v60, %v2971_v37  ;;  %vm545_vm1 = vcmask 1031168  }
 0x17a   : > { %581 = vrot.lane.b32.xlu1 %v575_v49, %s2644_s27  ;;  %v1223_v15 = vmul.f32 %v1218_v9, %v2973_v38 }
 0x17c   : > { %v1114_v51 = vpop.permute.xlu1 %1113  ;;  %v1112_v63 = vpop.permute.xlu0 %1111  ;;  %v2456_v24 = vpack.i.bf16 %v1224_v14, %v1223_v15 }
 0x17d   : > { %2417 = vrot.lane.b32.xlu0 %v2416_v40, %s2645_s11  ;;  %v1116_v19 = vsel %vm1115_vm3, %v1112_v63, %v1114_v51  ;;  %v1122_v22 = vmul.f32 %v1114_v51, %v2973_v38  ;;  %v1120_v31 = vmul.f32 %v1112_v63, %v2963_v25  ;;  %vm503_vm3 = vcmask 1039360  }
 0x17e   : > { %497 = vrot.lane.b32.xlu1 %v491_v55, %s2645_s11  ;;  %v1121_v23 = vmul.f32 %v1116_v19, %v2971_v37 }
 0x180   : > { %v1156_v10 = vpop.permute.xlu1 %1155  ;;  %v1154_v11 = vpop.permute.xlu0 %1153 }
 0x181   : > { %2422 = vrot.lane.b32.xlu0 %v2421_v61, %s2638_s24  ;;  %v1158_v17 = vsel %vm1157_vm2, %v1154_v11, %v1156_v10  ;;  %v1164_v20 = vmul.f32 %v1156_v10, %v2973_v38  ;;  %v2461_v38 = vpack.i.bf16 %v1122_v22, %v1121_v23  ;;  %v1162_v32 = vmul.f32 %v1154_v11, %v2963_v25  ;;  %s1956_s24 = scalar_lea.sflag [#allocation6], %s3429_s6 }
 0x182   : > { %2427 = vrot.lane.b32.xlu1 %v2426_v62, %s2640_s10  ;;  %v1163_v21 = vmul.f32 %v1158_v17, %v2971_v37  ;;  %vm587_vm2 = vcmask 982016   ;;  %s2649_s10 = smov [#allocation5]  }
 0x184   : > { %v2466_v29 = vpack.i.bf16 %v1164_v20, %v1163_v21 }
 0x185   : > { %2432 = vrot.lane.b32.xlu0 %v2431_v0, %s2639_s13 }
 0x186   : > { %2437 = vrot.lane.b32.xlu1 %v2436_v57, %s2641_s5  ;;  %s2523_s5 = sshll.u32 %s2649_s10, 4  ;;  %s2524_s5 = int_to_ptr.vmem [resolvable:$false] %s2523_s5 }
 0x189   : > { %2442 = vrot.lane.b32.xlu0 %v2441_v5, %s2642_s19  ;;  %s2525_s19 = scalar_lea.vmem %s2524_s5, 512 }
 0x18a   : > { %2447 = vrot.lane.b32.xlu1 %v2446_v8, %s2643_s9 }
 0x18d   : > { %2452 = vrot.lane.b32.xlu0 %v2451_v16, %s2644_s27 }
 0x18e   : > { %1308 = vrot.lane.b32.xlu1 %v1302_v18, %s2644_s27 }
 0x191   : > { %2457 = vrot.lane.b32.xlu0 %v2456_v24, %s2645_s11 }
 0x192   : > { %1228 = vrot.lane.b32.xlu1 %v1222_v26, %s2645_s11 }
 0x195   : > { %2462 = vrot.lane.b32.xlu0 %v2461_v38, %s2647_s30  ;;  %v1043_v36 = vpop.permute.xlu0 %1042  ;;  %v1085_v46 = vpop.permute.xlu1 %1084 }
 0x196   : > { %2467 = vrot.lane.b32.xlu1 %v2466_v29, %s2648_s21 }
 0x199   : > { %1126 = vrot.lane.b32.xlu0 %v1120_v31, %s2647_s30  ;;  %s3422_s30 = sld [smem:[#allocation20_spill]] }
 0x19a   : > { %1168 = vrot.lane.b32.xlu1 %v1162_v32, %s2648_s21 }
 0x19d   : > { %1612 = vperm.xlu0 %2471, %v1606_v33   ;;  %v959_v47 = vpop.permute.xlu0 %958 }
 0x19e   : > { %1617 = vperm.xlu1 %2472, %v1607_v34  }
 0x19f   : > { %s3423_s21 = smov %s3422_s30 }
 0x1a1   : > { %1627 = vperm.xlu0 %2471, %v1609_v42   ;;  %v1001_v48 = vpop.permute.xlu1 %1000 }
 0x1a2   : > { %1622 = vperm.xlu1 %2472, %v1608_v45  }
 0x1a5   : > { %v875_v49 = vpop.permute.xlu0 %874 }
 0x1a9   : > { %v917_v52 = vpop.permute.xlu1 %916  ;;  %v2318_v35 = vpop.permute.xlu0 %2317 }
 0x1aa   : > { %v2320_v53 = vunpack.i.h.bf16 %v2318_v35  ;;  %v2319_v54 = vunpack.i.l.bf16 %v2318_v35 }
 0x1ac   : > { %v1050_v43 = vsel %vm1048_vm5, %v2319_v54, %v2320_v53  ;;  %v1049_v61 = vsel %vm1048_vm5, %v1043_v36, %v2319_v54  ;;  %vm1132_vm5 = vcmask 384000  }
 0x1ad   : > { %v2323_v40 = vpop.permute.xlu1 %2322  ;;  %v2328_v55 = vpop.permute.xlu0 %2327 }
 0x1ae   : > { %v2325_v58 = vunpack.i.h.bf16 %v2323_v40  ;;  %v2324_v39 = vunpack.i.l.bf16 %v2323_v40  ;;  %v2330_v59 = vunpack.i.h.bf16 %v2328_v55  ;;  %v2329_v60 = vunpack.i.l.bf16 %v2328_v55 }
 0x1b0   : > { %v1092_v44 = vsel %vm1090_vm7, %v2324_v39, %v2325_v58  ;;  %v1091_v62 = vsel %vm1090_vm7, %v1085_v46, %v2324_v39  ;;  %v966_v2 = vsel %vm964_vm8, %v2329_v60, %v2330_v59  ;;  %v965_v4 = vsel %vm964_vm8, %v959_v47, %v2329_v60 }
 0x1b1   : > { %v2333_v41 = vpop.permute.xlu1 %2332  ;;  %v2338_v50 = vpop.permute.xlu0 %2337  ;;  %v1593_v51 = vpack.c.bf16 %v1092_v44, %v1050_v43  ;;  %v1592_v63 = vpack.c.bf16 %v1091_v62, %v1049_v61  ;;  %vm1174_vm7 = vcmask 375808  }
 0x1b2   : > { %v2335_v0 = vunpack.i.h.bf16 %v2333_v41  ;;  %v2334_v1 = vunpack.i.l.bf16 %v2333_v41  ;;  %v2340_v56 = vunpack.i.h.bf16 %v2338_v50  ;;  %v2339_v57 = vunpack.i.l.bf16 %v2338_v50 }
 0x1b3   : > { %1662 = vmatprep.subr.bf16.mxu0 %v1593_v51  ;;  %2179 = vmatprep.subr.bf16.mxu1 %v1593_v51 }
 0x1b4   : > { %1663 = vmatpush1.bf16.msra.mxu0 %v1592_v63  ;;  %2193 = vmatpush1.bf16.msra.mxu1 %v1592_v63  ;;  %v1008_v3 = vsel %vm1006_vm9, %v2334_v1, %v2335_v0  ;;  %v1007_v5 = vsel %vm1006_vm9, %v1001_v48, %v2334_v1  ;;  %v882_v14 = vsel %vm880_vm11, %v2339_v57, %v2340_v56 }
 0x1b5   : > { %v2343_v6 = vpop.permute.xlu1 %2342  ;;  %v2348_v7 = vpop.permute.xlu0 %2347  ;;  %v1591_v8 = vpack.c.bf16 %v1008_v3, %v966_v2  ;;  %v1590_v9 = vpack.c.bf16 %v1007_v5, %v965_v4  ;;  %v881_v15 = vsel %vm880_vm11, %v875_v49, %v2339_v57 }
 0x1b6   : > { %v2345_v10 = vunpack.i.h.bf16 %v2343_v6  ;;  %v2344_v11 = vunpack.i.l.bf16 %v2343_v6  ;;  %v2350_v16 = vunpack.i.h.bf16 %v2348_v7  ;;  %v2349_v17 = vunpack.i.l.bf16 %v2348_v7 }
 0x1b7   : > { %1664 = vmatprep.subr.bf16.mxu0 %v1591_v8  ;;  %2180 = vmatprep.subr.bf16.mxu1 %v1591_v8  ;;  %v452_v8 = vld [vmem:[%s3386_s7] ss:$8 sm:$0x3] }
 0x1b8   : > { %1665 = vmatpush1.bf16.msra.mxu0 %v1590_v9  ;;  %2194 = vmatpush1.bf16.msra.mxu1 %v1590_v9  ;;  %v924_v18 = vsel %vm922_vm12, %v2344_v11, %v2345_v10  ;;  %v923_v19 = vsel %vm922_vm12, %v917_v52, %v2344_v11  ;;  %v799_v26 = vsel %vm797_vm13, %v2349_v17, %v2350_v16 }
 0x1b9   : > { %v2358_v20 = vpop.permute.xlu1 %2357  ;;  %v1589_v21 = vpack.c.bf16 %v924_v18, %v882_v14  ;;  %v1588_v22 = vpack.c.bf16 %v923_v19, %v881_v15  ;;  %v457_v16 = vrot.slane %v452_v8, %v2804_v12 }
 0x1ba   : > { %v2360_v23 = vunpack.i.h.bf16 %v2358_v20  ;;  %v2359_v24 = vunpack.i.l.bf16 %v2358_v20 }
 0x1bb   : > { %1666 = vmatprep.subr.bf16.mxu0 %v1589_v21  ;;  %2181 = vmatprep.subr.bf16.mxu1 %v1589_v21 }
 0x1bc   : > { %1667 = vmatpush1.bf16.msra.mxu0 %v1588_v22  ;;  %2195 = vmatpush1.bf16.msra.mxu1 %v1588_v22  ;;  %v840_v27 = vsel %vm822_vm10, %v2359_v24, %v2360_v23 }
 0x1bd   : > { %v1587_v28 = vpack.c.bf16 %v840_v27, %v799_v26  ;;  %v834_v29 = vpop.permute.xlu1 %833  ;;  %v464_v26 = vmul.f32 %v2963_v25, %v457_v16 }
 0x1be   : > { %v839_v32 = vsel %vm822_vm10, %v834_v29, %v2359_v24  ;;  %vm629_vm10 = vcmask 973824  }
 0x1bf   : > { %1668 = vmatprep.subr.bf16.mxu0 %v1587_v28  ;;  %2182 = vmatprep.subr.bf16.mxu1 %v1587_v28 }
 0x1c1   : > { %v2368_v38 = vpop.permute.xlu1 %2367 }
 0x1c2   : > { %v2370_v33 = vunpack.i.h.bf16 %v2368_v38  ;;  %v2369_v34 = vunpack.i.l.bf16 %v2368_v38 }
 0x1c4   : > { %v757_v49 = vsel %vm755_vm15, %v2369_v34, %v2370_v33 }
 0x1d3   : > { %v3170_v30 = vpop.permute.xlu0 %2352 }
 0x1d4   : > { %v2354_v31 = vunpack.i.l.bf16 %v3170_v30 }
 0x1d6   : > { %v798_v36 = vsel %vm797_vm13, %v2354_v31, %v2349_v17  ;;  %v461_v17 = vrot.slane %v452_v8, %v2806_v13 }
 0x1d7   : > { %v2363_v42 = vpop.permute.xlu0 %2362  ;;  %v1586_v45 = vpack.c.bf16 %v839_v32, %v798_v36 }
 0x1d8   : > { %v2365_v46 = vunpack.i.h.bf16 %v2363_v42  ;;  %v2364_v47 = vunpack.i.l.bf16 %v2363_v42  ;;  %v465_v27 = vmul.f32 %v2971_v37, %v461_v17  ;;  %v2355_v42 = vunpack.i.h.bf16 %v3170_v30 }
 0x1d9   : > { %1669 = vmatpush1.bf16.msra.mxu0 %v1586_v45  ;;  %2196 = vmatpush1.bf16.msra.mxu1 %v1586_v45 }
 0x1da   : > { %v715_v48 = vsel %vm713_vm14, %v2364_v47, %v2365_v46 }
 0x1db   : > { %v3177_v52 = vpop.permute.xlu0 %2372  ;;  %v1585_v35 = vpack.c.bf16 %v757_v49, %v715_v48 }
 0x1dc   : > { %v2374_v53 = vunpack.i.l.bf16 %v3177_v52  ;;  %v3180_v54 = vpop.permute.xlu1 %2377 }
 0x1dd   : > { %v2379_v40 = vunpack.i.l.bf16 %v3180_v54  ;;  %1670 = vmatprep.subr.bf16.mxu0 %v1585_v35  ;;  %2183 = vmatprep.subr.bf16.mxu1 %v1585_v35  ;;  %v2375_v35 = vunpack.i.h.bf16 %v3177_v52  ;;  %v2380_v30 = vunpack.i.h.bf16 %v3180_v54  ;;  %v2149_v54 = vld [vmem:[%s3386_s7 + $0x22] ss:$8 sm:$0x3] }
 0x1de   : > { %v714_v55 = vsel %vm713_vm14, %v2374_v53, %v2364_v47  ;;  %v1193_v17 = vrot.slane %v2149_v54, %v2806_v13 }
 0x1df   : > { %v2383_v58 = vpop.permute.xlu0 %2382  ;;  %v756_v39 = vsel %vm755_vm15, %v2379_v40, %v2369_v34 }
 0x1e0   : > { %v2385_v59 = vunpack.i.h.bf16 %v2383_v58  ;;  %v2384_v60 = vunpack.i.l.bf16 %v2383_v58  ;;  %v2388_v43 = vpop.permute.xlu1 %2387  ;;  %v1584_v44 = vpack.c.bf16 %v756_v39, %v714_v55 }
 0x1e1   : > { %v2390_v61 = vunpack.i.h.bf16 %v2388_v43  ;;  %v2389_v62 = vunpack.i.l.bf16 %v2388_v43 }
 0x1e2   : > { %1671 = vmatpush1.bf16.msra.mxu0 %v1584_v44  ;;  %2197 = vmatpush1.bf16.msra.mxu1 %v1584_v44  ;;  %v631_v41 = vsel %vm629_vm10, %v2384_v60, %v2385_v59 }
 0x1e3   : > { %v3186_v50 = vpop.permute.xlu0 %2392  ;;  %v673_v51 = vsel %vm671_vm0, %v2389_v62, %v2390_v61 }
 0x1e4   : > { %v2394_v63 = vunpack.i.l.bf16 %v3186_v50  ;;  %v3190_v0 = vpop.permute.xlu1 %2397  ;;  %v1583_v1 = vpack.c.bf16 %v673_v51, %v631_v41  ;;  %v2395_v51 = vunpack.i.h.bf16 %v3186_v50 }
 0x1e5   : > { %v2399_v56 = vunpack.i.l.bf16 %v3190_v0 }
 0x1e6   : > { %1672 = vmatprep.subr.bf16.mxu0 %v1583_v1  ;;  %2184 = vmatprep.subr.bf16.mxu1 %v1583_v1  ;;  %v630_v57 = vsel %vm629_vm10, %v2394_v63, %v2384_v60 }
 0x1e7   : > { %v2403_v2 = vpop.permute.xlu0 %2402  ;;  %v672_v3 = vsel %vm671_vm0, %v2399_v56, %v2389_v62 }
 0x1e8   : > { %v2405_v4 = vunpack.i.h.bf16 %v2403_v2  ;;  %v2404_v5 = vunpack.i.l.bf16 %v2403_v2  ;;  %v2408_v6 = vpop.permute.xlu1 %2407  ;;  %v1582_v7 = vpack.c.bf16 %v672_v3, %v630_v57  ;;  %v2400_v57 = vunpack.i.h.bf16 %v3190_v0 }
 0x1e9   : > { %v2410_v9 = vunpack.i.h.bf16 %v2408_v6  ;;  %v2409_v10 = vunpack.i.l.bf16 %v2408_v6 }
 0x1ea   : > { %1673 = vmatpush1.bf16.msra.mxu0 %v1582_v7  ;;  %2198 = vmatpush1.bf16.msra.mxu1 %v1582_v7  ;;  %v547_v11 = vsel %vm545_vm1, %v2404_v5, %v2405_v4  ;;  %v1189_v7 = vrot.slane %v2149_v54, %v2804_v12  ;;  %v1181_v12 = vld [vmem:[#allocation2 + $0x8] sm:$0xff] }
 0x1eb   : > { %v3199_v14 = vpop.permute.xlu0 %2412  ;;  %v589_v15 = vsel %vm587_vm2, %v2409_v10, %v2410_v9 }
 0x1ec   : > { %v2414_v18 = vunpack.i.l.bf16 %v3199_v14  ;;  %v582_v19 = vpop.permute.xlu1 %581  ;;  %v1581_v20 = vpack.c.bf16 %v589_v15, %v547_v11  ;;  %v2415_v0 = vunpack.i.h.bf16 %v3199_v14  ;;  %v1196_v13 = vmul.f32 %v1189_v7, %v1181_v12 }
 0x1ed   : > { %v588_v21 = vsel %vm587_vm2, %v582_v19, %v2409_v10 }
 0x1ee   : > { %v546_v22 = vsel %vm545_vm1, %v2414_v18, %v2404_v5  ;;  %1674 = vmatprep.subr.bf16.mxu0 %v1581_v20  ;;  %2185 = vmatprep.subr.bf16.mxu1 %v1581_v20 }
 0x1ef   : > { %v1580_v23 = vpack.c.bf16 %v588_v21, %v546_v22  ;;  %v2418_v24 = vpop.permute.xlu0 %2417  ;;  %v1182_v21 = vld [vmem:[#allocation2 + $0x10] sm:$0xff] }
 0x1f0   : > { %v2420_v28 = vunpack.i.h.bf16 %v2418_v24  ;;  %v2419_v29 = vunpack.i.l.bf16 %v2418_v24  ;;  %v498_v38 = vpop.permute.xlu1 %497 }
 0x1f1   : > { %1675 = vmatpush1.bf16.msra.mxu0 %v1580_v23  ;;  %2199 = vmatpush1.bf16.msra.mxu1 %v1580_v23 }
 0x1f2   : > { %v504_v31 = vsel %vm503_vm3, %v498_v38, %v2419_v29  ;;  %v505_v32 = vsel %vm503_vm3, %v2419_v29, %v2420_v28  ;;  %v1197_v29 = vmul.f32 %v1193_v17, %v1182_v21  ;;  %v1788_v17 = vld [vmem:[%s3423_s21] sm:$0xff] }
 0x1f3   : > { %v1578_v33 = vpack.c.bf16 %v504_v31, %v464_v26  ;;  %v2423_v34 = vpop.permute.xlu0 %2422  ;;  %v1579_v36 = vpack.c.bf16 %v505_v32, %v465_v27 }
 0x1f4   : > { %v2425_v45 = vunpack.i.h.bf16 %v2423_v34  ;;  %v2424_v46 = vunpack.i.l.bf16 %v2423_v34  ;;  %v2428_v47 = vpop.permute.xlu1 %2427 }
 0x1f5   : > { %v2429_v25 = vunpack.i.l.bf16 %v2428_v47  ;;  %1676 = vmatprep.subr.bf16.mxu0 %v1579_v36  ;;  %2186 = vmatprep.subr.bf16.mxu1 %v1579_v36  ;;  %v2430_v48 = vunpack.i.h.bf16 %v2428_v47 }
 0x1f6   : > { %v1515_v37 = vsel %vm797_vm13, %v2424_v46, %v2425_v45  ;;  %1677 = vmatpush1.bf16.msra.mxu0 %v1578_v33  ;;  %2200 = vmatpush1.bf16.msra.mxu1 %v1578_v33  ;;  %v1514_v49 = vsel %vm797_vm13, %v2355_v42, %v2424_v46 }
 0x1f7   : > { %v1605_v53 = vpack.c.bf16 %v1515_v37, %v1515_v37  ;;  %v2433_v40 = vpop.permute.xlu0 %2432  ;;  %v1604_v55 = vpack.c.bf16 %v1514_v49, %v1514_v49  ;;  %v1435_v44 = vsel %vm713_vm14, %v2375_v35, %v2429_v25  ;;  %v1434_v52 = vsel %vm713_vm14, %v2430_v48, %v2375_v35 }
 0x1f8   : > { %v2435_v58 = vunpack.i.h.bf16 %v2433_v40  ;;  %v2434_v39 = vunpack.i.l.bf16 %v2433_v40  ;;  %v2438_v59 = vpop.permute.xlu1 %2437 }
 0x1f9   : > { %v2439_v60 = vunpack.i.l.bf16 %v2438_v59  ;;  %2162 = vmatprep.subr.msk.bf16.mxu0 %vm1655_vm4, %v1605_v53  ;;  %2187 = vmatprep.subr.msk.bf16.mxu1 %vm1655_vm4, %v1605_v53  ;;  %v1657_v43 = vsel %vm1655_vm4, %v1604_v55, 0  ;;  %v2440_v61 = vunpack.i.h.bf16 %v2438_v59  ;;  %v2473_v59 = vld [vmem:[%s3382_s3] ss:$8 sps:$4 sm:$0xff]  }
 0x1fa   : > { %1683 = vmatpush2.bf16.msra.mxu0 %v1657_v43  ;;  %2201 = vmatpush2.bf16.msra.mxu1 %v1657_v43  ;;  %v1475_v62 = vsel %vm755_vm15, %v2380_v30, %v2434_v39  ;;  %v1474_v41 = vsel %vm755_vm15, %v2435_v58, %v2380_v30 }
 0x1fb   : > { %v2443_v63 = vpop.permute.xlu0 %2442  ;;  %v1603_v1 = vpack.c.bf16 %v1475_v62, %v1435_v44  ;;  %v1602_v56 = vpack.c.bf16 %v1474_v41, %v1434_v52  ;;  %v1355_v6 = vsel %vm629_vm10, %v2395_v51, %v2439_v60  ;;  %v1354_v9 = vsel %vm629_vm10, %v2440_v61, %v2395_v51  ;;  %v2476_v60 = vld [vmem:[%s3382_s3 + $0x10] ss:$8 sps:$4 sm:$0xff]  }
 0x1fc   : > { %v2445_v2 = vunpack.i.h.bf16 %v2443_v63  ;;  %v2444_v3 = vunpack.i.l.bf16 %v2443_v63  ;;  %v2448_v4 = vpop.permute.xlu1 %2447 }
 0x1fd   : > { %v2450_v5 = vunpack.i.h.bf16 %v2448_v4  ;;  %1684 = vmatprep.subr.bf16.mxu0 %v1603_v1  ;;  %2188 = vmatprep.subr.bf16.mxu1 %v1603_v1  ;;  %v2449_v8 = vunpack.i.l.bf16 %v2448_v4 }
 0x1fe   : > { %1685 = vmatpush2.bf16.msra.mxu0 %v1602_v56  ;;  %2202 = vmatpush2.bf16.msra.mxu1 %v1602_v56  ;;  %v1395_v50 = vsel %vm671_vm0, %v2400_v57, %v2444_v3  ;;  %v1394_v10 = vsel %vm671_vm0, %v2445_v2, %v2400_v57 }
 0x1ff   : > { %v2453_v11 = vpop.permute.xlu0 %2452  ;;  %v1601_v15 = vpack.c.bf16 %v1395_v50, %v1355_v6  ;;  %v1600_v16 = vpack.c.bf16 %v1394_v10, %v1354_v9  ;;  %v1274_v22 = vsel %vm545_vm1, %v2450_v5, %v2415_v0  ;;  %v1275_v14 = vsel %vm545_vm1, %v2415_v0, %v2449_v8 }
 0x200   : > { %v2455_v18 = vunpack.i.h.bf16 %v2453_v11  ;;  %v2454_v19 = vunpack.i.l.bf16 %v2453_v11  ;;  %v1309_v20 = vpop.permute.xlu1 %1308 }
 0x201   : > { %1686 = vmatprep.subr.bf16.mxu0 %v1601_v15  ;;  %2189 = vmatprep.subr.bf16.mxu1 %v1601_v15  ;;  %v1789_v15 = vld [vmem:[%s3422_s30 + $0x8] sm:$0xff]  ;;  %s1973_s30 = sshll.u32 %s2792_s20, 4  ;;  %s1974_s30 = int_to_ptr.vmem [resolvable:$true] %s1973_s30 }
 0x202   : > { %v1314_v23 = vsel %vm587_vm2, %v1309_v20, %v2454_v19  ;;  %1687 = vmatpush2.bf16.msra.mxu0 %v1600_v16  ;;  %2203 = vmatpush2.bf16.msra.mxu1 %v1600_v16  ;;  %v1315_v24 = vsel %vm587_vm2, %v2454_v19, %v2455_v18  ;;  %v1820_v16 = vld [vmem:[%s3424_s28] sm:$0xff]  ;;  %v1821_v18 = vld [vmem:[%s3424_s28 + $0x8] sm:$0xff]  ;;  %v1791_v19 = vld [vmem:[%s3423_s21 + $0x18] sm:$0xff]  ;;  %s2519_s13 = scalar_lea.vmem %s1974_s30, 256  ;;  %p2526_p5 = scmp.lt.s32.totalorder %s1974_s30, %s2524_s5 }
 0x203   : > { %v1598_v26 = vpack.c.bf16 %v1314_v23, %v1274_v22  ;;  %v2458_v27 = vpop.permute.xlu0 %2457  ;;  %v1599_v28 = vpack.c.bf16 %v1315_v24, %v1275_v14  ;;  %v1823_v20 = vld [vmem:[%s3424_s28 + $0x18] sm:$0xff]  ;;  %p2520_p1 = scmp.ne.s32.totalorder %s1974_s30, %s2519_s13  ;;  %p2527_p6 = scmp.lt.s32.totalorder %s2525_s19, %s2519_s13 }
 0x204   : > { %v2460_v38 = vunpack.i.h.bf16 %v2458_v27  ;;  %v2459_v31 = vunpack.i.l.bf16 %v2458_v27  ;;  %v1229_v32 = vpop.permute.xlu1 %1228 }
 0x205   : > { %1688 = vmatprep.subr.bf16.mxu0 %v1599_v28  ;;  %2190 = vmatprep.subr.bf16.mxu1 %v1599_v28  ;;  %v1790_v28 = vld [vmem:[%s3423_s21 + $0x10] sm:$0xff]  ;;  %p2521_p2 = pnand %p2520_p1, %p2749_p3  ;;  %p2528_p7 = por %p2527_p6, %p2526_p5 }
 0x206   : > { %v1234_v33 = vsel %vm503_vm3, %v1229_v32, %v2459_v31  ;;  %1689 = vmatpush2.bf16.msra.mxu0 %v1598_v26  ;;  %2204 = vmatpush2.bf16.msra.mxu1 %v1598_v26  ;;  %v1235_v34 = vsel %vm503_vm3, %v2459_v31, %v2460_v38  ;;  %v1822_v32 = vld [vmem:[%s3424_s28 + $0x10] sm:$0xff] }
 0x207   : > { %v1596_v36 = vpack.c.bf16 %v1234_v33, %v1196_v13  ;;  %v2463_v42 = vpop.permute.xlu0 %2462  ;;  %v1597_v45 = vpack.c.bf16 %v1235_v34, %v1197_v29  ;;  %p2522_p4 = pneg %p2521_p2 }
 0x208   : > { %v2465_v46 = vunpack.i.h.bf16 %v2463_v42  ;;  %v2464_v47 = vunpack.i.l.bf16 %v2463_v42  ;;  %v2468_v25 = vpop.permute.xlu1 %2467 }
 0x209   : > { %v2470_v37 = vunpack.i.h.bf16 %v2468_v25  ;;  %v2469_v48 = vunpack.i.l.bf16 %v2468_v25  ;;  %1690 = vmatprep.subr.bf16.mxu0 %v1597_v45  ;;  %2191 = vmatprep.subr.bf16.mxu1 %v1597_v45  ;;  %p2529_p8 = pnand %p2528_p7, %p2522_p4 }
 0x20a   : > { %1691 = vmatpush2.bf16.msra.mxu0 %v1596_v36  ;;  %2205 = vmatpush2.bf16.msra.mxu1 %v1596_v36  ;;  %v1134_v49 = vsel %vm1132_vm5, %v2464_v47, %v2465_v46 }
 0x20b   : > { %v1127_v35 = vpop.permute.xlu0 %1126  ;;  %v1176_v53 = vsel %vm1174_vm7, %v2469_v48, %v2470_v37 }
 0x20c   : > { %v1133_v40 = vsel %vm1132_vm5, %v1127_v35, %v2464_v47  ;;  %v1169_v55 = vpop.permute.xlu1 %1168  ;;  %v1595_v30 = vpack.c.bf16 %v1176_v53, %v1134_v49 }
 0x20d   : > { %v1175_v58 = vsel %vm1174_vm7, %v1169_v55, %v2469_v48 }
 0x20e   : > { %v1594_v39 = vpack.c.bf16 %v1175_v58, %v1133_v40  ;;  %1692 = vmatprep.subr.bf16.mxu0 %v1595_v30  ;;  %2192 = vmatprep.subr.bf16.mxu1 %v1595_v30 }
 0x210   : > { %1693 = vmatpush2.bf16.msra.mxu0 %v1594_v39  ;;  %2206 = vmatpush2.bf16.msra.mxu1 %v1594_v39 }
 0x213   : > { %1695 = vmatmul.mubr.bf16.vlgmr.msra.gmra.mxu0 %v2473_v59  ;;  %1705 = vmatmul.mubr.bf16.vlgmr.msra.gmra.mxu1 %v2476_v60 }
 0x218   : > { %v1613_v52 = vpop.permute.xlu0 %1612 }
 0x219   : > { %v1618_v43 = vpop.permute.xlu1 %1617 }
 0x21c   : > { %v1628_v22 = vpop.permute.xlu0 %1627 }
 0x21d   : > { %v1623_v44 = vpop.permute.xlu1 %1622 }
 0x2d3   : > { %v1696_v61 = vpop.f32.mrf.mxu0  ;;  %v1706_v62 = vpop.f32.mrf.mxu1 }
 0x2d4   : > { %v3244_v41 = vadd.f32 %v1706_v62, %v1623_v44  ;;  %v3250_v56 = vadd.f32 %v1696_v61, %v1613_v52 }
 0x2d5   : > { %v1698_v54 = vpop.f32.mrf.mxu0  ;;  %v1708_v51 = vpop.f32.mrf.mxu1 }
 0x2d6   : > { %v3246_v63 = vadd.f32 %v1698_v54, %v1613_v52  ;;  %v3248_v1 = vadd.f32 %v1708_v51, %v1623_v44  ;;  %v1732_v5 = vmul.f32 %v3250_v56, %v3250_v56  ;;  %v1736_v7 = vmul.f32 %v3244_v41, %v3244_v41 }
 0x2d7   : > { %v1700_v4 = vpop.f32.mrf.mxu0  ;;  %v1710_v12 = vpop.f32.mrf.mxu1 }
 0x2d8   : > { %v1733_v57 = vmul.f32 %v3246_v63, %v3246_v63  ;;  %v1721_v2 = vadd.f32 %v3248_v1, %v3244_v41  ;;  %v1715_v3 = vadd.f32 %v3246_v63, %v3250_v56  ;;  %v1737_v6 = vmul.f32 %v3248_v1, %v3248_v1 }
 0x2d9   : > { %v1702_v50 = vpop.f32.mrf.mxu0  ;;  %v3266_v0 = vadd.f32 %v1700_v4, %v1618_v43  ;;  %v1712_v21 = vpop.f32.mrf.mxu1  ;;  %v3290_v14 = vadd.f32 %v1710_v12, %v1628_v22 }
 0x2da   : > { %1722 = vadd.xlane.f32.xlu0 %v1721_v2  ;;  %1716 = vadd.xlane.f32.xlu1 %v1715_v3  ;;  %v1740_v8 = vadd.f32 %v1733_v57, %v1732_v5  ;;  %v1746_v9 = vadd.f32 %v1737_v6, %v1736_v7  ;;  %v3264_v10 = vadd.f32 %v1702_v50, %v1618_v43 }
 0x2db   : > { %v3288_v23 = vadd.f32 %v1712_v21, %v1628_v22  ;;  %v1734_v27 = vmul.f32 %v3266_v0, %v3266_v0  ;;  %v1738_v38 = vmul.f32 %v3290_v14, %v3290_v14 }
 0x2dc   : > { %v1718_v11 = vadd.f32 %v3264_v10, %v3266_v0  ;;  %v1735_v24 = vmul.f32 %v3264_v10, %v3264_v10 }
 0x2dd   : > { %v1724_v26 = vadd.f32 %v3288_v23, %v3290_v14  ;;  %v1739_v29 = vmul.f32 %v3288_v23, %v3288_v23 }
 0x2de   : > { %1741 = vadd.xlane.f32.xlu0 %v1740_v8  ;;  %v1743_v13 = vadd.f32 %v1735_v24, %v1734_v27  ;;  %v1862_v27 = vld [vmem:[%s2785_s26 + $0x10] sm:$0xff] }
 0x2df   : > { %v1749_v31 = vadd.f32 %v1739_v29, %v1738_v38 }
 0x2e2   : > { %1747 = vadd.xlane.f32.xlu0 %v1746_v9 }
 0x2e6   : > { %1719 = vadd.xlane.f32.xlu0 %v1718_v11 }
 0x2eb   : > { %1799 = vperm.xlu1 %2472, %v1789_v15  }
 0x2ef   : > { %1826 = vperm.xlu1 %2472, %v1820_v16  }
 0x2fc   : > { %1794 = vperm.xlu0 %2471, %v1788_v17  }
 0x300   : > { %1831 = vperm.xlu0 %2471, %v1821_v18   ;;  %v1860_v18 = vld [vmem:[%s2785_s26] sm:$0xff] }
 0x304   : > { %1809 = vperm.xlu0 %2471, %v1791_v19  }
 0x308   : > { %1841 = vperm.xlu0 %2471, %v1823_v20   ;;  %v1861_v20 = vld [vmem:[%s2785_s26 + $0x8] sm:$0xff] }
 0x313   : > { %1725 = vadd.xlane.f32.xlu1 %v1724_v26 }
 0x317   : > { %1744 = vadd.xlane.f32.xlu1 %v1743_v13 }
 0x328   : > { %1804 = vperm.xlu1 %2472, %v1790_v28   ;;  %v1863_v28 = vld [vmem:[%s2785_s26 + $0x18] sm:$0xff] }
 0x34c   : > { %1750 = vadd.xlane.f32.xlu1 %v1749_v31 }
 0x35d   : > { %1836 = vperm.xlu1 %2472, %v1822_v32  }
 0x363   : > { %v1717_v33 = vpop.xlane.xlu1 %1716  ;;  %v1723_v34 = vpop.xlane.xlu0 %1722 }
 0x364   : > { %v1728_v25 = vmul.f32 0.00390625, %v1717_v33  ;;  %v1730_v60 = vmul.f32 0.00390625, %v1723_v34 }
 0x366   : > { %v1756_v35 = vmul.f32 %v1728_v25, %v1728_v25  ;;  %v1764_v44 = vsub.f32 %v3250_v56, %v1728_v25  ;;  %v1758_v61 = vmul.f32 %v1730_v60, %v1730_v60  ;;  %v1765_v52 = vsub.f32 %v3246_v63, %v1728_v25 }
 0x367   : > { %v1800_v36 = vpop.permute.xlu1 %1799  ;;  %v1742_v42 = vpop.xlane.xlu0 %1741 }
 0x368   : > { %v1752_v48 = vmul.f32 0.00390625, %v1742_v42 }
 0x36a   : > { %v1760_v40 = vsub.f32 %v1752_v48, %v1756_v35 }
 0x36b   : > { %v1827_v45 = vpop.permute.xlu1 %1826  ;;  %v1748_v46 = vpop.xlane.xlu0 %1747 }
 0x36c   : > { %v1772_v58 = vadd.f32 1e-05, %v1760_v40  ;;  %v1754_v62 = vmul.f32 0.00390625, %v1748_v46  ;;  %v1768_v46 = vsub.f32 %v3244_v41, %v1730_v60 }
 0x36e   : > { %2479 = vrsqrt.f32 %v1772_v58  ;;  %v1762_v2 = vsub.f32 %v1754_v62, %v1758_v61 }
 0x36f   : > { %v1720_v37 = vpop.xlane.xlu0 %1719 }
 0x370   : > { %v1729_v53 = vmul.f32 0.00390625, %v1720_v37  ;;  %v1774_v56 = vadd.f32 1e-05, %v1762_v2  ;;  %v1769_v37 = vsub.f32 %v3248_v1, %v1730_v60 }
 0x372   : > { %v1757_v30 = vmul.f32 %v1729_v53, %v1729_v53  ;;  %v1766_v3 = vsub.f32 %v3266_v0, %v1729_v53  ;;  %v1767_v4 = vsub.f32 %v3264_v10, %v1729_v53 }
 0x377   : > { %v1795_v5 = vpop.permute.xlu0 %1794 }
 0x37b   : > { %v2480_v43 = vpop.eup %2479  ;;  %v1832_v16 = vpop.permute.xlu0 %1831 }
 0x37c   : > { %v1780_v54 = vmul.f32 %v2480_v43, %v1764_v44  ;;  %v1781_v57 = vmul.f32 %v2480_v43, %v1765_v52  ;;  %v1865_v43 = vld [vmem:[%s2785_s26 + $0x28] sm:$0xff] }
 0x37e   : > { %v1812_v6 = vmul.f32 %v1795_v5, %v1780_v54  ;;  %v1813_v8 = vmul.f32 %v1795_v5, %v1781_v57 }
 0x37f   : > { %v1810_v61 = vpop.permute.xlu0 %1809 }
 0x380   : > { %v1844_v9 = vadd.f32 %v1827_v45, %v1812_v6  ;;  %v1845_v63 = vadd.f32 %v1827_v45, %v1813_v8 }
 0x382   : > { %v1852_v17 = vmax.f32 %v1844_v9, 0.0  ;;  %v1853_v19 = vmax.f32 %v1845_v63, 0.0 }
 0x384   : > { %v1868_v21 = vadd.f32 %v1860_v18, %v1852_v17  ;;  %v1869_v26 = vadd.f32 %v1861_v20, %v1853_v19 }
 0x386   : > { %v2165_v38 = vmul.f32 -1.442695, %v1868_v21  ;;  %v2166_v34 = vmul.f32 -1.442695, %v1869_v26 }
 0x39c   : > { %v1726_v47 = vpop.xlane.xlu1 %1725 }
 0x39d   : > { %v1731_v22 = vmul.f32 0.00390625, %v1726_v47 }
 0x39f   : > { %v1759_v32 = vmul.f32 %v1731_v22, %v1731_v22  ;;  %v1770_v60 = vsub.f32 %v3290_v14, %v1731_v22  ;;  %v1771_v62 = vsub.f32 %v3288_v23, %v1731_v22 }
 0x3a0   : > { %v1745_v49 = vpop.xlane.xlu1 %1744 }
 0x3a1   : > { %v1753_v55 = vmul.f32 0.00390625, %v1745_v49 }
 0x3a3   : > { %v1761_v39 = vsub.f32 %v1753_v55, %v1757_v30 }
 0x3a4   : > { %v1805_v12 = vpop.permute.xlu1 %1804 }
 0x3a5   : > { %v1773_v59 = vadd.f32 1e-05, %v1761_v39  ;;  %v1864_v39 = vld [vmem:[%s2785_s26 + $0x20] sm:$0xff] }
 0x3a7   : > { %2481 = vrsqrt.f32 %v1773_v59 }
 0x3a8   : > { %2483 = vrsqrt.f32 %v1774_v56  ;;  %v1842_v56 = vpop.permute.xlu0 %1841 }
 0x3a9   : > { %2485 = vpow2.f32 %v2165_v38 }
 0x3aa   : > { %2487 = vpow2.f32 %v2166_v34 }
 0x3b4   : > { %v2482_v51 = vpop.eup %2481 }
 0x3b5   : > { %v1782_v7 = vmul.f32 %v2482_v51, %v1766_v3  ;;  %v1783_v50 = vmul.f32 %v2482_v51, %v1767_v4  ;;  %v2484_v45 = vpop.eup %2483 }
 0x3b6   : > { %v1784_v49 = vmul.f32 %v2484_v45, %v1768_v46  ;;  %v1785_v35 = vmul.f32 %v2484_v45, %v1769_v37  ;;  %v2486_v44 = vpop.eup %2485 }
 0x3b7   : > { %v1814_v11 = vmul.f32 %v1800_v36, %v1782_v7  ;;  %v1815_v15 = vmul.f32 %v1800_v36, %v1783_v50  ;;  %v2488_v1 = vpop.eup %2487  ;;  %v1882_v57 = vadd.f32 1.0, %v2486_v44 }
 0x3b8   : > { %v1816_v40 = vmul.f32 %v1805_v12, %v1784_v49  ;;  %v1817_v55 = vmul.f32 %v1805_v12, %v1785_v35  ;;  %v1883_v5 = vadd.f32 1.0, %v2488_v1 }
 0x3b9   : > { %v1846_v0 = vadd.f32 %v1832_v16, %v1814_v11  ;;  %v1847_v10 = vadd.f32 %v1832_v16, %v1815_v15  ;;  %v1866_v15 = vld [vmem:[%s2785_s26 + $0x30] sm:$0xff]  ;;  %v1867_v16 = vld [vmem:[%s2785_s26 + $0x38] sm:$0xff]  ;;  %s3425_s26 = sld [smem:[#allocation11_spill]] }
 0x3bb   : > { %v1854_v24 = vmax.f32 %v1846_v0, 0.0  ;;  %v1855_v13 = vmax.f32 %v1847_v10, 0.0 }
 0x3bd   : > { %v1870_v31 = vadd.f32 %v1862_v27, %v1854_v24  ;;  %v1871_v36 = vadd.f32 %v1863_v28, %v1855_v13  ;;  %v1914_v24 = vld [vmem:[#allocation3] sm:$0xff]  ;;  %v1915_v27 = vld [vmem:[#allocation3 + $0x8] sm:$0xff] }
 0x3bf   : > { %v2167_v25 = vmul.f32 -1.442695, %v1870_v31  ;;  %v2168_v48 = vmul.f32 -1.442695, %v1871_v36  ;;  %s2178_s16 = sshll.u32 %s3425_s26, 8 }
 0x3c0   : > { %s1971_s18 = scalar_lea.hbm %s3428_s29, %s2178_s16 }
 0x3d5   : > { %v1751_v29 = vpop.xlane.xlu1 %1750 }
 0x3d6   : > { %v1755_v33 = vmul.f32 0.00390625, %v1751_v29 }
 0x3d8   : > { %v1763_v42 = vsub.f32 %v1755_v33, %v1759_v32 }
 0x3d9   : > { %v1837_v53 = vpop.permute.xlu1 %1836 }
 0x3da   : > { %v1775_v47 = vadd.f32 1e-05, %v1763_v42  ;;  %v1848_v30 = vadd.f32 %v1837_v53, %v1816_v40  ;;  %v1849_v58 = vadd.f32 %v1837_v53, %v1817_v55 }
 0x3dc   : > { %2489 = vrsqrt.f32 %v1775_v47  ;;  %v1856_v41 = vmax.f32 %v1848_v30, 0.0  ;;  %v1857_v59 = vmax.f32 %v1849_v58, 0.0 }
 0x3dd   : > { %2491 = vpow2.f32 %v2167_v25 }
 0x3de   : > { %2493 = vpow2.f32 %v2168_v48  ;;  %v1872_v52 = vadd.f32 %v1864_v39, %v1856_v41  ;;  %v1873_v51 = vadd.f32 %v1865_v43, %v1857_v59 }
 0x3df   : > { %2495 = vrcp.f32 %v1882_v57 }
 0x3e0   : > { %v2169_v50 = vmul.f32 -1.442695, %v1872_v52  ;;  %v2170_v9 = vmul.f32 -1.442695, %v1873_v51  ;;  %2497 = vrcp.f32 %v1883_v5 }
 0x3e2   : > { %2499 = vpow2.f32 %v2169_v50 }
 0x3e3   : > { %2501 = vpow2.f32 %v2170_v9 }
 0x3e9   : > { %v2490_v54 = vpop.eup %2489 }
 0x3ea   : > { %v1786_v2 = vmul.f32 %v2490_v54, %v1770_v60  ;;  %v1787_v3 = vmul.f32 %v2490_v54, %v1771_v62  ;;  %v2492_v4 = vpop.eup %2491 }
 0x3eb   : > { %v2494_v6 = vpop.eup %2493  ;;  %v1894_v14 = vadd.f32 1.0, %v2492_v4 }
 0x3ec   : > { %v1818_v7 = vmul.f32 %v1810_v61, %v1786_v2  ;;  %v1819_v8 = vmul.f32 %v1810_v61, %v1787_v3  ;;  %v1895_v63 = vadd.f32 1.0, %v2494_v6  ;;  %v2496_v10 = vpop.eup %2495 }
 0x3ed   : > { %2503 = vrcp.f32 %v1894_v14  ;;  %v2498_v20 = vpop.eup %2497  ;;  %v1916_v31 = vmul.f32 %v2496_v10, %v1914_v24 }
 0x3ee   : > { %v1850_v11 = vadd.f32 %v1842_v56, %v1818_v7  ;;  %v1851_v23 = vadd.f32 %v1842_v56, %v1819_v8  ;;  %2505 = vrcp.f32 %v1895_v63  ;;  %v1917_v33 = vmul.f32 %v2498_v20, %v1915_v27 }
 0x3ef   : > { %v2500_v12 = vpop.eup %2499 }
 0x3f0   : > { %v1858_v17 = vmax.f32 %v1850_v11, 0.0  ;;  %v1859_v0 = vmax.f32 %v1851_v23, 0.0  ;;  %v2502_v21 = vpop.eup %2501  ;;  %v1906_v13 = vadd.f32 1.0, %v2500_v12 }
 0x3f1   : > { %v1907_v29 = vadd.f32 1.0, %v2502_v21 }
 0x3f2   : > { %v1874_v18 = vadd.f32 %v1866_v15, %v1858_v17  ;;  %v1875_v19 = vadd.f32 %v1867_v16, %v1859_v0 }
 0x3f4   : > { %2507 = vtanh.f32 %v1874_v18 }
 0x3f5   : > { %2509 = vtanh.f32 %v1875_v19 }
 0x3f6   : > { %2511 = vrcp.f32 %v1906_v13 }
 0x3f7   : > { %2513 = vrcp.f32 %v1907_v29 }
 0x3fa   : > { %v2504_v22 = vpop.eup %2503 }
 0x3fb   : > { %v2506_v26 = vpop.eup %2505 }
 0x401   : > { %v2508_v28 = vpop.eup %2507 }
 0x402   : > { %v2510_v38 = vpop.eup %2509  ;;  %v1918_v32 = vmul.f32 %v2508_v28, %v2504_v22 }
 0x403   : > { %v1919_v34 = vmul.f32 %v2510_v38, %v2506_v26 }
 0x404   : > { %v1920_v36 = vadd.f32 %v1918_v32, %v1916_v31 }
 0x405   : > { %v1921_v42 = vadd.f32 %v1919_v34, %v1917_v33 }
 0x406   : > { %2515 = vtanh.f32 %v1920_v36  ;;  %1926 = vst [vmem:[#allocation3] sm:$0xff] %v1920_v36  ;;  %1944 = vst [vmem:[%s2792_s20] sm:$0xff] %v1920_v36 }
 0x407   : > { %2517 = vtanh.f32 %v1921_v42  ;;  %1927 = vst [vmem:[#allocation3 + $0x8] sm:$0xff] %v1921_v42  ;;  %1945 = vst [vmem:[%s2792_s20 + $0x8] sm:$0xff] %v1921_v42 }
 0x408   : > { %2532 = shalt.err (!%p2529_p8)
}
 0x409   : > { %s2533_s20 = scalar_lea.hbm %s1971_s18, 256  ;;  %s2537_s11 = scalar_lea.hbm %s3428_s29, 512 }
 0x40a   : > { %p2534_p10 = scmp.ne.s32.totalorder %s1971_s18, %s2533_s20  ;;  %p2538_p13 = scmp.lt.s32.totalorder %s1971_s18, %s3428_s29 }
 0x40b   : > { %p2539_p0 = scmp.lt.s32.totalorder %s2537_s11, %s2533_s20 }
 0x40c   : > { %p2535_p11 = pnand %p2534_p10, %p2749_p3 }
 0x40d   : > { %p2540_p1 = por %p2539_p0, %p2538_p13 }
 0x40e   : > { %p2536_p12 = pneg %p2535_p11 }
 0x410   : > { %p2541_p2 = pnand %p2540_p1, %p2536_p12 }
 0x412   : > { %2544 = shalt.err (!%p2541_p2)
}
 0x413   : > { %2209 = dma.vmem_to_hbm [thread:$0]  (%p2749_p3), %s1974_s30, 256, %s1971_s18, %s1956_s24   ;;  %v2512_v45 = vpop.eup %2511  ;;  %vm1938_vm8 = vcmask 1048136  }
 0x414   : > { %v2514_v46 = vpop.eup %2513 }
 0x415   : > { %v2516_v25 = vpop.eup %2515 }
 0x416   : > { %v2518_v47 = vpop.eup %2517  ;;  %v1924_v37 = vmul.f32 %v2516_v25, %v2512_v45 }
 0x417   : > { %v1925_v48 = vmul.f32 %v2518_v47, %v2514_v46 }
 0x418   : > { %1930 = vrot.lane.b32.xlu1 %v1924_v37, %s2618_s25  ;;  %1942 = vst [vmem:[%s2790_s23] sm:$0xff] %v1924_v37 }
 0x419   : > { %1932 = vrot.lane.b32.xlu0 %v1925_v48, %s2618_s25  ;;  %1943 = vst [vmem:[%s2790_s23 + $0x8] sm:$0xff] %v1925_v48 }
 0x48a   : > { %v1931_v49 = vpop.permute.xlu1 %1930 }
 0x48b   : > { %v1933_v35 = vpop.permute.xlu0 %1932  ;;  %1939 = vst.msk [vmem:[#allocation2] sm:$0xff] %vm1938_vm8, %v1931_v49 }
 0x48c   : > { %1941 = vst.msk [vmem:[#allocation2 + $0x10] sm:$0xff] %vm989_vm6, %v1933_v35  ;;  %v1934_v53 = vsel %vm989_vm6, %v1931_v49, %v1933_v35 }
 0x48d   : > { %1940 = vst [vmem:[#allocation2 + $0x8] sm:$0xff] %v1934_v53 }
 0x48e PF: > { %s3430_s12 = sld [smem:[#allocation14_spill]] }
 0x48f   : > { %s3431_s14 = sld [smem:[#allocation8_spill]] }
 0x494   : > { %p2215_p3 = scmp.ge.s32.totalorder %s3430_s12, 2 }
 0x495   : > { %s1997_s30 = sand.u32 1, %s3431_s14  }
 0x496   : > { %p2212_p4 = pnand %p2215_p3, %p2759_p9  ;;  %s1998_s25 = scalar_lea.sflag [#allocation6], %s1997_s30 }
 0x498   : > { %p2213_p5 = pneg %p2212_p4 }
 0x49a   : > { %2578 = dma.done.wait (%p2213_p5), %s1998_s25, 256  }
 0x49b   : > { %2580 = vsyncadd (%p2213_p5), %s1998_s25, 4294967040  ;;  %s23_s16 = sadd.s32 1, %s3430_s12   ;;  %s3433_s30 = sld [smem:[#allocation9_spill]] }
 0x49c   : > { %p20_p6 = scmp.ge.s32.totalorder %s23_s16, 8   ;;  %s3434_s10 = sld [smem:[#allocation10_spill]] }
 0x49d   : > { %s3435_s11 = sld [smem:[#allocation19_spill]] }
 0x49e   : > { %s3436_s12 = sld [smem:[#allocation12_spill]]  ;;  %22 = sbr.rel (!%p20_p6) target bundleno = 9 (0x9), region = 135 }
 0x49f   : > { %s3437_s13 = sld [smem:[#allocation13_spill]] }
 0x4a0   : > { %s3438_s14 = sld [smem:[#allocation15_spill]] }
 0x4a1   : > { %s3439_s15 = sld [smem:[#allocation17_spill]] }
 0x4a3   :  { %2003 = vsyncpa [#allocation6], 1 }
 0x4a4   :  { %2005 = vsyncpa [#allocation6 + $0x1], 1 }

// kernel: conv_lstm_forward.7
= control target key start
LH: loop header
LB: loop body
LE: loop exit
PB: predicated region body
PF: predicated region fallthrough
CT: control target
= control target key end

     0   :  { %s2595_s30 = smov 0   ;;  %s2597_s10 = smov 0   ;;  %s3203_s0 = inlined_call_operand.vmem [shape: f32[2,3,32,256], index: 0, kind: input, shape index: {}]   ;;  %s3204_s1 = inlined_call_operand.vmem [shape: f32[2,8,256], index: 1, kind: input, shape index: {}]   ;;  %s3205_s2 = inlined_call_operand.vmem [shape: f32[2,8,256], index: 2, kind: input, shape index: {}]   ;;  %s3206_s3 = inlined_call_operand.vmem [shape: bf16[32,216], index: 3, kind: input, shape index: {}]   ;;  %s3207_s4 = inlined_call_operand.vmem [shape: f32[32,1], index: 4, kind: input, shape index: {}]   ;;  %s3208_s5 = inlined_call_operand.vmem [shape: f32[32,1], index: 5, kind: input, shape index: {}]   ;;  %s3209_s6 = inlined_call_operand.vmem [shape: f32[32,1], index: 6, kind: input, shape index: {}]   ;;  %s3210_s7 = inlined_call_operand.vmem [shape: f32[27,256], index: 7, kind: input, shape index: {}]   ;;  %s3211_s8 = inlined_call_operand.vmem [shape: f32[2,3,8,256], index: 8, kind: output, shape index: {0}]   ;;  %s3212_s9 = inlined_call_operand.vmem [shape: f32[2,8,256], index: 9, kind: output, shape index: {1}]  }
   0x1   :  { %3217 = sst [smem:[#allocation10_spill]] %s3209_s6  ;;  %s2599_s11 = smov 0  }
   0x2   :  { %s2601_s12 = smov 0   ;;  %s2603_s13 = smov 0  }
   0x3 LB: > { %3218 = sst [smem:[#allocation5_spill]] %s2499_s11  ;;  %s29_s14 = sadd.s32 1, %s2499_s11  ;;  %s2507_s13 = sphi %s2603_s13, %s20_s13   ;;  %s2503_s12 = sphi %s2601_s12, %s3228_s12   ;;  %s2499_s11 = sphi %s2599_s11, %s3227_s11   ;;  %s2495_s10 = sphi %s2597_s10, %s3226_s10   ;;  %s2491_s30 = sphi %s2595_s30, %s3225_s30  }
   0x4   : > { %3219 = sst [smem:[#allocation6_spill]] %s2503_s12  ;;  %s32_s15 = sadd.s32 1, %s2503_s12 }
   0x5   : > { %3220 = sst [smem:[#allocation7_spill]] %s2507_s13  ;;  %p30_p0 = scmp.ge.s32.totalorder %s29_s14, 3 }
   0x6   : > { %p2104_p1 = scmp.ge.s32.totalorder %s2507_s13, 1  ;;  %p330_p2 = scmp.lt.s32.totalorder %s2507_s13, 7 }
   0x7   : > { %s3230_s14 = smov (%p30_p0, %s29_s14), 0  ;;  %s3232_s15 = smov (!%p30_p0, %s32_s15), %s2503_s12 }
   0x8   : > { %3221 = sst [smem:[#allocation8_spill]] %s3230_s14  ;;  %p331_p3 = pnand %p2104_p1, %p330_p2 }
   0x9   : > { %p34_p4 = scmp.ge.s32.totalorder %s3232_s15, 2  ;;  %p389_p5 = scmp.lt.s32.totalorder (!%p331_p3), %s2495_s10, 1 }
   0xa   : > { %334 = sbr.rel (%p331_p3) target bundleno = 1147 (0x47b), region = 52  ;;  %p391_p6 = scmp.lt.s32.totalorder (!%p331_p3), %s2491_s30, 2 }
   0xb   : > { %s3234_s15 = smov (%p34_p4, %s3232_s15), 0  ;;  %p2115_p7 = scmp.ne.s32.totalorder (!%p331_p3), %s2491_s30, 0 }
   0xc   : > { %3222 = sst [smem:[#allocation9_spill]] %s3234_s15 }
   0xf   : > { %s3236_s10 = smov (!%p389_p5, %s2495_s10), 1  ;;  %s2509_s15 = smov (!%p2115_p7), 73  }
  0x10   : > { %s392_s16 = scalar_select %p391_p6, %s2491_s30, 2 }
  0x11   : > { %s2188_s17 = smul.u32 24, %s3236_s10  ;;  %s2157_s18 = sshll.u32 %s3236_s10, 4 }
  0x12   : > { %s2105_s19 = sshll.u32 %s392_s16, 3  ;;  %s402_s22 = scalar_lea.vmem %s3204_s1, %s2157_s18 }
  0x13   : > { %s395_s23 = sadd.s32 %s2188_s17, %s2105_s19  ;;  %s407_s26 = scalar_lea.vmem %s3205_s2, %s2157_s18 }
  0x14   : > { %s2106_s27 = sshll.u32 %s395_s23, 3  ;;  %s2111_s28 = sshll.u32 %s392_s16, 1 }
  0x15   : > { %s2638_s14 = scalar_lea.vmem %s3203_s0, %s2106_s27  ;;  %s2189_s12 = smul.u32 6, %s3236_s10 }
  0x16   : > { %s2643_s6 = scalar_lea.vmem %s3212_s9, %s2157_s18  ;;  %426 = sbr.rel (%p2115_p7) target bundleno = 149 (0x95), region = 56 }
  0x17   : > { %s414_s20 = sadd.s32 %s2189_s12, %s2111_s28 }
  0x18   : > { %s2112_s21 = sshll.u32 %s414_s20, 3 }
  0x19   : > { %s2648_s24 = scalar_lea.vmem %s3211_s8, %s2112_s21 }
  0x1b   : > { %v433_v0 = vld [vmem:[%s402_s22] sm:$0xff]  ;;  %vm427_vm0 = vcmask 596992   ;;  %vm429_vm1 = vcmask 1048136   ;;  %v2510_v1 = vmov 0.0   ;;  %vm431_vm2 = vcmask 146432   ;;  %v449_v3 = vld [vmem:[%s407_s26 + $0x8] sm:$0xff] }
  0x1c   : > { %437 = vrot.lane.b32.xlu0 %v433_v0, %s2509_s15  ;;  %428 = vst.msk [vmem:[#allocation2] sm:$0xff] %vm427_vm0, %v2510_v1  ;;  %v448_v2 = vld [vmem:[%s407_s26] sm:$0xff]  ;;  %v434_v4 = vld [vmem:[%s402_s22 + $0x8] sm:$0xff]  ;;  %451 = vst [vmem:[#allocation3 + $0x8] sm:$0xff] %v449_v3 }
  0x1d   : > { %430 = vst.msk [vmem:[#allocation2 + $0x10] sm:$0xff] %vm429_vm1, %v2510_v1  ;;  %450 = vst [vmem:[#allocation3] sm:$0xff] %v448_v2 }
  0x1e   : > { %432 = vst.msk [vmem:[#allocation2 + $0x18] sm:$0xff] %vm431_vm2, %v2510_v1 }
  0x20   : > { %439 = vrot.lane.b32.xlu0 %v434_v4, %s2509_s15 }
  0x8e   : > { %v438_v5 = vpop.permute.xlu0 %437 }
  0x8f   : > { %445 = vst.msk [vmem:[#allocation2] sm:$0xff] %vm429_vm1, %v438_v5 }
  0x92   : > { %v440_v6 = vpop.permute.xlu0 %439 }
  0x93   : > { %v441_v7 = vsel %vm427_vm0, %v438_v5, %v440_v6  ;;  %447 = vst.msk [vmem:[#allocation2 + $0x10] sm:$0xff] %vm427_vm0, %v440_v6 }
  0x94   : > { %446 = vst [vmem:[#allocation2 + $0x8] sm:$0xff] %v441_v7 }
  0x95 PF: > { %v456_v8 = vlaneseq  ;;  %v2130_v10 = vld [vmem:[%s3210_s7 + $0x17] ss:$8 sm:$0x3]  ;;  %v2129_v11 = vld [vmem:[%s3210_s7 + $0x16] ss:$8 sm:$0x3] }
  0x96   : > { %s2511_s13 = smov 80   ;;  %s2512_s16 = smov 74   ;;  %v2127_v18 = vld [vmem:[%s3210_s7 + $0x14] ss:$8 sm:$0x3]  ;;  %vm1033_vm3 = vcmask 605184  }
  0x97   : > { %v457_v9 = vshrl.u32 %v456_v8, 7  ;;  %v2128_v21 = vld [vmem:[%s3210_s7 + $0x15] ss:$8 sm:$0x3]  ;;  %s2513_s26 = smov 72   ;;  %s2514_s29 = smov 73  }
  0x98   : > { %v2125_v24 = vld [vmem:[%s3210_s7 + $0x12] ss:$8 sm:$0x3]  ;;  %v2126_v27 = vld [vmem:[%s3210_s7 + $0x13] ss:$8 sm:$0x3] }
  0x99   : > { %v2660_v12 = vsub.s32 0, %v457_v9  ;;  %v2662_v13 = vsub.s32 1, %v457_v9  ;;  %s2515_s17 = smov 65   ;;  %v2123_v30 = vld [vmem:[%s3210_s7 + $0x10] ss:$8 sm:$0x3] }
  0x9a   : > { %s2516_s30 = smov 66   ;;  %v2124_v33 = vld [vmem:[%s3210_s7 + $0x11] ss:$8 sm:$0x3]  ;;  %s2517_s12 = smov 18   ;;  %vm1075_vm4 = vcmask 654336  }
  0x9b   : > { %v1066_v14 = vrot.slane %v2130_v10, %v2660_v12  ;;  %v1024_v15 = vrot.slane %v2129_v11, %v2660_v12  ;;  %v1070_v16 = vrot.slane %v2130_v10, %v2662_v13  ;;  %v1028_v17 = vrot.slane %v2129_v11, %v2662_v13  ;;  %v2121_v36 = vld [vmem:[%s3210_s7 + $0x6] ss:$8 sm:$0x3]  ;;  %s2518_s18 = smov 64   ;;  %s2519_s25 = smov 16  }
  0x9c   : > { %v944_v19 = vrot.slane %v2127_v18, %v2662_v13  ;;  %v940_v20 = vrot.slane %v2127_v18, %v2660_v12  ;;  %v986_v22 = vrot.slane %v2128_v21, %v2662_v13  ;;  %v982_v23 = vrot.slane %v2128_v21, %v2660_v12  ;;  %v2122_v39 = vld [vmem:[%s3210_s7 + $0x7] ss:$8 sm:$0x3]  ;;  %v2119_v42 = vld [vmem:[%s3210_s7 + $0x4] ss:$8 sm:$0x3] }
  0x9d   : > { %1071 = vrot.lane.b32.xlu1 %v1066_v14, %s2511_s13  ;;  %1029 = vrot.lane.b32.xlu0 %v1024_v15, %s2512_s16  ;;  %v860_v25 = vrot.slane %v2125_v24, %v2662_v13  ;;  %v856_v26 = vrot.slane %v2125_v24, %v2660_v12  ;;  %v902_v28 = vrot.slane %v2126_v27, %v2662_v13  ;;  %s2520_s28 = smov 17   ;;  %v2120_v45 = vld [vmem:[%s3210_s7 + $0x5] ss:$8 sm:$0x3]  ;;  %s2524_s23 = smov 8   ;;  %vm949_vm5 = vcmask 588800  }
  0x9e   : > { %v898_v29 = vrot.slane %v2126_v27, %v2660_v12  ;;  %v777_v31 = vrot.slane %v2123_v30, %v2662_v13  ;;  %v773_v32 = vrot.slane %v2123_v30, %v2660_v12  ;;  %v819_v34 = vrot.slane %v2124_v33, %v2662_v13  ;;  %v2117_v48 = vld [vmem:[%s3210_s7 + $0x2] ss:$8 sm:$0x3]  ;;  %v2118_v51 = vld [vmem:[%s3210_s7 + $0x3] ss:$8 sm:$0x3] }
  0x9f   : > { %v815_v35 = vrot.slane %v2124_v33, %v2660_v12  ;;  %v693_v37 = vrot.slane %v2121_v36, %v2662_v13  ;;  %v689_v38 = vrot.slane %v2121_v36, %v2660_v12  ;;  %v735_v40 = vrot.slane %v2122_v39, %v2662_v13  ;;  %v2116_v54 = vld [vmem:[%s3210_s7 + $0x1] ss:$8 sm:$0x3]  ;;  %v2141_v57 = vld [vmem:[%s3210_s7 + $0x32] ss:$8 sm:$0x3] }
  0xa0   : > { %v731_v41 = vrot.slane %v2122_v39, %v2660_v12  ;;  %v609_v43 = vrot.slane %v2119_v42, %v2662_v13  ;;  %v605_v44 = vrot.slane %v2119_v42, %v2660_v12  ;;  %v651_v46 = vrot.slane %v2120_v45, %v2662_v13  ;;  %s2525_s20 = smov 1   ;;  %v2139_v60 = vld [vmem:[%s3210_s7 + $0x30] ss:$8 sm:$0x3]  ;;  %s2527_s10 = smov 82  }
  0xa1   : > { %1073 = vrot.lane.b32.xlu1 %v1070_v16, %s2511_s13  ;;  %1031 = vrot.lane.b32.xlu0 %v1028_v17, %s2512_s16  ;;  %v647_v47 = vrot.slane %v2120_v45, %v2660_v12  ;;  %v525_v49 = vrot.slane %v2117_v48, %v2662_v13  ;;  %v521_v50 = vrot.slane %v2117_v48, %v2660_v12  ;;  %s2523_s13 = smov 2   ;;  %v2140_v63 = vld [vmem:[%s3210_s7 + $0x31] ss:$8 sm:$0x3]  ;;  %s2529_s11 = smov 54   ;;  %vm991_vm6 = vcmask 596992  }
  0xa2   : > { %v567_v52 = vrot.slane %v2118_v51, %v2662_v13  ;;  %v563_v53 = vrot.slane %v2118_v51, %v2660_v12  ;;  %v483_v55 = vrot.slane %v2116_v54, %v2662_v13  ;;  %v479_v56 = vrot.slane %v2116_v54, %v2660_v12  ;;  %v2137_v2 = vld [vmem:[%s3210_s7 + $0x26] ss:$8 sm:$0x3]  ;;  %v2138_v5 = vld [vmem:[%s3210_s7 + $0x27] ss:$8 sm:$0x3] }
  0xa3   : > { %v1495_v58 = vrot.slane %v2141_v57, %v2662_v13  ;;  %v1491_v59 = vrot.slane %v2141_v57, %v2660_v12  ;;  %v1415_v61 = vrot.slane %v2139_v60, %v2662_v13  ;;  %v1411_v62 = vrot.slane %v2139_v60, %v2660_v12  ;;  %v2135_v8 = vld [vmem:[%s3210_s7 + $0x24] ss:$8 sm:$0x3]  ;;  %v2136_v11 = vld [vmem:[%s3210_s7 + $0x25] ss:$8 sm:$0x3] }
  0xa4   : > { %v1455_v0 = vrot.slane %v2140_v63, %v2662_v13  ;;  %v1451_v1 = vrot.slane %v2140_v63, %v2660_v12  ;;  %v1335_v3 = vrot.slane %v2137_v2, %v2662_v13  ;;  %v1331_v4 = vrot.slane %v2137_v2, %v2660_v12  ;;  %v2134_v16 = vld [vmem:[%s3210_s7 + $0x23] ss:$8 sm:$0x3]  ;;  %s2530_s16 = smov 56   ;;  %s2532_s22 = smov 63  }
  0xa5   : > { %947 = vrot.lane.b32.xlu1 %v944_v19, %s2513_s26  ;;  %945 = vrot.lane.b32.xlu0 %v940_v20, %s2513_s26  ;;  %v1375_v6 = vrot.slane %v2138_v5, %v2662_v13  ;;  %v1371_v7 = vrot.slane %v2138_v5, %v2660_v12  ;;  %v1255_v9 = vrot.slane %v2135_v8, %v2662_v13  ;;  %v2131_v19 = vld [vmem:[%s3210_s7 + $0x20] ss:$8 sm:$0x3]  ;;  %vm865_vm7 = vcmask 531456   ;;  %s2534_s26 = smov 110   ;;  %s2537_s27 = smov 119  }
  0xa6   : > { %v1251_v10 = vrot.slane %v2135_v8, %v2660_v12  ;;  %v1295_v14 = vrot.slane %v2136_v11, %v2662_v13  ;;  %v1291_v15 = vrot.slane %v2136_v11, %v2660_v12  ;;  %v1215_v17 = vrot.slane %v2134_v16, %v2662_v13  ;;  %s2539_s21 = smov 126   ;;  %s2541_s19 = smov 127  }
  0xa7   : > { %v1211_v18 = vrot.slane %v2134_v16, %v2660_v12  ;;  %v1112_v20 = vrot.slane %v2131_v19, %v2662_v13  ;;  %v1108_v21 = vrot.slane %v2131_v19, %v2660_v12  ;;  %vm907_vm8 = vcmask 539648  }
  0xa8   : > { %vm782_vm9 = vcmask 146432   ;;  %vm824_vm10 = vcmask 523264   ;;  %vm740_vm11 = vcmask 138240   ;;  %vm698_vm12 = vcmask 130048  }
  0xa9   : > { %989 = vrot.lane.b32.xlu1 %v986_v22, %s2514_s29  ;;  %987 = vrot.lane.b32.xlu0 %v982_v23, %s2514_s29  ;;  %v2132_v22 = vld [vmem:[%s3210_s7 + $0x21] ss:$8 sm:$0x3]  ;;  %vm614_vm13 = vcmask 72704   ;;  %vm656_vm14 = vcmask 80896   ;;  %vm530_vm15 = vcmask 15360  }
  0xaa   : > { %v1154_v23 = vrot.slane %v2132_v22, %v2662_v13  ;;  %v1150_v24 = vrot.slane %v2132_v22, %v2660_v12  ;;  %vm572_vm0 = vcmask 64512   ;;  %vm488_vm1 = vcmask 7168  }
  0xab   : > { %vm1159_vm2 = vcmask 670720  }
  0xad   : > { %863 = vrot.lane.b32.xlu1 %v860_v25, %s2515_s17  ;;  %861 = vrot.lane.b32.xlu0 %v856_v26, %s2515_s17  ;;  %s2521_s17 = smov 9   ;;  %v2819_v25 = vld [vmem:[#allocation2] sm:$0xff] }
  0xb1   : > { %905 = vrot.lane.b32.xlu1 %v902_v28, %s2516_s30  ;;  %903 = vrot.lane.b32.xlu0 %v898_v29, %s2516_s30  ;;  %s2522_s30 = smov 10  }
  0xb5   : > { %780 = vrot.lane.b32.xlu1 %v777_v31, %s2517_s12  ;;  %778 = vrot.lane.b32.xlu0 %v773_v32, %s2517_s12 }
  0xb9   : > { %822 = vrot.lane.b32.xlu1 %v819_v34, %s2518_s18  ;;  %820 = vrot.lane.b32.xlu0 %v815_v35, %s2518_s18 }
  0xbd   : > { %696 = vrot.lane.b32.xlu1 %v693_v37, %s2519_s25  ;;  %694 = vrot.lane.b32.xlu0 %v689_v38, %s2519_s25  ;;  %v2827_v37 = vld [vmem:[#allocation2 + $0x8] sm:$0xff]  ;;  %v2829_v38 = vld [vmem:[#allocation2 + $0x10] sm:$0xff] }
  0xc1   : > { %738 = vrot.lane.b32.xlu1 %v735_v40, %s2520_s28  ;;  %736 = vrot.lane.b32.xlu0 %v731_v41, %s2520_s28 }
  0xc5   : > { %612 = vrot.lane.b32.xlu1 %v609_v43, %s2521_s17  ;;  %610 = vrot.lane.b32.xlu0 %v605_v44, %s2521_s17 }
  0xc9   : > { %654 = vrot.lane.b32.xlu1 %v651_v46, %s2522_s30  ;;  %652 = vrot.lane.b32.xlu0 %v647_v47, %s2522_s30 }
  0xcd   : > { %528 = vrot.lane.b32.xlu1 %v525_v49, %s2523_s13  ;;  %526 = vrot.lane.b32.xlu0 %v521_v50, %s2523_s13 }
  0xd1   : > { %570 = vrot.lane.b32.xlu1 %v567_v52, %s2524_s23  ;;  %568 = vrot.lane.b32.xlu0 %v563_v53, %s2524_s23 }
  0xd5   : > { %486 = vrot.lane.b32.xlu1 %v483_v55, %s2525_s20  ;;  %484 = vrot.lane.b32.xlu0 %v479_v56, %s2525_s20 }
  0xd9   : > { %1498 = vrot.lane.b32.xlu1 %v1495_v58, %s2517_s12  ;;  %1496 = vrot.lane.b32.xlu0 %v1491_v59, %s2517_s12  ;;  %s2531_s12 = smov 55  }
  0xdd   : > { %1418 = vrot.lane.b32.xlu1 %v1415_v61, %s2519_s25  ;;  %1416 = vrot.lane.b32.xlu0 %v1411_v62, %s2519_s25  ;;  %s2533_s25 = smov 62  }
  0xe1   : > { %1458 = vrot.lane.b32.xlu1 %v1455_v0, %s2520_s28  ;;  %1456 = vrot.lane.b32.xlu0 %v1451_v1, %s2520_s28  ;;  %s2535_s28 = smov 111  }
  0xe5   : > { %1338 = vrot.lane.b32.xlu1 %v1335_v3, %s2521_s17  ;;  %1336 = vrot.lane.b32.xlu0 %v1331_v4, %s2521_s17  ;;  %s2538_s17 = smov 118  }
  0xe9   : > { %1378 = vrot.lane.b32.xlu1 %v1375_v6, %s2522_s30  ;;  %1376 = vrot.lane.b32.xlu0 %v1371_v7, %s2522_s30  ;;  %s2540_s30 = smov 120  }
  0xed   : > { %1258 = vrot.lane.b32.xlu1 %v1255_v9, %s2523_s13  ;;  %1256 = vrot.lane.b32.xlu0 %v1251_v10, %s2523_s13 }
  0xf1   : > { %1298 = vrot.lane.b32.xlu1 %v1295_v14, %s2524_s23  ;;  %1296 = vrot.lane.b32.xlu0 %v1291_v15, %s2524_s23  ;;  %s2526_s23 = smov 81  }
  0xf5   : > { %1218 = vrot.lane.b32.xlu1 %v1215_v17, %s2525_s20  ;;  %1216 = vrot.lane.b32.xlu0 %v1211_v18, %s2525_s20  ;;  %s2528_s20 = smov 48  }
  0xf9   : > { %1115 = vrot.lane.b32.xlu1 %v1112_v20, %s2526_s23  ;;  %1113 = vrot.lane.b32.xlu0 %v1108_v21, %s2526_s23 }
  0xfd   : > { %1157 = vrot.lane.b32.xlu1 %v1154_v23, %s2527_s10  ;;  %1155 = vrot.lane.b32.xlu0 %v1150_v24, %s2527_s10 }
 0x10f   : > { %v1072_v26 = vpop.permute.xlu1 %1071  ;;  %v1030_v27 = vpop.permute.xlu0 %1029 }
 0x110   : > { %v1080_v28 = vmul.f32 %v1072_v26, %v2819_v25  ;;  %v1038_v29 = vmul.f32 %v2819_v25, %v1030_v27 }
 0x112   : > { %1086 = vrot.lane.b32.xlu1 %v1080_v28, %s2528_s20  ;;  %1044 = vrot.lane.b32.xlu0 %v1038_v29, %s2529_s11 }
 0x113   : > { %v1074_v30 = vpop.permute.xlu1 %1073  ;;  %v1032_v31 = vpop.permute.xlu0 %1031 }
 0x114   : > { %v1034_v39 = vsel %vm1033_vm3, %v1030_v27, %v1032_v31  ;;  %v1040_v42 = vmul.f32 %v2829_v38, %v1032_v31  ;;  %v1076_v45 = vsel %vm1075_vm4, %v1072_v26, %v1074_v30  ;;  %v1082_v49 = vmul.f32 %v1074_v30, %v2829_v38 }
 0x115   : > { %v1039_v41 = vmul.f32 %v2827_v37, %v1034_v39  ;;  %v1081_v48 = vmul.f32 %v1076_v45, %v2827_v37  ;;  %vm1117_vm3 = vcmask 662528   ;;  %vm1650_vm4 = vcmask 719872  }
 0x117   : > { %v948_v32 = vpop.permute.xlu1 %947  ;;  %v946_v33 = vpop.permute.xlu0 %945  ;;  %v2266_v53 = vpack.i.bf16 %v1040_v42, %v1039_v41  ;;  %v2271_v0 = vpack.i.bf16 %v1082_v49, %v1081_v48 }
 0x118   : > { %v954_v34 = vmul.f32 %v2819_v25, %v946_v33  ;;  %v950_v47 = vsel %vm949_vm5, %v946_v33, %v948_v32  ;;  %v956_v50 = vmul.f32 %v2829_v38, %v948_v32  ;;  %vm1050_vm5 = vcmask 441344  }
 0x119   : > { %v955_v54 = vmul.f32 %v2827_v37, %v950_v47 }
 0x11a   : > { %960 = vrot.lane.b32.xlu0 %v954_v34, %s2530_s16 }
 0x11b   : > { %v990_v35 = vpop.permute.xlu1 %989  ;;  %v988_v36 = vpop.permute.xlu0 %987  ;;  %v2276_v1 = vpack.i.bf16 %v956_v50, %v955_v54 }
 0x11c   : > { %v996_v40 = vmul.f32 %v2819_v25, %v988_v36  ;;  %v992_v55 = vsel %vm991_vm6, %v988_v36, %v990_v35  ;;  %v998_v58 = vmul.f32 %v2829_v38, %v990_v35 }
 0x11d   : > { %v997_v59 = vmul.f32 %v2827_v37, %v992_v55 }
 0x11e   : > { %1002 = vrot.lane.b32.xlu1 %v996_v40, %s2531_s12 }
 0x11f   : > { %v864_v43 = vpop.permute.xlu1 %863  ;;  %v862_v44 = vpop.permute.xlu0 %861  ;;  %v2281_v6 = vpack.i.bf16 %v998_v58, %v997_v59 }
 0x120   : > { %v870_v46 = vmul.f32 %v2819_v25, %v862_v44  ;;  %v866_v56 = vsel %vm865_vm7, %v862_v44, %v864_v43  ;;  %v872_v60 = vmul.f32 %v2829_v38, %v864_v43  ;;  %vm1092_vm7 = vcmask 392192  }
 0x121   : > { %v871_v61 = vmul.f32 %v2827_v37, %v866_v56 }
 0x122   : > { %876 = vrot.lane.b32.xlu0 %v870_v46, %s2532_s22 }
 0x123   : > { %v906_v51 = vpop.permute.xlu1 %905  ;;  %v904_v52 = vpop.permute.xlu0 %903  ;;  %v2286_v7 = vpack.i.bf16 %v872_v60, %v871_v61 }
 0x124   : > { %v912_v57 = vmul.f32 %v2819_v25, %v904_v52  ;;  %v908_v2 = vsel %vm907_vm8, %v904_v52, %v906_v51  ;;  %v914_v8 = vmul.f32 %v2829_v38, %v906_v51  ;;  %vm966_vm8 = vcmask 457728  }
 0x125   : > { %v913_v9 = vmul.f32 %v2827_v37, %v908_v2 }
 0x126   : > { %918 = vrot.lane.b32.xlu1 %v912_v57, %s2533_s25  ;;  %2267 = vrot.lane.b32.xlu0 %v2266_v53, %s2529_s11  ;;  %s2544_s11 = smov 46  }
 0x127   : > { %v781_v62 = vpop.permute.xlu1 %780  ;;  %v779_v63 = vpop.permute.xlu0 %778  ;;  %v2291_v19 = vpack.i.bf16 %v914_v8, %v913_v9 }
 0x128   : > { %v783_v3 = vsel %vm782_vm9, %v779_v63, %v781_v62  ;;  %v789_v10 = vmul.f32 %v2829_v38, %v781_v62  ;;  %v787_v45 = vmul.f32 %v2819_v25, %v779_v63 }
 0x129   : > { %v788_v11 = vmul.f32 %v2827_v37, %v783_v3 }
 0x12a   : > { %2272 = vrot.lane.b32.xlu1 %v2271_v0, %s2528_s20  ;;  %2277 = vrot.lane.b32.xlu0 %v2276_v1, %s2530_s16  ;;  %s2543_s20 = smov 47  }
 0x12b   : > { %v823_v4 = vpop.permute.xlu1 %822  ;;  %v821_v5 = vpop.permute.xlu0 %820  ;;  %v2296_v20 = vpack.i.bf16 %v789_v10, %v788_v11 }
 0x12c   : > { %v825_v14 = vsel %vm824_vm10, %v821_v5, %v823_v4  ;;  %v831_v17 = vmul.f32 %v2829_v38, %v823_v4  ;;  %v829_v28 = vmul.f32 %v2819_v25, %v821_v5 }
 0x12d   : > { %v830_v18 = vmul.f32 %v2827_v37, %v825_v14 }
 0x12e   : > { %2282 = vrot.lane.b32.xlu1 %v2281_v6, %s2531_s12  ;;  %2287 = vrot.lane.b32.xlu0 %v2286_v7, %s2532_s22  ;;  %s3223_s22 = sld [smem:[#allocation10_spill]] }
 0x12f   : > { %v697_v15 = vpop.permute.xlu1 %696  ;;  %v695_v16 = vpop.permute.xlu0 %694  ;;  %v2306_v23 = vpack.i.bf16 %v831_v17, %v830_v18 }
 0x130   : > { %v699_v42 = vsel %vm698_vm12, %v695_v16, %v697_v15  ;;  %v705_v47 = vmul.f32 %v2829_v38, %v697_v15  ;;  %v703_v58 = vmul.f32 %v2819_v25, %v695_v16 }
 0x131   : > { %v704_v48 = vmul.f32 %v2827_v37, %v699_v42 }
 0x132   : > { %2292 = vrot.lane.b32.xlu1 %v2291_v19, %s2533_s25  ;;  %2297 = vrot.lane.b32.xlu0 %v2296_v20, %s2534_s26 }
 0x133   : > { %v739_v21 = vpop.permute.xlu1 %738  ;;  %v737_v22 = vpop.permute.xlu0 %736  ;;  %v2311_v54 = vpack.i.bf16 %v705_v47, %v704_v48 }
 0x134   : > { %v741_v24 = vsel %vm740_vm11, %v737_v22, %v739_v21  ;;  %v747_v29 = vmul.f32 %v2829_v38, %v739_v21  ;;  %v745_v61 = vmul.f32 %v2819_v25, %v737_v22 }
 0x135   : > { %v746_v30 = vmul.f32 %v2827_v37, %v741_v24 }
 0x136   : > { %2307 = vrot.lane.b32.xlu1 %v2306_v23, %s2518_s18 }
 0x137   : > { %v613_v26 = vpop.permute.xlu1 %612  ;;  %v611_v27 = vpop.permute.xlu0 %610  ;;  %v2316_v33 = vpack.i.bf16 %v747_v29, %v746_v30 }
 0x138   : > { %v615_v55 = vsel %vm614_vm13, %v611_v27, %v613_v26  ;;  %v621_v63 = vmul.f32 %v2829_v38, %v613_v26  ;;  %v619_v16 = vmul.f32 %v2819_v25, %v611_v27 }
 0x139   : > { %v620_v0 = vmul.f32 %v2827_v37, %v615_v55 }
 0x13a   : > { %835 = vrot.lane.b32.xlu1 %v829_v28, %s2518_s18  ;;  %s2536_s18 = smov 112  }
 0x13b   : > { %v655_v31 = vpop.permute.xlu1 %654  ;;  %v653_v32 = vpop.permute.xlu0 %652  ;;  %v2331_v9 = vpack.i.bf16 %v621_v63, %v620_v0 }
 0x13c   : > { %v657_v59 = vsel %vm656_vm14, %v653_v32, %v655_v31  ;;  %v663_v2 = vmul.f32 %v2829_v38, %v655_v31  ;;  %v661_v19 = vmul.f32 %v2819_v25, %v653_v32 }
 0x13d   : > { %v662_v3 = vmul.f32 %v2827_v37, %v657_v59 }
 0x13e   : > { %2317 = vrot.lane.b32.xlu1 %v2316_v33, %s2535_s28 }
 0x13f   : > { %v529_v34 = vpop.permute.xlu1 %528  ;;  %v2870_v35 = vpop.permute.xlu0 %526  ;;  %v2336_v15 = vpack.i.bf16 %v663_v2, %v662_v3 }
 0x140   : > { %v531_v10 = vsel %vm530_vm15, %v2870_v35, %v529_v34  ;;  %v537_v21 = vmul.f32 %v2829_v38, %v529_v34 }
 0x141   : > { %v536_v22 = vmul.f32 %v2827_v37, %v531_v10 }
 0x143   : > { %v571_v36 = vpop.permute.xlu1 %570  ;;  %v2872_v39 = vpop.permute.xlu0 %568  ;;  %v2351_v32 = vpack.i.bf16 %v537_v21, %v536_v22 }
 0x144   : > { %v573_v17 = vsel %vm572_vm0, %v2872_v39, %v571_v36  ;;  %v579_v24 = vmul.f32 %v2829_v38, %v571_v36  ;;  %v535_v36 = vmul.f32 %v2819_v25, %v2870_v35 }
 0x145   : > { %v578_v26 = vmul.f32 %v2827_v37, %v573_v17 }
 0x147   : > { %v2874_v40 = vpop.permute.xlu1 %486  ;;  %v2876_v41 = vpop.permute.xlu0 %484  ;;  %v2356_v34 = vpack.i.bf16 %v579_v24, %v578_v26 }
 0x148   : > { %v489_v33 = vsel %vm488_vm1, %v2876_v41, %v2874_v40  ;;  %v493_v55 = vmul.f32 %v2819_v25, %v2876_v41 }
 0x149   : > { %v494_v47 = vmul.f32 %v2827_v37, %v489_v33  ;;  %v1608_v33 = vld [vmem:[%s3207_s4] sm:$0xff] }
 0x14b   : > { %v2878_v43 = vpop.permute.xlu1 %1498  ;;  %v2880_v44 = vpop.permute.xlu0 %1496 }
 0x14c   : > { %v1504_v46 = vmul.f32 %v2880_v44, %v2827_v37  ;;  %v1500_v35 = vsel %vm782_vm9, %v2880_v44, %v2878_v43  ;;  %vm1008_vm9 = vcmask 449536  }
 0x14e   : > { %v2301_v49 = vpack.i.bf16 %v1504_v46, %v787_v45  ;;  %v495_v46 = vmul.f32 %v2829_v38, %v2874_v40 }
 0x14f   : > { %v2887_v50 = vpop.permute.xlu1 %1418  ;;  %v2889_v51 = vpop.permute.xlu0 %1416 }
 0x150   : > { %v1420_v52 = vsel %vm698_vm12, %v2889_v51, %v2887_v50  ;;  %2302 = vrot.lane.b32.xlu0 %v2301_v49, %s2534_s26  ;;  %v577_v49 = vmul.f32 %v2819_v25, %v2872_v39  ;;  %v2366_v40 = vpack.i.bf16 %v495_v46, %v494_v47  ;;  %v1424_v39 = vmul.f32 %v2889_v51, %v2827_v37 }
 0x151   : > { %v1425_v53 = vmul.f32 %v1420_v52, %v2829_v38  ;;  %v1484_v52 = vld [vmem:[#allocation2 + $0x18] sm:$0xff]  ;;  %vm924_vm12 = vcmask 506880  }
 0x153   : > { %v2896_v56 = vpop.permute.xlu1 %1458  ;;  %v2898_v57 = vpop.permute.xlu0 %1456  ;;  %v2321_v1 = vpack.i.bf16 %v1425_v53, %v703_v58  ;;  %v1506_v53 = vmul.f32 %v2878_v43, %v1484_v52  ;;  %v1426_v58 = vmul.f32 %v1484_v52, %v2887_v50 }
 0x154   : > { %v1460_v60 = vsel %vm740_vm11, %v2898_v57, %v2896_v56  ;;  %2312 = vrot.lane.b32.xlu0 %v2311_v54, %s2536_s18  ;;  %v1505_v54 = vmul.f32 %v1500_v35, %v2829_v38  ;;  %v1466_v43 = vmul.f32 %v1484_v52, %v2896_v56  ;;  %v1464_v44 = vmul.f32 %v2898_v57, %v2827_v37 }
 0x155   : > { %v1465_v62 = vmul.f32 %v1460_v60, %v2829_v38  ;;  %vm882_vm11 = vcmask 515072  }
 0x156   : > { %v2381_v0 = vpack.i.bf16 %v1464_v44, %v1466_v43 }
 0x157   : > { %v2912_v4 = vpop.permute.xlu1 %1338  ;;  %v2914_v5 = vpop.permute.xlu0 %1336  ;;  %v2326_v6 = vpack.i.bf16 %v1465_v62, %v745_v61  ;;  %v2371_v61 = vpack.i.bf16 %v1506_v53, %v1505_v54  ;;  %v2376_v62 = vpack.i.bf16 %v1424_v39, %v1426_v58 }
 0x158   : > { %v1340_v7 = vsel %vm614_vm13, %v2914_v5, %v2912_v4  ;;  %2322 = vrot.lane.b32.xlu0 %v2321_v1, %s2536_s18  ;;  %v1346_v41 = vmul.f32 %v1484_v52, %v2912_v4  ;;  %v1344_v50 = vmul.f32 %v2914_v5, %v2827_v37  ;;  %vm799_vm13 = vcmask 900096  }
 0x159   : > { %2327 = vrot.lane.b32.xlu1 %v2326_v6, %s2535_s28  ;;  %v1345_v8 = vmul.f32 %v1340_v7, %v2829_v38 }
 0x15a   : > { %v2386_v57 = vpack.i.bf16 %v1344_v50, %v1346_v41 }
 0x15b   : > { %v2924_v11 = vpop.permute.xlu1 %1378  ;;  %v2926_v14 = vpop.permute.xlu0 %1376  ;;  %v2341_v23 = vpack.i.bf16 %v1345_v8, %v619_v16 }
 0x15c   : > { %v1380_v18 = vsel %vm656_vm14, %v2926_v14, %v2924_v11  ;;  %2332 = vrot.lane.b32.xlu0 %v2331_v9, %s2537_s27  ;;  %v1386_v1 = vmul.f32 %v1484_v52, %v2924_v11  ;;  %v1384_v56 = vmul.f32 %v2926_v14, %v2827_v37  ;;  %vm715_vm14 = vcmask 916480  }
 0x15d   : > { %v1385_v20 = vmul.f32 %v1380_v18, %v2829_v38  ;;  %2337 = vrot.lane.b32.xlu1 %v2336_v15, %s2538_s17 }
 0x15e   : > { %v2391_v5 = vpack.i.bf16 %v1384_v56, %v1386_v1 }
 0x15f   : > { %v1259_v27 = vpop.permute.xlu1 %1258  ;;  %v1257_v28 = vpop.permute.xlu0 %1256  ;;  %v2346_v29 = vpack.i.bf16 %v1385_v20, %v661_v19 }
 0x160   : > { %v1260_v30 = vsel %vm530_vm15, %v1257_v28, %v1259_v27  ;;  %2342 = vrot.lane.b32.xlu0 %v2341_v23, %s2537_s27  ;;  %v1266_v2 = vmul.f32 %v1484_v52, %v1259_v27  ;;  %v1264_v3 = vmul.f32 %v1257_v28, %v2827_v37  ;;  %v2425_v27 = vld [vmem:[%s3206_s3 + $0x4] ss:$8 sps:$4 sm:$0xff]   ;;  %v2428_v28 = vld [vmem:[%s3206_s3 + $0x14] ss:$8 sps:$4 sm:$0xff]   ;;  %vm757_vm15 = vcmask 908288  }
 0x161   : > { %2347 = vrot.lane.b32.xlu1 %v2346_v29, %s2538_s17  ;;  %v1265_v31 = vmul.f32 %v1260_v30, %v2829_v38  ;;  %2147 = vmatprep.mubr.msk.bf16.mxu0 %vm1650_vm4, %v2425_v27  ;;  %v2542_v30 = vmov 0  }
 0x162   : > { %v2396_v8 = vpack.i.bf16 %v1264_v3, %v1266_v2  ;;  %2148 = vmatprep.mubr.msk.bf16.mxu1 %vm1650_vm4, %v2428_v28  ;;  %2422 = vset.pattern.permute.xlu1 %v2542_v30  ;;  %vm1657_vm4 = vcmask 1043456  }
 0x163   : > { %v1299_v42 = vpop.permute.xlu1 %1298  ;;  %v1297_v45 = vpop.permute.xlu0 %1296  ;;  %v2361_v48 = vpack.i.bf16 %v1265_v31, %v535_v36  ;;  %2421 = vset.pattern.permute.xlu0 %v2542_v30 }
 0x164   : > { %2352 = vrot.lane.b32.xlu0 %v2351_v32, %s2539_s21  ;;  %v1300_v4 = vsel %vm572_vm0, %v1297_v45, %v1299_v42  ;;  %v1306_v6 = vmul.f32 %v1484_v52, %v1299_v42  ;;  %v1304_v18 = vmul.f32 %v1297_v45, %v2827_v37  ;;  %v1611_v42 = vld [vmem:[%s3207_s4 + $0x18] sm:$0xff]  ;;  %v1610_v45 = vld [vmem:[%s3207_s4 + $0x10] sm:$0xff]  ;;  %vm673_vm0 = vcmask 965632  }
 0x165   : > { %2357 = vrot.lane.b32.xlu1 %v2356_v34, %s2540_s30  ;;  %v1305_v7 = vmul.f32 %v1300_v4, %v2829_v38  ;;  %v1609_v34 = vld [vmem:[%s3207_s4 + $0x8] sm:$0xff] }
 0x167   : > { %v1219_v59 = vpop.permute.xlu1 %1218  ;;  %v1217_v60 = vpop.permute.xlu0 %1216  ;;  %v2401_v16 = vpack.i.bf16 %v1306_v6, %v1305_v7 }
 0x168   : > { %2362 = vrot.lane.b32.xlu0 %v2361_v48, %s2539_s21  ;;  %v1220_v9 = vsel %vm488_vm1, %v1217_v60, %v1219_v59  ;;  %v1226_v14 = vmul.f32 %v1484_v52, %v1219_v59  ;;  %v1224_v26 = vmul.f32 %v1217_v60, %v2827_v37  ;;  %vm547_vm1 = vcmask 1031168  }
 0x169   : > { %583 = vrot.lane.b32.xlu1 %v577_v49, %s2540_s30  ;;  %v1225_v15 = vmul.f32 %v1220_v9, %v2829_v38 }
 0x16b   : > { %v1116_v51 = vpop.permute.xlu1 %1115  ;;  %v1114_v63 = vpop.permute.xlu0 %1113  ;;  %v2406_v24 = vpack.i.bf16 %v1226_v14, %v1225_v15 }
 0x16c   : > { %2367 = vrot.lane.b32.xlu0 %v2366_v40, %s2541_s19  ;;  %v1118_v19 = vsel %vm1117_vm3, %v1114_v63, %v1116_v51  ;;  %v1124_v22 = vmul.f32 %v1116_v51, %v2829_v38  ;;  %v1122_v31 = vmul.f32 %v1114_v63, %v2819_v25  ;;  %vm505_vm3 = vcmask 1039360  }
 0x16d   : > { %499 = vrot.lane.b32.xlu1 %v493_v55, %s2541_s19  ;;  %v1123_v23 = vmul.f32 %v1118_v19, %v2827_v37 }
 0x16f   : > { %v1158_v10 = vpop.permute.xlu1 %1157  ;;  %v1156_v11 = vpop.permute.xlu0 %1155 }
 0x170   : > { %2372 = vrot.lane.b32.xlu0 %v2371_v61, %s2534_s26  ;;  %v1160_v17 = vsel %vm1159_vm2, %v1156_v11, %v1158_v10  ;;  %v1166_v20 = vmul.f32 %v1158_v10, %v2829_v38  ;;  %v2411_v38 = vpack.i.bf16 %v1124_v22, %v1123_v23  ;;  %v1164_v32 = vmul.f32 %v1156_v11, %v2819_v25 }
 0x171   : > { %2377 = vrot.lane.b32.xlu1 %v2376_v62, %s2536_s18  ;;  %v1165_v21 = vmul.f32 %v1160_v17, %v2827_v37  ;;  %vm589_vm2 = vcmask 982016  }
 0x173   : > { %v2416_v29 = vpack.i.bf16 %v1166_v20, %v1165_v21 }
 0x174   : > { %2382 = vrot.lane.b32.xlu0 %v2381_v0, %s2535_s28 }
 0x175   : > { %2387 = vrot.lane.b32.xlu1 %v2386_v57, %s2537_s27 }
 0x178   : > { %2392 = vrot.lane.b32.xlu0 %v2391_v5, %s2538_s17 }
 0x179   : > { %2397 = vrot.lane.b32.xlu1 %v2396_v8, %s2539_s21 }
 0x17c   : > { %2402 = vrot.lane.b32.xlu0 %v2401_v16, %s2540_s30 }
 0x17d   : > { %1310 = vrot.lane.b32.xlu1 %v1304_v18, %s2540_s30 }
 0x180   : > { %2407 = vrot.lane.b32.xlu0 %v2406_v24, %s2541_s19 }
 0x181   : > { %1230 = vrot.lane.b32.xlu1 %v1224_v26, %s2541_s19 }
 0x184   : > { %2412 = vrot.lane.b32.xlu0 %v2411_v38, %s2543_s20  ;;  %v1045_v36 = vpop.permute.xlu0 %1044  ;;  %v1087_v46 = vpop.permute.xlu1 %1086 }
 0x185   : > { %2417 = vrot.lane.b32.xlu1 %v2416_v29, %s2544_s11 }
 0x188   : > { %1128 = vrot.lane.b32.xlu0 %v1122_v31, %s2543_s20 }
 0x189   : > { %1170 = vrot.lane.b32.xlu1 %v1164_v32, %s2544_s11 }
 0x18c   : > { %1614 = vperm.xlu0 %2421, %v1608_v33   ;;  %v961_v47 = vpop.permute.xlu0 %960 }
 0x18d   : > { %1619 = vperm.xlu1 %2422, %v1609_v34  }
 0x190   : > { %1629 = vperm.xlu0 %2421, %v1611_v42   ;;  %v1003_v48 = vpop.permute.xlu1 %1002 }
 0x191   : > { %1624 = vperm.xlu1 %2422, %v1610_v45  }
 0x194   : > { %v877_v49 = vpop.permute.xlu0 %876 }
 0x198   : > { %v919_v52 = vpop.permute.xlu1 %918  ;;  %v2268_v35 = vpop.permute.xlu0 %2267 }
 0x199   : > { %v2270_v53 = vunpack.i.h.bf16 %v2268_v35  ;;  %v2269_v54 = vunpack.i.l.bf16 %v2268_v35 }
 0x19b   : > { %v1052_v43 = vsel %vm1050_vm5, %v2269_v54, %v2270_v53  ;;  %v1051_v61 = vsel %vm1050_vm5, %v1045_v36, %v2269_v54  ;;  %vm1134_vm5 = vcmask 384000  }
 0x19c   : > { %v2273_v40 = vpop.permute.xlu1 %2272  ;;  %v2278_v55 = vpop.permute.xlu0 %2277 }
 0x19d   : > { %v2275_v58 = vunpack.i.h.bf16 %v2273_v40  ;;  %v2274_v39 = vunpack.i.l.bf16 %v2273_v40  ;;  %v2280_v59 = vunpack.i.h.bf16 %v2278_v55  ;;  %v2279_v60 = vunpack.i.l.bf16 %v2278_v55 }
 0x19f   : > { %v1094_v44 = vsel %vm1092_vm7, %v2274_v39, %v2275_v58  ;;  %v1093_v62 = vsel %vm1092_vm7, %v1087_v46, %v2274_v39  ;;  %v968_v2 = vsel %vm966_vm8, %v2279_v60, %v2280_v59  ;;  %v967_v4 = vsel %vm966_vm8, %v961_v47, %v2279_v60 }
 0x1a0   : > { %v2283_v41 = vpop.permute.xlu1 %2282  ;;  %v2288_v50 = vpop.permute.xlu0 %2287  ;;  %v1595_v51 = vpack.c.bf16 %v1094_v44, %v1052_v43  ;;  %v1594_v63 = vpack.c.bf16 %v1093_v62, %v1051_v61  ;;  %vm1176_vm7 = vcmask 375808   ;;  %vm1940_vm8 = vcmask 1048136  }
 0x1a1   : > { %v2285_v0 = vunpack.i.h.bf16 %v2283_v41  ;;  %v2284_v1 = vunpack.i.l.bf16 %v2283_v41  ;;  %v2290_v56 = vunpack.i.h.bf16 %v2288_v50  ;;  %v2289_v57 = vunpack.i.l.bf16 %v2288_v50 }
 0x1a2   : > { %1664 = vmatprep.subr.bf16.mxu0 %v1595_v51  ;;  %2160 = vmatprep.subr.bf16.mxu1 %v1595_v51 }
 0x1a3   : > { %1665 = vmatpush1.bf16.msra.mxu0 %v1594_v63  ;;  %2174 = vmatpush1.bf16.msra.mxu1 %v1594_v63  ;;  %v1010_v3 = vsel %vm1008_vm9, %v2284_v1, %v2285_v0  ;;  %v1009_v5 = vsel %vm1008_vm9, %v1003_v48, %v2284_v1  ;;  %v884_v14 = vsel %vm882_vm11, %v2289_v57, %v2290_v56 }
 0x1a4   : > { %v2293_v6 = vpop.permute.xlu1 %2292  ;;  %v2298_v7 = vpop.permute.xlu0 %2297  ;;  %v1593_v8 = vpack.c.bf16 %v1010_v3, %v968_v2  ;;  %v1592_v9 = vpack.c.bf16 %v1009_v5, %v967_v4  ;;  %v883_v15 = vsel %vm882_vm11, %v877_v49, %v2289_v57 }
 0x1a5   : > { %v2295_v10 = vunpack.i.h.bf16 %v2293_v6  ;;  %v2294_v11 = vunpack.i.l.bf16 %v2293_v6  ;;  %v2300_v16 = vunpack.i.h.bf16 %v2298_v7  ;;  %v2299_v17 = vunpack.i.l.bf16 %v2298_v7 }
 0x1a6   : > { %1666 = vmatprep.subr.bf16.mxu0 %v1593_v8  ;;  %2161 = vmatprep.subr.bf16.mxu1 %v1593_v8  ;;  %v454_v8 = vld [vmem:[%s3210_s7] ss:$8 sm:$0x3] }
 0x1a7   : > { %1667 = vmatpush1.bf16.msra.mxu0 %v1592_v9  ;;  %2175 = vmatpush1.bf16.msra.mxu1 %v1592_v9  ;;  %v926_v18 = vsel %vm924_vm12, %v2294_v11, %v2295_v10  ;;  %v925_v19 = vsel %vm924_vm12, %v919_v52, %v2294_v11  ;;  %v801_v26 = vsel %vm799_vm13, %v2299_v17, %v2300_v16 }
 0x1a8   : > { %v2308_v20 = vpop.permute.xlu1 %2307  ;;  %v1591_v21 = vpack.c.bf16 %v926_v18, %v884_v14  ;;  %v1590_v22 = vpack.c.bf16 %v925_v19, %v883_v15  ;;  %v459_v16 = vrot.slane %v454_v8, %v2660_v12 }
 0x1a9   : > { %v2310_v23 = vunpack.i.h.bf16 %v2308_v20  ;;  %v2309_v24 = vunpack.i.l.bf16 %v2308_v20 }
 0x1aa   : > { %1668 = vmatprep.subr.bf16.mxu0 %v1591_v21  ;;  %2162 = vmatprep.subr.bf16.mxu1 %v1591_v21 }
 0x1ab   : > { %1669 = vmatpush1.bf16.msra.mxu0 %v1590_v22  ;;  %2176 = vmatpush1.bf16.msra.mxu1 %v1590_v22  ;;  %v842_v27 = vsel %vm824_vm10, %v2309_v24, %v2310_v23 }
 0x1ac   : > { %v1589_v28 = vpack.c.bf16 %v842_v27, %v801_v26  ;;  %v836_v29 = vpop.permute.xlu1 %835  ;;  %v466_v26 = vmul.f32 %v2819_v25, %v459_v16 }
 0x1ad   : > { %v841_v32 = vsel %vm824_vm10, %v836_v29, %v2309_v24  ;;  %vm631_vm10 = vcmask 973824  }
 0x1ae   : > { %1670 = vmatprep.subr.bf16.mxu0 %v1589_v28  ;;  %2163 = vmatprep.subr.bf16.mxu1 %v1589_v28 }
 0x1b0   : > { %v2318_v38 = vpop.permute.xlu1 %2317 }
 0x1b1   : > { %v2320_v33 = vunpack.i.h.bf16 %v2318_v38  ;;  %v2319_v34 = vunpack.i.l.bf16 %v2318_v38 }
 0x1b3   : > { %v759_v49 = vsel %vm757_vm15, %v2319_v34, %v2320_v33 }
 0x1c2   : > { %v3026_v30 = vpop.permute.xlu0 %2302 }
 0x1c3   : > { %v2304_v31 = vunpack.i.l.bf16 %v3026_v30 }
 0x1c5   : > { %v800_v36 = vsel %vm799_vm13, %v2304_v31, %v2299_v17  ;;  %v463_v17 = vrot.slane %v454_v8, %v2662_v13 }
 0x1c6   : > { %v2313_v42 = vpop.permute.xlu0 %2312  ;;  %v1588_v45 = vpack.c.bf16 %v841_v32, %v800_v36 }
 0x1c7   : > { %v2315_v46 = vunpack.i.h.bf16 %v2313_v42  ;;  %v2314_v47 = vunpack.i.l.bf16 %v2313_v42  ;;  %v467_v27 = vmul.f32 %v2827_v37, %v463_v17  ;;  %v2305_v42 = vunpack.i.h.bf16 %v3026_v30 }
 0x1c8   : > { %1671 = vmatpush1.bf16.msra.mxu0 %v1588_v45  ;;  %2177 = vmatpush1.bf16.msra.mxu1 %v1588_v45 }
 0x1c9   : > { %v717_v48 = vsel %vm715_vm14, %v2314_v47, %v2315_v46 }
 0x1ca   : > { %v3033_v52 = vpop.permute.xlu0 %2322  ;;  %v1587_v35 = vpack.c.bf16 %v759_v49, %v717_v48 }
 0x1cb   : > { %v2324_v53 = vunpack.i.l.bf16 %v3033_v52  ;;  %v3036_v54 = vpop.permute.xlu1 %2327 }
 0x1cc   : > { %v2329_v40 = vunpack.i.l.bf16 %v3036_v54  ;;  %1672 = vmatprep.subr.bf16.mxu0 %v1587_v35  ;;  %2164 = vmatprep.subr.bf16.mxu1 %v1587_v35  ;;  %v2325_v35 = vunpack.i.h.bf16 %v3033_v52  ;;  %v2330_v30 = vunpack.i.h.bf16 %v3036_v54  ;;  %v2133_v54 = vld [vmem:[%s3210_s7 + $0x22] ss:$8 sm:$0x3] }
 0x1cd   : > { %v716_v55 = vsel %vm715_vm14, %v2324_v53, %v2314_v47  ;;  %v1195_v17 = vrot.slane %v2133_v54, %v2662_v13 }
 0x1ce   : > { %v2333_v58 = vpop.permute.xlu0 %2332  ;;  %v758_v39 = vsel %vm757_vm15, %v2329_v40, %v2319_v34 }
 0x1cf   : > { %v2335_v59 = vunpack.i.h.bf16 %v2333_v58  ;;  %v2334_v60 = vunpack.i.l.bf16 %v2333_v58  ;;  %v2338_v43 = vpop.permute.xlu1 %2337  ;;  %v1586_v44 = vpack.c.bf16 %v758_v39, %v716_v55 }
 0x1d0   : > { %v2340_v61 = vunpack.i.h.bf16 %v2338_v43  ;;  %v2339_v62 = vunpack.i.l.bf16 %v2338_v43 }
 0x1d1   : > { %1673 = vmatpush1.bf16.msra.mxu0 %v1586_v44  ;;  %2178 = vmatpush1.bf16.msra.mxu1 %v1586_v44  ;;  %v633_v41 = vsel %vm631_vm10, %v2334_v60, %v2335_v59 }
 0x1d2   : > { %v3042_v50 = vpop.permute.xlu0 %2342  ;;  %v675_v51 = vsel %vm673_vm0, %v2339_v62, %v2340_v61 }
 0x1d3   : > { %v2344_v63 = vunpack.i.l.bf16 %v3042_v50  ;;  %v3046_v0 = vpop.permute.xlu1 %2347  ;;  %v1585_v1 = vpack.c.bf16 %v675_v51, %v633_v41  ;;  %v2345_v51 = vunpack.i.h.bf16 %v3042_v50 }
 0x1d4   : > { %v2349_v56 = vunpack.i.l.bf16 %v3046_v0 }
 0x1d5   : > { %1674 = vmatprep.subr.bf16.mxu0 %v1585_v1  ;;  %2165 = vmatprep.subr.bf16.mxu1 %v1585_v1  ;;  %v632_v57 = vsel %vm631_vm10, %v2344_v63, %v2334_v60 }
 0x1d6   : > { %v2353_v2 = vpop.permute.xlu0 %2352  ;;  %v674_v3 = vsel %vm673_vm0, %v2349_v56, %v2339_v62 }
 0x1d7   : > { %v2355_v4 = vunpack.i.h.bf16 %v2353_v2  ;;  %v2354_v5 = vunpack.i.l.bf16 %v2353_v2  ;;  %v2358_v6 = vpop.permute.xlu1 %2357  ;;  %v1584_v7 = vpack.c.bf16 %v674_v3, %v632_v57  ;;  %v2350_v57 = vunpack.i.h.bf16 %v3046_v0 }
 0x1d8   : > { %v2360_v9 = vunpack.i.h.bf16 %v2358_v6  ;;  %v2359_v10 = vunpack.i.l.bf16 %v2358_v6 }
 0x1d9   : > { %1675 = vmatpush1.bf16.msra.mxu0 %v1584_v7  ;;  %2179 = vmatpush1.bf16.msra.mxu1 %v1584_v7  ;;  %v549_v11 = vsel %vm547_vm1, %v2354_v5, %v2355_v4  ;;  %v1191_v7 = vrot.slane %v2133_v54, %v2660_v12  ;;  %v1183_v12 = vld [vmem:[#allocation2 + $0x8] sm:$0xff] }
 0x1da   : > { %v3055_v14 = vpop.permute.xlu0 %2362  ;;  %v591_v15 = vsel %vm589_vm2, %v2359_v10, %v2360_v9 }
 0x1db   : > { %v2364_v18 = vunpack.i.l.bf16 %v3055_v14  ;;  %v584_v19 = vpop.permute.xlu1 %583  ;;  %v1583_v20 = vpack.c.bf16 %v591_v15, %v549_v11  ;;  %v2365_v0 = vunpack.i.h.bf16 %v3055_v14  ;;  %v1198_v13 = vmul.f32 %v1191_v7, %v1183_v12 }
 0x1dc   : > { %v590_v21 = vsel %vm589_vm2, %v584_v19, %v2359_v10 }
 0x1dd   : > { %v548_v22 = vsel %vm547_vm1, %v2364_v18, %v2354_v5  ;;  %1676 = vmatprep.subr.bf16.mxu0 %v1583_v20  ;;  %2166 = vmatprep.subr.bf16.mxu1 %v1583_v20 }
 0x1de   : > { %v1582_v23 = vpack.c.bf16 %v590_v21, %v548_v22  ;;  %v2368_v24 = vpop.permute.xlu0 %2367  ;;  %v1184_v21 = vld [vmem:[#allocation2 + $0x10] sm:$0xff] }
 0x1df   : > { %v2370_v28 = vunpack.i.h.bf16 %v2368_v24  ;;  %v2369_v29 = vunpack.i.l.bf16 %v2368_v24  ;;  %v500_v38 = vpop.permute.xlu1 %499 }
 0x1e0   : > { %1677 = vmatpush1.bf16.msra.mxu0 %v1582_v23  ;;  %2180 = vmatpush1.bf16.msra.mxu1 %v1582_v23 }
 0x1e1   : > { %v506_v31 = vsel %vm505_vm3, %v500_v38, %v2369_v29  ;;  %v507_v32 = vsel %vm505_vm3, %v2369_v29, %v2370_v28  ;;  %v1199_v29 = vmul.f32 %v1195_v17, %v1184_v21  ;;  %v1790_v17 = vld [vmem:[%s3208_s5] sm:$0xff] }
 0x1e2   : > { %v1580_v33 = vpack.c.bf16 %v506_v31, %v466_v26  ;;  %v2373_v34 = vpop.permute.xlu0 %2372  ;;  %v1581_v36 = vpack.c.bf16 %v507_v32, %v467_v27 }
 0x1e3   : > { %v2375_v45 = vunpack.i.h.bf16 %v2373_v34  ;;  %v2374_v46 = vunpack.i.l.bf16 %v2373_v34  ;;  %v2378_v47 = vpop.permute.xlu1 %2377 }
 0x1e4   : > { %v2379_v25 = vunpack.i.l.bf16 %v2378_v47  ;;  %1678 = vmatprep.subr.bf16.mxu0 %v1581_v36  ;;  %2167 = vmatprep.subr.bf16.mxu1 %v1581_v36  ;;  %v2380_v48 = vunpack.i.h.bf16 %v2378_v47 }
 0x1e5   : > { %v1517_v37 = vsel %vm799_vm13, %v2374_v46, %v2375_v45  ;;  %1679 = vmatpush1.bf16.msra.mxu0 %v1580_v33  ;;  %2181 = vmatpush1.bf16.msra.mxu1 %v1580_v33  ;;  %v1516_v49 = vsel %vm799_vm13, %v2305_v42, %v2374_v46 }
 0x1e6   : > { %v1607_v53 = vpack.c.bf16 %v1517_v37, %v1517_v37  ;;  %v2383_v40 = vpop.permute.xlu0 %2382  ;;  %v1606_v55 = vpack.c.bf16 %v1516_v49, %v1516_v49  ;;  %v1437_v44 = vsel %vm715_vm14, %v2325_v35, %v2379_v25  ;;  %v1436_v52 = vsel %vm715_vm14, %v2380_v48, %v2325_v35 }
 0x1e7   : > { %v2385_v58 = vunpack.i.h.bf16 %v2383_v40  ;;  %v2384_v39 = vunpack.i.l.bf16 %v2383_v40  ;;  %v2388_v59 = vpop.permute.xlu1 %2387 }
 0x1e8   : > { %v2389_v60 = vunpack.i.l.bf16 %v2388_v59  ;;  %2146 = vmatprep.subr.msk.bf16.mxu0 %vm1657_vm4, %v1607_v53  ;;  %2168 = vmatprep.subr.msk.bf16.mxu1 %vm1657_vm4, %v1607_v53  ;;  %v1659_v43 = vsel %vm1657_vm4, %v1606_v55, 0  ;;  %v2390_v61 = vunpack.i.h.bf16 %v2388_v59  ;;  %v2423_v59 = vld [vmem:[%s3206_s3] ss:$8 sps:$4 sm:$0xff]  }
 0x1e9   : > { %1685 = vmatpush2.bf16.msra.mxu0 %v1659_v43  ;;  %2182 = vmatpush2.bf16.msra.mxu1 %v1659_v43  ;;  %v1477_v62 = vsel %vm757_vm15, %v2330_v30, %v2384_v39  ;;  %v1476_v41 = vsel %vm757_vm15, %v2385_v58, %v2330_v30 }
 0x1ea   : > { %v2393_v63 = vpop.permute.xlu0 %2392  ;;  %v1605_v1 = vpack.c.bf16 %v1477_v62, %v1437_v44  ;;  %v1604_v56 = vpack.c.bf16 %v1476_v41, %v1436_v52  ;;  %v1357_v6 = vsel %vm631_vm10, %v2345_v51, %v2389_v60  ;;  %v1356_v9 = vsel %vm631_vm10, %v2390_v61, %v2345_v51  ;;  %v2426_v60 = vld [vmem:[%s3206_s3 + $0x10] ss:$8 sps:$4 sm:$0xff]  }
 0x1eb   : > { %v2395_v2 = vunpack.i.h.bf16 %v2393_v63  ;;  %v2394_v3 = vunpack.i.l.bf16 %v2393_v63  ;;  %v2398_v4 = vpop.permute.xlu1 %2397 }
 0x1ec   : > { %v2400_v5 = vunpack.i.h.bf16 %v2398_v4  ;;  %1686 = vmatprep.subr.bf16.mxu0 %v1605_v1  ;;  %2169 = vmatprep.subr.bf16.mxu1 %v1605_v1  ;;  %v2399_v8 = vunpack.i.l.bf16 %v2398_v4 }
 0x1ed   : > { %1687 = vmatpush2.bf16.msra.mxu0 %v1604_v56  ;;  %2183 = vmatpush2.bf16.msra.mxu1 %v1604_v56  ;;  %v1397_v50 = vsel %vm673_vm0, %v2350_v57, %v2394_v3  ;;  %v1396_v10 = vsel %vm673_vm0, %v2395_v2, %v2350_v57 }
 0x1ee   : > { %v2403_v11 = vpop.permute.xlu0 %2402  ;;  %v1603_v15 = vpack.c.bf16 %v1397_v50, %v1357_v6  ;;  %v1602_v16 = vpack.c.bf16 %v1396_v10, %v1356_v9  ;;  %v1276_v22 = vsel %vm547_vm1, %v2400_v5, %v2365_v0  ;;  %v1277_v14 = vsel %vm547_vm1, %v2365_v0, %v2399_v8 }
 0x1ef   : > { %v2405_v18 = vunpack.i.h.bf16 %v2403_v11  ;;  %v2404_v19 = vunpack.i.l.bf16 %v2403_v11  ;;  %v1311_v20 = vpop.permute.xlu1 %1310 }
 0x1f0   : > { %1688 = vmatprep.subr.bf16.mxu0 %v1603_v15  ;;  %2170 = vmatprep.subr.bf16.mxu1 %v1603_v15  ;;  %v1791_v15 = vld [vmem:[%s3208_s5 + $0x8] sm:$0xff] }
 0x1f1   : > { %v1316_v23 = vsel %vm589_vm2, %v1311_v20, %v2404_v19  ;;  %1689 = vmatpush2.bf16.msra.mxu0 %v1602_v16  ;;  %2184 = vmatpush2.bf16.msra.mxu1 %v1602_v16  ;;  %v1317_v24 = vsel %vm589_vm2, %v2404_v19, %v2405_v18  ;;  %v1822_v16 = vld [vmem:[%s3223_s22] sm:$0xff]  ;;  %v1823_v18 = vld [vmem:[%s3223_s22 + $0x8] sm:$0xff]  ;;  %v1793_v19 = vld [vmem:[%s3208_s5 + $0x18] sm:$0xff] }
 0x1f2   : > { %v1600_v26 = vpack.c.bf16 %v1316_v23, %v1276_v22  ;;  %v2408_v27 = vpop.permute.xlu0 %2407  ;;  %v1601_v28 = vpack.c.bf16 %v1317_v24, %v1277_v14  ;;  %v1825_v20 = vld [vmem:[%s3223_s22 + $0x18] sm:$0xff] }
 0x1f3   : > { %v2410_v38 = vunpack.i.h.bf16 %v2408_v27  ;;  %v2409_v31 = vunpack.i.l.bf16 %v2408_v27  ;;  %v1231_v32 = vpop.permute.xlu1 %1230 }
 0x1f4   : > { %1690 = vmatprep.subr.bf16.mxu0 %v1601_v28  ;;  %2171 = vmatprep.subr.bf16.mxu1 %v1601_v28  ;;  %v1792_v28 = vld [vmem:[%s3208_s5 + $0x10] sm:$0xff] }
 0x1f5   : > { %v1236_v33 = vsel %vm505_vm3, %v1231_v32, %v2409_v31  ;;  %1691 = vmatpush2.bf16.msra.mxu0 %v1600_v26  ;;  %2185 = vmatpush2.bf16.msra.mxu1 %v1600_v26  ;;  %v1237_v34 = vsel %vm505_vm3, %v2409_v31, %v2410_v38  ;;  %v1824_v32 = vld [vmem:[%s3223_s22 + $0x10] sm:$0xff] }
 0x1f6   : > { %v1598_v36 = vpack.c.bf16 %v1236_v33, %v1198_v13  ;;  %v2413_v42 = vpop.permute.xlu0 %2412  ;;  %v1599_v45 = vpack.c.bf16 %v1237_v34, %v1199_v29 }
 0x1f7   : > { %v2415_v46 = vunpack.i.h.bf16 %v2413_v42  ;;  %v2414_v47 = vunpack.i.l.bf16 %v2413_v42  ;;  %v2418_v25 = vpop.permute.xlu1 %2417 }
 0x1f8   : > { %v2420_v37 = vunpack.i.h.bf16 %v2418_v25  ;;  %v2419_v48 = vunpack.i.l.bf16 %v2418_v25  ;;  %1692 = vmatprep.subr.bf16.mxu0 %v1599_v45  ;;  %2172 = vmatprep.subr.bf16.mxu1 %v1599_v45 }
 0x1f9   : > { %1693 = vmatpush2.bf16.msra.mxu0 %v1598_v36  ;;  %2186 = vmatpush2.bf16.msra.mxu1 %v1598_v36  ;;  %v1136_v49 = vsel %vm1134_vm5, %v2414_v47, %v2415_v46 }
 0x1fa   : > { %v1129_v35 = vpop.permute.xlu0 %1128  ;;  %v1178_v53 = vsel %vm1176_vm7, %v2419_v48, %v2420_v37 }
 0x1fb   : > { %v1135_v40 = vsel %vm1134_vm5, %v1129_v35, %v2414_v47  ;;  %v1171_v55 = vpop.permute.xlu1 %1170  ;;  %v1597_v30 = vpack.c.bf16 %v1178_v53, %v1136_v49 }
 0x1fc   : > { %v1177_v58 = vsel %vm1176_vm7, %v1171_v55, %v2419_v48 }
 0x1fd   : > { %v1596_v39 = vpack.c.bf16 %v1177_v58, %v1135_v40  ;;  %1694 = vmatprep.subr.bf16.mxu0 %v1597_v30  ;;  %2173 = vmatprep.subr.bf16.mxu1 %v1597_v30 }
 0x1ff   : > { %1695 = vmatpush2.bf16.msra.mxu0 %v1596_v39  ;;  %2187 = vmatpush2.bf16.msra.mxu1 %v1596_v39 }
 0x202   : > { %1697 = vmatmul.mubr.bf16.vlgmr.msra.gmra.mxu0 %v2423_v59  ;;  %1707 = vmatmul.mubr.bf16.vlgmr.msra.gmra.mxu1 %v2426_v60 }
 0x207   : > { %v1615_v52 = vpop.permute.xlu0 %1614 }
 0x208   : > { %v1620_v43 = vpop.permute.xlu1 %1619 }
 0x20b   : > { %v1630_v22 = vpop.permute.xlu0 %1629 }
 0x20c   : > { %v1625_v44 = vpop.permute.xlu1 %1624 }
 0x2c2   : > { %v1698_v61 = vpop.f32.mrf.mxu0  ;;  %v1708_v62 = vpop.f32.mrf.mxu1 }
 0x2c3   : > { %v3100_v41 = vadd.f32 %v1708_v62, %v1625_v44  ;;  %v3106_v56 = vadd.f32 %v1698_v61, %v1615_v52 }
 0x2c4   : > { %v1700_v54 = vpop.f32.mrf.mxu0  ;;  %v1710_v51 = vpop.f32.mrf.mxu1 }
 0x2c5   : > { %v3102_v63 = vadd.f32 %v1700_v54, %v1615_v52  ;;  %v3104_v1 = vadd.f32 %v1710_v51, %v1625_v44  ;;  %v1734_v5 = vmul.f32 %v3106_v56, %v3106_v56  ;;  %v1738_v7 = vmul.f32 %v3100_v41, %v3100_v41 }
 0x2c6   : > { %v1702_v4 = vpop.f32.mrf.mxu0  ;;  %v1712_v12 = vpop.f32.mrf.mxu1 }
 0x2c7   : > { %v1735_v57 = vmul.f32 %v3102_v63, %v3102_v63  ;;  %v1723_v2 = vadd.f32 %v3104_v1, %v3100_v41  ;;  %v1717_v3 = vadd.f32 %v3102_v63, %v3106_v56  ;;  %v1739_v6 = vmul.f32 %v3104_v1, %v3104_v1 }
 0x2c8   : > { %v1704_v50 = vpop.f32.mrf.mxu0  ;;  %v3122_v0 = vadd.f32 %v1702_v4, %v1620_v43  ;;  %v1714_v21 = vpop.f32.mrf.mxu1  ;;  %v3146_v14 = vadd.f32 %v1712_v12, %v1630_v22 }
 0x2c9   : > { %1724 = vadd.xlane.f32.xlu0 %v1723_v2  ;;  %1718 = vadd.xlane.f32.xlu1 %v1717_v3  ;;  %v1742_v8 = vadd.f32 %v1735_v57, %v1734_v5  ;;  %v1748_v9 = vadd.f32 %v1739_v6, %v1738_v7  ;;  %v3120_v10 = vadd.f32 %v1704_v50, %v1620_v43 }
 0x2ca   : > { %v3144_v23 = vadd.f32 %v1714_v21, %v1630_v22  ;;  %v1736_v27 = vmul.f32 %v3122_v0, %v3122_v0  ;;  %v1740_v38 = vmul.f32 %v3146_v14, %v3146_v14 }
 0x2cb   : > { %v1720_v11 = vadd.f32 %v3120_v10, %v3122_v0  ;;  %v1737_v24 = vmul.f32 %v3120_v10, %v3120_v10 }
 0x2cc   : > { %v1726_v26 = vadd.f32 %v3144_v23, %v3146_v14  ;;  %v1741_v29 = vmul.f32 %v3144_v23, %v3144_v23 }
 0x2cd   : > { %1743 = vadd.xlane.f32.xlu0 %v1742_v8  ;;  %v1745_v13 = vadd.f32 %v1737_v24, %v1736_v27  ;;  %v1864_v27 = vld [vmem:[%s2638_s14 + $0x10] sm:$0xff] }
 0x2ce   : > { %v1751_v31 = vadd.f32 %v1741_v29, %v1740_v38 }
 0x2d1   : > { %1749 = vadd.xlane.f32.xlu0 %v1748_v9 }
 0x2d5   : > { %1721 = vadd.xlane.f32.xlu0 %v1720_v11 }
 0x2da   : > { %1801 = vperm.xlu1 %2422, %v1791_v15  }
 0x2de   : > { %1828 = vperm.xlu1 %2422, %v1822_v16  }
 0x2eb   : > { %1796 = vperm.xlu0 %2421, %v1790_v17  }
 0x2ef   : > { %1833 = vperm.xlu0 %2421, %v1823_v18   ;;  %v1862_v18 = vld [vmem:[%s2638_s14] sm:$0xff] }
 0x2f3   : > { %1811 = vperm.xlu0 %2421, %v1793_v19  }
 0x2f7   : > { %1843 = vperm.xlu0 %2421, %v1825_v20   ;;  %v1863_v20 = vld [vmem:[%s2638_s14 + $0x8] sm:$0xff] }
 0x302   : > { %1727 = vadd.xlane.f32.xlu1 %v1726_v26 }
 0x306   : > { %1746 = vadd.xlane.f32.xlu1 %v1745_v13 }
 0x317   : > { %1806 = vperm.xlu1 %2422, %v1792_v28   ;;  %v1865_v28 = vld [vmem:[%s2638_s14 + $0x18] sm:$0xff] }
 0x33b   : > { %1752 = vadd.xlane.f32.xlu1 %v1751_v31 }
 0x34c   : > { %1838 = vperm.xlu1 %2422, %v1824_v32  }
 0x352   : > { %v1719_v33 = vpop.xlane.xlu1 %1718  ;;  %v1725_v34 = vpop.xlane.xlu0 %1724 }
 0x353   : > { %v1730_v25 = vmul.f32 0.00390625, %v1719_v33  ;;  %v1732_v60 = vmul.f32 0.00390625, %v1725_v34 }
 0x355   : > { %v1758_v35 = vmul.f32 %v1730_v25, %v1730_v25  ;;  %v1766_v44 = vsub.f32 %v3106_v56, %v1730_v25  ;;  %v1760_v61 = vmul.f32 %v1732_v60, %v1732_v60  ;;  %v1767_v52 = vsub.f32 %v3102_v63, %v1730_v25 }
 0x356   : > { %v1802_v36 = vpop.permute.xlu1 %1801  ;;  %v1744_v42 = vpop.xlane.xlu0 %1743 }
 0x357   : > { %v1754_v48 = vmul.f32 0.00390625, %v1744_v42 }
 0x359   : > { %v1762_v40 = vsub.f32 %v1754_v48, %v1758_v35 }
 0x35a   : > { %v1829_v45 = vpop.permute.xlu1 %1828  ;;  %v1750_v46 = vpop.xlane.xlu0 %1749 }
 0x35b   : > { %v1774_v58 = vadd.f32 1e-05, %v1762_v40  ;;  %v1756_v62 = vmul.f32 0.00390625, %v1750_v46  ;;  %v1770_v46 = vsub.f32 %v3100_v41, %v1732_v60 }
 0x35d   : > { %2429 = vrsqrt.f32 %v1774_v58  ;;  %v1764_v2 = vsub.f32 %v1756_v62, %v1760_v61 }
 0x35e   : > { %v1722_v37 = vpop.xlane.xlu0 %1721 }
 0x35f   : > { %v1731_v53 = vmul.f32 0.00390625, %v1722_v37  ;;  %v1776_v56 = vadd.f32 1e-05, %v1764_v2  ;;  %v1771_v37 = vsub.f32 %v3104_v1, %v1732_v60 }
 0x361   : > { %v1759_v30 = vmul.f32 %v1731_v53, %v1731_v53  ;;  %v1768_v3 = vsub.f32 %v3122_v0, %v1731_v53  ;;  %v1769_v4 = vsub.f32 %v3120_v10, %v1731_v53 }
 0x366   : > { %v1797_v5 = vpop.permute.xlu0 %1796 }
 0x36a   : > { %v2430_v43 = vpop.eup %2429  ;;  %v1834_v16 = vpop.permute.xlu0 %1833 }
 0x36b   : > { %v1782_v54 = vmul.f32 %v2430_v43, %v1766_v44  ;;  %v1783_v57 = vmul.f32 %v2430_v43, %v1767_v52  ;;  %v1867_v43 = vld [vmem:[%s2638_s14 + $0x28] sm:$0xff] }
 0x36d   : > { %v1814_v6 = vmul.f32 %v1797_v5, %v1782_v54  ;;  %v1815_v8 = vmul.f32 %v1797_v5, %v1783_v57 }
 0x36e   : > { %v1812_v61 = vpop.permute.xlu0 %1811 }
 0x36f   : > { %v1846_v9 = vadd.f32 %v1829_v45, %v1814_v6  ;;  %v1847_v63 = vadd.f32 %v1829_v45, %v1815_v8 }
 0x371   : > { %v1854_v17 = vmax.f32 %v1846_v9, 0.0  ;;  %v1855_v19 = vmax.f32 %v1847_v63, 0.0 }
 0x373   : > { %v1870_v21 = vadd.f32 %v1862_v18, %v1854_v17  ;;  %v1871_v26 = vadd.f32 %v1863_v20, %v1855_v19 }
 0x375   : > { %v2149_v38 = vmul.f32 -1.442695, %v1870_v21  ;;  %v2150_v34 = vmul.f32 -1.442695, %v1871_v26 }
 0x38b   : > { %v1728_v47 = vpop.xlane.xlu1 %1727 }
 0x38c   : > { %v1733_v22 = vmul.f32 0.00390625, %v1728_v47 }
 0x38e   : > { %v1761_v32 = vmul.f32 %v1733_v22, %v1733_v22  ;;  %v1772_v60 = vsub.f32 %v3146_v14, %v1733_v22  ;;  %v1773_v62 = vsub.f32 %v3144_v23, %v1733_v22 }
 0x38f   : > { %v1747_v49 = vpop.xlane.xlu1 %1746 }
 0x390   : > { %v1755_v55 = vmul.f32 0.00390625, %v1747_v49 }
 0x392   : > { %v1763_v39 = vsub.f32 %v1755_v55, %v1759_v30 }
 0x393   : > { %v1807_v12 = vpop.permute.xlu1 %1806 }
 0x394   : > { %v1775_v59 = vadd.f32 1e-05, %v1763_v39  ;;  %v1866_v39 = vld [vmem:[%s2638_s14 + $0x20] sm:$0xff] }
 0x396   : > { %2431 = vrsqrt.f32 %v1775_v59 }
 0x397   : > { %2433 = vrsqrt.f32 %v1776_v56  ;;  %v1844_v56 = vpop.permute.xlu0 %1843 }
 0x398   : > { %2435 = vpow2.f32 %v2149_v38 }
 0x399   : > { %2437 = vpow2.f32 %v2150_v34 }
 0x3a3   : > { %v2432_v51 = vpop.eup %2431 }
 0x3a4   : > { %v1784_v7 = vmul.f32 %v2432_v51, %v1768_v3  ;;  %v1785_v50 = vmul.f32 %v2432_v51, %v1769_v4  ;;  %v2434_v45 = vpop.eup %2433 }
 0x3a5   : > { %v1786_v49 = vmul.f32 %v2434_v45, %v1770_v46  ;;  %v1787_v35 = vmul.f32 %v2434_v45, %v1771_v37  ;;  %v2436_v44 = vpop.eup %2435 }
 0x3a6   : > { %v1816_v11 = vmul.f32 %v1802_v36, %v1784_v7  ;;  %v1817_v15 = vmul.f32 %v1802_v36, %v1785_v50  ;;  %v2438_v1 = vpop.eup %2437  ;;  %v1884_v57 = vadd.f32 1.0, %v2436_v44 }
 0x3a7   : > { %v1818_v40 = vmul.f32 %v1807_v12, %v1786_v49  ;;  %v1819_v55 = vmul.f32 %v1807_v12, %v1787_v35  ;;  %v1885_v5 = vadd.f32 1.0, %v2438_v1 }
 0x3a8   : > { %v1848_v0 = vadd.f32 %v1834_v16, %v1816_v11  ;;  %v1849_v10 = vadd.f32 %v1834_v16, %v1817_v15  ;;  %v1868_v15 = vld [vmem:[%s2638_s14 + $0x30] sm:$0xff]  ;;  %v1869_v16 = vld [vmem:[%s2638_s14 + $0x38] sm:$0xff] }
 0x3aa   : > { %v1856_v24 = vmax.f32 %v1848_v0, 0.0  ;;  %v1857_v13 = vmax.f32 %v1849_v10, 0.0 }
 0x3ac   : > { %v1872_v31 = vadd.f32 %v1864_v27, %v1856_v24  ;;  %v1873_v36 = vadd.f32 %v1865_v28, %v1857_v13  ;;  %v1916_v24 = vld [vmem:[#allocation3] sm:$0xff]  ;;  %v1917_v27 = vld [vmem:[#allocation3 + $0x8] sm:$0xff] }
 0x3ae   : > { %v2151_v25 = vmul.f32 -1.442695, %v1872_v31  ;;  %v2152_v48 = vmul.f32 -1.442695, %v1873_v36 }
 0x3c4   : > { %v1753_v29 = vpop.xlane.xlu1 %1752 }
 0x3c5   : > { %v1757_v33 = vmul.f32 0.00390625, %v1753_v29 }
 0x3c7   : > { %v1765_v42 = vsub.f32 %v1757_v33, %v1761_v32 }
 0x3c8   : > { %v1839_v53 = vpop.permute.xlu1 %1838 }
 0x3c9   : > { %v1777_v47 = vadd.f32 1e-05, %v1765_v42  ;;  %v1850_v30 = vadd.f32 %v1839_v53, %v1818_v40  ;;  %v1851_v58 = vadd.f32 %v1839_v53, %v1819_v55 }
 0x3cb   : > { %2439 = vrsqrt.f32 %v1777_v47  ;;  %v1858_v41 = vmax.f32 %v1850_v30, 0.0  ;;  %v1859_v59 = vmax.f32 %v1851_v58, 0.0 }
 0x3cc   : > { %2441 = vpow2.f32 %v2151_v25 }
 0x3cd   : > { %2443 = vpow2.f32 %v2152_v48  ;;  %v1874_v52 = vadd.f32 %v1866_v39, %v1858_v41  ;;  %v1875_v51 = vadd.f32 %v1867_v43, %v1859_v59 }
 0x3ce   : > { %2445 = vrcp.f32 %v1884_v57 }
 0x3cf   : > { %v2153_v50 = vmul.f32 -1.442695, %v1874_v52  ;;  %v2154_v9 = vmul.f32 -1.442695, %v1875_v51  ;;  %2447 = vrcp.f32 %v1885_v5 }
 0x3d1   : > { %2449 = vpow2.f32 %v2153_v50 }
 0x3d2   : > { %2451 = vpow2.f32 %v2154_v9 }
 0x3d8   : > { %v2440_v54 = vpop.eup %2439 }
 0x3d9   : > { %v1788_v2 = vmul.f32 %v2440_v54, %v1772_v60  ;;  %v1789_v3 = vmul.f32 %v2440_v54, %v1773_v62  ;;  %v2442_v4 = vpop.eup %2441 }
 0x3da   : > { %v2444_v6 = vpop.eup %2443  ;;  %v1896_v14 = vadd.f32 1.0, %v2442_v4 }
 0x3db   : > { %v1820_v7 = vmul.f32 %v1812_v61, %v1788_v2  ;;  %v1821_v8 = vmul.f32 %v1812_v61, %v1789_v3  ;;  %v1897_v63 = vadd.f32 1.0, %v2444_v6  ;;  %v2446_v10 = vpop.eup %2445 }
 0x3dc   : > { %2453 = vrcp.f32 %v1896_v14  ;;  %v2448_v20 = vpop.eup %2447  ;;  %v1918_v31 = vmul.f32 %v2446_v10, %v1916_v24 }
 0x3dd   : > { %v1852_v11 = vadd.f32 %v1844_v56, %v1820_v7  ;;  %v1853_v23 = vadd.f32 %v1844_v56, %v1821_v8  ;;  %2455 = vrcp.f32 %v1897_v63  ;;  %v1919_v33 = vmul.f32 %v2448_v20, %v1917_v27 }
 0x3de   : > { %v2450_v12 = vpop.eup %2449 }
 0x3df   : > { %v1860_v17 = vmax.f32 %v1852_v11, 0.0  ;;  %v1861_v0 = vmax.f32 %v1853_v23, 0.0  ;;  %v2452_v21 = vpop.eup %2451  ;;  %v1908_v13 = vadd.f32 1.0, %v2450_v12 }
 0x3e0   : > { %v1909_v29 = vadd.f32 1.0, %v2452_v21 }
 0x3e1   : > { %v1876_v18 = vadd.f32 %v1868_v15, %v1860_v17  ;;  %v1877_v19 = vadd.f32 %v1869_v16, %v1861_v0 }
 0x3e3   : > { %2457 = vtanh.f32 %v1876_v18 }
 0x3e4   : > { %2459 = vtanh.f32 %v1877_v19 }
 0x3e5   : > { %2461 = vrcp.f32 %v1908_v13 }
 0x3e6   : > { %2463 = vrcp.f32 %v1909_v29 }
 0x3e9   : > { %v2454_v22 = vpop.eup %2453 }
 0x3ea   : > { %v2456_v26 = vpop.eup %2455 }
 0x3f0   : > { %v2458_v28 = vpop.eup %2457 }
 0x3f1   : > { %v2460_v38 = vpop.eup %2459  ;;  %v1920_v32 = vmul.f32 %v2458_v28, %v2454_v22 }
 0x3f2   : > { %v1921_v34 = vmul.f32 %v2460_v38, %v2456_v26  ;;  %v2462_v45 = vpop.eup %2461 }
 0x3f3   : > { %v1922_v36 = vadd.f32 %v1920_v32, %v1918_v31  ;;  %v2464_v46 = vpop.eup %2463 }
 0x3f4   : > { %v1923_v42 = vadd.f32 %v1921_v34, %v1919_v33 }
 0x3f5   : > { %2465 = vtanh.f32 %v1922_v36  ;;  %1928 = vst [vmem:[#allocation3] sm:$0xff] %v1922_v36  ;;  %1946 = vst [vmem:[%s2643_s6] sm:$0xff] %v1922_v36 }
 0x3f6   : > { %2467 = vtanh.f32 %v1923_v42  ;;  %1929 = vst [vmem:[#allocation3 + $0x8] sm:$0xff] %v1923_v42  ;;  %1947 = vst [vmem:[%s2643_s6 + $0x8] sm:$0xff] %v1923_v42 }
 0x402   : > { %v2466_v25 = vpop.eup %2465 }
 0x403   : > { %v2468_v47 = vpop.eup %2467  ;;  %v1926_v37 = vmul.f32 %v2466_v25, %v2462_v45 }
 0x404   : > { %v1927_v48 = vmul.f32 %v2468_v47, %v2464_v46 }
 0x405   : > { %1932 = vrot.lane.b32.xlu1 %v1926_v37, %s2514_s29  ;;  %1944 = vst [vmem:[%s2648_s24] sm:$0xff] %v1926_v37 }
 0x406   : > { %1934 = vrot.lane.b32.xlu0 %v1927_v48, %s2514_s29  ;;  %1945 = vst [vmem:[%s2648_s24 + $0x8] sm:$0xff] %v1927_v48 }
 0x477   : > { %v1933_v49 = vpop.permute.xlu1 %1932 }
 0x478   : > { %v1935_v35 = vpop.permute.xlu0 %1934  ;;  %1941 = vst.msk [vmem:[#allocation2] sm:$0xff] %vm1940_vm8, %v1933_v49 }
 0x479   : > { %1943 = vst.msk [vmem:[#allocation2 + $0x10] sm:$0xff] %vm991_vm6, %v1935_v35  ;;  %v1936_v53 = vsel %vm991_vm6, %v1933_v49, %v1935_v35 }
 0x47a   : > { %1942 = vst [vmem:[#allocation2 + $0x8] sm:$0xff] %v1936_v53 }
 0x47b PF: > { %s3224_s6 = sld [smem:[#allocation7_spill]] }
 0x47c   : > { %s3225_s30 = sld [smem:[#allocation5_spill]] }
 0x47d   : > { %s3226_s10 = sld [smem:[#allocation6_spill]] }
 0x47e   : > { %s3227_s11 = sld [smem:[#allocation8_spill]] }
 0x47f   : > { %s3228_s12 = sld [smem:[#allocation9_spill]] }
 0x481   : > { %s20_s13 = sadd.s32 1, %s3224_s6  }
 0x482   : > { %p17_p8 = scmp.ge.s32.totalorder %s20_s13, 8  }
 0x484   :  { %19 = sbr.rel (!%p17_p8) target bundleno = 3 (0x3), region = 130 }

</bundles_post_ra>
